<compile_context>
chip_gen: v7x
topology: tpu7x:2x2x1
jax: 0.10.0
libtpu: 0.0.40
codegen_flags: <defaults>
</compile_context>

<pallas_src>
import functools

import jax
import jax.numpy as jnp
from jax import lax
from jax.experimental import pallas as pl
from jax.experimental.pallas import tpu as pltpu

# Model configuration (EGSC-T defaults for gnn_operator='gcn').
NUM_LABELS = 16
F1, F2, F3 = 64, 32, 16
BOTTLENECK = 16
FEAT = (F1 + F2 + F3) // 2          # 56 = feature_count
K1, K2, K3 = F1 // 2, F2 // 2, F3 // 2   # tensor_neurons per NTN level

# Demo sizes.
N_GRAPHS = 4                        # graph pairs in the batch
NODES_PER_GRAPH = 6
N_NODES = N_GRAPHS * NODES_PER_GRAPH

# ---------------------------------------------------------------------------
# Packed tower-weight slab: one (rows, 128) bf16 buffer for all small weights.
# Row starts are multiples of 16 so every slice is sublane-tile aligned (bf16).
# ---------------------------------------------------------------------------
TOWER_W_SPECS = (                    # (name, rows, cols)
    ("cw1", NUM_LABELS, F1),
    ("cw2", F1, F2),
    ("cw3", F2, F3),
    ("aw11", F1, F1 // 4),
    ("aw12", F1 // 4, F1),
    ("aw21", F2, F2 // 4),
    ("aw22", F2 // 4, F2),
    ("aw31", F3, F3 // 4),
    ("aw32", F3 // 4, F3),
)


def _pack_offsets(specs, align=16):
    offs, r = {}, 0
    for name, rows, _ in specs:
        offs[name] = r
        r = ((r + rows + align - 1) // align) * align
    return offs, r


TOWER_W_OFF, TOWER_W_ROWS = _pack_offsets(TOWER_W_SPECS)
TOWER_W_SHAPE = {name: (rows, cols) for name, rows, cols in TOWER_W_SPECS}

# Packed bias slab rows (one (16, 64) f32 buffer).
BIAS_ROW = {name: i for i, name in enumerate(
    ("conv1", "conv2", "conv3",
     "att1a", "att1b", "att2a", "att2b", "att3a", "att3b",
     "ntn1", "ntn2", "ntn3", "se1", "se2", "fc"))}
BIAS_WIDTH = {
    "conv1": F1, "conv2": F2, "conv3": F3,
    "att1a": F1 // 4, "att1b": F1,
    "att2a": F2 // 4, "att2b": F2,
    "att3a": F3 // 4, "att3b": F3,
    "ntn1": K1, "ntn2": K2, "ntn3": K3,
    "se1": FEAT // 4, "se2": FEAT, "fc": BOTTLENECK,
}
BIAS_ROWS, BIAS_COLS = 16, 64


# ---------------------------------------------------------------------------
# Fused kernel: GCN x3 + attention pooling x3 (both graph sides, block-diag) +
# 3x TensorNetwork + SE score-attention + bottleneck head.
# ---------------------------------------------------------------------------
def egsct_kernel(a_ref, x_ref, p_ref, pm_ref, pt_ref, tw_ref,
                 wt1_ref, wb1_ref, wt2_ref, wb2_ref, wt3_ref, wb3_ref,
                 hw1_ref, hw2_ref, wfc_ref, bias_ref, out_ref, *, n_graphs):
    f32, bf16 = jnp.float32, jnp.bfloat16

    a = a_ref[...]          # (2N, 2N) bf16 block-diag normalized adjacency
    p = p_ref[...]          # (2B, 2N) bf16 one-hot membership       (scatter_add)
    pm = pm_ref[...]        # (2B, 2N) bf16 row-normalized membership (scatter_mean)
    pt = pt_ref[...]        # (2N, 2B) bf16 membership^T              (gather per node)
    x = x_ref[...]          # (2N, F0) f32 node features, both sides stacked
    bias = bias_ref[...]    # (16, 64) f32 packed biases

    def b_of(name):
        r = BIAS_ROW[name]
        return bias[r:r + 1, :BIAS_WIDTH[name]]

    def w_of(name):
        r = TOWER_W_OFF[name]
        rows, cols = TOWER_W_SHAPE[name]
        return tw_ref[r:r + rows, :cols]                       # bf16 weight slice

    def bdot(xa, wb):
        # bf16 MXU matmul, f32 accumulation; element-wise math stays f32.
        return jnp.dot(xa.astype(bf16), wb, preferred_element_type=f32)

    # ---- GCNConv + ReLU (dropout = identity in eval mode) -------------------
    def gcn(h, wname, bname):
        hw = bdot(h, w_of(wname))                                        # X @ W
        ah = jnp.dot(a, hw.astype(bf16), preferred_element_type=f32)     # D^-1/2(A+I)D^-1/2 (XW)
        return jax.nn.relu(ah + b_of(bname))

    # ---- AttentionModule (fc: Linear -> ReLU -> Linear -> Tanh) -------------
    def att_pool(h, w1name, b1name, w2name, b2name):
        z = jax.nn.relu(bdot(h, w_of(w1name)) + b_of(b1name))
        att = jnp.tanh(bdot(z, w_of(w2name)) + b_of(b2name))
        h2 = att * h + h
        h2b = h2.astype(bf16)
        mean = jnp.dot(pm, h2b, preferred_element_type=f32)              # scatter_mean
        tg = jnp.tanh(mean)
        tg_nodes = jnp.dot(pt, tg.astype(bf16), preferred_element_type=f32)  # tg[batch]
        coefs = jax.nn.sigmoid(
            jnp.sum(h2 * tg_nodes, axis=1, keepdims=True) * 10.0)        # (2N, 1)
        return jnp.dot(p, (coefs * h2).astype(bf16), preferred_element_type=f32)  # scatter_add

    feats1 = gcn(x, "cw1", "conv1")
    pool1 = att_pool(feats1, "aw11", "att1a", "aw12", "att1b")           # (2B, F1)
    feats2 = gcn(feats1, "cw2", "conv2")
    pool2 = att_pool(feats2, "aw21", "att2a", "aw22", "att2b")           # (2B, F2)
    feats3 = gcn(feats2, "cw3", "conv3")
    pool3 = att_pool(feats3, "aw31", "att3a", "aw32", "att3b")           # (2B, F3)

    # ---- TensorNetworkModule -------------------------------------------------
    def ntn(pool, wt_r, wb_r, bname, k, d):
        e1 = pool[:n_graphs]                                             # (B, d) side 1
        e2 = pool[n_graphs:]                                             # (B, d) side 2
        # scoring[b,kk] = e1[b] . W[:,:,kk] . e2[b]
        # one wide (B,d)x(d,k*d) bf16 MXU matmul (wt pre-flattened: wt[i, kk*d+j] = W[i,j,kk])
        u = jnp.dot(e1.astype(bf16), wt_r[...], preferred_element_type=f32)   # (B, k*d)
        e2_tiled = jnp.concatenate([e2] * k, axis=1)                     # (B, k*d)
        # Exact f32 group-sum over j (blocks of d lanes) on the MXU via a 0/1
        # selection matrix built in-kernel (2-D iota + compares).
        i0 = lax.broadcasted_iota(jnp.int32, (k * d, k), 0)
        i1 = lax.broadcasted_iota(jnp.int32, (k * d, k), 1)
        gsel = ((i0 >= i1 * d) & (i0 < (i1 + 1) * d)).astype(f32)        # (k*d, k)
        scoring = jnp.dot(u * e2_tiled, gsel, preferred_element_type=f32)  # (B, k)
        wb = wb_r[...]                                                   # (2d, k) bf16
        block = bdot(e1, wb[:d]) + bdot(e2, wb[d:])                      # == [e1|e2] @ Wb^T
        return jax.nn.relu(scoring + block + b_of(bname))

    s1 = ntn(pool1, wt1_ref, wb1_ref, "ntn1", K1, F1)
    s2 = ntn(pool2, wt2_ref, wb2_ref, "ntn2", K2, F2)
    s3 = ntn(pool3, wt3_ref, wb3_ref, "ntn3", K3, F3)

    # torch.cat((scores_level3, scores_level2, scores_level1), dim=1)
    scores = jnp.concatenate([s3, s2, s1], axis=1)                       # (B, 56)
    # SEAttentionModule: Linear -> ReLU -> Linear -> Sigmoid
    h = jax.nn.relu(bdot(scores, hw1_ref[...]) + b_of("se1"))
    se = jax.nn.sigmoid(bdot(h, hw2_ref[...]) + b_of("se2"))
    z = se * scores + scores
    # fully_connected_first + ReLU
    out_ref[...] = jax.nn.relu(bdot(z, wfc_ref[...]) + b_of("fc"))


def egsct_forward(params, a_blk, x_all, p_blk, pm_blk, pt_blk):
    n_graphs = p_blk.shape[0] // 2
    args = (a_blk, x_all, p_blk, pm_blk, pt_blk, params["tower_w"],
            params["ntn1_wt"], params["ntn1_wbT"],
            params["ntn2_wt"], params["ntn2_wbT"],
            params["ntn3_wt"], params["ntn3_wbT"],
            params["hw1"], params["hw2"], params["wfc"], params["bias"])
    kernel = functools.partial(egsct_kernel, n_graphs=n_graphs)
    vmem = pltpu.MemorySpace.VMEM
    return pl.pallas_call(
        kernel,
        out_shape=jax.ShapeDtypeStruct((n_graphs, BOTTLENECK), jnp.float32),
        in_specs=[pl.BlockSpec(memory_space=vmem) for _ in args],
        out_specs=pl.BlockSpec(memory_space=vmem),
    )(*args)


# ---------------------------------------------------------------------------
# Glue: graph preprocessing + deterministic parameter init
# ---------------------------------------------------------------------------
def build_norm_adj(edge_index, n):
    """Dense symmetric GCN-normalized adjacency: D^-1/2 (A + I) D^-1/2."""
    a = jnp.zeros((n, n), jnp.float32)
    a = a.at[edge_index[0], edge_index[1]].set(1.0)
    a = a.at[edge_index[1], edge_index[0]].set(1.0)
    a = jnp.minimum(a + jnp.eye(n, dtype=jnp.float32), 1.0)
    deg = a.sum(axis=1)
    dinv = jax.lax.rsqrt(deg)
    return a * dinv[:, None] * dinv[None, :]


def build_batch_matrices(batch, n_slots):
    """One-hot membership (scatter_add), transpose (gather), row-normalized (scatter_mean)."""
    p = (batch[None, :] == jnp.arange(n_slots)[:, None]).astype(jnp.float32)
    counts = jnp.maximum(p.sum(axis=1, keepdims=True), 1.0)
    return p, p.T, p / counts


def init_params(key):
    keys = iter(jax.random.split(key, 64))

    def glorot(shape):
        fan_in, fan_out = shape[0], shape[-1]
        lim = (6.0 / (fan_in + fan_out)) ** 0.5
        return jax.random.uniform(next(keys), shape, jnp.float32, -lim, lim)

    params = {}

    # Packed tower-weight slab (GCN convs + attention fc's), bf16, 1 DMA.
    slab = jnp.zeros((TOWER_W_ROWS, 128), jnp.float32)
    for name, rows, cols in TOWER_W_SPECS:
        r = TOWER_W_OFF[name]
        slab = slab.at[r:r + rows, :cols].set(glorot((rows, cols)))
    params["tower_w"] = slab.astype(jnp.bfloat16)

    # TensorNetworkModule weights, pre-flattened for the wide MXU matmul:
    #   wt_flat[i, kk*d + j] = W[i, j, kk]   (torch weight_matrix layout (d, d, k))
    for name, d, k in (("ntn1", F1, K1), ("ntn2", F2, K2), ("ntn3", F3, K3)):
        w3 = glorot((d, d, k))
        params[name + "_wt"] = (jnp.transpose(w3, (0, 2, 1))
                                .reshape(d, k * d).astype(jnp.bfloat16))
        params[name + "_wbT"] = glorot((k, 2 * d)).T.astype(jnp.bfloat16)   # (2d, k)

    params["hw1"] = glorot((FEAT, FEAT // 4)).astype(jnp.bfloat16)
    params["hw2"] = glorot((FEAT // 4, FEAT)).astype(jnp.bfloat16)
    params["wfc"] = glorot((FEAT, BOTTLENECK)).astype(jnp.bfloat16)

    # Packed bias slab, f32 (added after f32 accumulation).
    bias = jnp.zeros((BIAS_ROWS, BIAS_COLS), jnp.float32)
    for name, row in BIAS_ROW.items():
        w = BIAS_WIDTH[name]
        vals = jax.random.uniform(next(keys), (w,), jnp.float32, -0.1, 0.1)
        bias = bias.at[row, :w].set(vals)
    params["bias"] = bias
    return params


def make_edges(key):
    src, dst = [], []
    for g in range(N_GRAPHS):
        base = g * NODES_PER_GRAPH
        for i in range(NODES_PER_GRAPH - 1):
            src.append(base + i)
            dst.append(base + i + 1)
    src = jnp.array(src, jnp.int32)
    dst = jnp.array(dst, jnp.int32)
    extra = jax.random.randint(key, (2, N_GRAPHS * 3), 0, NODES_PER_GRAPH)
    offs = jnp.repeat(jnp.arange(N_GRAPHS) * NODES_PER_GRAPH, 3)
    return jnp.stack([jnp.concatenate([src, extra[0] + offs]),
                      jnp.concatenate([dst, extra[1] + offs])])


# ---------------------------------------------------------------------------
# Demo
# ---------------------------------------------------------------------------
if __name__ == "__main__":
    key = jax.random.PRNGKey(0)
    k_par, k_x1, k_x2, k_e1, k_e2 = jax.random.split(key, 5)

    params = init_params(k_par)

    x1 = jax.random.normal(k_x1, (N_NODES, NUM_LABELS), jnp.float32)
    x2 = jax.random.normal(k_x2, (N_NODES, NUM_LABELS), jnp.float32)
    a1 = build_norm_adj(make_edges(k_e1), N_NODES)
    a2 = build_norm_adj(make_edges(k_e2), N_NODES)

    # Both graph sides stacked into one body: block-diagonal adjacency, features
    # stacked on rows, graph slots 0..B-1 = side 1, B..2B-1 = side 2.
    a_blk = jnp.zeros((2 * N_NODES, 2 * N_NODES), jnp.float32)
    a_blk = a_blk.at[:N_NODES, :N_NODES].set(a1).at[N_NODES:, N_NODES:].set(a2)
    a_blk = a_blk.astype(jnp.bfloat16)      # bf16 MXU path, f32 accumulation
    x_all = jnp.concatenate([x1, x2], axis=0)

    batch = jnp.repeat(jnp.arange(N_GRAPHS), NODES_PER_GRAPH)
    batch_all = jnp.concatenate([batch, batch + N_GRAPHS])
    p, pt, pm = build_batch_matrices(batch_all, 2 * N_GRAPHS)
    p_blk = p.astype(jnp.bfloat16)          # exact 0/1 in bf16
    pt_blk = pt.astype(jnp.bfloat16)
    pm_blk = pm.astype(jnp.bfloat16)

    out = jax.jit(egsct_forward)(params, a_blk, x_all, p_blk, pm_blk, pt_blk)
    out = jax.block_until_ready(out)
    assert out.shape == (N_GRAPHS, BOTTLENECK)
    assert bool(jnp.all(jnp.isfinite(out)))
    print("KERNEL_OK")
</pallas_src>

<mosaic_0001>
module attributes {stable_mosaic.version = 11 : i64} {
  func.func @egsct_kernel(%arg0: memref<48x48xbf16, #tpu.memory_space<vmem>>, %arg1: memref<48x16xf32, #tpu.memory_space<vmem>>, %arg2: memref<8x48xbf16, #tpu.memory_space<vmem>>, %arg3: memref<8x48xbf16, #tpu.memory_space<vmem>>, %arg4: memref<48x8xbf16, #tpu.memory_space<vmem>>, %arg5: memref<272x128xbf16, #tpu.memory_space<vmem>>, %arg6: memref<64x2048xbf16, #tpu.memory_space<vmem>>, %arg7: memref<128x32xbf16, #tpu.memory_space<vmem>>, %arg8: memref<32x512xbf16, #tpu.memory_space<vmem>>, %arg9: memref<64x16xbf16, #tpu.memory_space<vmem>>, %arg10: memref<16x128xbf16, #tpu.memory_space<vmem>>, %arg11: memref<32x8xbf16, #tpu.memory_space<vmem>>, %arg12: memref<56x14xbf16, #tpu.memory_space<vmem>>, %arg13: memref<14x56xbf16, #tpu.memory_space<vmem>>, %arg14: memref<56x16xbf16, #tpu.memory_space<vmem>>, %arg15: memref<16x64xf32, #tpu.memory_space<vmem>>, %arg16: memref<4x16xf32, #tpu.memory_space<vmem>>) attributes {dimension_semantics = [], scalar_prefetch = 0 : i64, scratch_operands = 0 : i64, tpu.core_type = #tpu.core_type<tc>} {
    %c0 = arith.constant 0 : index
    %c0_0 = arith.constant 0 : index
    %0 = vector.load %arg0[%c0, %c0_0] : memref<48x48xbf16, #tpu.memory_space<vmem>>, vector<48x48xbf16>
    %c0_1 = arith.constant 0 : index
    %c0_2 = arith.constant 0 : index
    %1 = vector.load %arg2[%c0_1, %c0_2] : memref<8x48xbf16, #tpu.memory_space<vmem>>, vector<8x48xbf16>
    %c0_3 = arith.constant 0 : index
    %c0_4 = arith.constant 0 : index
    %2 = vector.load %arg3[%c0_3, %c0_4] : memref<8x48xbf16, #tpu.memory_space<vmem>>, vector<8x48xbf16>
    %c0_5 = arith.constant 0 : index
    %c0_6 = arith.constant 0 : index
    %3 = vector.load %arg4[%c0_5, %c0_6] : memref<48x8xbf16, #tpu.memory_space<vmem>>, vector<48x8xbf16>
    %c0_7 = arith.constant 0 : index
    %c0_8 = arith.constant 0 : index
    %4 = vector.load %arg1[%c0_7, %c0_8] : memref<48x16xf32, #tpu.memory_space<vmem>>, vector<48x16xf32>
    %c0_9 = arith.constant 0 : index
    %c0_10 = arith.constant 0 : index
    %5 = vector.load %arg15[%c0_9, %c0_10] : memref<16x64xf32, #tpu.memory_space<vmem>>, vector<16x64xf32>
    %c0_11 = arith.constant 0 : index
    %c0_12 = arith.constant 0 : index
    %6 = vector.load %arg5[%c0_11, %c0_12] : memref<272x128xbf16, #tpu.memory_space<vmem>>, vector<16x64xbf16>
    %7 = arith.truncf %4 : vector<48x16xf32> to vector<48x16xbf16>
    %cst = arith.constant dense<0.000000e+00> : vector<48x64xf32>
    %8 = tpu.matmul %7, %6, %cst {dimension_numbers = #tpu.dot_dimension_numbers<[1], [0], [0], [1], [0, 0, 1, 1], [], []>} : vector<48x16xbf16>, vector<16x64xbf16>, vector<48x64xf32> -> vector<48x64xf32>
    %9 = arith.truncf %8 : vector<48x64xf32> to vector<48x64xbf16>
    %cst_13 = arith.constant dense<0.000000e+00> : vector<48x64xf32>
    %10 = tpu.matmul %0, %9, %cst_13 {dimension_numbers = #tpu.dot_dimension_numbers<[1], [0], [0], [1], [0, 0, 1, 1], [], []>} : vector<48x48xbf16>, vector<48x64xbf16>, vector<48x64xf32> -> vector<48x64xf32>
    %11 = vector.extract_strided_slice %5 {offsets = [0, 0], sizes = [1, 64], strides = [1, 1]} : vector<16x64xf32> to vector<1x64xf32>
    %12 = vector.broadcast %11 : vector<1x64xf32> to vector<48x64xf32>
    %13 = arith.addf %10, %12 : vector<48x64xf32>
    %cst_14 = arith.constant 0.000000e+00 : f32
    %14 = vector.broadcast %cst_14 : f32 to vector<48x64xf32>
    %15 = arith.maximumf %13, %14 : vector<48x64xf32>
    %c112 = arith.constant 112 : index
    %c0_15 = arith.constant 0 : index
    %16 = vector.load %arg5[%c112, %c0_15] : memref<272x128xbf16, #tpu.memory_space<vmem>>, vector<64x16xbf16>
    %17 = arith.truncf %15 : vector<48x64xf32> to vector<48x64xbf16>
    %cst_16 = arith.constant dense<0.000000e+00> : vector<48x16xf32>
    %18 = tpu.matmul %17, %16, %cst_16 {dimension_numbers = #tpu.dot_dimension_numbers<[1], [0], [0], [1], [0, 0, 1, 1], [], []>} : vector<48x64xbf16>, vector<64x16xbf16>, vector<48x16xf32> -> vector<48x16xf32>
    %19 = vector.extract_strided_slice %5 {offsets = [3, 0], sizes = [1, 16], strides = [1, 1]} : vector<16x64xf32> to vector<1x16xf32>
    %20 = vector.broadcast %19 : vector<1x16xf32> to vector<48x16xf32>
    %21 = arith.addf %18, %20 : vector<48x16xf32>
    %cst_17 = arith.constant 0.000000e+00 : f32
    %22 = vector.broadcast %cst_17 : f32 to vector<48x16xf32>
    %23 = arith.maximumf %21, %22 : vector<48x16xf32>
    %c176 = arith.constant 176 : index
    %c0_18 = arith.constant 0 : index
    %24 = vector.load %arg5[%c176, %c0_18] : memref<272x128xbf16, #tpu.memory_space<vmem>>, vector<16x64xbf16>
    %25 = arith.truncf %23 : vector<48x16xf32> to vector<48x16xbf16>
    %cst_19 = arith.constant dense<0.000000e+00> : vector<48x64xf32>
    %26 = tpu.matmul %25, %24, %cst_19 {dimension_numbers = #tpu.dot_dimension_numbers<[1], [0], [0], [1], [0, 0, 1, 1], [], []>} : vector<48x16xbf16>, vector<16x64xbf16>, vector<48x64xf32> -> vector<48x64xf32>
    %27 = vector.extract_strided_slice %5 {offsets = [4, 0], sizes = [1, 64], strides = [1, 1]} : vector<16x64xf32> to vector<1x64xf32>
    %28 = vector.broadcast %27 : vector<1x64xf32> to vector<48x64xf32>
    %29 = arith.addf %26, %28 : vector<48x64xf32>
    %30 = math.tanh %29 : vector<48x64xf32>
    %31 = arith.mulf %30, %15 : vector<48x64xf32>
    %32 = arith.addf %31, %15 : vector<48x64xf32>
    %33 = arith.truncf %32 : vector<48x64xf32> to vector<48x64xbf16>
    %cst_20 = arith.constant dense<0.000000e+00> : vector<8x64xf32>
    %34 = tpu.matmul %2, %33, %cst_20 {dimension_numbers = #tpu.dot_dimension_numbers<[1], [0], [0], [1], [0, 0, 1, 1], [], []>} : vector<8x48xbf16>, vector<48x64xbf16>, vector<8x64xf32> -> vector<8x64xf32>
    %35 = math.tanh %34 : vector<8x64xf32>
    %36 = arith.truncf %35 : vector<8x64xf32> to vector<8x64xbf16>
    %cst_21 = arith.constant dense<0.000000e+00> : vector<48x64xf32>
    %37 = tpu.matmul %3, %36, %cst_21 {dimension_numbers = #tpu.dot_dimension_numbers<[1], [0], [0], [1], [0, 0, 1, 1], [], []>} : vector<48x8xbf16>, vector<8x64xbf16>, vector<48x64xf32> -> vector<48x64xf32>
    %38 = arith.mulf %32, %37 : vector<48x64xf32>
    %cst_22 = arith.constant dense<0.000000e+00> : vector<48xf32>
    %39 = vector.multi_reduction <add>, %38, %cst_22 [1] : vector<48x64xf32> to vector<48xf32>
    %40 = vector.shape_cast %39 : vector<48xf32> to vector<48x1xf32>
    %cst_23 = arith.constant 1.000000e+01 : f32
    %41 = vector.broadcast %cst_23 : f32 to vector<48x1xf32>
    %42 = arith.mulf %40, %41 : vector<48x1xf32>
    %43 = arith.negf %42 : vector<48x1xf32>
    %44 = math.exp %43 : vector<48x1xf32>
    %cst_24 = arith.constant 1.000000e+00 : f32
    %45 = vector.broadcast %cst_24 : f32 to vector<48x1xf32>
    %46 = arith.addf %45, %44 : vector<48x1xf32>
    %47 = arith.divf %45, %46 : vector<48x1xf32>
    %48 = vector.broadcast %47 : vector<48x1xf32> to vector<48x64xf32>
    %49 = arith.mulf %48, %32 : vector<48x64xf32>
    %50 = arith.truncf %49 : vector<48x64xf32> to vector<48x64xbf16>
    %cst_25 = arith.constant dense<0.000000e+00> : vector<8x64xf32>
    %51 = tpu.matmul %1, %50, %cst_25 {dimension_numbers = #tpu.dot_dimension_numbers<[1], [0], [0], [1], [0, 0, 1, 1], [], []>} : vector<8x48xbf16>, vector<48x64xbf16>, vector<8x64xf32> -> vector<8x64xf32>
    %c16 = arith.constant 16 : index
    %c0_26 = arith.constant 0 : index
    %52 = vector.load %arg5[%c16, %c0_26] : memref<272x128xbf16, #tpu.memory_space<vmem>>, vector<64x32xbf16>
    %53 = arith.truncf %15 : vector<48x64xf32> to vector<48x64xbf16>
    %cst_27 = arith.constant dense<0.000000e+00> : vector<48x32xf32>
    %54 = tpu.matmul %53, %52, %cst_27 {dimension_numbers = #tpu.dot_dimension_numbers<[1], [0], [0], [1], [0, 0, 1, 1], [], []>} : vector<48x64xbf16>, vector<64x32xbf16>, vector<48x32xf32> -> vector<48x32xf32>
    %55 = arith.truncf %54 : vector<48x32xf32> to vector<48x32xbf16>
    %cst_28 = arith.constant dense<0.000000e+00> : vector<48x32xf32>
    %56 = tpu.matmul %0, %55, %cst_28 {dimension_numbers = #tpu.dot_dimension_numbers<[1], [0], [0], [1], [0, 0, 1, 1], [], []>} : vector<48x48xbf16>, vector<48x32xbf16>, vector<48x32xf32> -> vector<48x32xf32>
    %57 = vector.extract_strided_slice %5 {offsets = [1, 0], sizes = [1, 32], strides = [1, 1]} : vector<16x64xf32> to vector<1x32xf32>
    %58 = vector.broadcast %57 : vector<1x32xf32> to vector<48x32xf32>
    %59 = arith.addf %56, %58 : vector<48x32xf32>
    %cst_29 = arith.constant 0.000000e+00 : f32
    %60 = vector.broadcast %cst_29 : f32 to vector<48x32xf32>
    %61 = arith.maximumf %59, %60 : vector<48x32xf32>
    %c192 = arith.constant 192 : index
    %c0_30 = arith.constant 0 : index
    %62 = vector.load %arg5[%c192, %c0_30] : memref<272x128xbf16, #tpu.memory_space<vmem>>, vector<32x8xbf16>
    %63 = arith.truncf %61 : vector<48x32xf32> to vector<48x32xbf16>
    %cst_31 = arith.constant dense<0.000000e+00> : vector<48x8xf32>
    %64 = tpu.matmul %63, %62, %cst_31 {dimension_numbers = #tpu.dot_dimension_numbers<[1], [0], [0], [1], [0, 0, 1, 1], [], []>} : vector<48x32xbf16>, vector<32x8xbf16>, vector<48x8xf32> -> vector<48x8xf32>
    %65 = vector.extract_strided_slice %5 {offsets = [5, 0], sizes = [1, 8], strides = [1, 1]} : vector<16x64xf32> to vector<1x8xf32>
    %66 = vector.broadcast %65 : vector<1x8xf32> to vector<48x8xf32>
    %67 = arith.addf %64, %66 : vector<48x8xf32>
    %cst_32 = arith.constant 0.000000e+00 : f32
    %68 = vector.broadcast %cst_32 : f32 to vector<48x8xf32>
    %69 = arith.maximumf %67, %68 : vector<48x8xf32>
    %c224 = arith.constant 224 : index
    %c0_33 = arith.constant 0 : index
    %70 = vector.load %arg5[%c224, %c0_33] : memref<272x128xbf16, #tpu.memory_space<vmem>>, vector<8x32xbf16>
    %71 = arith.truncf %69 : vector<48x8xf32> to vector<48x8xbf16>
    %cst_34 = arith.constant dense<0.000000e+00> : vector<48x32xf32>
    %72 = tpu.matmul %71, %70, %cst_34 {dimension_numbers = #tpu.dot_dimension_numbers<[1], [0], [0], [1], [0, 0, 1, 1], [], []>} : vector<48x8xbf16>, vector<8x32xbf16>, vector<48x32xf32> -> vector<48x32xf32>
    %73 = vector.extract_strided_slice %5 {offsets = [6, 0], sizes = [1, 32], strides = [1, 1]} : vector<16x64xf32> to vector<1x32xf32>
    %74 = vector.broadcast %73 : vector<1x32xf32> to vector<48x32xf32>
    %75 = arith.addf %72, %74 : vector<48x32xf32>
    %76 = math.tanh %75 : vector<48x32xf32>
    %77 = arith.mulf %76, %61 : vector<48x32xf32>
    %78 = arith.addf %77, %61 : vector<48x32xf32>
    %79 = arith.truncf %78 : vector<48x32xf32> to vector<48x32xbf16>
    %cst_35 = arith.constant dense<0.000000e+00> : vector<8x32xf32>
    %80 = tpu.matmul %2, %79, %cst_35 {dimension_numbers = #tpu.dot_dimension_numbers<[1], [0], [0], [1], [0, 0, 1, 1], [], []>} : vector<8x48xbf16>, vector<48x32xbf16>, vector<8x32xf32> -> vector<8x32xf32>
    %81 = math.tanh %80 : vector<8x32xf32>
    %82 = arith.truncf %81 : vector<8x32xf32> to vector<8x32xbf16>
    %cst_36 = arith.constant dense<0.000000e+00> : vector<48x32xf32>
    %83 = tpu.matmul %3, %82, %cst_36 {dimension_numbers = #tpu.dot_dimension_numbers<[1], [0], [0], [1], [0, 0, 1, 1], [], []>} : vector<48x8xbf16>, vector<8x32xbf16>, vector<48x32xf32> -> vector<48x32xf32>
    %84 = arith.mulf %78, %83 : vector<48x32xf32>
    %cst_37 = arith.constant dense<0.000000e+00> : vector<48xf32>
    %85 = vector.multi_reduction <add>, %84, %cst_37 [1] : vector<48x32xf32> to vector<48xf32>
    %86 = vector.shape_cast %85 : vector<48xf32> to vector<48x1xf32>
    %cst_38 = arith.constant 1.000000e+01 : f32
    %87 = vector.broadcast %cst_38 : f32 to vector<48x1xf32>
    %88 = arith.mulf %86, %87 : vector<48x1xf32>
    %89 = arith.negf %88 : vector<48x1xf32>
    %90 = math.exp %89 : vector<48x1xf32>
    %cst_39 = arith.constant 1.000000e+00 : f32
    %91 = vector.broadcast %cst_39 : f32 to vector<48x1xf32>
    %92 = arith.addf %91, %90 : vector<48x1xf32>
    %93 = arith.divf %91, %92 : vector<48x1xf32>
    %94 = vector.broadcast %93 : vector<48x1xf32> to vector<48x32xf32>
    %95 = arith.mulf %94, %78 : vector<48x32xf32>
    %96 = arith.truncf %95 : vector<48x32xf32> to vector<48x32xbf16>
    %cst_40 = arith.constant dense<0.000000e+00> : vector<8x32xf32>
    %97 = tpu.matmul %1, %96, %cst_40 {dimension_numbers = #tpu.dot_dimension_numbers<[1], [0], [0], [1], [0, 0, 1, 1], [], []>} : vector<8x48xbf16>, vector<48x32xbf16>, vector<8x32xf32> -> vector<8x32xf32>
    %c80 = arith.constant 80 : index
    %c0_41 = arith.constant 0 : index
    %98 = vector.load %arg5[%c80, %c0_41] : memref<272x128xbf16, #tpu.memory_space<vmem>>, vector<32x16xbf16>
    %99 = arith.truncf %61 : vector<48x32xf32> to vector<48x32xbf16>
    %cst_42 = arith.constant dense<0.000000e+00> : vector<48x16xf32>
    %100 = tpu.matmul %99, %98, %cst_42 {dimension_numbers = #tpu.dot_dimension_numbers<[1], [0], [0], [1], [0, 0, 1, 1], [], []>} : vector<48x32xbf16>, vector<32x16xbf16>, vector<48x16xf32> -> vector<48x16xf32>
    %101 = arith.truncf %100 : vector<48x16xf32> to vector<48x16xbf16>
    %cst_43 = arith.constant dense<0.000000e+00> : vector<48x16xf32>
    %102 = tpu.matmul %0, %101, %cst_43 {dimension_numbers = #tpu.dot_dimension_numbers<[1], [0], [0], [1], [0, 0, 1, 1], [], []>} : vector<48x48xbf16>, vector<48x16xbf16>, vector<48x16xf32> -> vector<48x16xf32>
    %103 = vector.extract_strided_slice %5 {offsets = [2, 0], sizes = [1, 16], strides = [1, 1]} : vector<16x64xf32> to vector<1x16xf32>
    %104 = vector.broadcast %103 : vector<1x16xf32> to vector<48x16xf32>
    %105 = arith.addf %102, %104 : vector<48x16xf32>
    %cst_44 = arith.constant 0.000000e+00 : f32
    %106 = vector.broadcast %cst_44 : f32 to vector<48x16xf32>
    %107 = arith.maximumf %105, %106 : vector<48x16xf32>
    %c240 = arith.constant 240 : index
    %c0_45 = arith.constant 0 : index
    %108 = vector.load %arg5[%c240, %c0_45] : memref<272x128xbf16, #tpu.memory_space<vmem>>, vector<16x4xbf16>
    %109 = arith.truncf %107 : vector<48x16xf32> to vector<48x16xbf16>
    %cst_46 = arith.constant dense<0.000000e+00> : vector<48x4xf32>
    %110 = tpu.matmul %109, %108, %cst_46 {dimension_numbers = #tpu.dot_dimension_numbers<[1], [0], [0], [1], [0, 0, 1, 1], [], []>} : vector<48x16xbf16>, vector<16x4xbf16>, vector<48x4xf32> -> vector<48x4xf32>
    %111 = vector.extract_strided_slice %5 {offsets = [7, 0], sizes = [1, 4], strides = [1, 1]} : vector<16x64xf32> to vector<1x4xf32>
    %112 = vector.broadcast %111 : vector<1x4xf32> to vector<48x4xf32>
    %113 = arith.addf %110, %112 : vector<48x4xf32>
    %cst_47 = arith.constant 0.000000e+00 : f32
    %114 = vector.broadcast %cst_47 : f32 to vector<48x4xf32>
    %115 = arith.maximumf %113, %114 : vector<48x4xf32>
    %c256 = arith.constant 256 : index
    %c0_48 = arith.constant 0 : index
    %116 = vector.load %arg5[%c256, %c0_48] : memref<272x128xbf16, #tpu.memory_space<vmem>>, vector<4x16xbf16>
    %117 = arith.truncf %115 : vector<48x4xf32> to vector<48x4xbf16>
    %cst_49 = arith.constant dense<0.000000e+00> : vector<48x16xf32>
    %118 = tpu.matmul %117, %116, %cst_49 {dimension_numbers = #tpu.dot_dimension_numbers<[1], [0], [0], [1], [0, 0, 1, 1], [], []>} : vector<48x4xbf16>, vector<4x16xbf16>, vector<48x16xf32> -> vector<48x16xf32>
    %119 = vector.extract_strided_slice %5 {offsets = [8, 0], sizes = [1, 16], strides = [1, 1]} : vector<16x64xf32> to vector<1x16xf32>
    %120 = vector.broadcast %119 : vector<1x16xf32> to vector<48x16xf32>
    %121 = arith.addf %118, %120 : vector<48x16xf32>
    %122 = math.tanh %121 : vector<48x16xf32>
    %123 = arith.mulf %122, %107 : vector<48x16xf32>
    %124 = arith.addf %123, %107 : vector<48x16xf32>
    %125 = arith.truncf %124 : vector<48x16xf32> to vector<48x16xbf16>
    %cst_50 = arith.constant dense<0.000000e+00> : vector<8x16xf32>
    %126 = tpu.matmul %2, %125, %cst_50 {dimension_numbers = #tpu.dot_dimension_numbers<[1], [0], [0], [1], [0, 0, 1, 1], [], []>} : vector<8x48xbf16>, vector<48x16xbf16>, vector<8x16xf32> -> vector<8x16xf32>
    %127 = math.tanh %126 : vector<8x16xf32>
    %128 = arith.truncf %127 : vector<8x16xf32> to vector<8x16xbf16>
    %cst_51 = arith.constant dense<0.000000e+00> : vector<48x16xf32>
    %129 = tpu.matmul %3, %128, %cst_51 {dimension_numbers = #tpu.dot_dimension_numbers<[1], [0], [0], [1], [0, 0, 1, 1], [], []>} : vector<48x8xbf16>, vector<8x16xbf16>, vector<48x16xf32> -> vector<48x16xf32>
    %130 = arith.mulf %124, %129 : vector<48x16xf32>
    %cst_52 = arith.constant dense<0.000000e+00> : vector<48xf32>
    %131 = vector.multi_reduction <add>, %130, %cst_52 [1] : vector<48x16xf32> to vector<48xf32>
    %132 = vector.shape_cast %131 : vector<48xf32> to vector<48x1xf32>
    %cst_53 = arith.constant 1.000000e+01 : f32
    %133 = vector.broadcast %cst_53 : f32 to vector<48x1xf32>
    %134 = arith.mulf %132, %133 : vector<48x1xf32>
    %135 = arith.negf %134 : vector<48x1xf32>
    %136 = math.exp %135 : vector<48x1xf32>
    %cst_54 = arith.constant 1.000000e+00 : f32
    %137 = vector.broadcast %cst_54 : f32 to vector<48x1xf32>
    %138 = arith.addf %137, %136 : vector<48x1xf32>
    %139 = arith.divf %137, %138 : vector<48x1xf32>
    %140 = vector.broadcast %139 : vector<48x1xf32> to vector<48x16xf32>
    %141 = arith.mulf %140, %124 : vector<48x16xf32>
    %142 = arith.truncf %141 : vector<48x16xf32> to vector<48x16xbf16>
    %cst_55 = arith.constant dense<0.000000e+00> : vector<8x16xf32>
    %143 = tpu.matmul %1, %142, %cst_55 {dimension_numbers = #tpu.dot_dimension_numbers<[1], [0], [0], [1], [0, 0, 1, 1], [], []>} : vector<8x48xbf16>, vector<48x16xbf16>, vector<8x16xf32> -> vector<8x16xf32>
    %144 = vector.extract_strided_slice %51 {offsets = [0, 0], sizes = [4, 64], strides = [1, 1]} : vector<8x64xf32> to vector<4x64xf32>
    %145 = vector.extract_strided_slice %51 {offsets = [4, 0], sizes = [4, 64], strides = [1, 1]} : vector<8x64xf32> to vector<4x64xf32>
    %146 = arith.truncf %144 : vector<4x64xf32> to vector<4x64xbf16>
    %c0_56 = arith.constant 0 : index
    %c0_57 = arith.constant 0 : index
    %147 = vector.load %arg6[%c0_56, %c0_57] : memref<64x2048xbf16, #tpu.memory_space<vmem>>, vector<64x2048xbf16>
    %cst_58 = arith.constant dense<0.000000e+00> : vector<4x2048xf32>
    %148 = tpu.matmul %146, %147, %cst_58 {dimension_numbers = #tpu.dot_dimension_numbers<[1], [0], [0], [1], [0, 0, 1, 1], [], []>} : vector<4x64xbf16>, vector<64x2048xbf16>, vector<4x2048xf32> -> vector<4x2048xf32>
    %149 = tpu.concatenate %145, %145, %145, %145, %145, %145, %145, %145, %145, %145, %145, %145, %145, %145, %145, %145 in 1 : vector<4x64xf32>, vector<4x64xf32>, vector<4x64xf32>, vector<4x64xf32>, vector<4x64xf32>, vector<4x64xf32>, vector<4x64xf32>, vector<4x64xf32>, vector<4x64xf32>, vector<4x64xf32>, vector<4x64xf32>, vector<4x64xf32>, vector<4x64xf32>, vector<4x64xf32>, vector<4x64xf32>, vector<4x64xf32> -> vector<4x1024xf32>
    %150 = tpu.concatenate %145, %145, %145, %145, %145, %145, %145, %145, %145, %145, %145, %145, %145, %145, %145, %145 in 1 : vector<4x64xf32>, vector<4x64xf32>, vector<4x64xf32>, vector<4x64xf32>, vector<4x64xf32>, vector<4x64xf32>, vector<4x64xf32>, vector<4x64xf32>, vector<4x64xf32>, vector<4x64xf32>, vector<4x64xf32>, vector<4x64xf32>, vector<4x64xf32>, vector<4x64xf32>, vector<4x64xf32>, vector<4x64xf32> -> vector<4x1024xf32>
    %151 = tpu.concatenate %149, %150 in 1 : vector<4x1024xf32>, vector<4x1024xf32> -> vector<4x2048xf32>
    %152 = tpu.iota {dimensions = array<i32: 0>} : vector<2048x32xi32>
    %153 = tpu.iota {dimensions = array<i32: 1>} : vector<2048x32xi32>
    %c64_i32 = arith.constant 64 : i32
    %154 = vector.broadcast %c64_i32 : i32 to vector<2048x32xi32>
    %155 = arith.muli %153, %154 : vector<2048x32xi32>
    %156 = arith.cmpi sge, %152, %155 : vector<2048x32xi32>
    %c1_i32 = arith.constant 1 : i32
    %157 = vector.broadcast %c1_i32 : i32 to vector<2048x32xi32>
    %158 = arith.addi %153, %157 : vector<2048x32xi32>
    %c64_i32_59 = arith.constant 64 : i32
    %159 = vector.broadcast %c64_i32_59 : i32 to vector<2048x32xi32>
    %160 = arith.muli %158, %159 : vector<2048x32xi32>
    %161 = arith.cmpi slt, %152, %160 : vector<2048x32xi32>
    %162 = arith.andi %156, %161 : vector<2048x32xi1>
    %163 = arith.extui %162 : vector<2048x32xi1> to vector<2048x32xi32>
    %164 = arith.sitofp %163 : vector<2048x32xi32> to vector<2048x32xf32>
    %165 = arith.mulf %148, %151 : vector<4x2048xf32>
    %cst_60 = arith.constant dense<0.000000e+00> : vector<4x32xf32>
    %166 = tpu.matmul %165, %164, %cst_60 {dimension_numbers = #tpu.dot_dimension_numbers<[1], [0], [0], [1], [0, 0, 1, 1], [], []>} : vector<4x2048xf32>, vector<2048x32xf32>, vector<4x32xf32> -> vector<4x32xf32>
    %c0_61 = arith.constant 0 : index
    %c0_62 = arith.constant 0 : index
    %167 = vector.load %arg7[%c0_61, %c0_62] : memref<128x32xbf16, #tpu.memory_space<vmem>>, vector<128x32xbf16>
    %168 = vector.extract_strided_slice %167 {offsets = [0, 0], sizes = [64, 32], strides = [1, 1]} : vector<128x32xbf16> to vector<64x32xbf16>
    %169 = arith.truncf %144 : vector<4x64xf32> to vector<4x64xbf16>
    %cst_63 = arith.constant dense<0.000000e+00> : vector<4x32xf32>
    %170 = tpu.matmul %169, %168, %cst_63 {dimension_numbers = #tpu.dot_dimension_numbers<[1], [0], [0], [1], [0, 0, 1, 1], [], []>} : vector<4x64xbf16>, vector<64x32xbf16>, vector<4x32xf32> -> vector<4x32xf32>
    %171 = vector.extract_strided_slice %167 {offsets = [64, 0], sizes = [64, 32], strides = [1, 1]} : vector<128x32xbf16> to vector<64x32xbf16>
    %172 = arith.truncf %145 : vector<4x64xf32> to vector<4x64xbf16>
    %cst_64 = arith.constant dense<0.000000e+00> : vector<4x32xf32>
    %173 = tpu.matmul %172, %171, %cst_64 {dimension_numbers = #tpu.dot_dimension_numbers<[1], [0], [0], [1], [0, 0, 1, 1], [], []>} : vector<4x64xbf16>, vector<64x32xbf16>, vector<4x32xf32> -> vector<4x32xf32>
    %174 = arith.addf %170, %173 : vector<4x32xf32>
    %175 = arith.addf %166, %174 : vector<4x32xf32>
    %176 = vector.extract_strided_slice %5 {offsets = [9, 0], sizes = [1, 32], strides = [1, 1]} : vector<16x64xf32> to vector<1x32xf32>
    %177 = vector.broadcast %176 : vector<1x32xf32> to vector<4x32xf32>
    %178 = arith.addf %175, %177 : vector<4x32xf32>
    %cst_65 = arith.constant 0.000000e+00 : f32
    %179 = vector.broadcast %cst_65 : f32 to vector<4x32xf32>
    %180 = arith.maximumf %178, %179 : vector<4x32xf32>
    %181 = vector.extract_strided_slice %97 {offsets = [0, 0], sizes = [4, 32], strides = [1, 1]} : vector<8x32xf32> to vector<4x32xf32>
    %182 = vector.extract_strided_slice %97 {offsets = [4, 0], sizes = [4, 32], strides = [1, 1]} : vector<8x32xf32> to vector<4x32xf32>
    %183 = arith.truncf %181 : vector<4x32xf32> to vector<4x32xbf16>
    %c0_66 = arith.constant 0 : index
    %c0_67 = arith.constant 0 : index
    %184 = vector.load %arg8[%c0_66, %c0_67] : memref<32x512xbf16, #tpu.memory_space<vmem>>, vector<32x512xbf16>
    %cst_68 = arith.constant dense<0.000000e+00> : vector<4x512xf32>
    %185 = tpu.matmul %183, %184, %cst_68 {dimension_numbers = #tpu.dot_dimension_numbers<[1], [0], [0], [1], [0, 0, 1, 1], [], []>} : vector<4x32xbf16>, vector<32x512xbf16>, vector<4x512xf32> -> vector<4x512xf32>
    %186 = tpu.concatenate %182, %182, %182, %182, %182, %182, %182, %182, %182, %182, %182, %182, %182, %182, %182, %182 in 1 : vector<4x32xf32>, vector<4x32xf32>, vector<4x32xf32>, vector<4x32xf32>, vector<4x32xf32>, vector<4x32xf32>, vector<4x32xf32>, vector<4x32xf32>, vector<4x32xf32>, vector<4x32xf32>, vector<4x32xf32>, vector<4x32xf32>, vector<4x32xf32>, vector<4x32xf32>, vector<4x32xf32>, vector<4x32xf32> -> vector<4x512xf32>
    %187 = tpu.iota {dimensions = array<i32: 0>} : vector<512x16xi32>
    %188 = tpu.iota {dimensions = array<i32: 1>} : vector<512x16xi32>
    %c32_i32 = arith.constant 32 : i32
    %189 = vector.broadcast %c32_i32 : i32 to vector<512x16xi32>
    %190 = arith.muli %188, %189 : vector<512x16xi32>
    %191 = arith.cmpi sge, %187, %190 : vector<512x16xi32>
    %c1_i32_69 = arith.constant 1 : i32
    %192 = vector.broadcast %c1_i32_69 : i32 to vector<512x16xi32>
    %193 = arith.addi %188, %192 : vector<512x16xi32>
    %c32_i32_70 = arith.constant 32 : i32
    %194 = vector.broadcast %c32_i32_70 : i32 to vector<512x16xi32>
    %195 = arith.muli %193, %194 : vector<512x16xi32>
    %196 = arith.cmpi slt, %187, %195 : vector<512x16xi32>
    %197 = arith.andi %191, %196 : vector<512x16xi1>
    %198 = arith.extui %197 : vector<512x16xi1> to vector<512x16xi32>
    %199 = arith.sitofp %198 : vector<512x16xi32> to vector<512x16xf32>
    %200 = arith.mulf %185, %186 : vector<4x512xf32>
    %cst_71 = arith.constant dense<0.000000e+00> : vector<4x16xf32>
    %201 = tpu.matmul %200, %199, %cst_71 {dimension_numbers = #tpu.dot_dimension_numbers<[1], [0], [0], [1], [0, 0, 1, 1], [], []>} : vector<4x512xf32>, vector<512x16xf32>, vector<4x16xf32> -> vector<4x16xf32>
    %c0_72 = arith.constant 0 : index
    %c0_73 = arith.constant 0 : index
    %202 = vector.load %arg9[%c0_72, %c0_73] : memref<64x16xbf16, #tpu.memory_space<vmem>>, vector<64x16xbf16>
    %203 = vector.extract_strided_slice %202 {offsets = [0, 0], sizes = [32, 16], strides = [1, 1]} : vector<64x16xbf16> to vector<32x16xbf16>
    %204 = arith.truncf %181 : vector<4x32xf32> to vector<4x32xbf16>
    %cst_74 = arith.constant dense<0.000000e+00> : vector<4x16xf32>
    %205 = tpu.matmul %204, %203, %cst_74 {dimension_numbers = #tpu.dot_dimension_numbers<[1], [0], [0], [1], [0, 0, 1, 1], [], []>} : vector<4x32xbf16>, vector<32x16xbf16>, vector<4x16xf32> -> vector<4x16xf32>
    %206 = vector.extract_strided_slice %202 {offsets = [32, 0], sizes = [32, 16], strides = [1, 1]} : vector<64x16xbf16> to vector<32x16xbf16>
    %207 = arith.truncf %182 : vector<4x32xf32> to vector<4x32xbf16>
    %cst_75 = arith.constant dense<0.000000e+00> : vector<4x16xf32>
    %208 = tpu.matmul %207, %206, %cst_75 {dimension_numbers = #tpu.dot_dimension_numbers<[1], [0], [0], [1], [0, 0, 1, 1], [], []>} : vector<4x32xbf16>, vector<32x16xbf16>, vector<4x16xf32> -> vector<4x16xf32>
    %209 = arith.addf %205, %208 : vector<4x16xf32>
    %210 = arith.addf %201, %209 : vector<4x16xf32>
    %211 = vector.extract_strided_slice %5 {offsets = [10, 0], sizes = [1, 16], strides = [1, 1]} : vector<16x64xf32> to vector<1x16xf32>
    %212 = vector.broadcast %211 : vector<1x16xf32> to vector<4x16xf32>
    %213 = arith.addf %210, %212 : vector<4x16xf32>
    %cst_76 = arith.constant 0.000000e+00 : f32
    %214 = vector.broadcast %cst_76 : f32 to vector<4x16xf32>
    %215 = arith.maximumf %213, %214 : vector<4x16xf32>
    %216 = vector.extract_strided_slice %143 {offsets = [0, 0], sizes = [4, 16], strides = [1, 1]} : vector<8x16xf32> to vector<4x16xf32>
    %217 = vector.extract_strided_slice %143 {offsets = [4, 0], sizes = [4, 16], strides = [1, 1]} : vector<8x16xf32> to vector<4x16xf32>
    %218 = arith.truncf %216 : vector<4x16xf32> to vector<4x16xbf16>
    %c0_77 = arith.constant 0 : index
    %c0_78 = arith.constant 0 : index
    %219 = vector.load %arg10[%c0_77, %c0_78] : memref<16x128xbf16, #tpu.memory_space<vmem>>, vector<16x128xbf16>
    %cst_79 = arith.constant dense<0.000000e+00> : vector<4x128xf32>
    %220 = tpu.matmul %218, %219, %cst_79 {dimension_numbers = #tpu.dot_dimension_numbers<[1], [0], [0], [1], [0, 0, 1, 1], [], []>} : vector<4x16xbf16>, vector<16x128xbf16>, vector<4x128xf32> -> vector<4x128xf32>
    %221 = tpu.concatenate %217, %217, %217, %217, %217, %217, %217, %217 in 1 : vector<4x16xf32>, vector<4x16xf32>, vector<4x16xf32>, vector<4x16xf32>, vector<4x16xf32>, vector<4x16xf32>, vector<4x16xf32>, vector<4x16xf32> -> vector<4x128xf32>
    %222 = tpu.iota {dimensions = array<i32: 0>} : vector<128x8xi32>
    %223 = tpu.iota {dimensions = array<i32: 1>} : vector<128x8xi32>
    %c16_i32 = arith.constant 16 : i32
    %224 = vector.broadcast %c16_i32 : i32 to vector<128x8xi32>
    %225 = arith.muli %223, %224 : vector<128x8xi32>
    %226 = arith.cmpi sge, %222, %225 : vector<128x8xi32>
    %c1_i32_80 = arith.constant 1 : i32
    %227 = vector.broadcast %c1_i32_80 : i32 to vector<128x8xi32>
    %228 = arith.addi %223, %227 : vector<128x8xi32>
    %c16_i32_81 = arith.constant 16 : i32
    %229 = vector.broadcast %c16_i32_81 : i32 to vector<128x8xi32>
    %230 = arith.muli %228, %229 : vector<128x8xi32>
    %231 = arith.cmpi slt, %222, %230 : vector<128x8xi32>
    %232 = arith.andi %226, %231 : vector<128x8xi1>
    %233 = arith.extui %232 : vector<128x8xi1> to vector<128x8xi32>
    %234 = arith.sitofp %233 : vector<128x8xi32> to vector<128x8xf32>
    %235 = arith.mulf %220, %221 : vector<4x128xf32>
    %cst_82 = arith.constant dense<0.000000e+00> : vector<4x8xf32>
    %236 = tpu.matmul %235, %234, %cst_82 {dimension_numbers = #tpu.dot_dimension_numbers<[1], [0], [0], [1], [0, 0, 1, 1], [], []>} : vector<4x128xf32>, vector<128x8xf32>, vector<4x8xf32> -> vector<4x8xf32>
    %c0_83 = arith.constant 0 : index
    %c0_84 = arith.constant 0 : index
    %237 = vector.load %arg11[%c0_83, %c0_84] : memref<32x8xbf16, #tpu.memory_space<vmem>>, vector<32x8xbf16>
    %238 = vector.extract_strided_slice %237 {offsets = [0, 0], sizes = [16, 8], strides = [1, 1]} : vector<32x8xbf16> to vector<16x8xbf16>
    %239 = arith.truncf %216 : vector<4x16xf32> to vector<4x16xbf16>
    %cst_85 = arith.constant dense<0.000000e+00> : vector<4x8xf32>
    %240 = tpu.matmul %239, %238, %cst_85 {dimension_numbers = #tpu.dot_dimension_numbers<[1], [0], [0], [1], [0, 0, 1, 1], [], []>} : vector<4x16xbf16>, vector<16x8xbf16>, vector<4x8xf32> -> vector<4x8xf32>
    %241 = vector.extract_strided_slice %237 {offsets = [16, 0], sizes = [16, 8], strides = [1, 1]} : vector<32x8xbf16> to vector<16x8xbf16>
    %242 = arith.truncf %217 : vector<4x16xf32> to vector<4x16xbf16>
    %cst_86 = arith.constant dense<0.000000e+00> : vector<4x8xf32>
    %243 = tpu.matmul %242, %241, %cst_86 {dimension_numbers = #tpu.dot_dimension_numbers<[1], [0], [0], [1], [0, 0, 1, 1], [], []>} : vector<4x16xbf16>, vector<16x8xbf16>, vector<4x8xf32> -> vector<4x8xf32>
    %244 = arith.addf %240, %243 : vector<4x8xf32>
    %245 = arith.addf %236, %244 : vector<4x8xf32>
    %246 = vector.extract_strided_slice %5 {offsets = [11, 0], sizes = [1, 8], strides = [1, 1]} : vector<16x64xf32> to vector<1x8xf32>
    %247 = vector.broadcast %246 : vector<1x8xf32> to vector<4x8xf32>
    %248 = arith.addf %245, %247 : vector<4x8xf32>
    %cst_87 = arith.constant 0.000000e+00 : f32
    %249 = vector.broadcast %cst_87 : f32 to vector<4x8xf32>
    %250 = arith.maximumf %248, %249 : vector<4x8xf32>
    %251 = tpu.concatenate %250, %215, %180 in 1 : vector<4x8xf32>, vector<4x16xf32>, vector<4x32xf32> -> vector<4x56xf32>
    %c0_88 = arith.constant 0 : index
    %c0_89 = arith.constant 0 : index
    %252 = vector.load %arg12[%c0_88, %c0_89] : memref<56x14xbf16, #tpu.memory_space<vmem>>, vector<56x14xbf16>
    %253 = arith.truncf %251 : vector<4x56xf32> to vector<4x56xbf16>
    %cst_90 = arith.constant dense<0.000000e+00> : vector<4x14xf32>
    %254 = tpu.matmul %253, %252, %cst_90 {dimension_numbers = #tpu.dot_dimension_numbers<[1], [0], [0], [1], [0, 0, 1, 1], [], []>} : vector<4x56xbf16>, vector<56x14xbf16>, vector<4x14xf32> -> vector<4x14xf32>
    %255 = vector.extract_strided_slice %5 {offsets = [12, 0], sizes = [1, 14], strides = [1, 1]} : vector<16x64xf32> to vector<1x14xf32>
    %256 = vector.broadcast %255 : vector<1x14xf32> to vector<4x14xf32>
    %257 = arith.addf %254, %256 : vector<4x14xf32>
    %cst_91 = arith.constant 0.000000e+00 : f32
    %258 = vector.broadcast %cst_91 : f32 to vector<4x14xf32>
    %259 = arith.maximumf %257, %258 : vector<4x14xf32>
    %c0_92 = arith.constant 0 : index
    %c0_93 = arith.constant 0 : index
    %260 = vector.load %arg13[%c0_92, %c0_93] : memref<14x56xbf16, #tpu.memory_space<vmem>>, vector<14x56xbf16>
    %261 = arith.truncf %259 : vector<4x14xf32> to vector<4x14xbf16>
    %cst_94 = arith.constant dense<0.000000e+00> : vector<4x56xf32>
    %262 = tpu.matmul %261, %260, %cst_94 {dimension_numbers = #tpu.dot_dimension_numbers<[1], [0], [0], [1], [0, 0, 1, 1], [], []>} : vector<4x14xbf16>, vector<14x56xbf16>, vector<4x56xf32> -> vector<4x56xf32>
    %263 = vector.extract_strided_slice %5 {offsets = [13, 0], sizes = [1, 56], strides = [1, 1]} : vector<16x64xf32> to vector<1x56xf32>
    %264 = vector.broadcast %263 : vector<1x56xf32> to vector<4x56xf32>
    %265 = arith.addf %262, %264 : vector<4x56xf32>
    %266 = arith.negf %265 : vector<4x56xf32>
    %267 = math.exp %266 : vector<4x56xf32>
    %cst_95 = arith.constant 1.000000e+00 : f32
    %268 = vector.broadcast %cst_95 : f32 to vector<4x56xf32>
    %269 = arith.addf %268, %267 : vector<4x56xf32>
    %270 = arith.divf %268, %269 : vector<4x56xf32>
    %271 = arith.mulf %270, %251 : vector<4x56xf32>
    %272 = arith.addf %271, %251 : vector<4x56xf32>
    %c0_96 = arith.constant 0 : index
    %c0_97 = arith.constant 0 : index
    %273 = vector.load %arg14[%c0_96, %c0_97] : memref<56x16xbf16, #tpu.memory_space<vmem>>, vector<56x16xbf16>
    %274 = arith.truncf %272 : vector<4x56xf32> to vector<4x56xbf16>
    %cst_98 = arith.constant dense<0.000000e+00> : vector<4x16xf32>
    %275 = tpu.matmul %274, %273, %cst_98 {dimension_numbers = #tpu.dot_dimension_numbers<[1], [0], [0], [1], [0, 0, 1, 1], [], []>} : vector<4x56xbf16>, vector<56x16xbf16>, vector<4x16xf32> -> vector<4x16xf32>
    %276 = vector.extract_strided_slice %5 {offsets = [14, 0], sizes = [1, 16], strides = [1, 1]} : vector<16x64xf32> to vector<1x16xf32>
    %277 = vector.broadcast %276 : vector<1x16xf32> to vector<4x16xf32>
    %278 = arith.addf %275, %277 : vector<4x16xf32>
    %cst_99 = arith.constant 0.000000e+00 : f32
    %279 = vector.broadcast %cst_99 : f32 to vector<4x16xf32>
    %280 = arith.maximumf %278, %279 : vector<4x16xf32>
    %c0_100 = arith.constant 0 : index
    %c0_101 = arith.constant 0 : index
    %281 = vector.load %arg16[%c0_100, %c0_101] : memref<4x16xf32, #tpu.memory_space<vmem>>, vector<4x16xf32>
    tpu.vector_store %arg16[%c0_100, %c0_101], %280 {strides = array<i32>} : memref<4x16xf32, #tpu.memory_space<vmem>>, vector<4x16xf32>,
    return
  }
}

</mosaic_0001>

<bundles_post_ra>
// kernel: egsct_forward.1
= control target key start
LH: loop header
LB: loop body
LE: loop exit
PB: predicated region body
PF: predicated region fallthrough
CT: control target
= control target key end

     0   :  { %s13824_s0 = inlined_call_operand.vmem [shape: bf16[48,48], index: 0, kind: input, shape index: {}]   ;;  %s13825_s1 = inlined_call_operand.vmem [shape: f32[48,16], index: 1, kind: input, shape index: {}]   ;;  %s13826_s2 = inlined_call_operand.vmem [shape: bf16[8,48], index: 2, kind: input, shape index: {}]   ;;  %s13827_s3 = inlined_call_operand.vmem [shape: bf16[8,48], index: 3, kind: input, shape index: {}]   ;;  %s13828_s4 = inlined_call_operand.vmem [shape: bf16[48,8], index: 4, kind: input, shape index: {}]   ;;  %s13829_s5 = inlined_call_operand.vmem [shape: bf16[272,128], index: 5, kind: input, shape index: {}]   ;;  %s13830_s6 = inlined_call_operand.hbm [shape: bf16[64,2048], index: 6, kind: input, shape index: {}]   ;;  %s13831_s7 = inlined_call_operand.vmem [shape: bf16[128,32], index: 7, kind: input, shape index: {}]   ;;  %s13832_s8 = inlined_call_operand.vmem [shape: bf16[32,512], index: 8, kind: input, shape index: {}]   ;;  %s13833_s9 = inlined_call_operand.vmem [shape: bf16[64,16], index: 9, kind: input, shape index: {}]   ;;  %s13834_s10 = inlined_call_operand.vmem [shape: bf16[16,128], index: 10, kind: input, shape index: {}]   ;;  %s13835_s11 = inlined_call_operand.vmem [shape: bf16[32,8], index: 11, kind: input, shape index: {}]   ;;  %s13836_s12 = inlined_call_operand.vmem [shape: bf16[56,14], index: 12, kind: input, shape index: {}]   ;;  %s13837_s13 = inlined_call_operand.vmem [shape: bf16[14,56], index: 13, kind: input, shape index: {}]   ;;  %s13838_s14 = inlined_call_operand.vmem [shape: bf16[56,16], index: 14, kind: input, shape index: {}]   ;;  %s13839_s15 = inlined_call_operand.vmem [shape: f32[16,64], index: 15, kind: input, shape index: {}]   ;;  %s13840_s16 = inlined_call_operand.hbm [shape: f32[4,16], index: 16, kind: output, shape index: {}]  }
   0x1   :  { %14061 = sst [smem:[#allocation44_spill]] %s13824_s0 }
   0x2   :  { %21 = vsyncpa [#allocation3], 0 }
   0x3   :  { %22 = vsyncpa [#allocation4], 0  ;;  %s8581_s21 = smov [#allocation2]   ;;  %s8533_s25 = scalar_lea.hbm %s13830_s6, 8192 }
   0x4   :  { %s40_s22 = sshll.u32 %s8581_s21, 4  ;;  %p8534_p0 = scmp.ne.s32.totalorder %s13830_s6, %s8533_s25  ;;  %s41_s22 = int_to_ptr.vmem [resolvable:$true] %s40_s22 }
   0x5   :  { %p8537_p1 = scmp.lt.u32.totalorder %s8533_s25, %s13830_s6 }
   0x7   :  { %p8539_p2 = pnand %p8537_p1, %p8534_p0 }
   0x9   :  { %8542 = shalt.err (!%p8539_p2)
}
   0xa   :  { %s8543_s30 = scalar_lea.vmem %s41_s22, 8192  ;;  %p8548_p4 = scmp.lt.s32.totalorder %s41_s22, %s41_s22 }
   0xb   :  { %p8544_p3 = scmp.ne.s32.totalorder %s41_s22, %s8543_s30  ;;  %p8549_p5 = scmp.lt.s32.totalorder %s8543_s30, %s8543_s30 }
   0xd   :  { %p8550_p6 = por %p8549_p5, %p8548_p4 }
   0xf   :  { %p8551_p7 = pnand %p8550_p6, %p8544_p3 }
  0x11   :  { %8554 = shalt.err (!%p8551_p7)
}
  0x12   :  { %s8582_s0 = smov 1024   ;;  %s8583_s17 = smov 64  }
  0x13   :  { %46 = dma.hbm_to_vmem [thread:$0]  %s13830_s6, 8192, %s41_s22, [#allocation3], %s8582_s0, %s8582_s0, %s8583_s17  }
  0x14   :  { %8577 = dma.done.wait [#allocation3], 8192  }
  0x15   :  { %8578 = vsyncadd [#allocation3], 4294959104  ;;  %v13858_v0 = vmov 0.0   ;;  %vm13845_vm0 = vmmov 0   ;;  %v8348_v1 = vld [vmem:[%s13829_s5] sm:$0xff]   ;;  %v84_v3 = vld [vmem:[%s13825_s1 + $0x8] sm:$0xff]  ;;  %v172_v33 = vlaneseq }
  0x16   :  { %7562 = vmatprep.subr.bf16.mxu0 %v13858_v0  ;;  %7564 = vmatprep.mubr.msk.bf16.mxu0 %vm13845_vm0, %v13858_v0  ;;  %v83_v2 = vld [vmem:[%s13825_s1] sm:$0xff]  ;;  %vm13848_vm1 = vcmask 130048   ;;  %v85_v5 = vld [vmem:[%s13825_s1 + $0x10] sm:$0xff]  ;;  %v86_v6 = vld [vmem:[%s13825_s1 + $0x18] sm:$0xff]  ;;  %s14062_s22 = sld [smem:[#allocation44_spill]]  ;;  %vm13847_vm2 = vcmask 392192  }
  0x17   :  { %7576 = vmatprep.subr.bf16.mxu1 %v13858_v0  ;;  %7582 = vmatprep.mubr.msk.bf16.mxu1 %vm13845_vm0, %v13858_v0  ;;  %v93_v4 = vpack.c.bf16 %v84_v3, %v83_v2  ;;  %v94_v7 = vpack.c.bf16 %v86_v6, %v85_v5  ;;  %v87_v8 = vld [vmem:[%s13825_s1 + $0x20] sm:$0xff]  ;;  %v88_v9 = vld [vmem:[%s13825_s1 + $0x28] sm:$0xff]  ;;  %v8352_v11 = vld [vmem:[%s13829_s5 + $0x38] sm:$0xff]   ;;  %v8780_v34 = vshrl.u32 %v172_v33, 7  ;;  %vm13849_vm3 = vcmask 523264   ;;  %s8588_s29 = smov 32  }
  0x18   :  { %7563 = vmatpush3.bf16.msra.mxu0 %v8348_v1  ;;  %v95_v10 = vpack.c.bf16 %v88_v9, %v87_v8  ;;  %v8353_v12 = vld [vmem:[%s13829_s5 + $0x40] sm:$0xff]   ;;  %v8354_v31 = vld [vmem:[%s13829_s5 + $0x48] sm:$0xff]   ;;  %v8355_v32 = vld [vmem:[%s13829_s5 + $0x50] sm:$0xff]   ;;  %vm13843_vm4 = vcmask 1043456   ;;  %vm13842_vm5 = vcmask 64512   ;;  %vm13844_vm6 = vcmask 261120  }
  0x19   :  { %7594 = vmatprep.subr.bf16.mxu0 %v13858_v0  ;;  %v174_v35 = vsub.s32 0, %v8780_v34  ;;  %v8786_v36 = vld [vmem:[%s13839_s15] sm:$0xff]  ;;  %v8356_v2 = vld [vmem:[%s13829_s5 + $0x58] sm:$0xff]   ;;  %v13853_v3 = vsub.s32 3, %v8780_v34  ;;  %vm1545_vm7 = vcmask 1041408   ;;  %vm1535_vm8 = vcmask 31744  }
  0x1a   :  { %s8590_s18 = smov 16  }
  0x1b   :  { %7565 = vmatmul.mubr.msk.bf16.vlgmr.msra.gmra.mrb[0].mxu0 %vm13848_vm1, %v93_v4  ;;  %v175_v37 = vrot.slane %v8786_v36, %v174_v35  ;;  %v278_v4 = vrot.slane %v8786_v36, %v13853_v3 }
  0x1c   :  { %7568 = vmatprep.mubr.msk.bf16.mxu0 %vm13845_vm0, %v13858_v0  ;;  %7595 = vmatpush3.bf16.msra.mxu0 %v8352_v11  ;;  %v8746_v28 = vld [vmem:[%s14062_s22] sm:$0xff]   ;;  %v8756_v29 = vld [vmem:[%s14062_s22 + $0x8] sm:$0xff]   ;;  %v8765_v30 = vld [vmem:[%s14062_s22 + $0x10] sm:$0xff]  }
  0x1d   :  { %7596 = vmatprep.subr.bf16.mxu0 %v13858_v0 }
  0x20   :  { %7597 = vmatpush3.bf16.msra.mxu0 %v8353_v12 }
  0x21   :  { %7598 = vmatprep.subr.bf16.mxu0 %v13858_v0 }
  0x23   :  { %7569 = vmatmul.mubr.msk.bf16.gmra.mrb[4].mxu0 %vm13848_vm1, %v94_v7 }
  0x24   :  { %7572 = vmatprep.mubr.msk.bf16.mxu0 %vm13845_vm0, %v13858_v0  ;;  %7599 = vmatpush3.bf16.msra.mxu0 %v8354_v31 }
  0x25   :  { %7600 = vmatprep.subr.bf16.mxu0 %v13858_v0 }
  0x28   :  { %7601 = vmatpush3.bf16.msra.mxu0 %v8355_v32 }
  0x29   :  { %7628 = vmatprep.subr.bf16.mxu0 %v13858_v0 }
  0x2b   :  { %7573 = vmatmul.mubr.msk.bf16.gmra.mrb[8].mxu0 %vm13848_vm1, %v95_v10 }
  0x2c   :  { %7602 = vmatprep.mubr.msk.bf16.mxu0 %vm13845_vm0, %v13858_v0 }
  0xee   :  { %v146_v13 = vpop.f32.mrb[0].mxu0 }
  0xef   :  { %v7566_v14 = vpop.f32.mrb[1].mxu0 }
  0xf0   :  { %v149_v15 = vpop.f32.mrb[2].mxu0 }
  0xf1   :  { %v169_v16 = vpack.c.bf16 %v149_v15, %v146_v13  ;;  %v7567_v17 = vpop.f32.mrb[3].mxu0 }
  0xf3   :  { %7577 = vmatpush3.bf16.msra.mxu1 %v169_v16 }
  0xf4   :  { %7578 = vmatprep.subr.bf16.mxu1 %v13858_v0 }
  0xf6   :  { %v154_v18 = vpop.f32.mrb[4].mxu0 }
  0xf7   :  { %v7570_v19 = vpop.f32.mrb[5].mxu0 }
  0xf8   :  { %v157_v20 = vpop.f32.mrb[6].mxu0 }
  0xf9   :  { %v170_v21 = vpack.c.bf16 %v157_v20, %v154_v18  ;;  %v7571_v22 = vpop.f32.mrb[7].mxu0 }
  0xfb   :  { %7579 = vmatpush3.bf16.msra.mxu1 %v170_v21 }
  0xfc   :  { %7580 = vmatprep.subr.bf16.mxu1 %v13858_v0 }
  0xfe   :  { %v162_v23 = vpop.f32.mrb[8].mxu0 }
  0xff   :  { %v7574_v24 = vpop.f32.mrb[9].mxu0 }
 0x100   :  { %v165_v25 = vpop.f32.mrb[10].mxu0 }
 0x101   :  { %v171_v26 = vpack.c.bf16 %v165_v25, %v162_v23  ;;  %v7575_v27 = vpop.f32.mrb[11].mxu0 }
 0x103   :  { %7581 = vmatpush3.bf16.msra.mxu1 %v171_v26 }
 0x104   :  { %7614 = vmatprep.subr.bf16.mxu1 %v13858_v0 }
 0x106   :  { %7583 = vmatmul.mubr.msk.bf16.vlgmr.msra.gmra.mrb[0].mxu1 %vm13847_vm2, %v8746_v28 }
 0x107   :  { %7586 = vmatprep.mubr.msk.bf16.mxu1 %vm13845_vm0, %v13858_v0  ;;  %7615 = vmatpush3.bf16.msra.mxu1 %v8356_v2 }
 0x108   :  { %7652 = vmatprep.subr.bf16.mxu1 %v13858_v0 }
 0x10e   :  { %7587 = vmatmul.mubr.msk.bf16.gmra.mrb[4].mxu1 %vm13847_vm2, %v8756_v29 }
 0x10f   :  { %7590 = vmatprep.mubr.msk.bf16.mxu1 %vm13845_vm0, %v13858_v0 }
 0x116   :  { %7591 = vmatmul.mubr.msk.bf16.gmra.mrb[8].mxu1 %vm13847_vm2, %v8765_v30 }
 0x117   :  { %7616 = vmatprep.mubr.msk.bf16.mxu1 %vm13845_vm0, %v13858_v0 }
 0x1d9   :  { %v235_v38 = vpop.f32.mrb[0].mxu1 }
 0x1da   :  { %v236_v39 = vadd.f32 %v235_v38, %v175_v37  ;;  %v7584_v40 = vpop.f32.mrb[1].mxu1 }
 0x1db   :  { %v238_v41 = vpop.f32.mrb[2].mxu1 }
 0x1dc   :  { %v239_v42 = vadd.f32 %v238_v41, %v175_v37  ;;  %v7585_v43 = vpop.f32.mrb[3].mxu1  ;;  %v8791_v44 = vmax.f32 %v236_v39, 0.0  ;;  %v13852_v39 = vsub.s32 4, %v8780_v34 }
 0x1de   :  { %v8793_v45 = vmax.f32 %v239_v42, 0.0  ;;  %v384_v40 = vrot.slane %v8786_v36, %v13852_v39 }
 0x1e0   :  { %v8797_v46 = vpack.c.bf16 %v8793_v45, %v8791_v44 }
 0x1e1   :  { %v243_v47 = vpop.f32.mrb[4].mxu1 }
 0x1e2   :  { %v244_v48 = vadd.f32 %v243_v47, %v175_v37  ;;  %v7588_v49 = vpop.f32.mrb[5].mxu1  ;;  %7603 = vmatmul.mubr.msk.bf16.vlgmr.msra.gmra.mrb[12].mxu0 %vm13849_vm3, %v8797_v46 }
 0x1e3   :  { %v246_v50 = vpop.f32.mrb[6].mxu1  ;;  %7606 = vmatprep.mubr.msk.bf16.mxu0 %vm13845_vm0, %v13858_v0 }
 0x1e4   :  { %v247_v51 = vadd.f32 %v246_v50, %v175_v37  ;;  %v7589_v52 = vpop.f32.mrb[7].mxu1  ;;  %v8803_v53 = vmax.f32 %v244_v48, 0.0 }
 0x1e6   :  { %v8805_v54 = vmax.f32 %v247_v51, 0.0 }
 0x1e8   :  { %v8809_v55 = vpack.c.bf16 %v8805_v54, %v8803_v53 }
 0x1e9   :  { %v251_v56 = vpop.f32.mrb[8].mxu1 }
 0x1ea   :  { %v252_v57 = vadd.f32 %v251_v56, %v175_v37  ;;  %v7592_v58 = vpop.f32.mrb[9].mxu1  ;;  %7607 = vmatmul.mubr.msk.bf16.gmra.mrb[16].mxu0 %vm13849_vm3, %v8809_v55 }
 0x1eb   :  { %v254_v59 = vpop.f32.mrb[10].mxu1  ;;  %7610 = vmatprep.mubr.msk.bf16.mxu0 %vm13845_vm0, %v13858_v0 }
 0x1ec   :  { %v255_v60 = vadd.f32 %v254_v59, %v175_v37  ;;  %v7593_v61 = vpop.f32.mrb[11].mxu1  ;;  %v8815_v62 = vmax.f32 %v252_v57, 0.0 }
 0x1ee   :  { %v8817_v63 = vmax.f32 %v255_v60, 0.0 }
 0x1f0   :  { %v8821_v1 = vpack.c.bf16 %v8817_v63, %v8815_v62 }
 0x1f2   :  { %7611 = vmatmul.mubr.msk.bf16.gmra.mrb[20].mxu0 %vm13849_vm3, %v8821_v1 }
 0x1f3   :  { %7634 = vmatprep.mubr.msk.bf16.mxu0 %vm13845_vm0, %v13858_v0 }
 0x2b5   :  { %v347_v5 = vpop.f32.mrb[12].mxu0 }
 0x2b6   :  { %v348_v6 = vadd.f32 %v347_v5, %v278_v4  ;;  %v7604_v7 = vpop.f32.mrb[13].mxu0 }
 0x2b7   :  { %v350_v8 = vpop.f32.mrb[14].mxu0 }
 0x2b8   :  { %v351_v9 = vadd.f32 %v350_v8, %v278_v4  ;;  %v7605_v10 = vpop.f32.mrb[15].mxu0  ;;  %v370_v11 = vmax.f32 %v348_v6, 0.0 }
 0x2ba   :  { %v371_v12 = vmax.f32 %v351_v9, 0.0 }
 0x2bc   :  { %v378_v13 = vpack.c.bf16 %v371_v12, %v370_v11 }
 0x2bd   :  { %v355_v14 = vpop.f32.mrb[16].mxu0 }
 0x2be   :  { %v356_v15 = vadd.f32 %v355_v14, %v278_v4  ;;  %v7608_v16 = vpop.f32.mrb[17].mxu0  ;;  %7617 = vmatmul.mubr.msk.bf16.vlgmr.msra.gmra.mrb[12].mxu1 %vm13848_vm1, %v378_v13 }
 0x2bf   :  { %v358_v17 = vpop.f32.mrb[18].mxu0  ;;  %7620 = vmatprep.mubr.msk.bf16.mxu1 %vm13845_vm0, %v13858_v0 }
 0x2c0   :  { %v359_v18 = vadd.f32 %v358_v17, %v278_v4  ;;  %v7609_v19 = vpop.f32.mrb[19].mxu0  ;;  %v372_v20 = vmax.f32 %v356_v15, 0.0 }
 0x2c2   :  { %v373_v21 = vmax.f32 %v359_v18, 0.0 }
 0x2c4   :  { %v379_v22 = vpack.c.bf16 %v373_v21, %v372_v20 }
 0x2c5   :  { %v363_v23 = vpop.f32.mrb[20].mxu0 }
 0x2c6   :  { %v364_v24 = vadd.f32 %v363_v23, %v278_v4  ;;  %v7612_v25 = vpop.f32.mrb[21].mxu0  ;;  %7621 = vmatmul.mubr.msk.bf16.gmra.mrb[16].mxu1 %vm13848_vm1, %v379_v22  ;;  %v8883_v23 = vld [vmem:[%s13827_s3] sm:$0xf] }
 0x2c7   :  { %v366_v26 = vpop.f32.mrb[22].mxu0  ;;  %7624 = vmatprep.mubr.msk.bf16.mxu1 %vm13845_vm0, %v13858_v0 }
 0x2c8   :  { %v367_v27 = vadd.f32 %v366_v26, %v278_v4  ;;  %v7613_v31 = vpop.f32.mrb[23].mxu0  ;;  %v374_v32 = vmax.f32 %v364_v24, 0.0 }
 0x2ca   :  { %v375_v37 = vmax.f32 %v367_v27, 0.0 }
 0x2cc   :  { %v380_v38 = vpack.c.bf16 %v375_v37, %v374_v32  ;;  %v8894_v32 = vld [vmem:[%s13828_s4] sm:$0xff]   ;;  %v8904_v37 = vld [vmem:[%s13828_s4 + $0x8] sm:$0xff]  }
 0x2ce   :  { %7625 = vmatmul.mubr.msk.bf16.gmra.mrb[20].mxu1 %vm13848_vm1, %v380_v38  ;;  %v8913_v38 = vld [vmem:[%s13828_s4 + $0x10] sm:$0xff]  }
 0x2cf   :  { %7658 = vmatprep.mubr.msk.bf16.mxu1 %vm13845_vm0, %v13858_v0 }
 0x391   :  { %v434_v41 = vpop.f32.mrb[12].mxu1 }
 0x392   :  { %v435_v42 = vadd.f32 %v434_v41, %v384_v40  ;;  %v7618_v43 = vpop.f32.mrb[13].mxu1 }
 0x393   :  { %v437_v47 = vpop.f32.mrb[14].mxu1 }
 0x394   :  { %8405 = vtanh.f32 %v435_v42  ;;  %v438_v48 = vadd.f32 %v437_v47, %v384_v40  ;;  %v7619_v49 = vpop.f32.mrb[15].mxu1 }
 0x396   :  { %8407 = vtanh.f32 %v438_v48 }
 0x399   :  { %v442_v50 = vpop.f32.mrb[16].mxu1 }
 0x39a   :  { %v443_v51 = vadd.f32 %v442_v50, %v384_v40  ;;  %v7622_v52 = vpop.f32.mrb[17].mxu1 }
 0x39b   :  { %v445_v56 = vpop.f32.mrb[18].mxu1 }
 0x39c   :  { %8409 = vtanh.f32 %v443_v51  ;;  %v446_v57 = vadd.f32 %v445_v56, %v384_v40  ;;  %v7623_v58 = vpop.f32.mrb[19].mxu1 }
 0x39e   :  { %v8406_v59 = vpop.eup %8405  ;;  %8411 = vtanh.f32 %v446_v57 }
 0x39f   :  { %v463_v60 = vmul.f32 %v8406_v59, %v8791_v44 }
 0x3a0   :  { %v8408_v61 = vpop.eup %8407 }
 0x3a1   :  { %v464_v2 = vmul.f32 %v8408_v61, %v8793_v45  ;;  %v450_v4 = vpop.f32.mrb[20].mxu1  ;;  %v8851_v8 = vadd.f32 %v463_v60, %v8791_v44 }
 0x3a2   :  { %v451_v5 = vadd.f32 %v450_v4, %v384_v40  ;;  %v7626_v6 = vpop.f32.mrb[21].mxu1 }
 0x3a3   :  { %v453_v7 = vpop.f32.mrb[22].mxu1  ;;  %v8854_v9 = vadd.f32 %v464_v2, %v8793_v45 }
 0x3a4   :  { %8413 = vtanh.f32 %v451_v5  ;;  %v454_v10 = vadd.f32 %v453_v7, %v384_v40  ;;  %v7627_v11 = vpop.f32.mrb[23].mxu1 }
 0x3a5   :  { %v475_v12 = vpack.c.bf16 %v8854_v9, %v8851_v8 }
 0x3a6   :  { %v8410_v13 = vpop.eup %8409  ;;  %8415 = vtanh.f32 %v454_v10 }
 0x3a7   :  { %v465_v14 = vmul.f32 %v8410_v13, %v8803_v53  ;;  %7629 = vmatpush3.bf16.msra.mxu0 %v475_v12 }
 0x3a8   :  { %v8412_v15 = vpop.eup %8411  ;;  %7630 = vmatprep.subr.bf16.mxu0 %v13858_v0 }
 0x3a9   :  { %v466_v44 = vmul.f32 %v8412_v15, %v8805_v54  ;;  %v8862_v16 = vadd.f32 %v465_v14, %v8803_v53 }
 0x3ab   :  { %v8865_v45 = vadd.f32 %v466_v44, %v8805_v54 }
 0x3ad   :  { %v476_v17 = vpack.c.bf16 %v8865_v45, %v8862_v16 }
 0x3ae   :  { %v8414_v18 = vpop.eup %8413 }
 0x3af   :  { %v467_v19 = vmul.f32 %v8414_v18, %v8815_v62  ;;  %7631 = vmatpush3.bf16.msra.mxu0 %v476_v17 }
 0x3b0   :  { %v8416_v20 = vpop.eup %8415  ;;  %7632 = vmatprep.subr.bf16.mxu0 %v13858_v0 }
 0x3b1   :  { %v468_v21 = vmul.f32 %v8416_v20, %v8817_v63  ;;  %v8873_v22 = vadd.f32 %v467_v19, %v8815_v62 }
 0x3b3   :  { %v8876_v53 = vadd.f32 %v468_v21, %v8817_v63 }
 0x3b5   :  { %v477_v54 = vpack.c.bf16 %v8876_v53, %v8873_v22 }
 0x3b7   :  { %7633 = vmatpush3.bf16.msra.mxu0 %v477_v54 }
 0x3b8   :  { %7638 = vmatprep.subr.bf16.mxu0 %v13858_v0 }
 0x3ba   :  { %7635 = vmatmul.mubr.msk.bf16.vlgmr.msra.gmra.mrb[24].mxu0 %vm13847_vm2, %v8883_v23 }
 0x3bb   :  { %7640 = vmatprep.mubr.msk.bf16.mxu0 %vm13845_vm0, %v13858_v0 }
 0x48d   :  { %v515_v62 = vpop.f32.mrb[24].mxu0 }
 0x48e   :  { %8417 = vtanh.f32 %v515_v62  ;;  %v7636_v63 = vpop.f32.mrb[25].mxu0 }
 0x48f   :  { %v518_v24 = vpop.f32.mrb[26].mxu0 }
 0x490   :  { %v7637_v25 = vpop.f32.mrb[27].mxu0 }
 0x498   :  { %v8418_v26 = vpop.eup %8417 }
 0x499   :  { %v522_v27 = vpack.c.bf16 %v8418_v26, %v8418_v26 }
 0x49b   :  { %v550_v31 = vsel %vm13843_vm4, %v522_v27, 0 }
 0x49c   :  { %7639 = vmatpush3.bf16.msra.mxu0 %v550_v31 }
 0x49d   :  { %7682 = vmatprep.subr.bf16.mxu0 %v13858_v0 }
 0x49f   :  { %7641 = vmatmul.mubr.msk.bf16.vlgmr.msra.gmra.mrb[28].mxu0 %vm13842_vm5, %v8894_v32 }
 0x4a0   :  { %7644 = vmatprep.mubr.msk.bf16.mxu0 %vm13845_vm0, %v13858_v0 }
 0x4a7   :  { %7645 = vmatmul.mubr.msk.bf16.gmra.mrb[32].mxu0 %vm13842_vm5, %v8904_v37 }
 0x4a8   :  { %7648 = vmatprep.mubr.msk.bf16.mxu0 %vm13845_vm0, %v13858_v0 }
 0x4af   :  { %7649 = vmatmul.mubr.msk.bf16.gmra.mrb[36].mxu0 %vm13842_vm5, %v8913_v38 }
 0x4b0   :  { %7688 = vmatprep.mubr.msk.bf16.mxu0 %vm13845_vm0, %v13858_v0 }
 0x572   :  { %v586_v40 = vpop.f32.mrb[28].mxu0 }
 0x573   :  { %v609_v41 = vmul.f32 %v586_v40, %v8851_v8  ;;  %v7642_v42 = vpop.f32.mrb[29].mxu0 }
 0x574   :  { %v589_v43 = vpop.f32.mrb[30].mxu0 }
 0x575   :  { %v610_v47 = vmul.f32 %v589_v43, %v8854_v9  ;;  %v7643_v48 = vpop.f32.mrb[31].mxu0  ;;  %v615_v49 = vsel %vm13849_vm3, %v609_v41, 0.0 }
 0x576   :  { %616 = vadd.xlane.f32.xlu0 %v615_v49 }
 0x577   :  { %v618_v50 = vsel %vm13849_vm3, %v610_v47, 0.0 }
 0x57a   :  { %619 = vadd.xlane.f32.xlu0 %v618_v50  ;;  %v594_v51 = vpop.f32.mrb[32].mxu0 }
 0x57b   :  { %v611_v52 = vmul.f32 %v594_v51, %v8862_v16  ;;  %v7646_v56 = vpop.f32.mrb[33].mxu0 }
 0x57c   :  { %v597_v57 = vpop.f32.mrb[34].mxu0 }
 0x57d   :  { %v612_v58 = vmul.f32 %v597_v57, %v8865_v45  ;;  %v7647_v59 = vpop.f32.mrb[35].mxu0  ;;  %v621_v60 = vsel %vm13849_vm3, %v611_v52, 0.0 }
 0x57e   :  { %622 = vadd.xlane.f32.xlu1 %v621_v60 }
 0x57f   :  { %v624_v61 = vsel %vm13849_vm3, %v612_v58, 0.0 }
 0x582   :  { %625 = vadd.xlane.f32.xlu1 %v624_v61  ;;  %v602_v2 = vpop.f32.mrb[36].mxu0 }
 0x583   :  { %v613_v4 = vmul.f32 %v602_v2, %v8873_v22  ;;  %v7650_v5 = vpop.f32.mrb[37].mxu0 }
 0x584   :  { %v605_v6 = vpop.f32.mrb[38].mxu0 }
 0x585   :  { %v614_v7 = vmul.f32 %v605_v6, %v8876_v53  ;;  %v7651_v10 = vpop.f32.mrb[39].mxu0  ;;  %v627_v11 = vsel %vm13849_vm3, %v613_v4, 0.0 }
 0x586   :  { %628 = vadd.xlane.f32.xlu0 %v627_v11 }
 0x587   :  { %v630_v12 = vsel %vm13849_vm3, %v614_v7, 0.0 }
 0x588   :  { %631 = vadd.xlane.f32.xlu1 %v630_v12 }
 0x603   :  { %v617_v13 = vpop.xlane.xlu0 %616 }
 0x604   :  { %v6212_v14 = vmul.f32 -10.0, %v617_v13 }
 0x606   :  { %v645_v15 = vmul.f32 1.442695, %v6212_v14 }
 0x607   :  { %v620_v44 = vpop.xlane.xlu0 %619 }
 0x608   :  { %8419 = vpow2.f32 %v645_v15  ;;  %v6213_v17 = vmul.f32 -10.0, %v620_v44  ;;  %v8942_v15 = vld [vmem:[%s13826_s2] sm:$0xf] }
 0x60a   :  { %v647_v18 = vmul.f32 1.442695, %v6213_v17 }
 0x60b   :  { %v623_v19 = vpop.xlane.xlu1 %622 }
 0x60c   :  { %8421 = vpow2.f32 %v647_v18  ;;  %v6214_v20 = vmul.f32 -10.0, %v623_v19 }
 0x60e   :  { %v649_v21 = vmul.f32 1.442695, %v6214_v20 }
 0x60f   :  { %v626_v54 = vpop.xlane.xlu1 %625 }
 0x610   :  { %8423 = vpow2.f32 %v649_v21  ;;  %v6215_v62 = vmul.f32 -10.0, %v626_v54 }
 0x612   :  { %v8420_v63 = vpop.eup %8419  ;;  %v651_v24 = vmul.f32 1.442695, %v6215_v62 }
 0x613   :  { %v657_v25 = vadd.f32 1.0, %v8420_v63  ;;  %v629_v26 = vpop.xlane.xlu0 %628 }
 0x614   :  { %8425 = vpow2.f32 %v651_v24  ;;  %v6216_v27 = vmul.f32 -10.0, %v629_v26 }
 0x615   :  { %v632_v31 = vpop.xlane.xlu1 %631  ;;  %8427 = vrcp.f32 %v657_v25 }
 0x616   :  { %v8422_v40 = vpop.eup %8421  ;;  %v653_v41 = vmul.f32 1.442695, %v6216_v27  ;;  %v6217_v42 = vmul.f32 -10.0, %v632_v31 }
 0x617   :  { %v658_v43 = vadd.f32 1.0, %v8422_v40 }
 0x618   :  { %8429 = vpow2.f32 %v653_v41  ;;  %v655_v47 = vmul.f32 1.442695, %v6217_v42  ;;  %v8364_v42 = vld [vmem:[%s13829_s5 + $0x60] sm:$0xff]  }
 0x619   :  { %8431 = vrcp.f32 %v658_v43 }
 0x61a   :  { %v8424_v48 = vpop.eup %8423  ;;  %8433 = vpow2.f32 %v655_v47 }
 0x61b   :  { %v659_v49 = vadd.f32 1.0, %v8424_v48 }
 0x61d   :  { %8435 = vrcp.f32 %v659_v49 }
 0x61e   :  { %v8426_v50 = vpop.eup %8425 }
 0x61f   :  { %v660_v51 = vadd.f32 1.0, %v8426_v50  ;;  %v8428_v52 = vpop.eup %8427 }
 0x620   :  { %v675_v60 = vmul.f32 %v8428_v52, %v8851_v8 }
 0x621   :  { %8437 = vrcp.f32 %v660_v51 }
 0x622   :  { %v8430_v56 = vpop.eup %8429 }
 0x623   :  { %v8432_v57 = vpop.eup %8431  ;;  %v661_v58 = vadd.f32 1.0, %v8430_v56 }
 0x624   :  { %v8434_v59 = vpop.eup %8433  ;;  %v676_v61 = vmul.f32 %v8432_v57, %v8854_v9 }
 0x625   :  { %8439 = vrcp.f32 %v661_v58  ;;  %v662_v2 = vadd.f32 1.0, %v8434_v59 }
 0x626   :  { %v681_v4 = vpack.c.bf16 %v676_v61, %v675_v60 }
 0x627   :  { %8441 = vrcp.f32 %v662_v2  ;;  %v8436_v5 = vpop.eup %8435 }
 0x628   :  { %7653 = vmatpush3.bf16.msra.mxu1 %v681_v4  ;;  %v677_v7 = vmul.f32 %v8436_v5, %v8862_v16  ;;  %v8360_v16 = vld [vmem:[%s13829_s5 + $0x8] sm:$0xff]  }
 0x629   :  { %7654 = vmatprep.subr.bf16.mxu1 %v13858_v0 }
 0x62b   :  { %v8438_v6 = vpop.eup %8437 }
 0x62c   :  { %v678_v10 = vmul.f32 %v8438_v6, %v8865_v45  ;;  %v8361_v45 = vld [vmem:[%s13829_s5 + $0x10] sm:$0xff]  }
 0x62e   :  { %v682_v11 = vpack.c.bf16 %v678_v10, %v677_v7 }
 0x62f   :  { %v8440_v12 = vpop.eup %8439 }
 0x630   :  { %7655 = vmatpush3.bf16.msra.mxu1 %v682_v11  ;;  %v679_v8 = vmul.f32 %v8440_v12, %v8873_v22  ;;  %v8362_v22 = vld [vmem:[%s13829_s5 + $0x18] sm:$0xff]  }
 0x631   :  { %v8442_v13 = vpop.eup %8441  ;;  %7656 = vmatprep.subr.bf16.mxu1 %v13858_v0 }
 0x632   :  { %v680_v9 = vmul.f32 %v8442_v13, %v8876_v53  ;;  %v8363_v53 = vld [vmem:[%s13829_s5 + $0x20] sm:$0xff]  }
 0x634   :  { %v683_v14 = vpack.c.bf16 %v680_v9, %v679_v8 }
 0x636   :  { %7657 = vmatpush3.bf16.msra.mxu1 %v683_v14 }
 0x637   :  { %7662 = vmatprep.subr.bf16.mxu1 %v13858_v0 }
 0x639   :  { %7659 = vmatmul.mubr.msk.bf16.vlgmr.msra.gmra.mrb[24].mxu1 %vm13847_vm2, %v8942_v15 }
 0x63a   :  { %7663 = vmatpush3.bf16.msra.mxu1 %v8360_v16  ;;  %7670 = vmatprep.mubr.msk.bf16.mxu1 %vm13845_vm0, %v13858_v0 }
 0x63b   :  { %7664 = vmatprep.subr.bf16.mxu1 %v13858_v0 }
 0x63e   :  { %7665 = vmatpush3.bf16.msra.mxu1 %v8361_v45 }
 0x63f   :  { %7666 = vmatprep.subr.bf16.mxu1 %v13858_v0 }
 0x642   :  { %7667 = vmatpush3.bf16.msra.mxu1 %v8362_v22  ;;  %v982_v22 = vld [vmem:[%s13829_s5 + $0x70] sm:$0xf] }
 0x643   :  { %7668 = vmatprep.subr.bf16.mxu1 %v13858_v0 }
 0x646   :  { %7669 = vmatpush3.bf16.msra.mxu1 %v8363_v53  ;;  %v1000_v53 = vsel %vm13843_vm4, %v982_v22, 0 }
 0x647   :  { %7700 = vmatprep.subr.bf16.mxu1 %v13858_v0 }
 0x649   :  { %7671 = vmatmul.mubr.msk.bf16.vlgmr.msra.gmra.mrb[28].mxu1 %vm13849_vm3, %v8797_v46 }
 0x64a   :  { %7674 = vmatprep.mubr.msk.bf16.mxu1 %vm13845_vm0, %v13858_v0  ;;  %7701 = vmatpush3.bf16.msra.mxu1 %v8364_v42 }
 0x64b   :  { %7702 = vmatprep.subr.bf16.mxu1 %v13858_v0 }
 0x651   :  { %7675 = vmatmul.mubr.msk.bf16.gmra.mrb[32].mxu1 %vm13849_vm3, %v8809_v55 }
 0x652   :  { %7678 = vmatprep.mubr.msk.bf16.mxu1 %vm13845_vm0, %v13858_v0 }
 0x659   :  { %7679 = vmatmul.mubr.msk.bf16.gmra.mrb[36].mxu1 %vm13849_vm3, %v8821_v1 }
 0x65a   :  { %7704 = vmatprep.mubr.msk.bf16.mxu1 %vm13845_vm0, %v13858_v0 }
 0x70c   :  { %v8977_v44 = vpop.f32.mrb[24].mxu1 }
 0x70d   :  { %v7660_v17 = vpop.f32.mrb[25].mxu1 }
 0x70e   :  { %v724_v18 = vpop.f32.mrb[26].mxu1  ;;  %v13851_v17 = vsub.s32 5, %v8780_v34 }
 0x70f   :  { %v7661_v46 = vpop.f32.mrb[27].mxu1 }
 0x710   :  { %v896_v18 = vrot.slane %v8786_v36, %v13851_v17 }
 0x71c   :  { %v793_v19 = vpop.f32.mrb[28].mxu1 }
 0x71d   :  { %v7672_v20 = vpop.f32.mrb[29].mxu1 }
 0x71e   :  { %v796_v21 = vpop.f32.mrb[30].mxu1 }
 0x71f   :  { %v816_v54 = vpack.c.bf16 %v796_v21, %v793_v19  ;;  %v7673_v62 = vpop.f32.mrb[31].mxu1 }
 0x721   :  { %7683 = vmatpush3.bf16.msra.mxu0 %v816_v54 }
 0x722   :  { %7684 = vmatprep.subr.bf16.mxu0 %v13858_v0 }
 0x724   :  { %v801_v55 = vpop.f32.mrb[32].mxu1 }
 0x725   :  { %v7676_v63 = vpop.f32.mrb[33].mxu1 }
 0x726   :  { %v804_v24 = vpop.f32.mrb[34].mxu1 }
 0x727   :  { %v817_v1 = vpack.c.bf16 %v804_v24, %v801_v55  ;;  %v7677_v25 = vpop.f32.mrb[35].mxu1 }
 0x729   :  { %7685 = vmatpush3.bf16.msra.mxu0 %v817_v1 }
 0x72a   :  { %7686 = vmatprep.subr.bf16.mxu0 %v13858_v0 }
 0x72c   :  { %v809_v26 = vpop.f32.mrb[36].mxu1 }
 0x72d   :  { %v7680_v27 = vpop.f32.mrb[37].mxu1 }
 0x72e   :  { %v812_v31 = vpop.f32.mrb[38].mxu1 }
 0x72f   :  { %v818_v40 = vpack.c.bf16 %v812_v31, %v809_v26  ;;  %v7681_v41 = vpop.f32.mrb[39].mxu1 }
 0x731   :  { %7687 = vmatpush3.bf16.msra.mxu0 %v818_v40 }
 0x732   :  { %7716 = vmatprep.subr.bf16.mxu0 %v13858_v0 }
 0x734   :  { %7689 = vmatmul.mubr.msk.bf16.vlgmr.msra.gmra.mrb[40].mxu0 %vm13847_vm2, %v8746_v28  ;;  %v8365_v28 = vld [vmem:[%s13829_s5 + $0x68] sm:$0xff]  }
 0x735   :  { %7692 = vmatprep.mubr.msk.bf16.mxu0 %vm13845_vm0, %v13858_v0  ;;  %7703 = vmatpush3.bf16.msra.mxu1 %v8365_v28 }
 0x736   :  { %7730 = vmatprep.subr.bf16.mxu1 %v13858_v0  ;;  %7717 = vmatpush3.bf16.msra.mxu0 %v1000_v53 }
 0x737   :  { %7740 = vmatprep.subr.bf16.mxu0 %v13858_v0 }
 0x73c   :  { %7693 = vmatmul.mubr.msk.bf16.gmra.mrb[44].mxu0 %vm13847_vm2, %v8756_v29  ;;  %v13855_v29 = vsub.s32 1, %v8780_v34 }
 0x73d   :  { %7696 = vmatprep.mubr.msk.bf16.mxu0 %vm13845_vm0, %v13858_v0 }
 0x744   :  { %7697 = vmatmul.mubr.msk.bf16.gmra.mrb[48].mxu0 %vm13847_vm2, %v8765_v30  ;;  %v822_v30 = vrot.slane %v8786_v36, %v13855_v29 }
 0x745   :  { %7718 = vmatprep.mubr.msk.bf16.mxu0 %vm13845_vm0, %v13858_v0 }
 0x807   :  { %v857_v43 = vpop.f32.mrb[40].mxu0 }
 0x808   :  { %v858_v47 = vadd.f32 %v857_v43, %v822_v30  ;;  %v7690_v48 = vpop.f32.mrb[41].mxu0 }
 0x809   :  { %v860_v49 = vpop.f32.mrb[42].mxu0 }
 0x80a   :  { %v861_v50 = vadd.f32 %v860_v49, %v822_v30  ;;  %v7691_v51 = vpop.f32.mrb[43].mxu0  ;;  %v9006_v52 = vmax.f32 %v858_v47, 0.0 }
 0x80c   :  { %v9008_v56 = vmax.f32 %v861_v50, 0.0 }
 0x80e   :  { %v9012_v57 = vpack.c.bf16 %v9008_v56, %v9006_v52 }
 0x80f   :  { %v865_v58 = vpop.f32.mrb[44].mxu0 }
 0x810   :  { %v866_v59 = vadd.f32 %v865_v58, %v822_v30  ;;  %v7694_v60 = vpop.f32.mrb[45].mxu0  ;;  %7705 = vmatmul.mubr.msk.bf16.vlgmr.msra.gmra.mrb[40].mxu1 %vm13844_vm6, %v9012_v57 }
 0x811   :  { %v868_v61 = vpop.f32.mrb[46].mxu0  ;;  %7708 = vmatprep.mubr.msk.bf16.mxu1 %vm13845_vm0, %v13858_v0  ;;  %v13850_v60 = vsub.s32 6, %v8780_v34 }
 0x812   :  { %v869_v2 = vadd.f32 %v868_v61, %v822_v30  ;;  %v7695_v4 = vpop.f32.mrb[47].mxu0  ;;  %v9018_v5 = vmax.f32 %v866_v59, 0.0 }
 0x813   :  { %v989_v61 = vrot.slane %v8786_v36, %v13850_v60 }
 0x814   :  { %v9020_v6 = vmax.f32 %v869_v2, 0.0 }
 0x816   :  { %v9024_v7 = vpack.c.bf16 %v9020_v6, %v9018_v5 }
 0x817   :  { %v873_v10 = vpop.f32.mrb[48].mxu0 }
 0x818   :  { %v874_v11 = vadd.f32 %v873_v10, %v822_v30  ;;  %v7698_v12 = vpop.f32.mrb[49].mxu0  ;;  %7709 = vmatmul.mubr.msk.bf16.gmra.mrb[44].mxu1 %vm13844_vm6, %v9024_v7 }
 0x819   :  { %v876_v13 = vpop.f32.mrb[50].mxu0  ;;  %7712 = vmatprep.mubr.msk.bf16.mxu1 %vm13845_vm0, %v13858_v0 }
 0x81a   :  { %v877_v8 = vadd.f32 %v876_v13, %v822_v30  ;;  %v7699_v9 = vpop.f32.mrb[51].mxu0  ;;  %v9030_v14 = vmax.f32 %v874_v11, 0.0 }
 0x81c   :  { %v9032_v16 = vmax.f32 %v877_v8, 0.0 }
 0x81e   :  { %v9036_v45 = vpack.c.bf16 %v9032_v16, %v9030_v14 }
 0x820   :  { %7713 = vmatmul.mubr.msk.bf16.gmra.mrb[48].mxu1 %vm13844_vm6, %v9036_v45 }
 0x821   :  { %7736 = vmatprep.mubr.msk.bf16.mxu1 %vm13845_vm0, %v13858_v0 }
 0x8e3   :  { %v953_v46 = vpop.f32.mrb[40].mxu1 }
 0x8e4   :  { %v954_v19 = vadd.f32 %v953_v46, %v896_v18  ;;  %v7706_v20 = vpop.f32.mrb[41].mxu1 }
 0x8e5   :  { %v956_v21 = vpop.f32.mrb[42].mxu1 }
 0x8e6   :  { %v957_v54 = vadd.f32 %v956_v21, %v896_v18  ;;  %v7707_v62 = vpop.f32.mrb[43].mxu1  ;;  %v976_v55 = vmax.f32 %v954_v19, 0.0 }
 0x8e8   :  { %v977_v63 = vmax.f32 %v957_v54, 0.0 }
 0x8ea   :  { %v983_v24 = vpack.c.bf16 %v977_v63, %v976_v55 }
 0x8eb   :  { %v961_v1 = vpop.f32.mrb[44].mxu1 }
 0x8ec   :  { %v962_v25 = vadd.f32 %v961_v1, %v896_v18  ;;  %v7710_v26 = vpop.f32.mrb[45].mxu1  ;;  %7719 = vmatmul.mubr.msk.bf16.vlgmr.msra.gmra.mrb[52].mxu0 %vm13842_vm5, %v983_v24 }
 0x8ed   :  { %v964_v27 = vpop.f32.mrb[46].mxu1  ;;  %7722 = vmatprep.mubr.msk.bf16.mxu0 %vm13845_vm0, %v13858_v0 }
 0x8ee   :  { %v965_v31 = vadd.f32 %v964_v27, %v896_v18  ;;  %v7711_v40 = vpop.f32.mrb[47].mxu1  ;;  %v978_v41 = vmax.f32 %v962_v25, 0.0 }
 0x8f0   :  { %v979_v42 = vmax.f32 %v965_v31, 0.0 }
 0x8f2   :  { %v984_v28 = vpack.c.bf16 %v979_v42, %v978_v41 }
 0x8f3   :  { %v969_v30 = vpop.f32.mrb[48].mxu1 }
 0x8f4   :  { %v970_v43 = vadd.f32 %v969_v30, %v896_v18  ;;  %v7714_v47 = vpop.f32.mrb[49].mxu1  ;;  %7723 = vmatmul.mubr.msk.bf16.gmra.mrb[56].mxu0 %vm13842_vm5, %v984_v28 }
 0x8f5   :  { %v972_v48 = vpop.f32.mrb[50].mxu1  ;;  %7726 = vmatprep.mubr.msk.bf16.mxu0 %vm13845_vm0, %v13858_v0 }
 0x8f6   :  { %v973_v49 = vadd.f32 %v972_v48, %v896_v18  ;;  %v7715_v50 = vpop.f32.mrb[51].mxu1  ;;  %v980_v51 = vmax.f32 %v970_v43, 0.0 }
 0x8f8   :  { %v981_v58 = vmax.f32 %v973_v49, 0.0 }
 0x8fa   :  { %v985_v59 = vpack.c.bf16 %v981_v58, %v980_v51 }
 0x8fc   :  { %7727 = vmatmul.mubr.msk.bf16.gmra.mrb[60].mxu0 %vm13842_vm5, %v985_v59 }
 0x8fd   :  { %7742 = vmatprep.mubr.msk.bf16.mxu0 %vm13845_vm0, %v13858_v0 }
 0x9bf   :  { %v1036_v2 = vpop.f32.mrb[52].mxu0 }
 0x9c0   :  { %v1037_v4 = vadd.f32 %v1036_v2, %v989_v61  ;;  %v7720_v10 = vpop.f32.mrb[53].mxu0 }
 0x9c1   :  { %v1039_v11 = vpop.f32.mrb[54].mxu0 }
 0x9c2   :  { %8443 = vtanh.f32 %v1037_v4  ;;  %v1040_v12 = vadd.f32 %v1039_v11, %v989_v61  ;;  %v7721_v13 = vpop.f32.mrb[55].mxu0 }
 0x9c4   :  { %8445 = vtanh.f32 %v1040_v12 }
 0x9c7   :  { %v1044_v8 = vpop.f32.mrb[56].mxu0 }
 0x9c8   :  { %v1045_v9 = vadd.f32 %v1044_v8, %v989_v61  ;;  %v7724_v22 = vpop.f32.mrb[57].mxu0 }
 0x9c9   :  { %v1047_v53 = vpop.f32.mrb[58].mxu0 }
 0x9ca   :  { %8447 = vtanh.f32 %v1045_v9  ;;  %v1048_v18 = vadd.f32 %v1047_v53, %v989_v61  ;;  %v7725_v46 = vpop.f32.mrb[59].mxu0 }
 0x9cc   :  { %v8444_v19 = vpop.eup %8443  ;;  %8449 = vtanh.f32 %v1048_v18 }
 0x9cd   :  { %v1065_v20 = vmul.f32 %v8444_v19, %v9006_v52 }
 0x9ce   :  { %v8446_v36 = vpop.eup %8445 }
 0x9cf   :  { %v1066_v21 = vmul.f32 %v8446_v36, %v9008_v56  ;;  %v1052_v54 = vpop.f32.mrb[60].mxu0  ;;  %v9067_v24 = vadd.f32 %v1065_v20, %v9006_v52 }
 0x9d0   :  { %v1053_v62 = vadd.f32 %v1052_v54, %v989_v61  ;;  %v7728_v55 = vpop.f32.mrb[61].mxu0 }
 0x9d1   :  { %v1055_v63 = vpop.f32.mrb[62].mxu0  ;;  %v9070_v1 = vadd.f32 %v1066_v21, %v9008_v56 }
 0x9d2   :  { %8451 = vtanh.f32 %v1053_v62  ;;  %v1056_v25 = vadd.f32 %v1055_v63, %v989_v61  ;;  %v7729_v26 = vpop.f32.mrb[63].mxu0 }
 0x9d3   :  { %v1077_v27 = vpack.c.bf16 %v9070_v1, %v9067_v24 }
 0x9d4   :  { %v8448_v31 = vpop.eup %8447  ;;  %8453 = vtanh.f32 %v1056_v25 }
 0x9d5   :  { %v1067_v40 = vmul.f32 %v8448_v31, %v9018_v5  ;;  %7731 = vmatpush3.bf16.msra.mxu1 %v1077_v27 }
 0x9d6   :  { %v8450_v41 = vpop.eup %8449  ;;  %7732 = vmatprep.subr.bf16.mxu1 %v13858_v0 }
 0x9d7   :  { %v1068_v52 = vmul.f32 %v8450_v41, %v9020_v6  ;;  %v9078_v42 = vadd.f32 %v1067_v40, %v9018_v5 }
 0x9d9   :  { %v9081_v56 = vadd.f32 %v1068_v52, %v9020_v6 }
 0x9db   :  { %v1078_v28 = vpack.c.bf16 %v9081_v56, %v9078_v42 }
 0x9dc   :  { %v8452_v30 = vpop.eup %8451 }
 0x9dd   :  { %v1069_v43 = vmul.f32 %v8452_v30, %v9030_v14  ;;  %7733 = vmatpush3.bf16.msra.mxu1 %v1078_v28 }
 0x9de   :  { %v8454_v47 = vpop.eup %8453  ;;  %7734 = vmatprep.subr.bf16.mxu1 %v13858_v0 }
 0x9df   :  { %v1070_v48 = vmul.f32 %v8454_v47, %v9032_v16  ;;  %v9089_v49 = vadd.f32 %v1069_v43, %v9030_v14 }
 0x9e1   :  { %v9092_v5 = vadd.f32 %v1070_v48, %v9032_v16 }
 0x9e3   :  { %v1079_v6 = vpack.c.bf16 %v9092_v5, %v9089_v49 }
 0x9e5   :  { %7735 = vmatpush3.bf16.msra.mxu1 %v1079_v6 }
 0x9e6   :  { %7754 = vmatprep.subr.bf16.mxu1 %v13858_v0 }
 0x9e8   :  { %7737 = vmatmul.mubr.msk.bf16.vlgmr.msra.gmra.mrb[52].mxu1 %vm13847_vm2, %v8883_v23 }
 0x9e9   :  { %7760 = vmatprep.mubr.msk.bf16.mxu1 %vm13845_vm0, %v13858_v0 }
 0xabb   :  { %v1114_v50 = vpop.f32.mrb[52].mxu1 }
 0xabc   :  { %8455 = vtanh.f32 %v1114_v50  ;;  %v7738_v51 = vpop.f32.mrb[53].mxu1 }
 0xabd   :  { %v1117_v14 = vpop.f32.mrb[54].mxu1 }
 0xabe   :  { %v7739_v58 = vpop.f32.mrb[55].mxu1 }
 0xac6   :  { %v8456_v59 = vpop.eup %8455 }
 0xac7   :  { %v1121_v16 = vpack.c.bf16 %v8456_v59, %v8456_v59 }
 0xac9   :  { %v1123_v61 = vsel %vm13843_vm4, %v1121_v16, 0 }
 0xaca   :  { %7741 = vmatpush3.bf16.msra.mxu0 %v1123_v61 }
 0xacb   :  { %7780 = vmatprep.subr.bf16.mxu0 %v13858_v0 }
 0xacd   :  { %7743 = vmatmul.mubr.msk.bf16.vlgmr.msra.gmra.mrb[64].mxu0 %vm13842_vm5, %v8894_v32 }
 0xace   :  { %7746 = vmatprep.mubr.msk.bf16.mxu0 %vm13845_vm0, %v13858_v0 }
 0xad5   :  { %7747 = vmatmul.mubr.msk.bf16.gmra.mrb[68].mxu0 %vm13842_vm5, %v8904_v37 }
 0xad6   :  { %7750 = vmatprep.mubr.msk.bf16.mxu0 %vm13845_vm0, %v13858_v0 }
 0xadd   :  { %7751 = vmatmul.mubr.msk.bf16.gmra.mrb[72].mxu0 %vm13842_vm5, %v8913_v38 }
 0xade   :  { %7786 = vmatprep.mubr.msk.bf16.mxu0 %vm13845_vm0, %v13858_v0 }
 0xba0   :  { %v1159_v23 = vpop.f32.mrb[64].mxu0 }
 0xba1   :  { %v1182_v2 = vmul.f32 %v1159_v23, %v9067_v24  ;;  %v7744_v4 = vpop.f32.mrb[65].mxu0 }
 0xba2   :  { %v1162_v32 = vpop.f32.mrb[66].mxu0 }
 0xba3   :  { %v1183_v10 = vmul.f32 %v1162_v32, %v9070_v1  ;;  %v1188_v11 = vsel %vm13844_vm6, %v1182_v2, 0.0  ;;  %v7745_v12 = vpop.f32.mrb[67].mxu0 }
 0xba4   :  { %1189 = vadd.xlane.f32.xlu0 %v1188_v11 }
 0xba5   :  { %v1191_v37 = vsel %vm13844_vm6, %v1183_v10, 0.0 }
 0xba6   :  { %1192 = vadd.xlane.f32.xlu1 %v1191_v37 }
 0xba8   :  { %v1167_v13 = vpop.f32.mrb[68].mxu0 }
 0xba9   :  { %v1184_v38 = vmul.f32 %v1167_v13, %v9078_v42  ;;  %v7748_v8 = vpop.f32.mrb[69].mxu0 }
 0xbaa   :  { %v1170_v9 = vpop.f32.mrb[70].mxu0 }
 0xbab   :  { %v1185_v22 = vmul.f32 %v1170_v9, %v9081_v56  ;;  %v1194_v53 = vsel %vm13844_vm6, %v1184_v38, 0.0  ;;  %v7749_v18 = vpop.f32.mrb[71].mxu0 }
 0xbac   :  { %1195 = vadd.xlane.f32.xlu0 %v1194_v53 }
 0xbad   :  { %v1197_v46 = vsel %vm13844_vm6, %v1185_v22, 0.0 }
 0xbae   :  { %1198 = vadd.xlane.f32.xlu1 %v1197_v46 }
 0xbb0   :  { %v1175_v19 = vpop.f32.mrb[72].mxu0 }
 0xbb1   :  { %v1186_v20 = vmul.f32 %v1175_v19, %v9089_v49  ;;  %v7752_v36 = vpop.f32.mrb[73].mxu0 }
 0xbb2   :  { %v1178_v21 = vpop.f32.mrb[74].mxu0 }
 0xbb3   :  { %v1187_v54 = vmul.f32 %v1178_v21, %v9092_v5  ;;  %v1200_v62 = vsel %vm13844_vm6, %v1186_v20, 0.0  ;;  %v7753_v55 = vpop.f32.mrb[75].mxu0 }
 0xbb4   :  { %1201 = vadd.xlane.f32.xlu0 %v1200_v62 }
 0xbb5   :  { %v1203_v63 = vsel %vm13844_vm6, %v1187_v54, 0.0 }
 0xbb6   :  { %1204 = vadd.xlane.f32.xlu1 %v1203_v63  ;;  %v8366_v63 = vld [vmem:[%s13829_s5 + $0x28] sm:$0xff]  }
 0xc31   :  { %v1190_v25 = vpop.xlane.xlu0 %1189 }
 0xc32   :  { %v6241_v26 = vmul.f32 -10.0, %v1190_v25 }
 0xc33   :  { %v1193_v27 = vpop.xlane.xlu1 %1192 }
 0xc34   :  { %v1218_v31 = vmul.f32 1.442695, %v6241_v26  ;;  %v6242_v40 = vmul.f32 -10.0, %v1193_v27 }
 0xc36   :  { %8457 = vpow2.f32 %v1218_v31  ;;  %v1220_v41 = vmul.f32 1.442695, %v6242_v40 }
 0xc38   :  { %8459 = vpow2.f32 %v1220_v41 }
 0xc39   :  { %v1196_v52 = vpop.xlane.xlu0 %1195 }
 0xc3a   :  { %v6243_v28 = vmul.f32 -10.0, %v1196_v52 }
 0xc3b   :  { %v1199_v30 = vpop.xlane.xlu1 %1198 }
 0xc3c   :  { %v1222_v43 = vmul.f32 1.442695, %v6243_v28  ;;  %v6244_v47 = vmul.f32 -10.0, %v1199_v30 }
 0xc3e   :  { %8461 = vpow2.f32 %v1222_v43  ;;  %v1224_v48 = vmul.f32 1.442695, %v6244_v47 }
 0xc40   :  { %v8458_v6 = vpop.eup %8457  ;;  %8463 = vpow2.f32 %v1224_v48 }
 0xc41   :  { %v1230_v50 = vadd.f32 1.0, %v8458_v6  ;;  %v1202_v51 = vpop.xlane.xlu0 %1201  ;;  %v8523_v6 = vld [vmem:[%s14062_s22] sm:$0xff]  }
 0xc42   :  { %v8460_v14 = vpop.eup %8459  ;;  %v6245_v58 = vmul.f32 -10.0, %v1202_v51  ;;  %v8525_v51 = vld [vmem:[%s14062_s22 + $0x10] sm:$0xff]  }
 0xc43   :  { %8465 = vrcp.f32 %v1230_v50  ;;  %v1231_v59 = vadd.f32 1.0, %v8460_v14  ;;  %v1205_v16 = vpop.xlane.xlu1 %1204  ;;  %v8524_v50 = vld [vmem:[%s14062_s22 + $0x8] sm:$0xff]   ;;  %v8368_v14 = vld [vmem:[%s13829_s5 + $0x78] sm:$0xff]  }
 0xc44   :  { %v1226_v61 = vmul.f32 1.442695, %v6245_v58  ;;  %v6246_v23 = vmul.f32 -10.0, %v1205_v16  ;;  %v13854_v58 = vsub.s32 2, %v8780_v34 }
 0xc45   :  { %8467 = vrcp.f32 %v1231_v59  ;;  %v8526_v59 = vld [vmem:[%s13839_s15] sm:$0xff] }
 0xc46   :  { %8469 = vpow2.f32 %v1226_v61  ;;  %v1228_v2 = vmul.f32 1.442695, %v6246_v23  ;;  %v1376_v16 = vrot.slane %v8526_v59, %v13854_v58 }
 0xc48   :  { %v8462_v4 = vpop.eup %8461  ;;  %8471 = vpow2.f32 %v1228_v2 }
 0xc49   :  { %v1232_v32 = vadd.f32 1.0, %v8462_v4 }
 0xc4a   :  { %v8464_v10 = vpop.eup %8463 }
 0xc4b   :  { %8473 = vrcp.f32 %v1232_v32  ;;  %v1233_v11 = vadd.f32 1.0, %v8464_v10 }
 0xc4d   :  { %v8466_v12 = vpop.eup %8465  ;;  %8475 = vrcp.f32 %v1233_v11 }
 0xc4e   :  { %v1248_v38 = vmul.f32 %v8466_v12, %v9067_v24 }
 0xc4f   :  { %v8468_v37 = vpop.eup %8467 }
 0xc50   :  { %v8470_v13 = vpop.eup %8469  ;;  %v1249_v8 = vmul.f32 %v8468_v37, %v9070_v1 }
 0xc51   :  { %v1234_v9 = vadd.f32 1.0, %v8470_v13 }
 0xc52   :  { %v8472_v22 = vpop.eup %8471  ;;  %v1254_v53 = vpack.c.bf16 %v1249_v8, %v1248_v38 }
 0xc53   :  { %8477 = vrcp.f32 %v1234_v9  ;;  %v1235_v18 = vadd.f32 1.0, %v8472_v22 }
 0xc54   :  { %7755 = vmatpush3.bf16.msra.mxu1 %v1254_v53 }
 0xc55   :  { %v8474_v46 = vpop.eup %8473  ;;  %8479 = vrcp.f32 %v1235_v18  ;;  %7756 = vmatprep.subr.bf16.mxu1 %v13858_v0 }
 0xc56   :  { %v1250_v20 = vmul.f32 %v8474_v46, %v9078_v42  ;;  %v8367_v42 = vld [vmem:[%s13829_s5 + $0x30] sm:$0xff]  }
 0xc57   :  { %v8476_v19 = vpop.eup %8475 }
 0xc58   :  { %v1251_v36 = vmul.f32 %v8476_v19, %v9081_v56 }
 0xc5a   :  { %v1255_v21 = vpack.c.bf16 %v1251_v36, %v1250_v20 }
 0xc5c   :  { %7757 = vmatpush3.bf16.msra.mxu1 %v1255_v21 }
 0xc5d   :  { %v8478_v24 = vpop.eup %8477  ;;  %7758 = vmatprep.subr.bf16.mxu1 %v13858_v0 }
 0xc5e   :  { %v1252_v54 = vmul.f32 %v8478_v24, %v9089_v49 }
 0xc5f   :  { %v8480_v1 = vpop.eup %8479 }
 0xc60   :  { %v1253_v62 = vmul.f32 %v8480_v1, %v9092_v5 }
 0xc62   :  { %v1256_v55 = vpack.c.bf16 %v1253_v62, %v1252_v54 }
 0xc64   :  { %7759 = vmatpush3.bf16.msra.mxu1 %v1256_v55 }
 0xc65   :  { %7764 = vmatprep.subr.bf16.mxu1 %v13858_v0 }
 0xc67   :  { %7761 = vmatmul.mubr.msk.bf16.vlgmr.msra.gmra.mrb[56].mxu1 %vm13847_vm2, %v8942_v15 }
 0xc68   :  { %7765 = vmatpush3.bf16.msra.mxu1 %v8366_v63  ;;  %7768 = vmatprep.mubr.msk.bf16.mxu1 %vm13845_vm0, %v13858_v0 }
 0xc69   :  { %7766 = vmatprep.subr.bf16.mxu1 %v13858_v0 }
 0xc6c   :  { %7767 = vmatpush3.bf16.msra.mxu1 %v8367_v42  ;;  %v1527_v42 = vld [vmem:[%s13829_s5 + $0x80] sm:$0x3]  ;;  %s8589_s5 = smov 96  }
 0xc6d   :  { %7798 = vmatprep.subr.bf16.mxu1 %v13858_v0 }
 0xc6f   :  { %7769 = vmatmul.mubr.msk.bf16.vlgmr.msra.gmra.mrb[60].mxu1 %vm13844_vm6, %v9012_v57 }
 0xc70   :  { %7772 = vmatprep.mubr.msk.bf16.mxu1 %vm13845_vm0, %v13858_v0  ;;  %7799 = vmatpush3.bf16.msra.mxu1 %v8368_v14 }
 0xc71   :  { %7826 = vmatprep.subr.bf16.mxu1 %v13858_v0 }
 0xc77   :  { %7773 = vmatmul.mubr.msk.bf16.gmra.mrb[64].mxu1 %vm13844_vm6, %v9024_v7 }
 0xc78   :  { %7776 = vmatprep.mubr.msk.bf16.mxu1 %vm13845_vm0, %v13858_v0 }
 0xc7f   :  { %7777 = vmatmul.mubr.msk.bf16.gmra.mrb[68].mxu1 %vm13844_vm6, %v9036_v45 }
 0xc80   :  { %7800 = vmatprep.mubr.msk.bf16.mxu1 %vm13845_vm0, %v13858_v0 }
 0xd3a   :  { %v9160_v15 = vpop.f32.mrb[56].mxu1 }
 0xd3b   :  { %v7762_v56 = vpop.f32.mrb[57].mxu1 }
 0xd3c   :  { %v1294_v49 = vpop.f32.mrb[58].mxu1  ;;  %v1547_v56 = vsel %vm1545_vm7, %v1527_v42, 0 }
 0xd3d   :  { %v7763_v57 = vpop.f32.mrb[59].mxu1  ;;  %v1447_v49 = vsub.s32 7, %v8780_v34 }
 0xd3f   :  { %v1448_v57 = vrot.slane %v8526_v59, %v1447_v49 }
 0xd42   :  { %v1347_v5 = vpop.f32.mrb[60].mxu1 }
 0xd43   :  { %v7770_v25 = vpop.f32.mrb[61].mxu1 }
 0xd44   :  { %v1350_v26 = vpop.f32.mrb[62].mxu1 }
 0xd45   :  { %v1370_v27 = vpack.c.bf16 %v1350_v26, %v1347_v5  ;;  %v7771_v31 = vpop.f32.mrb[63].mxu1 }
 0xd47   :  { %7781 = vmatpush3.bf16.msra.mxu0 %v1370_v27 }
 0xd48   :  { %7782 = vmatprep.subr.bf16.mxu0 %v13858_v0 }
 0xd4a   :  { %v1355_v7 = vpop.f32.mrb[64].mxu1 }
 0xd4b   :  { %v7774_v40 = vpop.f32.mrb[65].mxu1 }
 0xd4c   :  { %v1358_v41 = vpop.f32.mrb[66].mxu1 }
 0xd4d   :  { %v1371_v45 = vpack.c.bf16 %v1358_v41, %v1355_v7  ;;  %v7775_v52 = vpop.f32.mrb[67].mxu1 }
 0xd4f   :  { %7783 = vmatpush3.bf16.msra.mxu0 %v1371_v45 }
 0xd50   :  { %7784 = vmatprep.subr.bf16.mxu0 %v13858_v0 }
 0xd52   :  { %v1363_v28 = vpop.f32.mrb[68].mxu1 }
 0xd53   :  { %v7778_v30 = vpop.f32.mrb[69].mxu1 }
 0xd54   :  { %v1366_v43 = vpop.f32.mrb[70].mxu1 }
 0xd55   :  { %v1372_v47 = vpack.c.bf16 %v1366_v43, %v1363_v28  ;;  %v7779_v48 = vpop.f32.mrb[71].mxu1 }
 0xd57   :  { %7785 = vmatpush3.bf16.msra.mxu0 %v1372_v47 }
 0xd58   :  { %7812 = vmatprep.subr.bf16.mxu0 %v13858_v0 }
 0xd5a   :  { %7787 = vmatmul.mubr.msk.bf16.vlgmr.msra.gmra.mrb[76].mxu0 %vm13847_vm2, %v8523_v6 }
 0xd5b   :  { %7790 = vmatprep.mubr.msk.bf16.mxu0 %vm13845_vm0, %v13858_v0  ;;  %7813 = vmatpush3.bf16.msra.mxu0 %v1547_v56 }
 0xd5c   :  { %7850 = vmatprep.subr.bf16.mxu0 %v13858_v0 }
 0xd62   :  { %7791 = vmatmul.mubr.msk.bf16.gmra.mrb[80].mxu0 %vm13847_vm2, %v8524_v50 }
 0xd63   :  { %7794 = vmatprep.mubr.msk.bf16.mxu0 %vm13845_vm0, %v13858_v0 }
 0xd6a   :  { %7795 = vmatmul.mubr.msk.bf16.gmra.mrb[84].mxu0 %vm13847_vm2, %v8525_v51 }
 0xd6b   :  { %7814 = vmatprep.mubr.msk.bf16.mxu0 %vm13845_vm0, %v13858_v0 }
 0xe2d   :  { %v1411_v61 = vpop.f32.mrb[76].mxu0 }
 0xe2e   :  { %v1412_v23 = vadd.f32 %v1411_v61, %v1376_v16  ;;  %v7788_v2 = vpop.f32.mrb[77].mxu0 }
 0xe2f   :  { %v1414_v4 = vpop.f32.mrb[78].mxu0 }
 0xe30   :  { %v1415_v32 = vadd.f32 %v1414_v4, %v1376_v16  ;;  %v7789_v10 = vpop.f32.mrb[79].mxu0  ;;  %v9193_v11 = vmax.f32 %v1412_v23, 0.0 }
 0xe32   :  { %v9195_v12 = vmax.f32 %v1415_v32, 0.0 }
 0xe34   :  { %v1442_v37 = vpack.c.bf16 %v9195_v12, %v9193_v11 }
 0xe35   :  { %v1419_v13 = vpop.f32.mrb[80].mxu0 }
 0xe36   :  { %v1420_v38 = vadd.f32 %v1419_v13, %v1376_v16  ;;  %v7792_v8 = vpop.f32.mrb[81].mxu0  ;;  %7801 = vmatmul.mubr.msk.bf16.vlgmr.msra.gmra.mrb[72].mxu1 %vm13848_vm1, %v1442_v37  ;;  %v90_v37 = vld [vmem:[%s13839_s15 + $0x8] sm:$0xff] }
 0xe37   :  { %v1422_v9 = vpop.f32.mrb[82].mxu0  ;;  %7804 = vmatprep.mubr.msk.bf16.mxu1 %vm13845_vm0, %v13858_v0  ;;  %v1534_v13 = vrot.slane %v90_v37, %v174_v35 }
 0xe38   :  { %v1423_v22 = vadd.f32 %v1422_v9, %v1376_v16  ;;  %v7793_v53 = vpop.f32.mrb[83].mxu0  ;;  %v9202_v18 = vmax.f32 %v1420_v38, 0.0 }
 0xe3a   :  { %v9204_v46 = vmax.f32 %v1423_v22, 0.0 }
 0xe3c   :  { %v1443_v19 = vpack.c.bf16 %v9204_v46, %v9202_v18 }
 0xe3d   :  { %v1427_v20 = vpop.f32.mrb[84].mxu0 }
 0xe3e   :  { %v1428_v36 = vadd.f32 %v1427_v20, %v1376_v16  ;;  %v7796_v21 = vpop.f32.mrb[85].mxu0  ;;  %7805 = vmatmul.mubr.msk.bf16.gmra.mrb[76].mxu1 %vm13848_vm1, %v1443_v19 }
 0xe3f   :  { %v1430_v24 = vpop.f32.mrb[86].mxu0  ;;  %7808 = vmatprep.mubr.msk.bf16.mxu1 %vm13845_vm0, %v13858_v0 }
 0xe40   :  { %v1431_v1 = vadd.f32 %v1430_v24, %v1376_v16  ;;  %v7797_v54 = vpop.f32.mrb[87].mxu0  ;;  %v9211_v62 = vmax.f32 %v1428_v36, 0.0 }
 0xe42   :  { %v9213_v55 = vmax.f32 %v1431_v1, 0.0 }
 0xe44   :  { %v1444_v63 = vpack.c.bf16 %v9213_v55, %v9211_v62 }
 0xe46   :  { %7809 = vmatmul.mubr.msk.bf16.gmra.mrb[80].mxu1 %vm13848_vm1, %v1444_v63 }
 0xe47   :  { %7832 = vmatprep.mubr.msk.bf16.mxu1 %vm13845_vm0, %v13858_v0 }
 0xf09   :  { %v1498_v5 = vpop.f32.mrb[72].mxu1 }
 0xf0a   :  { %v1499_v25 = vadd.f32 %v1498_v5, %v1448_v57  ;;  %v7802_v26 = vpop.f32.mrb[73].mxu1 }
 0xf0b   :  { %v1501_v27 = vpop.f32.mrb[74].mxu1 }
 0xf0c   :  { %v1502_v31 = vadd.f32 %v1501_v27, %v1448_v57  ;;  %v7803_v7 = vpop.f32.mrb[75].mxu1  ;;  %v1521_v40 = vmax.f32 %v1499_v25, 0.0 }
 0xf0e   :  { %v1522_v41 = vmax.f32 %v1502_v31, 0.0 }
 0xf10   :  { %v1528_v45 = vpack.c.bf16 %v1522_v41, %v1521_v40 }
 0xf11   :  { %v1506_v52 = vpop.f32.mrb[76].mxu1 }
 0xf12   :  { %v1507_v28 = vadd.f32 %v1506_v52, %v1448_v57  ;;  %v7806_v30 = vpop.f32.mrb[77].mxu1  ;;  %7815 = vmatmul.mubr.msk.bf16.vlgmr.msra.gmra.mrb[88].mxu0 %vm1535_vm8, %v1528_v45 }
 0xf13   :  { %v1509_v43 = vpop.f32.mrb[78].mxu1  ;;  %7818 = vmatprep.mubr.msk.bf16.mxu0 %vm13845_vm0, %v13858_v0 }
 0xf14   :  { %v1510_v47 = vadd.f32 %v1509_v43, %v1448_v57  ;;  %v7807_v48 = vpop.f32.mrb[79].mxu1  ;;  %v1523_v6 = vmax.f32 %v1507_v28, 0.0 }
 0xf16   :  { %v1524_v50 = vmax.f32 %v1510_v47, 0.0 }
 0xf18   :  { %v1529_v51 = vpack.c.bf16 %v1524_v50, %v1523_v6 }
 0xf19   :  { %v1514_v14 = vpop.f32.mrb[80].mxu1 }
 0xf1a   :  { %v1515_v59 = vadd.f32 %v1514_v14, %v1448_v57  ;;  %v7810_v16 = vpop.f32.mrb[81].mxu1  ;;  %7819 = vmatmul.mubr.msk.bf16.gmra.mrb[92].mxu0 %vm1535_vm8, %v1529_v51  ;;  %v8527_v51 = vld [vmem:[%s13827_s3] sm:$0xf] }
 0xf1b   :  { %v1517_v61 = vpop.f32.mrb[82].mxu1  ;;  %7822 = vmatprep.mubr.msk.bf16.mxu0 %vm13845_vm0, %v13858_v0  ;;  %v1846_v16 = vld [vmem:[#allocation2 + $0x8] sm:$0xff] }
 0xf1c   :  { %v1518_v23 = vadd.f32 %v1517_v61, %v1448_v57  ;;  %v7811_v2 = vpop.f32.mrb[83].mxu1  ;;  %v1525_v4 = vmax.f32 %v1515_v59, 0.0  ;;  %v1854_v61 = vld [vmem:[#allocation2 + $0x48] sm:$0xff] }
 0xf1e   :  { %v1526_v32 = vmax.f32 %v1518_v23, 0.0 }
 0xf20   :  { %v1530_v10 = vpack.c.bf16 %v1526_v32, %v1525_v4  ;;  %v6277_v4 = vcombine.high %v1846_v16, %v1854_v61  ;;  %v1862_v32 = vld [vmem:[#allocation2 + $0x88] sm:$0xff] }
 0xf22   :  { %7823 = vmatmul.mubr.msk.bf16.gmra.mrb[96].mxu0 %vm1535_vm8, %v1530_v10  ;;  %v1870_v10 = vld [vmem:[#allocation2 + $0xc8] sm:$0xff] }
 0xf23   :  { %7856 = vmatprep.mubr.msk.bf16.mxu0 %vm13845_vm0, %v13858_v0 }
 0xfe5   :  { %v1583_v38 = vpop.f32.mrb[88].mxu0 }
 0xfe6   :  { %v1584_v8 = vadd.f32 %v1583_v38, %v1534_v13  ;;  %v7816_v9 = vpop.f32.mrb[89].mxu0  ;;  %v6293_v38 = vcombine.high %v1862_v32, %v1870_v10 }
 0xfe7   :  { %v1586_v22 = vpop.f32.mrb[90].mxu0  ;;  %v1886_v9 = vld [vmem:[#allocation2 + $0x148] sm:$0xff] }
 0xfe8   :  { %8481 = vtanh.f32 %v1584_v8  ;;  %v1587_v53 = vadd.f32 %v1586_v22, %v1534_v13  ;;  %v7817_v19 = vpop.f32.mrb[91].mxu0  ;;  %v1878_v8 = vld [vmem:[#allocation2 + $0x108] sm:$0xff]  ;;  %v8528_v22 = vld [vmem:[%s13828_s4] sm:$0xff]  }
 0xfe9   :  { %v6309_v19 = vcombine.high %v1878_v8, %v1886_v9 }
 0xfea   :  { %8483 = vtanh.f32 %v1587_v53  ;;  %v6292_v53 = vcombine.low %v1862_v32, %v1870_v10  ;;  %v1906_v32 = vld [vmem:[#allocation2 + $0x1e8] sm:$0xff] }
 0xfed   :  { %v1591_v20 = vpop.f32.mrb[92].mxu0 }
 0xfee   :  { %v1592_v36 = vadd.f32 %v1591_v20, %v1534_v13  ;;  %v7820_v21 = vpop.f32.mrb[93].mxu0  ;;  %v1894_v20 = vld [vmem:[#allocation2 + $0x188] sm:$0xff] }
 0xfef   :  { %v1594_v24 = vpop.f32.mrb[94].mxu0  ;;  %v6308_v21 = vcombine.low %v1878_v8, %v1886_v9 }
 0xff0   :  { %8485 = vtanh.f32 %v1592_v36  ;;  %v1595_v1 = vadd.f32 %v1594_v24, %v1534_v13  ;;  %v7821_v54 = vpop.f32.mrb[95].mxu0  ;;  %v1902_v36 = vld [vmem:[#allocation2 + $0x1c8] sm:$0xff] }
 0xff1   :  { %v6325_v24 = vcombine.high %v1894_v20, %v1902_v36  ;;  %v1856_v54 = vld [vmem:[#allocation2 + $0x58] sm:$0xff] }
 0xff2   :  { %v8482_v63 = vpop.eup %8481  ;;  %8487 = vtanh.f32 %v1595_v1  ;;  %v1848_v1 = vld [vmem:[#allocation2 + $0x18] sm:$0xff] }
 0xff3   :  { %v1612_v42 = vmul.f32 %v8482_v63, %v9193_v11  ;;  %v8529_v63 = vld [vmem:[%s13828_s4 + $0x8] sm:$0xff]  }
 0xff4   :  { %v8484_v35 = vpop.eup %8483 }
 0xff5   :  { %v1613_v56 = vmul.f32 %v8484_v35, %v9195_v12  ;;  %v1599_v49 = vpop.f32.mrb[96].mxu0  ;;  %v9242_v26 = vadd.f32 %v1612_v42, %v9193_v11  ;;  %v6324_v42 = vcombine.low %v1894_v20, %v1902_v36  ;;  %v6281_v35 = vcombine.high %v1848_v1, %v1856_v54  ;;  %v1884_v36 = vld [vmem:[#allocation2 + $0x138] sm:$0xff] }
 0xff6   :  { %v1600_v57 = vadd.f32 %v1599_v49, %v1534_v13  ;;  %v7824_v5 = vpop.f32.mrb[97].mxu0  ;;  %v13856_v49 = vmov 0  }
 0xff7   :  { %v1602_v25 = vpop.f32.mrb[98].mxu0  ;;  %v9245_v27 = vadd.f32 %v1613_v56, %v9195_v12  ;;  %v8530_v56 = vld [vmem:[%s13828_s4 + $0x10] sm:$0xff]   ;;  %v1872_v5 = vld [vmem:[#allocation2 + $0xd8] sm:$0xff] }
 0xff8   :  { %8489 = vtanh.f32 %v1600_v57  ;;  %v1603_v31 = vadd.f32 %v1602_v25, %v1534_v13  ;;  %v7825_v7 = vpop.f32.mrb[99].mxu0  ;;  %v6276_v13 = vcombine.low %v1846_v16, %v1854_v61  ;;  %v1864_v57 = vld [vmem:[#allocation2 + $0x98] sm:$0xff]  ;;  %v6280_v25 = vcombine.low %v1848_v1, %v1856_v54  ;;  %v1882_v16 = vld [vmem:[#allocation2 + $0x128] sm:$0xff] }
 0xff9   :  { %v1624_v40 = vpack.c.bf16 %v9245_v27, %v9242_v26  ;;  %v6297_v7 = vcombine.high %v1864_v57, %v1872_v5  ;;  %v1890_v61 = vld [vmem:[#allocation2 + $0x168] sm:$0xff]  ;;  %v1900_v54 = vld [vmem:[#allocation2 + $0x1b8] sm:$0xff] }
 0xffa   :  { %v8486_v41 = vpop.eup %8485  ;;  %8491 = vtanh.f32 %v1603_v31  ;;  %v9298_v31 = vpack.c.bf16 %v8977_v44, %v8977_v44  ;;  %v6316_v10 = vcombine.low %v1882_v16, %v1890_v61 }
 0xffb   :  { %v1614_v45 = vmul.f32 %v8486_v41, %v9202_v18  ;;  %7827 = vmatpush3.bf16.msra.mxu1 %v1624_v40  ;;  %v1880_v40 = vld [vmem:[#allocation2 + $0x118] sm:$0xff] }
 0xffc   :  { %v8488_v52 = vpop.eup %8487  ;;  %7828 = vmatprep.subr.bf16.mxu1 %v13858_v0  ;;  %v1888_v41 = vld [vmem:[#allocation2 + $0x158] sm:$0xff] }
 0xffd   :  { %v1615_v11 = vmul.f32 %v8488_v52, %v9204_v46  ;;  %v9253_v28 = vadd.f32 %v1614_v45, %v9202_v18  ;;  %v6296_v45 = vcombine.low %v1864_v57, %v1872_v5  ;;  %v6313_v52 = vcombine.high %v1880_v40, %v1888_v41  ;;  %v8369_v57 = vld [vmem:[%s13831_s7] sm:$0xff]   ;;  %v8370_v5 = vld [vmem:[%s13831_s7 + $0x8] sm:$0xff]  }
 0xfff   :  { %v9256_v12 = vadd.f32 %v1615_v11, %v9204_v46  ;;  %v1896_v11 = vld [vmem:[#allocation2 + $0x198] sm:$0xff] }
0x1001   :  { %v1625_v30 = vpack.c.bf16 %v9256_v12, %v9253_v28 }
0x1002   :  { %v8490_v43 = vpop.eup %8489 }
0x1003   :  { %v1616_v47 = vmul.f32 %v8490_v43, %v9211_v62  ;;  %7829 = vmatpush3.bf16.msra.mxu1 %v1625_v30  ;;  %v1904_v30 = vld [vmem:[#allocation2 + $0x1d8] sm:$0xff]  ;;  %v6312_v43 = vcombine.low %v1880_v40, %v1888_v41  ;;  %v9332_v40 = vadd.s32 384, %v8780_v34  ;;  %v9335_v41 = vand.u32 127, %v172_v33 }
0x1004   :  { %v8492_v48 = vpop.eup %8491  ;;  %7830 = vmatprep.subr.bf16.mxu1 %v13858_v0  ;;  %v9355_v33 = vadd.s32 264, %v8780_v34 }
0x1005   :  { %v1617_v6 = vmul.f32 %v8492_v48, %v9213_v55  ;;  %v9264_v50 = vadd.f32 %v1616_v47, %v9211_v62  ;;  %v6329_v47 = vcombine.high %v1896_v11, %v1904_v30  ;;  %v1850_v48 = vld [vmem:[#allocation2 + $0x28] sm:$0xff]  ;;  %14063 = vst [vmem:[#allocation8_spill] sm:$0xff] %v9335_v41 }
0x1007   :  { %v9267_v18 = vadd.f32 %v1617_v6, %v9213_v55  ;;  %v1858_v6 = vld [vmem:[#allocation2 + $0x68] sm:$0xff] }
0x1009   :  { %v1626_v46 = vpack.c.bf16 %v9267_v18, %v9264_v50 }
0x100b   :  { %7831 = vmatpush3.bf16.msra.mxu1 %v1626_v46  ;;  %v6328_v46 = vcombine.low %v1896_v11, %v1904_v30  ;;  %v9344_v11 = vadd.s32 1, %v9335_v41  ;;  %v9347_v30 = vadd.s32 256, %v8780_v34 }
0x100c   :  { %7836 = vmatprep.subr.bf16.mxu1 %v13858_v0 }
0x100d   :  { %14064 = vst [vmem:[#allocation9_spill] sm:$0xff] %v9344_v11 }
0x100e   :  { %7833 = vmatmul.mubr.msk.bf16.vlgmr.msra.gmra.mrb[84].mxu1 %vm13847_vm2, %v8527_v51  ;;  %v6285_v51 = vcombine.high %v1850_v48, %v1858_v6 }
0x100f   :  { %7838 = vmatprep.mubr.msk.bf16.mxu1 %vm13845_vm0, %v13858_v0 }
0x10e1   :  { %v1661_v62 = vpop.f32.mrb[84].mxu1 }
0x10e2   :  { %8493 = vtanh.f32 %v1661_v62  ;;  %v7834_v14 = vpop.f32.mrb[85].mxu1  ;;  %v1866_v62 = vld [vmem:[#allocation2 + $0xa8] sm:$0xff] }
0x10e3   :  { %v1664_v55 = vpop.f32.mrb[86].mxu1  ;;  %v1874_v14 = vld [vmem:[#allocation2 + $0xe8] sm:$0xff] }
0x10e4   :  { %v7835_v59 = vpop.f32.mrb[87].mxu1  ;;  %v6284_v55 = vcombine.low %v1850_v48, %v1858_v6  ;;  %v9371_v48 = vadd.s32 408, %v8780_v34  ;;  %v9378_v6 = vadd.s32 272, %v8780_v34 }
0x10e5   :  { %v6301_v59 = vcombine.high %v1866_v62, %v1874_v14 }
0x10ec   :  { %v8494_v23 = vpop.eup %8493 }
0x10ed   :  { %v1668_v2 = vpack.c.bf16 %v8494_v23, %v8494_v23  ;;  %v6300_v23 = vcombine.low %v1866_v62, %v1874_v14 }
0x10ef   :  { %v1670_v37 = vsel %vm13843_vm4, %v1668_v2, 0  ;;  %v6317_v2 = vcombine.high %v1882_v16, %v1890_v61 }
0x10f0   :  { %7837 = vmatpush3.bf16.msra.mxu1 %v1670_v37 }
0x10f1   :  { %2273 = vmatprep.subr.bf16.mxu1 %v6277_v4  ;;  %v1898_v4 = vld [vmem:[#allocation2 + $0x1a8] sm:$0xff] }
0x10f2   :  { %v6333_v37 = vcombine.high %v1898_v4, %v1906_v32  ;;  %v6332_v8 = vcombine.low %v1898_v4, %v1906_v32 }
0x10f3   :  { %7839 = vmatmul.mubr.msk.bf16.vlgmr.msra.gmra.mrb[88].mxu1 %vm13842_vm5, %v8528_v22  ;;  %v1868_v22 = vld [vmem:[#allocation2 + $0xb8] sm:$0xff] }
0x10f4   :  { %7842 = vmatprep.mubr.msk.bf16.mxu1 %vm13845_vm0, %v13858_v0  ;;  %2274 = vmatpush1.bf16.msra.mxu1 %v6276_v13  ;;  %v1852_v13 = vld [vmem:[#allocation2 + $0x38] sm:$0xff] }
0x10f5   :  { %2275 = vmatprep.subr.bf16.mxu1 %v6293_v38  ;;  %v1860_v38 = vld [vmem:[#allocation2 + $0x78] sm:$0xff] }
0x10f6   :  { %v6289_v9 = vcombine.high %v1852_v13, %v1860_v38 }
0x10f8   :  { %2276 = vmatpush1.bf16.msra.mxu1 %v6292_v53  ;;  %v1876_v53 = vld [vmem:[#allocation2 + $0xf8] sm:$0xff] }
0x10f9   :  { %2277 = vmatprep.subr.bf16.mxu1 %v6309_v19  ;;  %v6288_v19 = vcombine.low %v1852_v13, %v1860_v38  ;;  %v6305_v20 = vcombine.high %v1868_v22, %v1876_v53 }
0x10fb   :  { %7843 = vmatmul.mubr.msk.bf16.gmra.mrb[92].mxu1 %vm13842_vm5, %v8529_v63  ;;  %v1908_v63 = vld [vmem:[#allocation2 + $0x1f8] sm:$0xff] }
0x10fc   :  { %7846 = vmatprep.mubr.msk.bf16.mxu1 %vm13845_vm0, %v13858_v0  ;;  %2278 = vmatpush1.bf16.msra.mxu1 %v6308_v21  ;;  %v1892_v21 = vld [vmem:[#allocation2 + $0x178] sm:$0xff] }
0x10fd   :  { %2279 = vmatprep.subr.bf16.mxu1 %v6325_v24  ;;  %v6304_v24 = vcombine.low %v1868_v22, %v1876_v53  ;;  %v6321_v1 = vcombine.high %v1884_v36, %v1892_v21  ;;  %v9412_v22 = vadd.s32 416, %v8780_v34  ;;  %v9415_v53 = vadd.s32 424, %v8780_v34 }
0x1100   :  { %2280 = vmatpush1.bf16.msra.mxu1 %v6324_v42  ;;  %v6320_v42 = vcombine.low %v1884_v36, %v1892_v21  ;;  %v9421_v36 = vadd.s32 296, %v8780_v34 }
0x1101   :  { %2355 = vmatprep.subr.bf16.mxu1 %v6281_v35  ;;  %v6337_v35 = vcombine.high %v1900_v54, %v1908_v63 }
0x1103   :  { %7847 = vmatmul.mubr.msk.bf16.gmra.mrb[96].mxu1 %vm13842_vm5, %v8530_v56  ;;  %v6336_v56 = vcombine.low %v1900_v54, %v1908_v63  ;;  %v9587_v54 = vadd.s32 504, %v8780_v34 }
0x1104   :  { %2305 = vmatprep.mubr.bf16.mxu1 %v13856_v49 }
0x1105   :  { %14082 = vst [vmem:[#allocation25_spill] sm:$0xff] %v9587_v54 }
0x110b   :  { %6339 = vmatmul.mubr.msk.bf16.vlgmr.msra.gmra.mrb[100].mxu1 %vm13849_vm3, %v9298_v31 }
0x110c   :  { %2356 = vmatpush1.bf16.msra.mxu1 %v6280_v25  ;;  %2387 = vmatprep.mubr.bf16.mxu1 %v13856_v49  ;;  %v8371_v25 = vld [vmem:[%s13831_s7 + $0x10] sm:$0xff]  }
0x110d   :  { %2357 = vmatprep.subr.bf16.mxu1 %v6297_v7  ;;  %v8372_v7 = vld [vmem:[%s13831_s7 + $0x18] sm:$0xff]  }
0x1110   :  { %2358 = vmatpush1.bf16.msra.mxu1 %v6296_v45  ;;  %v9338_v45 = vadd.s32 392, %v8780_v34 }
0x1111   :  { %2359 = vmatprep.subr.bf16.mxu1 %v6313_v52  ;;  %v9341_v52 = vmul.u32 64, %v9335_v41 }
0x1113   :  { %vm2873_vm9 = vcmp.ge.s32.totalorder %v9332_v40, %v9341_v52  ;;  %vm2874_vm10 = vcmp.ge.s32.totalorder %v9338_v45, %v9341_v52  ;;  %vm2857_vm14 = vcmp.ge.s32.totalorder %v9347_v30, %v9341_v52  ;;  %vm2858_vm8 = vcmp.ge.s32.totalorder %v9355_v33, %v9341_v52 }
0x1114   :  { %2360 = vmatpush1.bf16.msra.mxu1 %v6312_v43  ;;  %v9352_v43 = vmul.u32 64, %v9344_v11 }
0x1115   :  { %2361 = vmatprep.subr.bf16.mxu1 %v6329_v47  ;;  %v9364_v47 = vadd.s32 400, %v8780_v34 }
0x1116   :  { %vm3131_vm11 = vcmp.lt.s32.totalorder %v9332_v40, %v9352_v43  ;;  %vm3132_vm12 = vcmp.lt.s32.totalorder %v9338_v45, %v9352_v43  ;;  %vm3115_vm15 = vcmp.lt.s32.totalorder %v9347_v30, %v9352_v43  ;;  %vm3116_vm5 = vcmp.lt.s32.totalorder %v9355_v33, %v9352_v43 }
0x1117   :  { %vm3387_vm13 = vmand %vm2873_vm9, %vm3131_vm11  ;;  %vm2875_vm11 = vcmp.ge.s32.totalorder %v9364_v47, %v9341_v52 }
0x1118   :  { %2362 = vmatpush1.bf16.msra.mxu1 %v6328_v46  ;;  %vm3388_vm7 = vmand %vm2874_vm10, %vm3132_vm12  ;;  %v13868_v46 = vmov 1.0|1.0   ;;  %vm3133_vm10 = vcmp.lt.s32.totalorder %v9364_v47, %v9352_v43 }
0x1119   :  { %2437 = vmatprep.subr.bf16.mxu1 %v6285_v51  ;;  %vm8015_vm4 = vmpackc.low %vm3388_vm7, %vm3387_vm13  ;;  %v9386_v51 = vadd.s32 280, %v8780_v34  ;;  %vm2876_vm13 = vcmp.ge.s32.totalorder %v9371_v48, %v9341_v52  ;;  %vm3134_vm7 = vcmp.lt.s32.totalorder %v9371_v48, %v9352_v43 }
0x111a   :  { %vm3371_vm9 = vmand %vm2857_vm14, %vm3115_vm15  ;;  %vm2859_vm14 = vcmp.ge.s32.totalorder %v9378_v6, %v9341_v52  ;;  %vm3117_vm15 = vcmp.lt.s32.totalorder %v9378_v6, %v9352_v43 }
0x111b   :  { %6341 = vmatmul.mubr.msk.bf16.vlgmr.msra.gmra.mrb[104].mxu1 %vm13849_vm3, %v9298_v31  ;;  %vm3372_vm12 = vmand %vm2858_vm8, %vm3116_vm5  ;;  %vm2860_vm5 = vcmp.ge.s32.totalorder %v9386_v51, %v9341_v52  ;;  %vm3118_vm8 = vcmp.lt.s32.totalorder %v9386_v51, %v9352_v43 }
0x111c   :  { %2438 = vmatpush1.bf16.msra.mxu1 %v6284_v55  ;;  %2469 = vmatprep.mubr.bf16.mxu1 %v13856_v49  ;;  %vm8017_vm6 = vmpackc.low %vm3372_vm12, %vm3371_vm9 }
0x111d   :  { %2439 = vmatprep.subr.bf16.mxu1 %v6301_v59  ;;  %vm3373_vm9 = vmand %vm2859_vm14, %vm3117_vm15 }
0x111e   :  { %vm3374_vm12 = vmand %vm2860_vm5, %vm3118_vm8  ;;  %vm3120_vm5 = vcmp.lt.s32.totalorder %v9421_v36, %v9352_v43 }
0x1120   :  { %2440 = vmatpush1.bf16.msra.mxu1 %v6300_v23 }
0x1121   :  { %2441 = vmatprep.subr.bf16.mxu1 %v6317_v2 }
0x1124   :  { %2442 = vmatpush1.bf16.msra.mxu1 %v6316_v10 }
0x1125   :  { %2443 = vmatprep.subr.bf16.mxu1 %v6333_v37 }
0x1128   :  { %2444 = vmatpush1.bf16.msra.mxu1 %v6332_v8 }
0x1129   :  { %2519 = vmatprep.subr.bf16.mxu1 %v6289_v9 }
0x112b   :  { %6343 = vmatmul.mubr.msk.bf16.vlgmr.msra.gmra.mrb[108].mxu1 %vm13849_vm3, %v9298_v31 }
0x112c   :  { %2520 = vmatpush1.bf16.msra.mxu1 %v6288_v19  ;;  %2551 = vmatprep.mubr.bf16.mxu1 %v13856_v49 }
0x112d   :  { %2521 = vmatprep.subr.bf16.mxu1 %v6305_v20  ;;  %v9418_v20 = vadd.s32 288, %v8780_v34 }
0x112f   :  { %vm3119_vm14 = vcmp.lt.s32.totalorder %v9418_v20, %v9352_v43 }
0x1130   :  { %2522 = vmatpush1.bf16.msra.mxu1 %v6304_v24 }
0x1131   :  { %2523 = vmatprep.subr.bf16.mxu1 %v6321_v1 }
0x1134   :  { %2524 = vmatpush1.bf16.msra.mxu1 %v6320_v42 }
0x1135   :  { %2525 = vmatprep.subr.bf16.mxu1 %v6337_v35 }
0x1138   :  { %2526 = vmatpush1.bf16.msra.mxu1 %v6336_v56  ;;  %v9447_v56 = vadd.s32 432, %v8780_v34 }
0x1139   :  { %7872 = vmatprep.subr.bf16.mxu1 %v13858_v0 }
0x113b   :  { %6345 = vmatmul.mubr.msk.bf16.vlgmr.msra.gmra.mrb[112].mxu1 %vm13849_vm3, %v9298_v31 }
0x113c   :  { %7873 = vmatpush3.bf16.msra.mxu1 %v8369_v57  ;;  %7880 = vmatprep.mubr.msk.bf16.mxu1 %vm13845_vm0, %v13858_v0  ;;  %vm3390_vm0 = vmand %vm2876_vm13, %vm3134_vm7  ;;  %vm2861_vm7 = vcmp.ge.s32.totalorder %v9418_v20, %v9341_v52  ;;  %v9452_v57 = vadd.s32 440, %v8780_v34 }
0x113d   :  { %7874 = vmatprep.subr.bf16.mxu1 %v13858_v0 }
0x1140   :  { %7875 = vmatpush3.bf16.msra.mxu1 %v8370_v5  ;;  %v9455_v5 = vadd.s32 304, %v8780_v34 }
0x1141   :  { %7876 = vmatprep.subr.bf16.mxu1 %v13858_v0 }
0x1142   :  { %14067 = vst [vmem:[#allocation10_spill] sm:$0xff] %v9455_v5 }
0x1144   :  { %7877 = vmatpush3.bf16.msra.mxu1 %v8371_v25 }
0x1145   :  { %7878 = vmatprep.subr.bf16.mxu1 %v13858_v0 }
0x1148   :  { %7879 = vmatpush3.bf16.msra.mxu1 %v8372_v7  ;;  %v9467_v7 = vadd.s32 312, %v8780_v34 }
0x1149   :  { %8016 = vmatprep.subr.msk.bf16.mxu1 %vm8015_vm4, %v13868_v46  ;;  %vm3389_vm4 = vmand %vm2875_vm11, %vm3133_vm10  ;;  %vm3135_vm11 = vcmp.lt.s32.totalorder %v9412_v22, %v9352_v43  ;;  %vm3136_vm10 = vcmp.lt.s32.totalorder %v9415_v53, %v9352_v43 }
0x114a   :  { %vm8019_vm2 = vmpackc.low %vm3390_vm0, %vm3389_vm4  ;;  %vm2877_vm0 = vcmp.ge.s32.totalorder %v9412_v22, %v9341_v52  ;;  %vm2862_vm4 = vcmp.ge.s32.totalorder %v9421_v36, %v9341_v52  ;;  %14068 = vst [vmem:[#allocation11_spill] sm:$0xff] %v9467_v7 }
0x114b   :  { %7881 = vmatmul.mubr.msk.bf16.vlgmr.msra.gmra.mrb[116].mxu1 %vm13849_vm3, %v9298_v31  ;;  %vm9432_vm13 = vmand %vm2877_vm0, %vm3135_vm11  ;;  %vm3138_vm11 = vcmp.lt.s32.totalorder %v9452_v57, %v9352_v43 }
0x114c   :  { %8018 = vmatpush3.bf16.msk.msra.mxu1 %vm8017_vm6, %v13868_v46  ;;  %vm8021_vm6 = vmpackc.low %vm3374_vm12, %vm3373_vm9  ;;  %vm2879_vm12 = vcmp.ge.s32.totalorder %v9447_v56, %v9341_v52 }
0x114d   :  { %8020 = vmatprep.subr.msk.bf16.mxu1 %vm8019_vm2, %v13868_v46  ;;  %vm2878_vm2 = vcmp.ge.s32.totalorder %v9415_v53, %v9341_v52  ;;  %vm3375_vm9 = vmand %vm2861_vm7, %vm3119_vm14  ;;  %vm2863_vm7 = vcmp.ge.s32.totalorder %v9455_v5, %v9341_v52 }
0x114e   :  { %vm3392_vm15 = vmand %vm2878_vm2, %vm3136_vm10  ;;  %vm2880_vm2 = vcmp.ge.s32.totalorder %v9452_v57, %v9341_v52 }
0x114f   :  { %vm8023_vm8 = vmpackc.low %vm3392_vm15, %vm9432_vm13  ;;  %vm2864_vm15 = vcmp.ge.s32.totalorder %v9467_v7, %v9341_v52 }
0x1150   :  { %8022 = vmatpush3.bf16.msk.msra.mxu1 %vm8021_vm6, %v13868_v46  ;;  %vm3137_vm6 = vcmp.lt.s32.totalorder %v9447_v56, %v9352_v43  ;;  %vm3376_vm0 = vmand %vm2862_vm4, %vm3120_vm5  ;;  %vm3121_vm4 = vcmp.lt.s32.totalorder %v9455_v5, %v9352_v43  ;;  %vm3122_vm5 = vcmp.lt.s32.totalorder %v9467_v7, %v9352_v43 }
0x1151   :  { %8024 = vmatprep.subr.msk.bf16.mxu1 %vm8023_vm8, %v13868_v46  ;;  %vm8025_vm10 = vmpackc.low %vm3376_vm0, %vm3375_vm9 }
0x1152   :  { %vm3393_vm13 = vmand %vm2879_vm12, %vm3137_vm6 }
0x1153   :  { %vm3394_vm14 = vmand %vm2880_vm2, %vm3138_vm11 }
0x1154   :  { %8026 = vmatpush3.bf16.msk.msra.mxu1 %vm8025_vm10, %v13868_v46  ;;  %vm8027_vm8 = vmpackc.low %vm3394_vm14, %vm3393_vm13 }
0x1155   :  { %8028 = vmatprep.subr.msk.bf16.mxu1 %vm8027_vm8, %v13868_v46  ;;  %vm3377_vm9 = vmand %vm2863_vm7, %vm3121_vm4 }
0x1156   :  { %vm3378_vm0 = vmand %vm2864_vm15, %vm3122_vm5 }
0x1157   :  { %vm8029_vm10 = vmpackc.low %vm3378_vm0, %vm3377_vm9 }
0x1158   :  { %8030 = vmatpush3.bf16.msk.msra.mxu1 %vm8029_vm10, %v13868_v46 }
0x11c6   :  { %v1706_v62 = vpop.f32.mrb[88].mxu1 }
0x11c7   :  { %v1729_v14 = vmul.f32 %v1706_v62, %v9242_v26  ;;  %v7840_v55 = vpop.f32.mrb[89].mxu1  ;;  %v9477_v62 = vadd.s32 448, %v8780_v34 }
0x11c8   :  { %v1709_v59 = vpop.f32.mrb[90].mxu1  ;;  %v9487_v55 = vadd.s32 456, %v8780_v34 }
0x11c9   :  { %v1730_v16 = vmul.f32 %v1709_v59, %v9245_v27  ;;  %v1735_v61 = vsel %vm13848_vm1, %v1729_v14, 0.0  ;;  %v7841_v23 = vpop.f32.mrb[91].mxu1  ;;  %14069 = vst [vmem:[#allocation12_spill] sm:$0xff] %v9477_v62  ;;  %vm2881_vm12 = vcmp.ge.s32.totalorder %v9477_v62, %v9341_v52  ;;  %vm3139_vm6 = vcmp.lt.s32.totalorder %v9477_v62, %v9352_v43 }
0x11ca   :  { %1736 = vadd.xlane.f32.xlu0 %v1735_v61  ;;  %14070 = vst [vmem:[#allocation13_spill] sm:$0xff] %v9487_v55  ;;  %v9496_v61 = vadd.s32 320, %v8780_v34  ;;  %vm2882_vm2 = vcmp.ge.s32.totalorder %v9487_v55, %v9341_v52  ;;  %vm3140_vm11 = vcmp.lt.s32.totalorder %v9487_v55, %v9352_v43  ;;  %vm3395_vm13 = vmand %vm2881_vm12, %vm3139_vm6 }
0x11cb   :  { %v1738_v2 = vsel %vm13848_vm1, %v1730_v16, 0.0  ;;  %vm3396_vm14 = vmand %vm2882_vm2, %vm3140_vm11 }
0x11cc   :  { %1739 = vadd.xlane.f32.xlu1 %v1738_v2  ;;  %14071 = vst [vmem:[#allocation14_spill] sm:$0xff] %v9496_v61  ;;  %v9504_v2 = vadd.s32 328, %v8780_v34  ;;  %vm2865_vm7 = vcmp.ge.s32.totalorder %v9496_v61, %v9341_v52  ;;  %vm3123_vm4 = vcmp.lt.s32.totalorder %v9496_v61, %v9352_v43  ;;  %vm8031_vm8 = vmpackc.low %vm3396_vm14, %vm3395_vm13  ;;  %v14102_v61 = vmov 0 }
0x11cd   :  { %8032 = vmatprep.subr.msk.bf16.mxu1 %vm8031_vm8, %v13868_v46  ;;  %vm3379_vm9 = vmand %vm2865_vm7, %vm3123_vm4 }
0x11ce   :  { %v1714_v4 = vpop.f32.mrb[92].mxu1  ;;  %14072 = vst [vmem:[#allocation15_spill] sm:$0xff] %v9504_v2  ;;  %vm2866_vm15 = vcmp.ge.s32.totalorder %v9504_v2, %v9341_v52  ;;  %vm3124_vm5 = vcmp.lt.s32.totalorder %v9504_v2, %v9352_v43  ;;  %v2670_v2 = vadd.s32 832, %v8780_v34 }
0x11cf   :  { %v1731_v32 = vmul.f32 %v1714_v4, %v9253_v28  ;;  %v7844_v10 = vpop.f32.mrb[93].mxu1  ;;  %v9511_v4 = vadd.s32 464, %v8780_v34  ;;  %vm3380_vm0 = vmand %vm2866_vm15, %vm3124_vm5 }
0x11d0   :  { %v1717_v37 = vpop.f32.mrb[94].mxu1  ;;  %v9526_v10 = vadd.s32 336, %v8780_v34  ;;  %vm8033_vm10 = vmpackc.low %vm3380_vm0, %vm3379_vm9 }
0x11d1   :  { %v1732_v13 = vmul.f32 %v1717_v37, %v9256_v12  ;;  %v1741_v38 = vsel %vm13848_vm1, %v1731_v32, 0.0  ;;  %v7845_v8 = vpop.f32.mrb[95].mxu1  ;;  %14073 = vst [vmem:[#allocation16_spill] sm:$0xff] %v9511_v4  ;;  %v9519_v32 = vadd.s32 472, %v8780_v34  ;;  %vm2883_vm12 = vcmp.ge.s32.totalorder %v9511_v4, %v9341_v52  ;;  %8034 = vmatpush3.bf16.msk.msra.mxu1 %vm8033_vm10, %v13868_v46 }
0x11d2   :  { %1742 = vadd.xlane.f32.xlu0 %v1741_v38  ;;  %14075 = vst [vmem:[#allocation18_spill] sm:$0xff] %v9526_v10  ;;  %vm3141_vm6 = vcmp.lt.s32.totalorder %v9511_v4, %v9352_v43  ;;  %v9534_v37 = vadd.s32 344, %v8780_v34  ;;  %vm2867_vm7 = vcmp.ge.s32.totalorder %v9526_v10, %v9341_v52  ;;  %vm3125_vm4 = vcmp.lt.s32.totalorder %v9526_v10, %v9352_v43 }
0x11d3   :  { %v1744_v9 = vsel %vm13848_vm1, %v1732_v13, 0.0  ;;  %14074 = vst [vmem:[#allocation17_spill] sm:$0xff] %v9519_v32  ;;  %vm2884_vm2 = vcmp.ge.s32.totalorder %v9519_v32, %v9341_v52  ;;  %vm3142_vm11 = vcmp.lt.s32.totalorder %v9519_v32, %v9352_v43  ;;  %v9541_v13 = vadd.s32 480, %v8780_v34  ;;  %vm3397_vm13 = vmand %vm2883_vm12, %vm3141_vm6 }
0x11d4   :  { %1745 = vadd.xlane.f32.xlu1 %v1744_v9  ;;  %14076 = vst [vmem:[#allocation19_spill] sm:$0xff] %v9534_v37  ;;  %v9549_v38 = vadd.s32 488, %v8780_v34  ;;  %vm3398_vm14 = vmand %vm2884_vm2, %vm3142_vm11  ;;  %vm2868_vm15 = vcmp.ge.s32.totalorder %v9534_v37, %v9341_v52  ;;  %vm3126_vm5 = vcmp.lt.s32.totalorder %v9534_v37, %v9352_v43  ;;  %v9556_v8 = vadd.s32 352, %v8780_v34 }
0x11d5   :  { %14077 = vst [vmem:[#allocation20_spill] sm:$0xff] %v9541_v13  ;;  %vm8035_vm8 = vmpackc.low %vm3398_vm14, %vm3397_vm13  ;;  %vm2885_vm12 = vcmp.ge.s32.totalorder %v9541_v13, %v9341_v52  ;;  %vm3143_vm6 = vcmp.lt.s32.totalorder %v9541_v13, %v9352_v43  ;;  %v9566_v9 = vadd.s32 360, %v8780_v34 }
0x11d6   :  { %v1722_v19 = vpop.f32.mrb[96].mxu1  ;;  %14078 = vst [vmem:[#allocation21_spill] sm:$0xff] %v9549_v38  ;;  %14079 = vst [vmem:[#allocation22_spill] sm:$0xff] %v9556_v8  ;;  %8036 = vmatprep.subr.msk.bf16.mxu1 %vm8035_vm8, %v13868_v46  ;;  %vm2886_vm2 = vcmp.ge.s32.totalorder %v9549_v38, %v9341_v52  ;;  %vm3144_vm11 = vcmp.lt.s32.totalorder %v9549_v38, %v9352_v43  ;;  %v14090_v38 = vmov 0 }
0x11d7   :  { %v1733_v21 = vmul.f32 %v1722_v19, %v9264_v50  ;;  %v7848_v24 = vpop.f32.mrb[97].mxu1  ;;  %vm3381_vm9 = vmand %vm2867_vm7, %vm3125_vm4  ;;  %14080 = vst [vmem:[#allocation23_spill] sm:$0xff] %v9566_v9  ;;  %vm2869_vm7 = vcmp.ge.s32.totalorder %v9556_v8, %v9341_v52  ;;  %vm3127_vm4 = vcmp.lt.s32.totalorder %v9556_v8, %v9352_v43  ;;  %v2684_v8 = vadd.s32 944, %v8780_v34 }
0x11d8   :  { %v1725_v1 = vpop.f32.mrb[98].mxu1  ;;  %vm3382_vm0 = vmand %vm2868_vm15, %vm3126_vm5  ;;  %v9577_v24 = vadd.s32 496, %v8780_v34  ;;  %vm2870_vm15 = vcmp.ge.s32.totalorder %v9566_v9, %v9341_v52  ;;  %vm3128_vm5 = vcmp.lt.s32.totalorder %v9566_v9, %v9352_v43 }
0x11d9   :  { %v1734_v63 = vmul.f32 %v1725_v1, %v9267_v18  ;;  %v1747_v42 = vsel %vm13848_vm1, %v1733_v21, 0.0  ;;  %v7849_v35 = vpop.f32.mrb[99].mxu1  ;;  %vm8037_vm10 = vmpackc.low %vm3382_vm0, %vm3381_vm9 }
0x11da   :  { %1748 = vadd.xlane.f32.xlu0 %v1747_v42  ;;  %14081 = vst [vmem:[#allocation24_spill] sm:$0xff] %v9577_v24  ;;  %8038 = vmatpush3.bf16.msk.msra.mxu1 %vm8037_vm10, %v13868_v46  ;;  %vm3399_vm13 = vmand %vm2885_vm12, %vm3143_vm6  ;;  %v9596_v42 = vadd.s32 368, %v8780_v34  ;;  %vm2887_vm12 = vcmp.ge.s32.totalorder %v9577_v24, %v9341_v52  ;;  %vm3145_vm6 = vcmp.lt.s32.totalorder %v9577_v24, %v9352_v43  ;;  %v9604_v35 = vadd.s32 376, %v8780_v34 }
0x11db   :  { %v1750_v25 = vsel %vm13848_vm1, %v1734_v63, 0.0  ;;  %vm3400_vm14 = vmand %vm2886_vm2, %vm3144_vm11  ;;  %vm2888_vm2 = vcmp.ge.s32.totalorder %v9587_v54, %v9341_v52  ;;  %vm3146_vm11 = vcmp.lt.s32.totalorder %v9587_v54, %v9352_v43 }
0x11dc   :  { %1751 = vadd.xlane.f32.xlu1 %v1750_v25  ;;  %vm8039_vm8 = vmpackc.low %vm3400_vm14, %vm3399_vm13  ;;  %14083 = vst [vmem:[#allocation26_spill] sm:$0xff] %v9596_v42  ;;  %v2678_v25 = vadd.s32 896, %v8780_v34 }
0x11dd   :  { %8040 = vmatprep.subr.msk.bf16.mxu1 %vm8039_vm8, %v13868_v46  ;;  %vm3383_vm9 = vmand %vm2869_vm7, %vm3127_vm4  ;;  %14084 = vst [vmem:[#allocation27_spill] sm:$0xff] %v9604_v35  ;;  %vm2871_vm7 = vcmp.ge.s32.totalorder %v9596_v42, %v9341_v52  ;;  %vm3129_vm4 = vcmp.lt.s32.totalorder %v9596_v42, %v9352_v43 }
0x11de   :  { %v9479_v14 = vpop.f32.mrb[100].mxu1  ;;  %vm3384_vm0 = vmand %vm2870_vm15, %vm3128_vm5  ;;  %vm2872_vm15 = vcmp.ge.s32.totalorder %v9604_v35, %v9341_v52  ;;  %vm3130_vm5 = vcmp.lt.s32.totalorder %v9604_v35, %v9352_v43 }
0x11df   :  { %v9489_v59 = vpop.f32.mrb[101].mxu1  ;;  %vm8041_vm10 = vmpackc.low %vm3384_vm0, %vm3383_vm9 }
0x11e0   :  { %v2311_v16 = vpop.f32.mrb[102].mxu1  ;;  %8042 = vmatpush3.bf16.msk.msra.mxu1 %vm8041_vm10, %v13868_v46  ;;  %vm3401_vm13 = vmand %vm2887_vm12, %vm3145_vm6  ;;  %vm2937_vm12 = vcmp.ge.s32.totalorder %v2678_v25, %v9341_v52  ;;  %vm3195_vm6 = vcmp.lt.s32.totalorder %v2678_v25, %v9352_v43 }
0x11e1   :  { %v2312_v23 = vpop.f32.mrb[103].mxu1  ;;  %v2679_v16 = vadd.s32 904, %v8780_v34  ;;  %vm3402_vm14 = vmand %vm2888_vm2, %vm3146_vm11 }
0x11e2   :  { %vm8043_vm8 = vmpackc.low %vm3402_vm14, %vm3401_vm13 }
0x11e3   :  { %8044 = vmatprep.subr.msk.bf16.mxu1 %vm8043_vm8, %v13868_v46  ;;  %vm3385_vm9 = vmand %vm2871_vm7, %vm3129_vm4  ;;  %vm2938_vm10 = vcmp.ge.s32.totalorder %v2679_v16, %v9341_v52  ;;  %vm3196_vm1 = vcmp.lt.s32.totalorder %v2679_v16, %v9352_v43 }
0x11e4   :  { %vm3386_vm0 = vmand %vm2872_vm15, %vm3130_vm5 }
0x11e5   :  { %vm8045_vm2 = vmpackc.low %vm3386_vm0, %vm3385_vm9 }
0x11e6   :  { %8046 = vmatpush3.bf16.msk.msra.mxu1 %vm8045_vm2, %v13868_v46  ;;  %vm3451_vm11 = vmand %vm2937_vm12, %vm3195_vm6 }
0x11e7   :  { %vm3452_vm3 = vmand %vm2938_vm10, %vm3196_vm1 }
0x11e8   :  { %vm8079_vm13 = vmpackc.low %vm3452_vm3, %vm3451_vm11 }
0x11e9   :  { %8080 = vmatprep.subr.msk.bf16.mxu1 %vm8079_vm13, %v13868_v46  ;;  %v2662_v46 = vadd.s32 768, %v8780_v34 }
0x11eb   :  { %vm2921_vm1 = vcmp.ge.s32.totalorder %v2662_v46, %v9341_v52  ;;  %vm3179_vm7 = vcmp.lt.s32.totalorder %v2662_v46, %v9352_v43 }
0x11ec   :  { %vm9665_vm0 = vmand %vm2921_vm1, %vm3179_vm7 }
0x11ed   :  { %4976 = vrot.lane.b32.xlu1 %v9160_v15, %s8588_s29 }
0x11ee   :  { %v9568_v19 = vpop.f32.mrb[104].mxu1 }
0x11ef   :  { %v9574_v21 = vpop.f32.mrb[105].mxu1 }
0x11f0   :  { %v2393_v1 = vpop.f32.mrb[106].mxu1  ;;  %2561 = vrot.lane.b32.xlu0 %v8977_v44, %s8583_s17 }
0x11f1   :  { %v2394_v63 = vpop.f32.mrb[107].mxu1  ;;  %4979 = vrot.lane.b32.xlu1 %v9160_v15, %s8583_s17 }
0x11f5   :  { %4982 = vrot.lane.b32.xlu1 %v9160_v15, %s8589_s5 }
0x11fe   :  { %v9629_v23 = vpop.f32.mrb[108].mxu1 }
0x11ff   :  { %v9631_v1 = vpop.f32.mrb[109].mxu1 }
0x1200   :  { %v2475_v63 = vpop.f32.mrb[110].mxu1 }
0x1201   :  { %v2476_v60 = vpop.f32.mrb[111].mxu1  ;;  %v2680_v63 = vadd.s32 912, %v8780_v34 }
0x1202   :  { %v2663_v60 = vadd.s32 776, %v8780_v34 }
0x1203   :  { %vm2939_vm14 = vcmp.ge.s32.totalorder %v2680_v63, %v9341_v52  ;;  %vm3197_vm5 = vcmp.lt.s32.totalorder %v2680_v63, %v9352_v43 }
0x1204   :  { %vm2922_vm3 = vcmp.ge.s32.totalorder %v2663_v60, %v9341_v52  ;;  %vm3180_vm4 = vcmp.lt.s32.totalorder %v2663_v60, %v9352_v43  ;;  %vm9687_vm7 = vmand %vm2939_vm14, %vm3197_vm5  ;;  %vm14106_vm5 = vcmask 523264  }
0x1205   :  { %vm9677_vm11 = vmand %vm2922_vm3, %vm3180_vm4  ;;  %v14091_v38 = vsel %vm9687_vm7, 4294967295, %v14090_v38 }
0x120e   :  { %v9634_v25 = vpop.f32.mrb[112].mxu1 }
0x120f   :  { %v9636_v17 = vpop.f32.mrb[113].mxu1 }
0x1210   :  { %v2557_v39 = vpop.f32.mrb[114].mxu1 }
0x1211   :  { %v2558_v16 = vpop.f32.mrb[115].mxu1  ;;  %v2681_v39 = vadd.s32 920, %v8780_v34 }
0x1212   :  { %v2664_v16 = vadd.s32 784, %v8780_v34 }
0x1213   :  { %vm2940_vm15 = vcmp.ge.s32.totalorder %v2681_v39, %v9341_v52  ;;  %vm3198_vm8 = vcmp.lt.s32.totalorder %v2681_v39, %v9352_v43  ;;  %v2686_v39 = vadd.s32 960, %v8780_v34 }
0x1214   :  { %vm2923_vm9 = vcmp.ge.s32.totalorder %v2664_v16, %v9341_v52  ;;  %vm3181_vm6 = vcmp.lt.s32.totalorder %v2664_v16, %v9352_v43  ;;  %vm9699_vm4 = vmand %vm2940_vm15, %vm3198_vm8  ;;  %vm14112_vm8 = vcmp.ge.s32.totalorder %v2684_v8, %v9341_v52  ;;  %v2749_v16 = vadd.s32 1464, %v8780_v34 }
0x1215   :  { %vm9710_vm3 = vmand %vm2923_vm9, %vm3181_vm6 }
0x121e   :  { %v9638_v3 = vpop.f32.mrb[116].mxu1 }
0x121f   :  { %14085 = vst [vmem:[#allocation28_spill] sm:$0xff] %v9638_v3  ;;  %v7882_v58 = vpop.f32.mrb[117].mxu1 }
0x1220   :  { %v4272_v29 = vpop.f32.mrb[118].mxu1  ;;  %v2682_v58 = vadd.s32 928, %v8780_v34 }
0x1221   :  { %v7883_v49 = vpop.f32.mrb[119].mxu1 }
0x1222   :  { %vm3199_vm1 = vcmp.lt.s32.totalorder %v2682_v58, %v9352_v43 }
0x1257   :  { %v1737_v0 = vpop.xlane.xlu0 %1736 }
0x1258   :  { %v6267_v35 = vmul.f32 -10.0, %v1737_v0  ;;  %v2665_v0 = vadd.s32 792, %v8780_v34 }
0x1259   :  { %v1740_v42 = vpop.xlane.xlu1 %1739 }
0x125a   :  { %v1765_v54 = vmul.f32 1.442695, %v6267_v35  ;;  %v6268_v24 = vmul.f32 -10.0, %v1740_v42  ;;  %v2667_v42 = vadd.s32 808, %v8780_v34  ;;  %vm3182_vm10 = vcmp.lt.s32.totalorder %v2665_v0, %v9352_v43 }
0x125b   :  { %vm14096_vm9 = vcmp.ge.s32.totalorder %v2665_v0, %v9341_v52  ;;  %v14100_v0 = vmov 0 }
0x125c   :  { %8495 = vpow2.f32 %v1765_v54  ;;  %v1767_v9 = vmul.f32 1.442695, %v6268_v24  ;;  %v2666_v54 = vadd.s32 800, %v8780_v34  ;;  %vm9725_vm6 = vmand %vm14096_vm9, %vm3182_vm10  ;;  %vm14099_vm10 = vcmp.ge.s32.totalorder %v2682_v58, %v9341_v52 }
0x125d   :  { %vm9740_vm9 = vmand %vm14099_vm10, %vm3199_vm1  ;;  %v2671_v58 = vadd.s32 840, %v8780_v34 }
0x125e   :  { %8497 = vpow2.f32 %v1767_v9  ;;  %v2683_v9 = vadd.s32 936, %v8780_v34  ;;  %vm2925_vm12 = vcmp.ge.s32.totalorder %v2666_v54, %v9341_v52  ;;  %vm3183_vm14 = vcmp.lt.s32.totalorder %v2666_v54, %v9352_v43 }
0x125f   :  { %v1743_v29 = vpop.xlane.xlu0 %1742  ;;  %v14101_v0 = vsel %vm9740_vm9, 4294967295, %v14100_v0  ;;  %vm9760_vm1 = vmand %vm2925_vm12, %vm3183_vm14  ;;  %vm14107_vm12 = vcmp.lt.s32.totalorder %v2667_v42, %v9352_v43  ;;  %vm14108_vm14 = vcmp.ge.s32.totalorder %v2667_v42, %v9341_v52  ;;  %v14117_v42 = vmov 0 }
0x1260   :  { %v6269_v49 = vmul.f32 -10.0, %v1743_v29  ;;  %vm2942_vm13 = vcmp.ge.s32.totalorder %v2683_v9, %v9341_v52  ;;  %vm3200_vm2 = vcmp.lt.s32.totalorder %v2683_v9, %v9352_v43  ;;  %vm9777_vm7 = vmand %vm14108_vm14, %vm14107_vm12  ;;  %v2743_v54 = vadd.s32 1416, %v8780_v34 }
0x1261   :  { %v1746_v24 = vpop.xlane.xlu1 %1745  ;;  %vm9750_vm15 = vmand %vm2942_vm13, %vm3200_vm2  ;;  %vm14111_vm2 = vcmp.lt.s32.totalorder %v2684_v8, %v9352_v43  ;;  %v2688_v8 = vadd.s32 976, %v8780_v34 }
0x1262   :  { %v1769_v35 = vmul.f32 1.442695, %v6269_v49  ;;  %v6270_v3 = vmul.f32 -10.0, %v1746_v24  ;;  %v2685_v49 = vadd.s32 952, %v8780_v34  ;;  %v14103_v61 = vsel %vm9750_vm15, 4294967295, %v14102_v61  ;;  %vm9792_vm10 = vmand %vm14112_vm8, %vm14111_vm2 }
0x1264   :  { %8499 = vpow2.f32 %v1769_v35  ;;  %v1771_v24 = vmul.f32 1.442695, %v6270_v3  ;;  %v2668_v3 = vadd.s32 816, %v8780_v34  ;;  %v2669_v35 = vadd.s32 824, %v8780_v34 }
0x1266   :  { %v8496_v60 = vpop.eup %8495  ;;  %8501 = vpow2.f32 %v1771_v24  ;;  %v14094_v24 = vmov 0  ;;  %vm14119_vm2 = vcmp.lt.s32.totalorder %v2668_v3, %v9352_v43  ;;  %vm14123_vm14 = vcmp.lt.s32.totalorder %v2669_v35, %v9352_v43 }
0x1267   :  { %v1777_v13 = vadd.f32 1.0, %v8496_v60  ;;  %v1749_v37 = vpop.xlane.xlu0 %1748  ;;  %v14095_v24 = vsel %vm9710_vm3, 4294967295, %v14094_v24  ;;  %v2687_v60 = vadd.s32 968, %v8780_v34  ;;  %vm14115_vm3 = vcmp.lt.s32.totalorder %v2685_v49, %v9352_v43 }
0x1268   :  { %v8498_v10 = vpop.eup %8497  ;;  %v6271_v32 = vmul.f32 -10.0, %v1749_v37  ;;  %vm14124_vm12 = vcmp.ge.s32.totalorder %v2669_v35, %v9341_v52  ;;  %v14129_v35 = vmov 0 }
0x1269   :  { %8503 = vrcp.f32 %v1777_v13  ;;  %v1778_v37 = vadd.f32 1.0, %v8498_v10  ;;  %v1752_v4 = vpop.xlane.xlu1 %1751  ;;  %vm9831_vm15 = vmand %vm14124_vm12, %vm14123_vm14  ;;  %vm14127_vm14 = vcmp.lt.s32.totalorder %v2686_v39, %v9352_v43  ;;  %vm14132_vm8 = vcmp.ge.s32.totalorder %v2687_v60, %v9341_v52 }
0x126a   :  { %v1773_v13 = vmul.f32 1.442695, %v6271_v32  ;;  %v6272_v10 = vmul.f32 -10.0, %v1752_v4  ;;  %v14104_v4 = vmov 0  ;;  %vm14155_vm12 = vnez %v14095_v24 }
0x126b   :  { %8505 = vrcp.f32 %v1778_v37  ;;  %v2562_v55 = vpop.permute.xlu0 %2561  ;;  %v14105_v4 = vsel %vm9760_vm1, 4294967295, %v14104_v4 }
0x126c   :  { %8507 = vpow2.f32 %v1773_v13  ;;  %v1775_v32 = vmul.f32 1.442695, %v6272_v10  ;;  %v2564_v9 = vsel %vm14106_vm5, %v8977_v44, %v2562_v55  ;;  %v14113_v44 = vmov 0 }
0x126d   :  { %v9782_v37 = vrot.slane %v2564_v9, 4  ;;  %v14114_v44 = vsel %vm9792_vm10, 4294967295, %v14113_v44  ;;  %vm14116_vm5 = vcmp.ge.s32.totalorder %v2685_v49, %v9341_v52  ;;  %v2689_v13 = vadd.s32 984, %v8780_v34 }
0x126e   :  { %v8500_v55 = vpop.eup %8499  ;;  %8509 = vpow2.f32 %v1775_v32  ;;  %vm9803_vm9 = vmand %vm14116_vm5, %vm14115_vm3  ;;  %vm14120_vm3 = vcmp.ge.s32.totalorder %v2668_v3, %v9341_v52  ;;  %v14121_v49 = vmov 0  ;;  %v2673_v3 = vadd.s32 856, %v8780_v34 }
0x126f   :  { %v14118_v42 = vsel %vm9803_vm9, 4294967295, %v14117_v42  ;;  %v1779_v10 = vadd.f32 1.0, %v8500_v55  ;;  %v4113_v9 = vmul.f32 %v9782_v37, %v9489_v59  ;;  %v4112_v32 = vmul.f32 %v9782_v37, %v9479_v14  ;;  %vm9818_vm5 = vmand %vm14120_vm3, %vm14119_vm2 }
0x1270   :  { %v14122_v49 = vsel %vm9818_vm5, 4294967295, %v14121_v49  ;;  %v8502_v62 = vpop.eup %8501  ;;  %v2672_v59 = vadd.s32 848, %v8780_v34  ;;  %v2690_v55 = vadd.s32 992, %v8780_v34  ;;  %v4117_v5 = vmul.f32 %v9782_v37, %v9574_v21 }
0x1271   :  { %8511 = vrcp.f32 %v1779_v10  ;;  %v1780_v7 = vadd.f32 1.0, %v8502_v62  ;;  %4409 = vmatprep.mubr.f32.mxu1 %v4113_v9  ;;  %vm14128_vm3 = vcmp.ge.s32.totalorder %v2686_v39, %v9341_v52  ;;  %v2691_v10 = vadd.s32 1000, %v8780_v34 }
0x1272   :  { %vm9849_vm13 = vmand %vm14128_vm3, %vm14127_vm14  ;;  %4410 = vmatmul.mubr.f32.vlgmr.msra.gmra.mrb[120].mxu1 %v4112_v32  ;;  %vm14131_vm2 = vcmp.lt.s32.totalorder %v2687_v60, %v9352_v43  ;;  %v14133_v62 = vmov 0  ;;  %v14135_v39 = vmov 1.0|1.0   ;;  %v14139_v60 = vmov 0 }
0x1273   :  { %v14130_v35 = vsel %vm9849_vm13, 4294967295, %v14129_v35  ;;  %vm9858_vm1 = vmand %vm14132_vm8, %vm14131_vm2  ;;  %v8504_v21 = vpop.eup %8503  ;;  %8513 = vrcp.f32 %v1780_v7  ;;  %4549 = vmatprep.mubr.f32.mxu1 %v4117_v5  ;;  %vm14137_vm8 = vcmp.lt.s32.totalorder %v2670_v2, %v9352_v43  ;;  %vm14138_vm2 = vcmp.ge.s32.totalorder %v2670_v2, %v9341_v52 }
0x1274   :  { %v14134_v62 = vsel %vm9858_vm1, 4294967295, %v14133_v62  ;;  %vm14136_vm3 = vmpackc.low %vm9677_vm11, %vm9665_vm0  ;;  %v2674_v7 = vadd.s32 864, %v8780_v34  ;;  %v2675_v9 = vadd.s32 872, %v8780_v34  ;;  %vm14141_vm0 = vnez %v14091_v38 }
0x1275   :  { %8082 = vmatpush3.bf16.msk.msra.mxu1 %vm14136_vm3, %v14135_v39  ;;  %vm9875_vm9 = vmand %vm14138_vm2, %vm14137_vm8  ;;  %vm14143_vm8 = vcmp.lt.s32.totalorder %v2671_v58, %v9352_v43  ;;  %vm14144_vm2 = vcmp.ge.s32.totalorder %v2671_v58, %v9341_v52  ;;  %v8506_v2 = vpop.eup %8505  ;;  %vm14148_vm3 = vcmp.ge.s32.totalorder %v2688_v8, %v9341_v52  ;;  %v14149_v38 = vmov 0 }
0x1276   :  { %v14140_v60 = vsel %vm9875_vm9, 4294967295, %v14139_v60  ;;  %vm14142_vm11 = vmpackc.low %vm9699_vm4, %vm14141_vm0  ;;  %v8508_v29 = vpop.eup %8507  ;;  %v1795_v46 = vmul.f32 %v8504_v21, %v9242_v26  ;;  %v1796_v63 = vmul.f32 %v8506_v2, %v9245_v27  ;;  %vm14151_vm0 = vcmp.lt.s32.totalorder %v2689_v13, %v9352_v43 }
0x1277   :  { %8084 = vmatprep.subr.msk.bf16.mxu1 %vm14142_vm11, %v14135_v39  ;;  %vm9896_vm10 = vmand %vm14144_vm2, %vm14143_vm8  ;;  %vm14147_vm11 = vcmp.lt.s32.totalorder %v2688_v8, %v9352_v43  ;;  %v14153_v58 = vmov 0  ;;  %v2692_v8 = vadd.s32 1008, %v8780_v34  ;;  %v1781_v32 = vadd.f32 1.0, %v8508_v29 }
0x1278   :  { %vm9911_vm8 = vmand %vm14148_vm3, %vm14147_vm11  ;;  %vm14152_vm3 = vcmp.ge.s32.totalorder %v2689_v13, %v9341_v52  ;;  %vm14157_vm4 = vcmp.lt.s32.totalorder %v2672_v59, %v9352_v43  ;;  %vm14158_vm13 = vcmp.ge.s32.totalorder %v2672_v59, %v9341_v52  ;;  %v14159_v26 = vmov 0  ;;  %v8510_v13 = vpop.eup %8509 }
0x1279   :  { %v14150_v38 = vsel %vm9911_vm8, 4294967295, %v14149_v38  ;;  %vm9925_vm11 = vmand %vm14152_vm3, %vm14151_vm0  ;;  %v2693_v27 = vadd.s32 1016, %v8780_v34  ;;  %vm14161_vm1 = vnez %v14103_v61  ;;  %v1801_v24 = vpack.c.bf16 %v1796_v63, %v1795_v46 }
0x127a   :  { %v14154_v58 = vsel %vm9925_vm11, 4294967295, %v14153_v58  ;;  %vm14156_vm14 = vmpackc.low %vm9725_vm6, %vm14155_vm12  ;;  %vm14162_vm6 = vnez %v14101_v0  ;;  %v2676_v61 = vadd.s32 880, %v8780_v34  ;;  %8515 = vrcp.f32 %v1781_v32 }
0x127b   :  { %8086 = vmatpush3.bf16.msk.msra.mxu1 %vm14156_vm14, %v14135_v39  ;;  %vm9941_vm0 = vmand %vm14158_vm13, %vm14157_vm4  ;;  %vm14164_vm14 = vcmp.lt.s32.totalorder %v2673_v3, %v9352_v43  ;;  %vm14165_vm4 = vcmp.ge.s32.totalorder %v2673_v3, %v9341_v52  ;;  %v1782_v0 = vadd.f32 1.0, %v8510_v13  ;;  %v14170_v59 = vmov 0  ;;  %7851 = vmatpush3.bf16.msra.mxu0 %v1801_v24 }
0x127c   :  { %v14160_v26 = vsel %vm9941_vm0, 4294967295, %v14159_v26  ;;  %vm14163_vm12 = vmpackc.low %vm14161_vm1, %vm14162_vm6  ;;  %vm14168_vm6 = vcmp.lt.s32.totalorder %v2690_v55, %v9352_v43  ;;  %v2677_v3 = vadd.s32 888, %v8780_v34  ;;  %v2742_v21 = vadd.s32 1408, %v8780_v34 }
0x127d   :  { %8088 = vmatprep.subr.msk.bf16.mxu1 %vm14163_vm12, %v14135_v39  ;;  %vm9962_vm2 = vmand %vm14165_vm4, %vm14164_vm14  ;;  %vm14169_vm12 = vcmp.ge.s32.totalorder %v2690_v55, %v9341_v52  ;;  %vm14172_vm4 = vcmp.lt.s32.totalorder %v2691_v10, %v9352_v43  ;;  %vm14173_vm13 = vcmp.ge.s32.totalorder %v2691_v10, %v9341_v52  ;;  %v14174_v2 = vmov 0  ;;  %v8512_v55 = vpop.eup %8511 }
0x127e   :  { %vm9977_vm14 = vmand %vm14169_vm12, %vm14168_vm6  ;;  %8517 = vrcp.f32 %v1782_v0  ;;  %vm14176_vm12 = vnez %v14105_v4  ;;  %v14178_v29 = vmov 0.0   ;;  %vm14187_vm1 = vcmp.ge.s32.totalorder %v2675_v9, %v9341_v52  ;;  %v10292_v4 = vld [vmem:[#allocation2 + $0x100] sm:$0xff] }
0x127f   :  { %v14171_v59 = vsel %vm9977_vm14, 4294967295, %v14170_v59  ;;  %vm9987_vm5 = vmand %vm14173_vm13, %vm14172_vm4  ;;  %7852 = vmatprep.subr.bf16.mxu0 %v14178_v29  ;;  %vm14179_vm13 = vcmp.lt.s32.totalorder %v2674_v7, %v9352_v43  ;;  %vm14180_vm4 = vcmp.ge.s32.totalorder %v2674_v7, %v9341_v52  ;;  %v14192_v7 = vmov 0 }
0x1280   :  { %v14175_v2 = vsel %vm9987_vm5, 4294967295, %v14174_v2  ;;  %vm14177_vm3 = vmpackc.low %vm9777_vm7, %vm14176_vm12  ;;  %vm14183_vm7 = vnez %v14118_v42  ;;  %v8514_v42 = vpop.eup %8513  ;;  %v1797_v46 = vmul.f32 %v8512_v55, %v9253_v28  ;;  %vm14195_vm9 = vcmp.ge.s32.totalorder %v2693_v27, %v9341_v52 }
0x1281   :  { %8090 = vmatpush3.bf16.msk.msra.mxu1 %vm14177_vm3, %v14135_v39  ;;  %vm10004_vm8 = vmand %vm14180_vm4, %vm14179_vm13  ;;  %vm14184_vm3 = vnez %v14114_v44  ;;  %vm14186_vm4 = vcmp.lt.s32.totalorder %v2675_v9, %v9352_v43  ;;  %v2726_v44 = vadd.s32 1280, %v8780_v34  ;;  %v2727_v9 = vadd.s32 1288, %v8780_v34 }
0x1282   :  { %vm14185_vm12 = vmpackc.low %vm14183_vm7, %vm14184_vm3  ;;  %vm14190_vm3 = vcmp.lt.s32.totalorder %v2692_v8, %v9352_v43  ;;  %v1798_v63 = vmul.f32 %v8514_v42, %v9256_v12  ;;  %vm14194_vm7 = vcmp.lt.s32.totalorder %v2693_v27, %v9352_v43  ;;  %v2744_v32 = vadd.s32 1424, %v8780_v34 }
0x1283   :  { %8092 = vmatprep.subr.msk.bf16.mxu1 %vm14185_vm12, %v14135_v39  ;;  %vm10025_vm11 = vmand %vm14187_vm1, %vm14186_vm4  ;;  %vm14191_vm12 = vcmp.ge.s32.totalorder %v2692_v8, %v9341_v52  ;;  %vm14198_vm6 = vnez %v14122_v49  ;;  %vm14200_vm13 = vcmp.lt.s32.totalorder %v2676_v61, %v9352_v43  ;;  %vm14201_vm14 = vcmp.ge.s32.totalorder %v2676_v61, %v9341_v52  ;;  %v8531_v8 = vld [vmem:[%s13826_s2] sm:$0xf] }
0x1284   :  { %vm10040_vm1 = vmand %vm14191_vm12, %vm14190_vm3  ;;  %v14202_v28 = vmov 0  ;;  %v2745_v12 = vadd.s32 1432, %v8780_v34  ;;  %vm14204_vm12 = vnez %v14134_v62  ;;  %v1802_v49 = vpack.c.bf16 %v1798_v63, %v1797_v46  ;;  %v8516_v61 = vpop.eup %8515  ;;  %v10220_v63 = vld [vmem:[#allocation2 + $0x80] sm:$0xff] }
0x1285   :  { %v14193_v7 = vsel %vm10040_vm1, 4294967295, %v14192_v7  ;;  %vm10054_vm3 = vmand %vm14195_vm9, %vm14194_vm7  ;;  %v14213_v62 = vmov 0  ;;  %v2729_v27 = vadd.s32 1304, %v8780_v34  ;;  %v2746_v13 = vadd.s32 1440, %v8780_v34 }
0x1286   :  { %vm14199_vm4 = vmpackc.low %vm9831_vm15, %vm14198_vm6  ;;  %vm14205_vm15 = vnez %v14130_v35  ;;  %v2728_v35 = vadd.s32 1296, %v8780_v34  ;;  %7853 = vmatpush3.bf16.msra.mxu0 %v1802_v49  ;;  %vm14215_vm7 = vcmp.lt.s32.totalorder %v2743_v54, %v9352_v43  ;;  %v14217_v24 = vmov 0 }
0x1287   :  { %8094 = vmatpush3.bf16.msk.msra.mxu1 %vm14199_vm4, %v14135_v39  ;;  %vm10070_vm5 = vmand %vm14201_vm14, %vm14200_vm13  ;;  %vm14207_vm13 = vcmp.lt.s32.totalorder %v2677_v3, %v9352_v43  ;;  %vm14208_vm4 = vcmp.ge.s32.totalorder %v2677_v3, %v9341_v52  ;;  %7854 = vmatprep.subr.bf16.mxu0 %v14178_v29  ;;  %vm14221_vm1 = vcmp.lt.s32.totalorder %v2726_v44, %v9352_v43  ;;  %v14223_v0 = vmov 0  ;;  %v10150_v3 = vld [vmem:[#allocation2 + $0x40] sm:$0xff] }
0x1288   :  { %v14203_v28 = vsel %vm10070_vm5, 4294967295, %v14202_v28  ;;  %vm14206_vm6 = vmpackc.low %vm14204_vm12, %vm14205_vm15  ;;  %vm14211_vm15 = vcmp.lt.s32.totalorder %v2742_v21, %v9352_v43  ;;  %vm14216_vm12 = vcmp.ge.s32.totalorder %v2743_v54, %v9341_v52  ;;  %v2747_v5 = vadd.s32 1448, %v8780_v34 }
0x1289   :  { %8096 = vmatprep.subr.msk.bf16.mxu1 %vm14206_vm6, %v14135_v39  ;;  %vm10091_vm9 = vmand %vm14208_vm4, %vm14207_vm13  ;;  %vm14212_vm6 = vcmp.ge.s32.totalorder %v2742_v21, %v9341_v52  ;;  %vm14219_vm13 = vnez %v14140_v60  ;;  %v10148_v60 = vld [vmem:[#allocation2] sm:$0xff]  ;;  %v14230_v21 = vmov 0  ;;  %vm14233_vm5 = vcmp.ge.s32.totalorder %v2744_v32, %v9341_v52 }
0x128a   :  { %vm10106_vm14 = vmand %vm14212_vm6, %vm14211_vm15  ;;  %vm14229_vm15 = vcmp.ge.s32.totalorder %v2727_v9, %v9341_v52  ;;  %v2731_v54 = vadd.s32 1320, %v8780_v34  ;;  %v2748_v46 = vadd.s32 1456, %v8780_v34  ;;  %v2733_v49 = vadd.s32 1336, %v8780_v34 }
0x128b   :  { %v14214_v62 = vsel %vm10106_vm14, 4294967295, %v14213_v62  ;;  %vm10118_vm0 = vmand %vm14216_vm12, %vm14215_vm7  ;;  %vm14222_vm7 = vcmp.ge.s32.totalorder %v2726_v44, %v9341_v52  ;;  %v1799_v44 = vmul.f32 %v8516_v61, %v9264_v50  ;;  %vm14237_vm14 = vcmp.ge.s32.totalorder %v2745_v12, %v9341_v52 }
0x128c   :  { %v14218_v24 = vsel %vm10118_vm0, 4294967295, %v14217_v24  ;;  %vm14220_vm4 = vmpackc.low %vm9896_vm10, %vm14219_vm13  ;;  %vm14225_vm10 = vnez %v14154_v58  ;;  %vm14226_vm13 = vnez %v14150_v38  ;;  %v2730_v38 = vadd.s32 1312, %v8780_v34  ;;  %v8518_v58 = vpop.eup %8517 }
0x128d   :  { %8098 = vmatpush3.bf16.msk.msra.mxu1 %vm14220_vm4, %v14135_v39  ;;  %vm10135_vm12 = vmand %vm14222_vm7, %vm14221_vm1  ;;  %vm14228_vm7 = vcmp.lt.s32.totalorder %v2727_v9, %v9352_v43  ;;  %vm14232_vm1 = vcmp.lt.s32.totalorder %v2744_v32, %v9352_v43  ;;  %v1800_v42 = vmul.f32 %v8518_v58, %v9267_v18  ;;  %v6275_v50 = vcombine.high %v10148_v60, %v10150_v3  ;;  %v10222_v32 = vld [vmem:[#allocation2 + $0xc0] sm:$0xff] }
0x128e   :  { %v14224_v0 = vsel %vm10135_vm12, 4294967295, %v14223_v0  ;;  %vm14227_vm4 = vmpackc.low %vm14225_vm10, %vm14226_vm13  ;;  %vm14240_vm13 = vnez %v14160_v26  ;;  %vm14242_vm10 = vcmp.lt.s32.totalorder %v2728_v35, %v9352_v43  ;;  %vm14254_vm12 = vcmp.ge.s32.totalorder %v2746_v13, %v9341_v52 }
0x128f   :  { %8100 = vmatprep.subr.msk.bf16.mxu1 %vm14227_vm4, %v14135_v39  ;;  %vm10160_vm6 = vmand %vm14229_vm15, %vm14228_vm7  ;;  %vm14236_vm4 = vcmp.lt.s32.totalorder %v2745_v12, %v9352_v43  ;;  %v1803_v26 = vpack.c.bf16 %v1800_v42, %v1799_v44  ;;  %v14255_v12 = vmov 0  ;;  %v6291_v61 = vcombine.high %v10220_v63, %v10222_v32 }
0x1290   :  { %v14231_v21 = vsel %vm10160_vm6, 4294967295, %v14230_v21  ;;  %vm10175_vm15 = vmand %vm14233_vm5, %vm14232_vm1  ;;  %vm14250_vm1 = vcmp.ge.s32.totalorder %v2729_v27, %v9341_v52  ;;  %v2751_v10 = vadd.s32 1480, %v8780_v34  ;;  %v2735_v58 = vadd.s32 1352, %v8780_v34 }
0x1291   :  { %vm10189_vm5 = vmand %vm14237_vm14, %vm14236_vm4  ;;  %vm14243_vm14 = vcmp.ge.s32.totalorder %v2728_v35, %v9341_v52  ;;  %7855 = vmatpush3.bf16.msra.mxu0 %v1803_v26  ;;  %v6274_v35 = vcombine.low %v10148_v60, %v10150_v3  ;;  %v10294_v60 = vld [vmem:[#allocation2 + $0x140] sm:$0xff]  ;;  %v14270_v3 = vmov 0  ;;  %v14277_v44 = vmov 0  }
0x1292   :  { %vm14241_vm7 = vmpackc.low %vm9962_vm2, %vm14240_vm13  ;;  %vm14246_vm2 = vnez %v14175_v2  ;;  %vm14247_vm13 = vnez %v14171_v59  ;;  %v2732_v59 = vadd.s32 1328, %v8780_v34  ;;  %2232 = vmatprep.subr.bf16.mxu0 %v6275_v50  ;;  %v14280_v42 = vmov 0  ;;  %v10371_v26 = vld [vmem:[#allocation2 + $0x180] sm:$0xff]  ;;  %v10517_v2 = vld [vmem:[#allocation2 + $0x90] sm:$0xff] }
0x1293   :  { %8102 = vmatpush3.bf16.msk.msra.mxu1 %vm14241_vm7, %v14135_v39  ;;  %vm10207_vm4 = vmand %vm14243_vm14, %vm14242_vm10  ;;  %vm14249_vm14 = vcmp.lt.s32.totalorder %v2729_v27, %v9352_v43  ;;  %vm14253_vm10 = vcmp.lt.s32.totalorder %v2746_v13, %v9352_v43  ;;  %v14259_v27 = vmov 0  ;;  %v2750_v13 = vadd.s32 1472, %v8780_v34 }
0x1294   :  { %vm14248_vm7 = vmpackc.low %vm14246_vm2, %vm14247_vm13  ;;  %vm14258_vm2 = vcmp.ge.s32.totalorder %v2747_v5, %v9341_v52  ;;  %v6307_v50 = vcombine.high %v10292_v4, %v10294_v60  ;;  %v4116_v14 = vmul.f32 %v9782_v37, %v9568_v19  ;;  %v2738_v55 = vadd.s32 1376, %v8780_v34  ;;  %v10664_v19 = vld [vmem:[#allocation2 + $0x190] sm:$0xff] }
0x1295   :  { %8104 = vmatprep.subr.msk.bf16.mxu1 %vm14248_vm7, %v14135_v39  ;;  %vm10232_vm0 = vmand %vm14250_vm1, %vm14249_vm14  ;;  %vm14257_vm7 = vcmp.lt.s32.totalorder %v2747_v5, %v9352_v43  ;;  %v14264_v5 = vmov 0  ;;  %vm14282_vm14 = vnez %v14203_v28  ;;  %v2753_v28 = vadd.s32 1496, %v8780_v34 }
0x1296   :  { %vm10247_vm6 = vmand %vm14254_vm12, %vm14253_vm10  ;;  %v14317_v9 = vmov 0  ;;  %v2757_v18 = vadd.s32 1528, %v8780_v34 }
0x1297   :  { %v14256_v12 = vsel %vm10247_vm6, 4294967295, %v14255_v12  ;;  %vm10260_vm13 = vmand %vm14258_vm2, %vm14257_vm7  ;;  %vm14262_vm2 = vcmp.lt.s32.totalorder %v2730_v38, %v9352_v43  ;;  %vm14263_vm7 = vcmp.ge.s32.totalorder %v2730_v38, %v9341_v52  ;;  %v14275_v38 = vmov 0 }
0x1298   :  { %v14260_v27 = vsel %vm10260_vm13, 4294967295, %v14259_v27  ;;  %vm14261_vm1 = vmpackc.low %vm10025_vm11, %vm10004_vm8  ;;  %vm14266_vm8 = vnez %v14193_v7  ;;  %v2734_v7 = vadd.s32 1344, %v8780_v34 }
0x1299   :  { %8106 = vmatpush3.bf16.msk.msra.mxu1 %vm14261_vm1, %v14135_v39  ;;  %vm10279_vm12 = vmand %vm14263_vm7, %vm14262_vm2  ;;  %vm14268_vm2 = vcmp.lt.s32.totalorder %v2731_v54, %v9352_v43  ;;  %vm14269_vm7 = vcmp.ge.s32.totalorder %v2731_v54, %v9341_v52  ;;  %vm14274_vm1 = vcmp.ge.s32.totalorder %v2748_v46, %v9341_v52  ;;  %v6290_v54 = vcombine.low %v10220_v63, %v10222_v32  ;;  %v10373_v63 = vld [vmem:[#allocation2 + $0x1c0] sm:$0xff] }
0x129a   :  { %v14265_v5 = vsel %vm10279_vm12, 4294967295, %v14264_v5  ;;  %vm14267_vm11 = vmpackc.low %vm10054_vm3, %vm14266_vm8  ;;  %vm14292_vm8 = vcmp.ge.s32.totalorder %v2733_v49, %v9341_v52  ;;  %v2792_v32 = vadd.s32 1808, %v8780_v34 }
0x129b   :  { %8108 = vmatprep.subr.msk.bf16.mxu1 %vm14267_vm11, %v14135_v39  ;;  %vm10304_vm10 = vmand %vm14269_vm7, %vm14268_vm2  ;;  %vm14272_vm11 = vcmask 392192   ;;  %vm14273_vm7 = vcmp.lt.s32.totalorder %v2748_v46, %v9352_v43  ;;  %vm14279_vm2 = vcmp.ge.s32.totalorder %v2749_v16, %v9341_v52  ;;  %v2752_v46 = vadd.s32 1488, %v8780_v34 }
0x129c   :  { %v14271_v3 = vsel %vm10304_vm10, 4294967295, %v14270_v3  ;;  %7857 = vmatmul.mubr.msk.bf16.vlgmr.msra.gmra.mrb[100].mxu0 %vm14272_vm11, %v8531_v8  ;;  %vm10323_vm3 = vmand %vm14274_vm1, %vm14273_vm7  ;;  %vm14278_vm11 = vcmp.lt.s32.totalorder %v2749_v16, %v9352_v43  ;;  %v14321_v8 = vmov 0  ;;  %v2809_v16 = vadd.s32 1944, %v8780_v34 }
0x129d   :  { %v14276_v38 = vsel %vm10323_vm3, 4294967295, %v14275_v38  ;;  %2233 = vmatpush1.bf16.msra.mxu0 %v6274_v35  ;;  %2264 = vmatprep.mubr.bf16.mxu0 %v14277_v44  ;;  %vm10337_vm1 = vmand %vm14279_vm2, %vm14278_vm11  ;;  %vm14284_vm2 = vcmp.lt.s32.totalorder %v2732_v59, %v9352_v43  ;;  %vm14285_vm11 = vcmp.ge.s32.totalorder %v2732_v59, %v9341_v52  ;;  %v2737_v59 = vadd.s32 1368, %v8780_v34 }
0x129e   :  { %v14281_v42 = vsel %vm10337_vm1, 4294967295, %v14280_v42  ;;  %vm14283_vm6 = vmpackc.low %vm10091_vm9, %vm14282_vm14  ;;  %2234 = vmatprep.subr.bf16.mxu0 %v6291_v61  ;;  %vm14288_vm9 = vnez %v14218_v24  ;;  %v4121_v24 = vmul.f32 %v9782_v37, %v9631_v1  ;;  %v6306_v1 = vcombine.low %v10292_v4, %v10294_v60 }
0x129f   :  { %8110 = vmatpush3.bf16.msk.msra.mxu1 %vm14283_vm6, %v14135_v39  ;;  %vm10356_vm7 = vmand %vm14285_vm11, %vm14284_vm2  ;;  %vm14289_vm6 = vnez %v14214_v62  ;;  %vm14291_vm11 = vcmp.lt.s32.totalorder %v2733_v49, %v9352_v43  ;;  %v2736_v62 = vadd.s32 1360, %v8780_v34  ;;  %vm14295_vm2 = vcmp.lt.s32.totalorder %v2750_v13, %v9352_v43 }
0x12a0   :  { %vm14290_vm14 = vmpackc.low %vm14288_vm9, %vm14289_vm6  ;;  %vm14300_vm3 = vcmp.ge.s32.totalorder %v2751_v10, %v9341_v52  ;;  %v2754_v35 = vadd.s32 1504, %v8780_v34  ;;  %vm14303_vm9 = vnez %v14231_v21  ;;  %vm14304_vm6 = vnez %v14224_v0  ;;  %v10445_v21 = vld [vmem:[#allocation2 + $0x10] sm:$0xff] }
0x12a1   :  { %8144 = vmatprep.subr.msk.bf16.mxu1 %vm14290_vm14, %v14135_v39  ;;  %vm10383_vm13 = vmand %vm14292_vm8, %vm14291_vm11  ;;  %vm14296_vm8 = vcmp.ge.s32.totalorder %v2750_v13, %v9341_v52  ;;  %2235 = vmatpush1.bf16.msra.mxu0 %v6290_v54  ;;  %vm14299_vm14 = vcmp.lt.s32.totalorder %v2751_v10, %v9352_v43  ;;  %v6323_v13 = vcombine.high %v10371_v26, %v10373_v63  ;;  %v14308_v61 = vmov 0  ;;  %v10447_v10 = vld [vmem:[#allocation2 + $0x50] sm:$0xff] }
0x12a2   :  { %vm10400_vm11 = vmand %vm14296_vm8, %vm14295_vm2  ;;  %4550 = vmatmul.mubr.f32.vlgmr.msra.gmra.mrb[122].mxu1 %v4116_v14  ;;  %v2755_v0 = vadd.s32 1512, %v8780_v34  ;;  %2236 = vmatprep.subr.bf16.mxu0 %v6307_v50  ;;  %v14313_v4 = vmov 0  ;;  %vm14316_vm8 = vcmp.ge.s32.totalorder %v2752_v46, %v9341_v52  ;;  %v2739_v60 = vadd.s32 1384, %v8780_v34  ;;  %v10519_v50 = vld [vmem:[#allocation2 + $0xd0] sm:$0xff] }
0x12a3   :  { %vm10413_vm1 = vmand %vm14300_vm3, %vm14299_vm14  ;;  %4689 = vmatprep.mubr.f32.mxu1 %v4121_v24  ;;  %vm14306_vm3 = vcmp.lt.s32.totalorder %v2734_v7, %v9352_v43  ;;  %vm14307_vm14 = vcmp.ge.s32.totalorder %v2734_v7, %v9341_v52  ;;  %v6322_v7 = vcombine.low %v10371_v26, %v10373_v63  ;;  %v6279_v54 = vcombine.high %v10445_v21, %v10447_v10 }
0x12a4   :  { %vm14305_vm12 = vmpackc.low %vm14303_vm9, %vm14304_vm6  ;;  %vm14311_vm6 = vcmp.lt.s32.totalorder %v2735_v58, %v9352_v43  ;;  %vm14315_vm9 = vcmp.lt.s32.totalorder %v2752_v46, %v9352_v43  ;;  %v14326_v46 = vmov 0  ;;  %v2741_v14 = vadd.s32 1400, %v8780_v34 }
0x12a5   :  { %8146 = vmatpush3.bf16.msk.msra.mxu1 %vm14305_vm12, %v14135_v39  ;;  %vm10432_vm2 = vmand %vm14307_vm14, %vm14306_vm3  ;;  %vm14312_vm3 = vcmp.ge.s32.totalorder %v2735_v58, %v9341_v52  ;;  %2237 = vmatpush1.bf16.msra.mxu0 %v6306_v1  ;;  %v2756_v58 = vadd.s32 1520, %v8780_v34  ;;  %v6278_v26 = vcombine.low %v10445_v21, %v10447_v10  ;;  %v6295_v24 = vcombine.high %v10517_v2, %v10519_v50  ;;  %v10591_v1 = vld [vmem:[#allocation2 + $0x150] sm:$0xff] }
0x12a6   :  { %v14309_v61 = vsel %vm10432_vm2, 4294967295, %v14308_v61  ;;  %vm14310_vm12 = vmpackc.low %vm10189_vm5, %vm10175_vm15  ;;  %vm14320_vm15 = vcmp.ge.s32.totalorder %v2753_v28, %v9341_v52  ;;  %2238 = vmatprep.subr.bf16.mxu0 %v6323_v13  ;;  %vm14336_vm2 = vcmp.ge.s32.totalorder %v2754_v35, %v9341_v52  ;;  %v2791_v13 = vadd.s32 1800, %v8780_v34 }
0x12a7   :  { %8148 = vmatprep.subr.msk.bf16.mxu1 %vm14310_vm12, %v14135_v39  ;;  %vm10457_vm14 = vmand %vm14312_vm3, %vm14311_vm6  ;;  %vm14319_vm12 = vcmp.lt.s32.totalorder %v2753_v28, %v9352_v43  ;;  %v14364_v21 = vmov 0  ;;  %v2808_v10 = vadd.s32 1936, %v8780_v34  ;;  %v14378_v49 = vmov 0 }
0x12a8   :  { %v14314_v4 = vsel %vm10457_vm14, 4294967295, %v14313_v4  ;;  %vm10472_vm10 = vmand %vm14316_vm8, %vm14315_vm9  ;;  %vm14332_vm9 = vcmp.ge.s32.totalorder %v2737_v59, %v9341_v52  ;;  %v2813_v28 = vadd.s32 1976, %v8780_v34  ;;  %v14420_v63 = vmov 0 }
0x12a9   :  { %v14318_v9 = vsel %vm10472_vm10, 4294967295, %v14317_v9  ;;  %vm10485_vm5 = vmand %vm14320_vm15, %vm14319_vm12  ;;  %vm14324_vm15 = vcmp.lt.s32.totalorder %v2736_v62, %v9352_v43  ;;  %vm14325_vm12 = vcmp.ge.s32.totalorder %v2736_v62, %v9341_v52  ;;  %2239 = vmatpush1.bf16.msra.mxu0 %v6322_v7  ;;  %v2806_v62 = vadd.s32 1920, %v8780_v34  ;;  %v10666_v7 = vld [vmem:[#allocation2 + $0x1d0] sm:$0xff] }
0x12aa   :  { %v14322_v8 = vsel %vm10485_vm5, 4294967295, %v14321_v8  ;;  %vm14323_vm6 = vmpackc.low %vm10232_vm0, %vm10207_vm4  ;;  %vm14328_vm0 = vnez %v14260_v27  ;;  %vm14329_vm4 = vnez %v14256_v12  ;;  %v2740_v12 = vadd.s32 1392, %v8780_v34  ;;  %2314 = vmatprep.subr.bf16.mxu0 %v6279_v54 }
0x12ab   :  { %8150 = vmatpush3.bf16.msk.msra.mxu1 %vm14323_vm6, %v14135_v39  ;;  %vm10504_vm8 = vmand %vm14325_vm12, %vm14324_vm15  ;;  %vm14331_vm12 = vcmp.lt.s32.totalorder %v2737_v59, %v9352_v43  ;;  %vm14335_vm15 = vcmp.lt.s32.totalorder %v2754_v35, %v9352_v43  ;;  %v14337_v27 = vmov 0  ;;  %v14348_v59 = vmov 0 }
0x12ac   :  { %v14327_v46 = vsel %vm10504_vm8, 4294967295, %v14326_v46  ;;  %vm14330_vm6 = vmpackc.low %vm14328_vm0, %vm14329_vm4  ;;  %vm14340_vm0 = vcmp.ge.s32.totalorder %v2755_v0, %v9341_v52  ;;  %vm14358_vm8 = vcmp.lt.s32.totalorder %v2756_v58, %v9352_v43  ;;  %v2793_v54 = vadd.s32 1816, %v8780_v34 }
0x12ad   :  { %8152 = vmatprep.subr.msk.bf16.mxu1 %vm14330_vm6, %v14135_v39  ;;  %vm10529_vm3 = vmand %vm14332_vm9, %vm14331_vm12  ;;  %vm14339_vm6 = vcmp.lt.s32.totalorder %v2755_v0, %v9352_v43  ;;  %vm14343_vm9 = vnez %v14271_v3  ;;  %vm14344_vm12 = vnez %v14265_v5  ;;  %v2807_v5 = vadd.s32 1928, %v8780_v34  ;;  %v10589_v3 = vld [vmem:[#allocation2 + $0x110] sm:$0xff] }
0x12ae   :  { %vm10544_vm14 = vmand %vm14336_vm2, %vm14335_vm15  ;;  %vm14354_vm15 = vcmp.ge.s32.totalorder %v2739_v60, %v9341_v52  ;;  %v6294_v0 = vcombine.low %v10517_v2, %v10519_v50  ;;  %v2810_v50 = vadd.s32 1952, %v8780_v34  ;;  %v2815_v35 = vadd.s32 1992, %v8780_v34 }
0x12af   :  { %v14338_v27 = vsel %vm10544_vm14, 4294967295, %v14337_v27  ;;  %vm10557_vm4 = vmand %vm14340_vm0, %vm14339_vm6  ;;  %vm14346_vm0 = vcmp.lt.s32.totalorder %v2738_v55, %v9352_v43  ;;  %vm14347_vm6 = vcmp.ge.s32.totalorder %v2738_v55, %v9341_v52  ;;  %v6311_v55 = vcombine.high %v10589_v3, %v10591_v1 }
0x12b0   :  { %vm14345_vm10 = vmpackc.low %vm14343_vm9, %vm14344_vm12  ;;  %vm14351_vm9 = vnez %v14276_v38  ;;  %v2790_v38 = vadd.s32 1792, %v8780_v34  ;;  %v4125_v2 = vmul.f32 %v9782_v37, %v9636_v17  ;;  %v2817_v17 = vadd.s32 2008, %v8780_v34 }
0x12b1   :  { %8154 = vmatpush3.bf16.msk.msra.mxu1 %vm14345_vm10, %v14135_v39  ;;  %vm10576_vm2 = vmand %vm14347_vm6, %vm14346_vm0  ;;  %vm14350_vm10 = vnez %v14281_v42  ;;  %vm14353_vm6 = vcmp.lt.s32.totalorder %v2739_v60, %v9352_v43  ;;  %v14360_v42 = vmov 0  ;;  %vm14363_vm0 = vcmp.ge.s32.totalorder %v2757_v18, %v9341_v52 }
0x12b2   :  { %v14349_v59 = vsel %vm10576_vm2, 4294967295, %v14348_v59  ;;  %vm14352_vm12 = vmpackc.low %vm14350_vm10, %vm14351_vm9  ;;  %v14369_v60 = vmov 0  ;;  %vm14377_vm10 = vcmp.ge.s32.totalorder %v2806_v62, %v9341_v52  ;;  %vm14403_vm2 = vcmp.ge.s32.totalorder %v2809_v16, %v9341_v52 }
0x12b3   :  { %8156 = vmatprep.subr.msk.bf16.mxu1 %vm14352_vm12, %v14135_v39  ;;  %vm10601_vm5 = vmand %vm14354_vm15, %vm14353_vm6  ;;  %vm14357_vm12 = vcmask 523264   ;;  %vm14359_vm15 = vcmp.ge.s32.totalorder %v2756_v58, %v9341_v52 }
0x12b4   :  { %6338 = vmatmul.mubr.msk.bf16.vlgmr.msra.gmra.mrb[104].mxu0 %vm14357_vm12, %v9298_v31  ;;  %vm10618_vm6 = vmand %vm14359_vm15, %vm14358_vm8  ;;  %vm14362_vm12 = vcmp.lt.s32.totalorder %v2757_v18, %v9352_v43  ;;  %v6310_v18 = vcombine.low %v10589_v3, %v10591_v1  ;;  %v14404_v3 = vmov 0  ;;  %v2812_v1 = vadd.s32 1968, %v8780_v34 }
0x12b5   :  { %v14361_v42 = vsel %vm10618_vm6, 4294967295, %v14360_v42  ;;  %2315 = vmatpush1.bf16.msra.mxu0 %v6278_v26  ;;  %2346 = vmatprep.mubr.bf16.mxu0 %v14277_v44  ;;  %vm10632_vm8 = vmand %vm14363_vm0, %vm14362_vm12  ;;  %vm14367_vm0 = vcmp.lt.s32.totalorder %v2740_v12, %v9352_v43  ;;  %vm14368_vm12 = vcmp.ge.s32.totalorder %v2740_v12, %v9341_v52  ;;  %v6327_v12 = vcombine.high %v10664_v19, %v10666_v7  ;;  %v1857_v26 = vld [vmem:[#allocation2 + $0x60] sm:$0xff] }
0x12b6   :  { %v14365_v21 = vsel %vm10632_vm8, 4294967295, %v14364_v21  ;;  %vm14366_vm9 = vmpackc.low %vm10383_vm13, %vm10356_vm7  ;;  %2316 = vmatprep.subr.bf16.mxu0 %v6295_v24  ;;  %vm14376_vm7 = vcmp.lt.s32.totalorder %v2806_v62, %v9352_v43  ;;  %v14396_v62 = vmov 0  ;;  %v2795_v24 = vadd.s32 1832, %v8780_v34 }
0x12b7   :  { %8158 = vmatpush3.bf16.msk.msra.mxu1 %vm14366_vm9, %v14135_v39  ;;  %vm10651_vm15 = vmand %vm14368_vm12, %vm14367_vm0  ;;  %vm14372_vm9 = vcmp.lt.s32.totalorder %v2741_v14, %v9352_v43  ;;  %vm14373_vm0 = vcmp.ge.s32.totalorder %v2741_v14, %v9341_v52  ;;  %v14389_v14 = vmov 0 }
0x12b8   :  { %v14370_v60 = vsel %vm10651_vm15, 4294967295, %v14369_v60  ;;  %vm14371_vm13 = vmpackc.low %vm10413_vm1, %vm10400_vm11  ;;  %vm14381_vm1 = vcmp.ge.s32.totalorder %v2807_v5, %v9341_v52 }
0x12b9   :  { %8160 = vmatprep.subr.msk.bf16.mxu1 %vm14371_vm13, %v14135_v39  ;;  %vm10676_vm12 = vmand %vm14373_vm0, %vm14372_vm9  ;;  %2317 = vmatpush1.bf16.msra.mxu0 %v6294_v0  ;;  %vm14380_vm13 = vcmp.lt.s32.totalorder %v2807_v5, %v9352_v43  ;;  %vm14384_vm9 = vnez %v14314_v4  ;;  %vm14385_vm0 = vnez %v14309_v61  ;;  %v2811_v61 = vadd.s32 1960, %v8780_v34  ;;  %v10736_v4 = vld [vmem:[#allocation2 + $0x20] sm:$0xff] }
0x12ba   :  { %vm10691_vm14 = vmand %vm14377_vm10, %vm14376_vm7  ;;  %2318 = vmatprep.subr.bf16.mxu0 %v6311_v55  ;;  %vm14395_vm7 = vcmp.ge.s32.totalorder %v2791_v13, %v9341_v52  ;;  %v6326_v5 = vcombine.low %v10664_v19, %v10666_v7  ;;  %v1873_v0 = vld [vmem:[#allocation2 + $0xe0] sm:$0xff]  ;;  %v2797_v55 = vadd.s32 1848, %v8780_v34  ;;  %v14424_v19 = vmov 0 }
0x12bb   :  { %v14379_v49 = vsel %vm10691_vm14, 4294967295, %v14378_v49  ;;  %vm10704_vm11 = vmand %vm14381_vm1, %vm14380_vm13  ;;  %vm14387_vm1 = vcmp.lt.s32.totalorder %v2790_v38, %v9352_v43  ;;  %vm14388_vm13 = vcmp.ge.s32.totalorder %v2790_v38, %v9341_v52  ;;  %v6283_v38 = vcombine.high %v10736_v4, %v1857_v26 }
0x12bc   :  { %vm14386_vm6 = vmpackc.low %vm14384_vm9, %vm14385_vm0  ;;  %vm14392_vm9 = vnez %v14318_v9  ;;  %v2794_v9 = vadd.s32 1824, %v8780_v34  ;;  %v2814_v7 = vadd.s32 1984, %v8780_v34 }
0x12bd   :  { %8162 = vmatpush3.bf16.msk.msra.mxu1 %vm14386_vm6, %v14135_v39  ;;  %vm10723_vm10 = vmand %vm14388_vm13, %vm14387_vm1  ;;  %vm14391_vm6 = vnez %v14322_v8  ;;  %vm14394_vm13 = vcmp.lt.s32.totalorder %v2791_v13, %v9352_v43  ;;  %vm14399_vm1 = vcmp.ge.s32.totalorder %v2808_v10, %v9341_v52  ;;  %v14400_v8 = vmov 0  ;;  %2319 = vmatpush1.bf16.msra.mxu0 %v6310_v18  ;;  %v1867_v13 = vld [vmem:[#allocation2 + $0xb0] sm:$0xff] }
0x12be   :  { %v14390_v14 = vsel %vm10723_vm10, 4294967295, %v14389_v14  ;;  %vm14393_vm0 = vmpackc.low %vm14391_vm6, %vm14392_vm9  ;;  %vm14402_vm9 = vcmp.lt.s32.totalorder %v2809_v16, %v9352_v43  ;;  %2320 = vmatprep.subr.bf16.mxu0 %v6327_v12  ;;  %v6282_v16 = vcombine.low %v10736_v4, %v1857_v26  ;;  %v14442_v18 = vmov 0  ;;  %v1897_v26 = vld [vmem:[#allocation2 + $0x1a0] sm:$0xff] }
0x12bf   :  { %8164 = vmatprep.subr.msk.bf16.mxu1 %vm14393_vm0, %v14135_v39  ;;  %vm10746_vm8 = vmand %vm14395_vm7, %vm14394_vm13  ;;  %vm14398_vm0 = vcmp.lt.s32.totalorder %v2808_v10, %v9352_v43  ;;  %vm14406_vm7 = vnez %v14327_v46  ;;  %v1865_v46 = vld [vmem:[#allocation2 + $0xa0] sm:$0xff]  ;;  %v2798_v4 = vadd.s32 1856, %v8780_v34  ;;  %v1875_v10 = vld [vmem:[#allocation2 + $0xf0] sm:$0xff] }
0x12c0   :  { %v14397_v62 = vsel %vm10746_vm8, 4294967295, %v14396_v62  ;;  %vm10761_vm15 = vmand %vm14399_vm1, %vm14398_vm0  ;;  %vm14422_vm0 = vcmp.lt.s32.totalorder %v2811_v61, %v9352_v43  ;;  %v6302_v12 = vcombine.low %v1867_v13, %v1875_v10 }
0x12c1   :  { %v14401_v8 = vsel %vm10761_vm15, 4294967295, %v14400_v8  ;;  %vm10774_vm6 = vmand %vm14403_vm2, %vm14402_vm9  ;;  %vm14408_vm2 = vcmp.lt.s32.totalorder %v2792_v32, %v9352_v43  ;;  %vm14409_vm9 = vcmp.ge.s32.totalorder %v2792_v32, %v9341_v52  ;;  %2321 = vmatpush1.bf16.msra.mxu0 %v6326_v5  ;;  %v6299_v32 = vcombine.high %v1865_v46, %v1873_v0 }
0x12c2   :  { %v14405_v3 = vsel %vm10774_vm6, 4294967295, %v14404_v3  ;;  %vm14407_vm13 = vmpackc.low %vm10529_vm3, %vm14406_vm7  ;;  %vm14412_vm3 = vnez %v14338_v27  ;;  %v2796_v27 = vadd.s32 1840, %v8780_v34  ;;  %2396 = vmatprep.subr.bf16.mxu0 %v6283_v38  ;;  %v2816_v5 = vadd.s32 2000, %v8780_v34 }
0x12c3   :  { %8166 = vmatpush3.bf16.msk.msra.mxu1 %vm14407_vm13, %v14135_v39  ;;  %vm10792_vm14 = vmand %vm14409_vm9, %vm14408_vm2  ;;  %vm14414_vm2 = vcmp.lt.s32.totalorder %v2793_v54, %v9352_v43  ;;  %vm14415_vm9 = vcmp.ge.s32.totalorder %v2793_v54, %v9341_v52  ;;  %vm14419_vm13 = vcmp.ge.s32.totalorder %v2810_v50, %v9341_v52  ;;  %v14430_v54 = vmov 0 }
0x12c4   :  { %vm14413_vm7 = vmpackc.low %vm10557_vm4, %vm14412_vm3  ;;  %vm14423_vm3 = vcmp.ge.s32.totalorder %v2811_v61, %v9341_v52  ;;  %v14452_v61 = vmov 0  ;;  %v14464_v38 = vmov 0 }
0x12c5   :  { %8168 = vmatprep.subr.msk.bf16.mxu1 %vm14413_vm7, %v14135_v39  ;;  %vm10813_vm1 = vmand %vm14415_vm9, %vm14414_vm2  ;;  %vm14418_vm7 = vcmp.lt.s32.totalorder %v2810_v50, %v9352_v43  ;;  %vm14426_vm2 = vnez %v14349_v59  ;;  %v6298_v50 = vcombine.low %v1865_v46, %v1873_v0  ;;  %v2800_v46 = vadd.s32 1872, %v8780_v34  ;;  %v1891_v59 = vld [vmem:[#allocation2 + $0x170] sm:$0xff] }
0x12c6   :  { %vm10828_vm10 = vmand %vm14419_vm13, %vm14418_vm7  ;;  %vm14436_vm13 = vcmp.ge.s32.totalorder %v2795_v24, %v9341_v52  ;;  %v2801_v0 = vadd.s32 1880, %v8780_v34 }
0x12c7   :  { %v14421_v63 = vsel %vm10828_vm10, 4294967295, %v14420_v63  ;;  %vm10840_vm4 = vmand %vm14423_vm3, %vm14422_vm0  ;;  %vm14428_vm0 = vcmp.lt.s32.totalorder %v2794_v9, %v9352_v43  ;;  %vm14429_vm3 = vcmp.ge.s32.totalorder %v2794_v9, %v9341_v52  ;;  %vm14450_vm10 = vcmp.lt.s32.totalorder %v2796_v27, %v9352_v43  ;;  %v1905_v9 = vld [vmem:[#allocation2 + $0x1e0] sm:$0xff] }
0x12c8   :  { %v14425_v19 = vsel %vm10840_vm4, 4294967295, %v14424_v19  ;;  %vm14427_vm9 = vmpackc.low %vm10601_vm5, %vm14426_vm2  ;;  %vm14432_vm5 = vnez %v14365_v21  ;;  %vm14433_vm2 = vnez %v14361_v42  ;;  %v1881_v42 = vld [vmem:[#allocation2 + $0x120] sm:$0xff]  ;;  %vm14451_vm4 = vcmp.ge.s32.totalorder %v2796_v27, %v9341_v52 }
0x12c9   :  { %8170 = vmatpush3.bf16.msk.msra.mxu1 %vm14427_vm9, %v14135_v39  ;;  %vm10857_vm15 = vmand %vm14429_vm3, %vm14428_vm0  ;;  %vm14435_vm3 = vcmp.lt.s32.totalorder %v2795_v24, %v9352_v43  ;;  %v1889_v21 = vld [vmem:[#allocation2 + $0x160] sm:$0xff]  ;;  %vm14448_vm0 = vnez %v14370_v60  ;;  %v4120_v60 = vmul.f32 %v9782_v37, %v9629_v23  ;;  %v14458_v23 = vmov 0 }
0x12ca   :  { %v14431_v54 = vsel %vm10857_vm15, 4294967295, %v14430_v54  ;;  %vm14434_vm9 = vmpackc.low %vm14432_vm5, %vm14433_vm2  ;;  %vm14439_vm5 = vcmask 523264   ;;  %vm14445_vm2 = vcmp.ge.s32.totalorder %v2813_v28, %v9341_v52  ;;  %v6315_v58 = vcombine.high %v1881_v42, %v1889_v21 }
0x12cb   :  { %8172 = vmatprep.subr.msk.bf16.mxu1 %vm14434_vm9, %v14135_v39  ;;  %vm10878_vm6 = vmand %vm14436_vm13, %vm14435_vm3  ;;  %6340 = vmatmul.mubr.msk.bf16.vlgmr.msra.gmra.mrb[108].mxu0 %vm14439_vm5, %v9298_v31  ;;  %vm14440_vm9 = vcmp.lt.s32.totalorder %v2812_v1, %v9352_v43  ;;  %vm14441_vm13 = vcmp.ge.s32.totalorder %v2812_v1, %v9341_v52  ;;  %vm14444_vm5 = vcmp.lt.s32.totalorder %v2813_v28, %v9352_v43  ;;  %v14461_v24 = vmov 0 }
0x12cc   :  { %vm10894_vm3 = vmand %vm14441_vm13, %vm14440_vm9  ;;  %2397 = vmatpush1.bf16.msra.mxu0 %v6282_v16  ;;  %2428 = vmatprep.mubr.bf16.mxu0 %v14277_v44  ;;  %vm3331_vm13 = vcmp.lt.s32.totalorder %v2814_v7, %v9352_v43  ;;  %vm3332_vm9 = vcmp.lt.s32.totalorder %v2815_v35, %v9352_v43  ;;  %v6314_v1 = vcombine.low %v1881_v42, %v1889_v21  ;;  %v14484_v16 = vmov 0 }
0x12cd   :  { %v14443_v18 = vsel %vm10894_vm3, 4294967295, %v14442_v18  ;;  %vm10905_vm8 = vmand %vm14445_vm2, %vm14444_vm5  ;;  %2398 = vmatprep.subr.bf16.mxu0 %v6299_v32  ;;  %v6331_v28 = vcombine.high %v1897_v26, %v1905_v9  ;;  %vm14469_vm15 = vnez %v14405_v3  ;;  %vm3334_vm3 = vcmp.lt.s32.totalorder %v2817_v17, %v9352_v43  ;;  %v8373_v3 = vld [vmem:[%s13831_s7 + $0x20] sm:$0xff]  }
0x12ce   :  { %vm14449_vm7 = vmpackc.low %vm10676_vm12, %vm14448_vm0  ;;  %vm14454_vm12 = vnez %v14379_v49  ;;  %vm14457_vm0 = vcmp.ge.s32.totalorder %v2797_v55, %v9341_v52  ;;  %v2799_v49 = vadd.s32 1864, %v8780_v34  ;;  %v2802_v42 = vadd.s32 1888, %v8780_v34 }
0x12cf   :  { %8174 = vmatpush3.bf16.msk.msra.mxu1 %vm14449_vm7, %v14135_v39  ;;  %vm10921_vm2 = vmand %vm14451_vm4, %vm14450_vm10  ;;  %vm14456_vm4 = vcmp.lt.s32.totalorder %v2797_v55, %v9352_v43  ;;  %v6303_v21 = vcombine.high %v1867_v13, %v1875_v10  ;;  %v11208_v55 = vadd.s32 144, %v8780_v34  ;;  %v8376_v13 = vld [vmem:[%s13832_s8 + $0xc] ss:$16 sps:$4 sm:$0xff]   ;;  %v11223_v10 = vadd.s32 152, %v8780_v34 }
0x12d0   :  { %v14453_v61 = vsel %vm10921_vm2, 4294967295, %v14452_v61  ;;  %vm14455_vm7 = vmpackc.low %vm10704_vm11, %vm14454_vm12  ;;  %vm14460_vm11 = vcmp.ge.s32.totalorder %v2814_v7, %v9341_v52  ;;  %2399 = vmatpush1.bf16.msra.mxu0 %v6298_v50  ;;  %vm3058_vm10 = vcmp.ge.s32.totalorder %v2799_v49, %v9341_v52  ;;  %v2819_v7 = vadd.s32 2024, %v8780_v34 }
0x12d1   :  { %8208 = vmatprep.subr.msk.bf16.mxu1 %vm14455_vm7, %v14135_v39  ;;  %vm10944_vm5 = vmand %vm14457_vm0, %vm14456_vm4  ;;  %vm14463_vm7 = vcmp.ge.s32.totalorder %v2815_v35, %v9341_v52  ;;  %vm14467_vm0 = vnez %v14390_v14  ;;  %2400 = vmatprep.subr.bf16.mxu0 %v6315_v58  ;;  %v1851_v14 = vld [vmem:[#allocation2 + $0x30] sm:$0xff]  ;;  %v14489_v35 = vmov 0  ;;  %v14493_v50 = vmov 0 }
0x12d2   :  { %v14459_v23 = vsel %vm10944_vm5, 4294967295, %v14458_v23  ;;  %vm10955_vm12 = vmand %vm14460_vm11, %vm3331_vm13  ;;  %4690 = vmatmul.mubr.f32.vlgmr.msra.gmra.mrb[124].mxu1 %v4120_v60  ;;  %vm14466_vm13 = vnez %v14397_v62  ;;  %v1859_v62 = vld [vmem:[#allocation2 + $0x70] sm:$0xff]  ;;  %vm14479_vm5 = vnez %v14425_v19  ;;  %v2818_v19 = vadd.s32 2016, %v8780_v34 }
0x12d3   :  { %v14462_v24 = vsel %vm10955_vm12, 4294967295, %v14461_v24  ;;  %vm10964_vm4 = vmand %vm14463_vm7, %vm3332_vm9  ;;  %4829 = vmatprep.mubr.f32.mxu1 %v4125_v2  ;;  %vm3316_vm9 = vcmp.lt.s32.totalorder %v2799_v49, %v9352_v43  ;;  %v6287_v27 = vcombine.high %v1851_v14, %v1859_v62  ;;  %v6286_v32 = vcombine.low %v1851_v14, %v1859_v62 }
0x12d4   :  { %v14465_v38 = vsel %vm10964_vm4, 4294967295, %v14464_v38  ;;  %vm14468_vm11 = vmpackc.low %vm14466_vm13, %vm14467_vm0  ;;  %vm14470_vm13 = vnez %v14401_v8  ;;  %2401 = vmatpush1.bf16.msra.mxu0 %v6314_v1  ;;  %v6330_v8 = vcombine.low %v1897_v26, %v1905_v9  ;;  %vm14486_vm4 = vcmp.ge.s32.totalorder %v2817_v17, %v9341_v52  ;;  %v1907_v9 = vld [vmem:[#allocation2 + $0x1f0] sm:$0xff] }
0x12d5   :  { %8210 = vmatpush3.bf16.msk.msra.mxu1 %vm14468_vm11, %v14135_v39  ;;  %vm14471_vm0 = vmpackc.low %vm14469_vm15, %vm14470_vm13  ;;  %vm14473_vm11 = vcmp.ge.s32.totalorder %v2798_v4, %v9341_v52  ;;  %2402 = vmatprep.subr.bf16.mxu0 %v6331_v28  ;;  %vm14480_vm13 = vnez %v14421_v63  ;;  %v2820_v60 = vadd.s32 2032, %v8780_v34  ;;  %v14501_v26 = vmov 0  ;;  %v8374_v63 = vld [vmem:[%s13832_s8 + $0x8] ss:$16 sps:$4 sm:$0xff]  }
0x12d6   :  { %8212 = vmatprep.subr.msk.bf16.mxu1 %vm14471_vm0, %v14135_v39  ;;  %vm14472_vm0 = vcmp.lt.s32.totalorder %v2798_v4, %v9352_v43  ;;  %vm14476_vm7 = vmpackc.low %vm10813_vm1, %vm10792_vm14  ;;  %vm14482_vm14 = vcmp.lt.s32.totalorder %v2816_v5, %v9352_v43  ;;  %vm14483_vm1 = vcmp.ge.s32.totalorder %v2816_v5, %v9341_v52  ;;  %v2803_v4 = vadd.s32 1896, %v8780_v34 }
0x12d7   :  { %vm11005_vm2 = vmand %vm14473_vm11, %vm14472_vm0  ;;  %vm3059_vm11 = vcmp.ge.s32.totalorder %v2800_v46, %v9341_v52  ;;  %vm3317_vm0 = vcmp.lt.s32.totalorder %v2800_v46, %v9352_v43  ;;  %v2804_v2 = vadd.s32 1904, %v8780_v34  ;;  %v2805_v1 = vadd.s32 1912, %v8780_v34 }
0x12d8   :  { %vm11017_vm15 = vmand %vm3058_vm10, %vm3316_vm9  ;;  %vm3060_vm9 = vcmp.ge.s32.totalorder %v2801_v0, %v9341_v52  ;;  %2403 = vmatpush1.bf16.msra.mxu0 %v6330_v8  ;;  %v11186_v62 = vadd.s32 128, %v8780_v34  ;;  %v11193_v8 = vadd.s32 136, %v8780_v34  ;;  %v11373_v49 = vpack.c.bf16 %v9160_v15, %v9160_v15 }
0x12d9   :  { %8214 = vmatpush3.bf16.msk.msra.mxu1 %vm14476_vm7, %v14135_v39  ;;  %vm14481_vm12 = vmpackc.low %vm14479_vm5, %vm14480_vm13  ;;  %vm3318_vm7 = vcmp.lt.s32.totalorder %v2801_v0, %v9352_v43  ;;  %vm14491_vm13 = vnez %v14431_v54  ;;  %2478 = vmatprep.subr.bf16.mxu0 %v6287_v27  ;;  %v1883_v54 = vld [vmem:[#allocation2 + $0x130] sm:$0xff]  ;;  %v11199_v27 = vadd.s32 8, %v8780_v34  ;;  %v11431_v28 = vadd.s32 176, %v8780_v34 }
0x12da   :  { %8216 = vmatprep.subr.msk.bf16.mxu1 %vm14481_vm12, %v14135_v39  ;;  %vm11033_vm10 = vmand %vm14483_vm1, %vm14482_vm14  ;;  %vm3335_vm1 = vcmp.lt.s32.totalorder %v2818_v19, %v9352_v43  ;;  %v6319_v58 = vcombine.high %v1883_v54, %v1891_v59  ;;  %v11447_v14 = vadd.s32 48, %v8780_v34  ;;  %v11450_v0 = vadd.s32 56, %v8780_v34 }
0x12db   :  { %v14485_v16 = vsel %vm11033_vm10, 4294967295, %v14484_v16  ;;  %vm11042_vm5 = vmand %vm14486_vm4, %vm3334_vm3  ;;  %vm14495_vm4 = vnez %v14443_v18  ;;  %v2821_v18 = vadd.s32 2040, %v8780_v34  ;;  %v11634_v5 = vadd.s32 248, %v8780_v34 }
0x12dc   :  { %vm11047_vm12 = vmand %vm3059_vm11, %vm3317_vm0  ;;  %vm3077_vm0 = vcmp.ge.s32.totalorder %v2818_v19, %v9341_v52  ;;  %v14532_v19 = vmov 0  ;;  %v2646_v17 = vadd.s32 640, %v8780_v34 }
0x12dd   :  { %v14490_v35 = vsel %vm11047_vm12, 4294967295, %v14489_v35  ;;  %vm14492_vm14 = vmpackc.low %vm10878_vm6, %vm14491_vm13  ;;  %vm14503_vm13 = vnez %v14465_v38  ;;  %vm3079_vm12 = vcmp.ge.s32.totalorder %v2820_v60, %v9341_v52  ;;  %14592 = vst [vmem:[#allocation40_spill] sm:$0xff] %v11634_v5 }
0x12de   :  { %8218 = vmatpush3.bf16.msk.msra.mxu1 %vm14492_vm14, %v14135_v39  ;;  %vm11058_vm3 = vmand %vm3060_vm9, %vm3318_vm7  ;;  %vm14497_vm9 = vcmask 523264   ;;  %vm3320_vm7 = vcmp.lt.s32.totalorder %v2803_v4, %v9352_v43 }
0x12df   :  { %v14494_v50 = vsel %vm11058_vm3, 4294967295, %v14493_v50  ;;  %vm14496_vm11 = vmpackc.low %vm10905_vm8, %vm14495_vm4  ;;  %6342 = vmatmul.mubr.msk.bf16.vlgmr.msra.gmra.mrb[112].mxu0 %vm14497_vm9, %v9298_v31  ;;  %vm14498_vm9 = vnez %v14459_v23  ;;  %vm14499_vm8 = vnez %v14453_v61  ;;  %vm3062_vm4 = vcmp.ge.s32.totalorder %v2803_v4, %v9341_v52  ;;  %v1899_v61 = vld [vmem:[#allocation2 + $0x1b0] sm:$0xff] }
0x12e0   :  { %8220 = vmatprep.subr.msk.bf16.mxu1 %vm14496_vm11, %v14135_v39  ;;  %2479 = vmatpush1.bf16.msra.mxu0 %v6286_v32  ;;  %vm3319_vm11 = vcmp.lt.s32.totalorder %v2802_v42, %v9352_v43  ;;  %vm14500_vm6 = vmpackc.low %vm14498_vm9, %vm14499_vm8  ;;  %vm14504_vm8 = vnez %v14462_v24  ;;  %vm14506_vm9 = vcmp.lt.s32.totalorder %v2819_v7, %v9352_v43  ;;  %vm3337_vm3 = vcmp.lt.s32.totalorder %v2820_v60, %v9352_v43  ;;  %v8381_v4 = vld [vmem:[%s13831_s7 + $0x30] sm:$0xff]   ;;  %v8378_v60 = vld [vmem:[%s13832_s8 + $0x28] ss:$16 sps:$4 sm:$0xff]  }
0x12e1   :  { %2510 = vmatprep.mubr.bf16.mxu0 %v14277_v44  ;;  %2480 = vmatprep.subr.bf16.mxu0 %v6303_v21  ;;  %vm11102_vm14 = vmand %vm3077_vm0, %vm3335_vm1  ;;  %vm14507_vm0 = vcmp.ge.s32.totalorder %v2819_v7, %v9341_v52  ;;  %v6318_v24 = vcombine.low %v1883_v54, %v1891_v59  ;;  %v6335_v38 = vcombine.high %v1899_v61, %v1907_v9  ;;  %v14538_v21 = vmov 0  ;;  %v14602_v7 = vld [vmem:[#allocation14_spill] sm:$0xff] }
0x12e2   :  { %8222 = vmatpush3.bf16.msk.msra.mxu1 %vm14500_vm6, %v14135_v39  ;;  %v14502_v26 = vsel %vm11102_vm14, 4294967295, %v14501_v26  ;;  %vm14505_vm6 = vmpackc.low %vm14503_vm13, %vm14504_vm8  ;;  %vm14510_vm14 = vcmp.ge.s32.totalorder %v2802_v42, %v9341_v52  ;;  %vm3080_vm13 = vcmp.ge.s32.totalorder %v2821_v18, %v9341_v52  ;;  %vm3338_vm8 = vcmp.lt.s32.totalorder %v2821_v18, %v9352_v43 }
0x12e3   :  { %8224 = vmatprep.subr.msk.bf16.mxu1 %vm14505_vm6, %v14135_v39  ;;  %vm11118_vm1 = vmand %vm14507_vm0, %vm14506_vm9  ;;  %v6334_v46 = vcombine.low %v1899_v61, %v1907_v9  ;;  %vm3064_vm0 = vcmp.ge.s32.totalorder %v2805_v1, %v9341_v52  ;;  %v4124_v32 = vmul.f32 %v9782_v37, %v9634_v25  ;;  %v11286_v25 = vadd.s32 16, %v8780_v34  ;;  %v8382_v61 = vld [vmem:[%s13831_s7 + $0x38] sm:$0xff]   ;;  %v8383_v9 = vld [vmem:[%s13833_s9] sm:$0xff]  }
0x12e4   :  { %vm11126_vm10 = vmand %vm14510_vm14, %vm3319_vm11  ;;  %2481 = vmatpush1.bf16.msra.mxu0 %v6302_v12  ;;  %v14540_v54 = vmov 0  ;;  %v11309_v59 = vadd.s32 160, %v8780_v34  ;;  %v14542_v18 = vmov 0  ;;  %v11320_v12 = vadd.s32 168, %v8780_v34 }
0x12e5   :  { %vm11133_vm6 = vmand %vm3062_vm4, %vm3320_vm7  ;;  %2482 = vmatprep.subr.bf16.mxu0 %v6319_v58  ;;  %vm14518_vm7 = vnez %v14485_v16  ;;  %v8377_v16 = vld [vmem:[%s13831_s7 + $0x28] sm:$0xff]   ;;  %v11332_v58 = vadd.s32 32, %v8780_v34  ;;  %v11537_v42 = vadd.s32 208, %v8780_v34  ;;  %v11611_v23 = vadd.s32 96, %v8780_v34  ;;  %s8594_s7 = smov 24  }
0x12e6   :  { %vm14515_vm14 = vmpackc.low %vm11017_vm15, %vm11005_vm2  ;;  %vm14522_vm2 = vnez %v14502_v26  ;;  %v11343_v26 = vadd.s32 40, %v8780_v34 }
0x12e7   :  { %8226 = vmatpush3.bf16.msk.msra.mxu1 %vm14515_vm14, %v14135_v39  ;;  %vm11144_vm11 = vmand %vm3079_vm12, %vm3337_vm3  ;;  %vm3063_vm12 = vcmp.ge.s32.totalorder %v2804_v2, %v9341_v52  ;;  %vm3321_vm3 = vcmp.lt.s32.totalorder %v2804_v2, %v9352_v43  ;;  %14578 = vst [vmem:[#allocation31_spill] sm:$0xff] %v11537_v42  ;;  %v11619_v2 = vadd.s32 104, %v8780_v34 }
0x12e8   :  { %vm14519_vm4 = vmpackc.low %vm11042_vm5, %vm14518_vm7  ;;  %2483 = vmatpush1.bf16.msra.mxu0 %v6318_v24  ;;  %14589 = vst [vmem:[#allocation37_spill] sm:$0xff] %v11611_v23  ;;  %v11626_v24 = vadd.s32 240, %v8780_v34 }
0x12e9   :  { %8228 = vmatprep.subr.msk.bf16.mxu1 %vm14519_vm4, %v14135_v39  ;;  %vm11154_vm9 = vmand %vm3080_vm13, %vm3338_vm8  ;;  %vm3322_vm13 = vcmp.lt.s32.totalorder %v2805_v1, %v9352_v43  ;;  %vm14523_vm8 = vnez %v14494_v50  ;;  %2484 = vmatprep.subr.bf16.mxu0 %v6335_v38  ;;  %vm3083_vm4 = vcmp.lt.s32.totalorder %v8780_v34, %v9352_v43  ;;  %v11299_v50 = vadd.s32 24, %v8780_v34  ;;  %v8384_v38 = vld [vmem:[%s13833_s9 + $0x8] sm:$0xff]   ;;  %14590 = vst [vmem:[#allocation38_spill] sm:$0xff] %v11619_v2 }
0x12ea   :  { %vm8231_vm15 = vmpackc.low %vm11118_vm1, %vm14522_vm2  ;;  %vm14524_vm1 = vnez %v14490_v35  ;;  %vm2841_vm2 = vcmp.ge.s32.totalorder %v11186_v62, %v9341_v52  ;;  %v8380_v35 = vld [vmem:[%s13832_s8 + $0x2c] ss:$16 sps:$4 sm:$0xff]   ;;  %v4143_v1 = vrot.slane %v9298_v31, 2  ;;  %14591 = vst [vmem:[#allocation39_spill] sm:$0xff] %v11626_v24 }
0x12eb   :  { %vm8233_vm5 = vmpackc.low %vm11133_vm6, %vm11126_vm10 }
0x12ec   :  { %vm14525_vm14 = vmpackc.low %vm14523_vm8, %vm14524_vm1  ;;  %2485 = vmatpush1.bf16.msra.mxu0 %v6334_v46  ;;  %vm3084_vm8 = vcmp.lt.s32.totalorder %v11199_v27, %v9352_v43  ;;  %v11434_v46 = vadd.s32 184, %v8780_v34 }
0x12ed   :  { %8230 = vmatpush3.bf16.msk.msra.mxu1 %vm14525_vm14, %v14135_v39  ;;  %vm8235_vm7 = vmpackc.low %vm11154_vm9, %vm11144_vm11  ;;  %7860 = vmatprep.subr.bf16.mxu0 %v14178_v29  ;;  %vm2825_vm11 = vcmp.ge.s32.totalorder %v8780_v34, %v9341_v52 }
0x12ee   :  { %8232 = vmatprep.subr.msk.bf16.mxu1 %vm8231_vm15, %v14135_v39  ;;  %vm11181_vm10 = vmand %vm3063_vm12, %vm3321_vm3  ;;  %vm3099_vm15 = vcmp.lt.s32.totalorder %v11186_v62, %v9352_v43  ;;  %vm14530_vm12 = vcmask 523264   ;;  %vm2842_vm3 = vcmp.ge.s32.totalorder %v11193_v8, %v9341_v52 }
0x12ef   :  { %vm11188_vm6 = vmand %vm3064_vm0, %vm3322_vm13  ;;  %6344 = vmatmul.mubr.msk.bf16.vlgmr.msra.gmra.mrb[116].mxu0 %vm14530_vm12, %v9298_v31  ;;  %vm14531_vm0 = vmmov 0   ;;  %vm2826_vm13 = vcmp.ge.s32.totalorder %v11199_v27, %v9341_v52  ;;  %vm3104_vm12 = vcmp.lt.s32.totalorder %v11320_v12, %v9352_v43  ;;  %v2647_v31 = vadd.s32 648, %v8780_v34 }
0x12f0   :  { %vm8237_vm9 = vmpackc.low %vm11188_vm6, %vm11181_vm10  ;;  %7861 = vmatpush3.bf16.msra.mxu0 %v8373_v3  ;;  %7868 = vmatprep.mubr.msk.bf16.mxu0 %vm14531_vm0, %v14178_v29  ;;  %vm3101_vm10 = vcmp.lt.s32.totalorder %v11208_v55, %v9352_v43  ;;  %v11674_v3 = vmul.u32 32, %v9335_v41  ;;  %v2637_v41 = vadd.s32 568, %v8780_v34 }
0x12f1   :  { %8234 = vmatpush3.bf16.msk.msra.mxu1 %vm8233_vm5, %v14135_v39  ;;  %vm3100_vm5 = vcmp.lt.s32.totalorder %v11193_v8, %v9352_v43  ;;  %vm11246_vm1 = vmand %vm2825_vm11, %vm3083_vm4  ;;  %7862 = vmatprep.subr.bf16.mxu0 %v14178_v29  ;;  %vm2844_vm11 = vcmp.ge.s32.totalorder %v11223_v10, %v9341_v52  ;;  %vm3102_vm4 = vcmp.lt.s32.totalorder %v11223_v10, %v9352_v43 }
0x12f2   :  { %8236 = vmatprep.subr.msk.bf16.mxu1 %vm8235_vm7, %v14135_v39  ;;  %v14533_v19 = vsel %vm11246_vm1, 4294967295, %v14532_v19  ;;  %vm11258_vm14 = vmand %vm2841_vm2, %vm3099_vm15  ;;  %vm2843_vm7 = vcmp.ge.s32.totalorder %v11208_v55, %v9341_v52  ;;  %vm2830_vm1 = vcmp.ge.s32.totalorder %v11343_v26, %v9341_v52 }
0x12f3   :  { %vm11277_vm6 = vmand %vm2842_vm3, %vm3100_vm5  ;;  %vm2827_vm3 = vcmp.ge.s32.totalorder %v11286_v25, %v9341_v52  ;;  %vm3085_vm5 = vcmp.lt.s32.totalorder %v11286_v25, %v9352_v43 }
0x12f4   :  { %7863 = vmatpush3.bf16.msra.mxu0 %v8377_v16  ;;  %vm11304_vm2 = vmand %vm2843_vm7, %vm3101_vm10  ;;  %vm3086_vm7 = vcmp.lt.s32.totalorder %v11299_v50, %v9352_v43  ;;  %vm2846_vm10 = vcmp.ge.s32.totalorder %v11320_v12, %v9341_v52  ;;  %v11487_v16 = vadd.s32 192, %v8780_v34 }
0x12f5   :  { %8238 = vmatpush3.bf16.msk.msra.mxu1 %vm8237_vm9, %v14135_v39  ;;  %vm11294_vm9 = vmand %vm2826_vm13, %vm3084_vm8  ;;  %v14541_v54 = vsel %vm11304_vm2, 4294967295, %v14540_v54  ;;  %7864 = vmatprep.subr.bf16.mxu0 %v14178_v29  ;;  %vm2828_vm8 = vcmp.ge.s32.totalorder %v11299_v50, %v9341_v52  ;;  %vm3087_vm2 = vcmp.lt.s32.totalorder %v11332_v58, %v9352_v43 }
0x12f6   :  { %4934 = vmatprep.subr.bf16.mxu1 %v8376_v13  ;;  %v14539_v21 = vsel %vm11294_vm9, 4294967295, %v14538_v21  ;;  %vm11315_vm15 = vmand %vm2844_vm11, %vm3102_vm4  ;;  %vm2845_vm11 = vcmp.ge.s32.totalorder %v11309_v59, %v9341_v52  ;;  %vm3103_vm4 = vcmp.lt.s32.totalorder %v11309_v59, %v9352_v43  ;;  %vm3088_vm9 = vcmp.lt.s32.totalorder %v11343_v26, %v9352_v43 }
0x12f7   :  { %v14543_v18 = vsel %vm11315_vm15, 4294967295, %v14542_v18  ;;  %vm11363_vm13 = vmand %vm2827_vm3, %vm3085_vm5  ;;  %vm2829_vm5 = vcmp.ge.s32.totalorder %v11332_v58, %v9341_v52  ;;  %v11677_v13 = vmul.u32 32, %v9344_v11  ;;  %v2636_v11 = vadd.s32 560, %v8780_v34 }
0x12f8   :  { %4830 = vmatmul.mubr.f32.vlgmr.msra.gmra.mrb[126].mxu1 %v4124_v32  ;;  %7865 = vmatpush3.bf16.msra.mxu0 %v8381_v4  ;;  %vm11382_vm3 = vmand %vm2828_vm8, %vm3086_vm7  ;;  %vm14550_vm8 = vcmask 261120   ;;  %v11522_v32 = vadd.s32 72, %v8780_v34  ;;  %v11554_v4 = vadd.s32 216, %v8780_v34 }
0x12f9   :  { %4935 = vmatpush1.bf16.msra.mxu1 %v8374_v63  ;;  %4966 = vmatprep.mubr.bf16.mxu1 %v14277_v44  ;;  %vm11390_vm15 = vmand %vm2845_vm11, %vm3103_vm4  ;;  %vm14558_vm4 = vcmask 523264   ;;  %v11505_v63 = vadd.s32 64, %v8780_v34 }
0x12fa   :  { %4936 = vmatprep.subr.bf16.mxu1 %v8380_v35  ;;  %7866 = vmatprep.subr.bf16.mxu0 %v14178_v29  ;;  %vm11400_vm7 = vmand %vm2846_vm10, %vm3104_vm12  ;;  %14575 = vst [vmem:[#allocation30_spill] sm:$0xff] %v11522_v32  ;;  %v2650_v35 = vadd.s32 672, %v8780_v34 }
0x12fb   :  { %vm11410_vm11 = vmand %vm2829_vm5, %vm3087_vm2  ;;  %vm14562_vm5 = vnez %v14543_v18  ;;  %14571 = vst [vmem:[#allocation29_spill] sm:$0xff] %v11505_v63  ;;  %v11580_v18 = vadd.s32 88, %v8780_v34 }
0x12fc   :  { %7867 = vmatpush3.bf16.msra.mxu0 %v8382_v61  ;;  %vm14555_vm12 = vmpackc.low %vm11277_vm6, %vm11258_vm14  ;;  %vm14559_vm14 = vnez %v14539_v21  ;;  %14582 = vst [vmem:[#allocation32_spill] sm:$0xff] %v11554_v4  ;;  %v11596_v61 = vadd.s32 224, %v8780_v34  ;;  %v2651_v21 = vadd.s32 680, %v8780_v34 }
0x12fd   :  { %4937 = vmatpush1.bf16.msra.mxu1 %v8378_v60  ;;  %7984 = vmatprep.subr.msk.bf16.mxu0 %vm14555_vm12, %v14135_v39  ;;  %vm11421_vm10 = vmand %vm2830_vm1, %vm3088_vm9  ;;  %vm14560_vm1 = vnez %v14533_v19  ;;  %vm3106_vm9 = vcmp.lt.s32.totalorder %v11434_v46, %v9352_v43  ;;  %v11490_v19 = vadd.s32 200, %v8780_v34  ;;  %14586 = vst [vmem:[#allocation34_spill] sm:$0xff] %v11580_v18 }
0x12fe   :  { %7892 = vmatprep.subr.bf16.mxu1 %v14178_v29  ;;  %vm14561_vm6 = vmpackc.low %vm14559_vm14, %vm14560_vm1  ;;  %vm2847_vm14 = vcmp.ge.s32.totalorder %v11431_v28, %v9341_v52  ;;  %vm2848_vm1 = vcmp.ge.s32.totalorder %v11434_v46, %v9341_v52  ;;  %14587 = vst [vmem:[#allocation35_spill] sm:$0xff] %v11596_v61 }
0x12ff   :  { %7869 = vmatmul.mubr.msk.bf16.vlgmr.msra.gmra.mrb[120].mxu0 %vm14558_vm4, %v4143_v1  ;;  %vm2832_vm4 = vcmp.ge.s32.totalorder %v11450_v0, %v9341_v52  ;;  %v11641_v1 = vadd.s32 112, %v8780_v34 }
0x1300   :  { %6877 = vmatmul.mubr.msk.bf16.vlgmr.msra.gmra.mrb[128].mxu1 %vm14550_vm8, %v11373_v49  ;;  %7986 = vmatpush3.bf16.msk.msra.mxu0 %vm14561_vm6, %v14135_v39  ;;  %vm14563_vm8 = vnez %v14541_v54  ;;  %vm3105_vm6 = vcmp.lt.s32.totalorder %v11431_v28, %v9352_v43  ;;  %v11569_v54 = vadd.s32 80, %v8780_v34 }
0x1301   :  { %7893 = vmatpush3.bf16.msra.mxu1 %v8383_v9  ;;  %7896 = vmatprep.mubr.msk.bf16.mxu1 %vm14531_vm0, %v14178_v29  ;;  %vm14564_vm12 = vmpackc.low %vm14562_vm5, %vm14563_vm8  ;;  %vm2831_vm5 = vcmp.ge.s32.totalorder %v11447_v14, %v9341_v52  ;;  %vm3089_vm8 = vcmp.lt.s32.totalorder %v11447_v14, %v9352_v43  ;;  %vm3090_vm0 = vcmp.lt.s32.totalorder %v11450_v0, %v9352_v43  ;;  %v11603_v9 = vadd.s32 232, %v8780_v34 }
0x1302   :  { %7894 = vmatprep.subr.bf16.mxu1 %v14178_v29  ;;  %7988 = vmatprep.subr.msk.bf16.mxu0 %vm14564_vm12, %v14135_v39  ;;  %vm11470_vm2 = vmand %vm2847_vm14, %vm3105_vm6  ;;  %vm14569_vm14 = vcmask 261120   ;;  %14583 = vst [vmem:[#allocation33_spill] sm:$0xff] %v11569_v54 }
0x1303   :  { %vm11478_vm12 = vmand %vm2848_vm1, %vm3106_vm9  ;;  %14588 = vst [vmem:[#allocation36_spill] sm:$0xff] %v11603_v9 }
0x1304   :  { %vm14570_vm9 = vmpackc.low %vm11382_vm3, %vm11363_vm13  ;;  %vm2849_vm13 = vcmp.ge.s32.totalorder %v11487_v16, %v9341_v52  ;;  %vm3107_vm3 = vcmp.lt.s32.totalorder %v11487_v16, %v9352_v43  ;;  %14593 = vst [vmem:[#allocation41_spill] sm:$0xff] %v11641_v1 }
0x1305   :  { %7895 = vmatpush3.bf16.msra.mxu1 %v8384_v38  ;;  %7990 = vmatpush3.bf16.msk.msra.mxu0 %vm14570_vm9, %v14135_v39  ;;  %vm7995_vm1 = vmpackc.low %vm11478_vm12, %vm11470_vm2  ;;  %vm2851_vm2 = vcmp.ge.s32.totalorder %v11537_v42, %v9341_v52  ;;  %vm3109_vm12 = vcmp.lt.s32.totalorder %v11537_v42, %v9352_v43  ;;  %v11649_v38 = vadd.s32 120, %v8780_v34 }
0x1306   :  { %vm14572_vm6 = vmpackc.low %vm11400_vm7, %vm11390_vm15  ;;  %vm2850_vm15 = vcmp.ge.s32.totalorder %v11490_v19, %v9341_v52  ;;  %vm3108_vm7 = vcmp.lt.s32.totalorder %v11490_v19, %v9352_v43 }
0x1307   :  { %7992 = vmatprep.subr.msk.bf16.mxu0 %vm14572_vm6, %v14135_v39  ;;  %vm11524_vm9 = vmand %vm2832_vm4, %vm3090_vm0  ;;  %vm3091_vm6 = vcmp.lt.s32.totalorder %v11505_v63, %v9352_v43  ;;  %14594 = vst [vmem:[#allocation42_spill] sm:$0xff] %v11649_v38 }
0x1308   :  { %7897 = vmatmul.mubr.msk.bf16.vlgmr.msra.gmra.mrb[132].mxu1 %vm14569_vm14, %v11373_v49  ;;  %vm11513_vm14 = vmand %vm2831_vm5, %vm3089_vm8  ;;  %vm2833_vm8 = vcmp.ge.s32.totalorder %v11505_v63, %v9341_v52 }
0x1309   :  { %vm7997_vm5 = vmpackc.low %vm11524_vm9, %vm11513_vm14  ;;  %vm2835_vm14 = vcmp.ge.s32.totalorder %v11569_v54, %v9341_v52  ;;  %vm3093_vm9 = vcmp.lt.s32.totalorder %v11569_v54, %v9352_v43  ;;  %v2661_v54 = vadd.s32 760, %v8780_v34 }
0x130a   :  { %vm14579_vm0 = vmpackc.low %vm11421_vm10, %vm11410_vm11  ;;  %vm2834_vm10 = vcmp.ge.s32.totalorder %v11522_v32, %v9341_v52 }
0x130b   :  { %7994 = vmatpush3.bf16.msk.msra.mxu0 %vm14579_vm0, %v14135_v39  ;;  %vm11545_vm4 = vmand %vm2849_vm13, %vm3107_vm3  ;;  %vm3092_vm13 = vcmp.lt.s32.totalorder %v11522_v32, %v9352_v43 }
0x130c   :  { %7996 = vmatprep.subr.msk.bf16.mxu0 %vm7995_vm1, %v14135_v39  ;;  %vm3364_vm11 = vmand %vm2850_vm15, %vm3108_vm7  ;;  %vm2852_vm15 = vcmp.ge.s32.totalorder %v11554_v4, %v9341_v52  ;;  %vm3110_vm7 = vcmp.lt.s32.totalorder %v11554_v4, %v9352_v43 }
0x130d   :  { %vm7999_vm3 = vmpackc.low %vm3364_vm11, %vm11545_vm4  ;;  %vm3094_vm11 = vcmp.lt.s32.totalorder %v11580_v18, %v9352_v43 }
0x130e   :  { %vm11571_vm0 = vmand %vm2833_vm8, %vm3091_vm6  ;;  %vm2836_vm6 = vcmp.ge.s32.totalorder %v11580_v18, %v9341_v52  ;;  %v2660_v18 = vadd.s32 752, %v8780_v34 }
0x130f   :  { %7998 = vmatpush3.bf16.msk.msra.mxu0 %vm7997_vm5, %v14135_v39  ;;  %vm3348_vm1 = vmand %vm2834_vm10, %vm3092_vm13 }
0x1310   :  { %8000 = vmatprep.subr.msk.bf16.mxu0 %vm7999_vm3, %v14135_v39  ;;  %vm8001_vm4 = vmpackc.low %vm3348_vm1, %vm11571_vm0  ;;  %vm2853_vm3 = vcmp.ge.s32.totalorder %v11596_v61, %v9341_v52  ;;  %vm3111_vm0 = vcmp.lt.s32.totalorder %v11596_v61, %v9352_v43  ;;  %vm3112_vm1 = vcmp.lt.s32.totalorder %v11603_v9, %v9352_v43 }
0x1311   :  { %vm3365_vm8 = vmand %vm2851_vm2, %vm3109_vm12  ;;  %vm2854_vm12 = vcmp.ge.s32.totalorder %v11603_v9, %v9341_v52  ;;  %v2641_v9 = vadd.s32 600, %v8780_v34 }
0x1312   :  { %vm3366_vm5 = vmand %vm2852_vm15, %vm3110_vm7 }
0x1313   :  { %8002 = vmatpush3.bf16.msk.msra.mxu0 %vm8001_vm4, %v14135_v39  ;;  %vm8003_vm10 = vmpackc.low %vm3366_vm5, %vm3365_vm8  ;;  %vm2837_vm4 = vcmp.ge.s32.totalorder %v11611_v23, %v9341_v52  ;;  %vm3095_vm8 = vcmp.lt.s32.totalorder %v11611_v23, %v9352_v43  ;;  %vm3096_vm5 = vcmp.lt.s32.totalorder %v11619_v2, %v9352_v43  ;;  %v2640_v23 = vadd.s32 592, %v8780_v34 }
0x1314   :  { %8004 = vmatprep.subr.msk.bf16.mxu0 %vm8003_vm10, %v14135_v39  ;;  %vm3349_vm13 = vmand %vm2835_vm14, %vm3093_vm9  ;;  %vm2838_vm9 = vcmp.ge.s32.totalorder %v11619_v2, %v9341_v52  ;;  %vm2855_vm10 = vcmp.ge.s32.totalorder %v11626_v24, %v9341_v52  ;;  %v14665_v2 = vmov 0 }
0x1315   :  { %vm3350_vm2 = vmand %vm2836_vm6, %vm3094_vm11 }
0x1316   :  { %vm8005_vm15 = vmpackc.low %vm3350_vm2, %vm3349_vm13  ;;  %vm3113_vm13 = vcmp.lt.s32.totalorder %v11626_v24, %v9352_v43  ;;  %vm3114_vm2 = vcmp.lt.s32.totalorder %v11634_v5, %v9352_v43  ;;  %v14658_v24 = vld [vmem:[#allocation19_spill] sm:$0xff] }
0x1317   :  { %8006 = vmatpush3.bf16.msk.msra.mxu0 %vm8005_vm15, %v14135_v39  ;;  %vm3367_vm7 = vmand %vm2853_vm3, %vm3111_vm0  ;;  %vm2856_vm0 = vcmp.ge.s32.totalorder %v11634_v5, %v9341_v52  ;;  %vm2839_vm15 = vcmp.ge.s32.totalorder %v11641_v1, %v9341_v52  ;;  %v2657_v5 = vadd.s32 728, %v8780_v34 }
0x1318   :  { %vm3368_vm14 = vmand %vm2854_vm12, %vm3112_vm1 }
0x1319   :  { %vm8007_vm6 = vmpackc.low %vm3368_vm14, %vm3367_vm7  ;;  %vm3097_vm7 = vcmp.lt.s32.totalorder %v11641_v1, %v9352_v43  ;;  %vm3098_vm14 = vcmp.lt.s32.totalorder %v11649_v38, %v9352_v43  ;;  %v14653_v1 = vld [vmem:[#allocation18_spill] sm:$0xff] }
0x131a   :  { %8008 = vmatprep.subr.msk.bf16.mxu0 %vm8007_vm6, %v14135_v39  ;;  %vm3351_vm11 = vmand %vm2837_vm4, %vm3095_vm8  ;;  %vm2840_vm8 = vcmp.ge.s32.totalorder %v11649_v38, %v9341_v52  ;;  %vm2905_vm6 = vcmp.ge.s32.totalorder %v2646_v17, %v9341_v52  ;;  %v2656_v38 = vadd.s32 720, %v8780_v34 }
0x131b   :  { %vm3352_vm3 = vmand %vm2838_vm9, %vm3096_vm5 }
0x131c   :  { %vm8009_vm12 = vmpackc.low %vm3352_vm3, %vm3351_vm11  ;;  %vm3163_vm11 = vcmp.lt.s32.totalorder %v2646_v17, %v9352_v43  ;;  %vm3164_vm3 = vcmp.lt.s32.totalorder %v2647_v31, %v9352_v43  ;;  %v14605_v17 = vld [vmem:[#allocation15_spill] sm:$0xff] }
0x131d   :  { %8010 = vmatpush3.bf16.msk.msra.mxu0 %vm8009_vm12, %v14135_v39  ;;  %vm3369_vm1 = vmand %vm2855_vm10, %vm3113_vm13  ;;  %vm2906_vm13 = vcmp.ge.s32.totalorder %v2647_v31, %v9341_v52 }
0x131e   :  { %vm3370_vm4 = vmand %vm2856_vm0, %vm3114_vm2 }
0x131f   :  { %vm8011_vm9 = vmpackc.low %vm3370_vm4, %vm3369_vm1  ;;  %vm5039_vm4 = vcmp.ge.s32.totalorder %v9338_v45, %v11674_v3 }
0x1320   :  { %8012 = vmatprep.subr.msk.bf16.mxu0 %vm8011_vm9, %v14135_v39  ;;  %vm3353_vm5 = vmand %vm2839_vm15, %vm3097_vm7  ;;  %vm5038_vm15 = vcmp.ge.s32.totalorder %v9332_v40, %v11674_v3  ;;  %vm5103_vm7 = vcmp.lt.s32.totalorder %v9332_v40, %v11677_v13  ;;  %vm5022_vm9 = vcmp.ge.s32.totalorder %v9347_v30, %v11674_v3 }
0x1321   :  { %vm3354_vm10 = vmand %vm2840_vm8, %vm3098_vm14  ;;  %vm5104_vm8 = vcmp.lt.s32.totalorder %v9338_v45, %v11677_v13 }
0x1322   :  { %vm8013_vm0 = vmpackc.low %vm3354_vm10, %vm3353_vm5  ;;  %vm5087_vm5 = vcmp.lt.s32.totalorder %v9347_v30, %v11677_v13  ;;  %vm5088_vm10 = vcmp.lt.s32.totalorder %v9355_v33, %v11677_v13 }
0x1323   :  { %8014 = vmatpush3.bf16.msk.msra.mxu0 %vm8013_vm0, %v14135_v39  ;;  %vm3419_vm2 = vmand %vm2905_vm6, %vm3163_vm11  ;;  %vm5023_vm11 = vcmp.ge.s32.totalorder %v9355_v33, %v11674_v3  ;;  %v14596_v33 = vld [vmem:[#allocation10_spill] sm:$0xff] }
0x1324   :  { %vm3420_vm12 = vmand %vm2906_vm13, %vm3164_vm3 }
0x1325   :  { %vm8047_vm1 = vmpackc.low %vm3420_vm12, %vm3419_vm2  ;;  %vm5040_vm12 = vcmp.ge.s32.totalorder %v9364_v47, %v11674_v3 }
0x1326   :  { %8048 = vmatprep.subr.msk.bf16.mxu0 %vm8047_vm1, %v14135_v39  ;;  %vm5167_vm14 = vmand %vm5038_vm15, %vm5103_vm7  ;;  %vm5105_vm1 = vcmp.lt.s32.totalorder %v9364_v47, %v11677_v13  ;;  %vm5041_vm15 = vcmp.ge.s32.totalorder %v9371_v48, %v11674_v3  ;;  %vm5106_vm7 = vcmp.lt.s32.totalorder %v9371_v48, %v11677_v13  ;;  %v14597_v47 = vld [vmem:[#allocation11_spill] sm:$0xff]  ;;  %v2630_v48 = vadd.s32 512, %v8780_v34 }
0x1327   :  { %vm5168_vm6 = vmand %vm5039_vm4, %vm5104_vm8  ;;  %vm5024_vm8 = vcmp.ge.s32.totalorder %v9378_v6, %v11674_v3 }
0x1328   :  { %vm8271_vm13 = vmpackc.low %vm5168_vm6, %vm5167_vm14  ;;  %vm5089_vm14 = vcmp.lt.s32.totalorder %v9378_v6, %v11677_v13  ;;  %vm5090_vm6 = vcmp.lt.s32.totalorder %v9386_v51, %v11677_v13  ;;  %v2631_v6 = vadd.s32 520, %v8780_v34 }
0x1329   :  { %8272 = vmatprep.subr.msk.bf16.mxu1 %vm8271_vm13, %v14135_v39  ;;  %vm5151_vm3 = vmand %vm5022_vm9, %vm5087_vm5  ;;  %vm5025_vm5 = vcmp.ge.s32.totalorder %v9386_v51, %v11674_v3  ;;  %v2648_v51 = vadd.s32 656, %v8780_v34 }
0x132a   :  { %vm5152_vm0 = vmand %vm5023_vm11, %vm5088_vm10 }
0x132b   :  { %vm8273_vm2 = vmpackc.low %vm5152_vm0, %vm5151_vm3  ;;  %vm5042_vm0 = vcmp.ge.s32.totalorder %v9412_v22, %v11674_v3 }
0x132c   :  { %8274 = vmatpush3.bf16.msk.msra.mxu1 %vm8273_vm2, %v14135_v39  ;;  %vm5169_vm4 = vmand %vm5040_vm12, %vm5105_vm1  ;;  %vm5107_vm2 = vcmp.lt.s32.totalorder %v9412_v22, %v11677_v13  ;;  %vm5043_vm12 = vcmp.ge.s32.totalorder %v9415_v53, %v11674_v3  ;;  %vm5108_vm1 = vcmp.lt.s32.totalorder %v9415_v53, %v11677_v13  ;;  %v2649_v22 = vadd.s32 664, %v8780_v34  ;;  %v14598_v53 = vld [vmem:[#allocation12_spill] sm:$0xff] }
0x132d   :  { %vm5170_vm9 = vmand %vm5041_vm15, %vm5106_vm7  ;;  %vm5026_vm7 = vcmp.ge.s32.totalorder %v9418_v20, %v11674_v3 }
0x132e   :  { %vm8275_vm11 = vmpackc.low %vm5170_vm9, %vm5169_vm4  ;;  %vm5091_vm4 = vcmp.lt.s32.totalorder %v9418_v20, %v11677_v13  ;;  %vm5092_vm9 = vcmp.lt.s32.totalorder %v9421_v36, %v11677_v13  ;;  %v14599_v20 = vld [vmem:[#allocation13_spill] sm:$0xff] }
0x132f   :  { %8276 = vmatprep.subr.msk.bf16.mxu1 %vm8275_vm11, %v14135_v39  ;;  %vm5153_vm10 = vmand %vm5024_vm8, %vm5089_vm14  ;;  %vm5027_vm14 = vcmp.ge.s32.totalorder %v9421_v36, %v11674_v3  ;;  %v2632_v36 = vadd.s32 528, %v8780_v34 }
0x1330   :  { %vm5154_vm13 = vmand %vm5025_vm5, %vm5090_vm6 }
0x1331   :  { %vm8277_vm3 = vmpackc.low %vm5154_vm13, %vm5153_vm10  ;;  %vm5044_vm13 = vcmp.ge.s32.totalorder %v9447_v56, %v11674_v3 }
0x1332   :  { %8278 = vmatpush3.bf16.msk.msra.mxu1 %vm8277_vm3, %v14135_v39  ;;  %vm5171_vm15 = vmand %vm5042_vm0, %vm5107_vm2  ;;  %vm5109_vm3 = vcmp.lt.s32.totalorder %v9447_v56, %v11677_v13  ;;  %vm5045_vm0 = vcmp.ge.s32.totalorder %v9452_v57, %v11674_v3  ;;  %vm5110_vm2 = vcmp.lt.s32.totalorder %v9452_v57, %v11677_v13  ;;  %v2633_v56 = vadd.s32 536, %v8780_v34 }
0x1333   :  { %vm5172_vm8 = vmand %vm5043_vm12, %vm5108_vm1  ;;  %vm5028_vm1 = vcmp.ge.s32.totalorder %v14596_v33, %v11674_v3  ;;  %v14765_v57 = vmov 0 }
0x1334   :  { %vm8279_vm5 = vmpackc.low %vm5172_vm8, %vm5171_vm15  ;;  %vm5093_vm15 = vcmp.lt.s32.totalorder %v14596_v33, %v11677_v13  ;;  %vm5094_vm8 = vcmp.lt.s32.totalorder %v14597_v47, %v11677_v13  ;;  %v2634_v33 = vadd.s32 544, %v8780_v34 }
0x1335   :  { %8280 = vmatprep.subr.msk.bf16.mxu1 %vm8279_vm5, %v14135_v39  ;;  %vm5155_vm6 = vmand %vm5026_vm7, %vm5091_vm4  ;;  %vm5029_vm4 = vcmp.ge.s32.totalorder %v14597_v47, %v11674_v3  ;;  %v2635_v47 = vadd.s32 552, %v8780_v34 }
0x1336   :  { %vm5156_vm11 = vmand %vm5027_vm14, %vm5092_vm9 }
0x1337   :  { %vm8281_vm10 = vmpackc.low %vm5156_vm11, %vm5155_vm6  ;;  %vm2889_vm11 = vcmp.ge.s32.totalorder %v2630_v48, %v9341_v52 }
0x1338   :  { %8282 = vmatpush3.bf16.msk.msra.mxu1 %vm8281_vm10, %v14135_v39  ;;  %vm5173_vm12 = vmand %vm5044_vm13, %vm5109_vm3  ;;  %vm2890_vm10 = vcmp.ge.s32.totalorder %v2631_v6, %v9341_v52  ;;  %vm5046_vm13 = vcmp.ge.s32.totalorder %v14598_v53, %v11674_v3  ;;  %vm5111_vm3 = vcmp.lt.s32.totalorder %v14598_v53, %v11677_v13  ;;  %v14732_v53 = vld [vmem:[#allocation23_spill] sm:$0xff] }
0x1339   :  { %vm5174_vm7 = vmand %vm5045_vm0, %vm5110_vm2  ;;  %vm3147_vm0 = vcmp.lt.s32.totalorder %v2630_v48, %v9352_v43  ;;  %vm3148_vm2 = vcmp.lt.s32.totalorder %v2631_v6, %v9352_v43  ;;  %v14737_v6 = vmov 0 }
0x133a   :  { %vm8283_vm14 = vmpackc.low %vm5174_vm7, %vm5173_vm12  ;;  %vm5047_vm12 = vcmp.ge.s32.totalorder %v14599_v20, %v11674_v3  ;;  %vm2908_vm7 = vcmp.ge.s32.totalorder %v2649_v22, %v9341_v52 }
0x133b   :  { %8284 = vmatprep.subr.msk.bf16.mxu1 %vm8283_vm14, %v14135_v39  ;;  %vm5157_vm9 = vmand %vm5028_vm1, %vm5093_vm15  ;;  %vm5112_vm1 = vcmp.lt.s32.totalorder %v14599_v20, %v11677_v13  ;;  %vm2907_vm15 = vcmp.ge.s32.totalorder %v2648_v51, %v9341_v52  ;;  %v2652_v20 = vadd.s32 688, %v8780_v34 }
0x133c   :  { %vm5158_vm5 = vmand %vm5029_vm4, %vm5094_vm8  ;;  %vm3165_vm4 = vcmp.lt.s32.totalorder %v2648_v51, %v9352_v43  ;;  %vm3166_vm8 = vcmp.lt.s32.totalorder %v2649_v22, %v9352_v43  ;;  %v2653_v51 = vadd.s32 696, %v8780_v34  ;;  %v2655_v22 = vadd.s32 712, %v8780_v34 }
0x133d   :  { %vm8285_vm6 = vmpackc.low %vm5158_vm5, %vm5157_vm9  ;;  %vm5095_vm5 = vcmp.lt.s32.totalorder %v14602_v7, %v11677_v13 }
0x133e   :  { %8286 = vmatpush3.bf16.msk.msra.mxu1 %vm8285_vm6, %v14135_v39  ;;  %vm11775_vm14 = vmand %vm5046_vm13, %vm5111_vm3  ;;  %vm5031_vm13 = vcmp.ge.s32.totalorder %v14605_v17, %v11674_v3  ;;  %vm5096_vm3 = vcmp.lt.s32.totalorder %v14605_v17, %v11677_v13  ;;  %v2654_v17 = vadd.s32 704, %v8780_v34 }
0x133f   :  { %vm11785_vm6 = vmand %vm5047_vm12, %vm5112_vm1  ;;  %vm3149_vm1 = vcmp.lt.s32.totalorder %v2632_v36, %v9352_v43 }
0x1340   :  { %vm11799_vm9 = vmand %vm2889_vm11, %vm3147_vm0 }
0x1341   :  { %vm11807_vm12 = vmand %vm2890_vm10, %vm3148_vm2  ;;  %vm3168_vm2 = vcmp.lt.s32.totalorder %v2651_v21, %v9352_v43 }
0x1342   :  { %vm8287_vm11 = vmpackc.low %vm11785_vm6, %vm11775_vm14  ;;  %vm14617_vm6 = vcmp.ge.s32.totalorder %v2632_v36, %v9341_v52  ;;  %v14767_v36 = vmov 0 }
0x1343   :  { %vm11824_vm10 = vmand %vm2907_vm15, %vm3165_vm4  ;;  %vm14614_vm15 = vcmp.ge.s32.totalorder %v14602_v7, %v11674_v3  ;;  %8288 = vmatprep.subr.msk.bf16.mxu1 %vm8287_vm11, %v14135_v39 }
0x1344   :  { %vm11832_vm0 = vmand %vm2908_vm7, %vm3166_vm8  ;;  %vm3167_vm8 = vcmp.lt.s32.totalorder %v2650_v35, %v9352_v43 }
0x1345   :  { %v7238_v40 = vpop.f32.mrb[120].mxu1  ;;  %vm11846_vm4 = vmand %vm14614_vm15, %vm5095_vm5 }
0x1346   :  { %v7239_v45 = vpop.f32.mrb[121].mxu1  ;;  %vm5160_vm5 = vmand %vm5031_vm13, %vm5096_vm3  ;;  %vm14628_vm13 = vcmp.ge.s32.totalorder %v2651_v21, %v9341_v52  ;;  %vm14632_vm3 = vcmp.lt.s32.totalorder %v2634_v33, %v9352_v43  ;;  %v14638_v21 = vmov 0 }
0x1347   :  { %v11727_v30 = vadd.f32 %v7239_v45, %v7238_v40  ;;  %v14606_v40 = vmov 0  ;;  %v14608_v45 = vmov 0  ;;  %vm8289_vm14 = vmpackc.low %vm5160_vm5, %vm11846_vm4  ;;  %vm14621_vm4 = vcmp.ge.s32.totalorder %v2633_v56, %v9341_v52 }
0x1348   :  { %v14607_v40 = vsel %vm11799_vm9, 4294967295, %v14606_v40  ;;  %v14609_v45 = vsel %vm11807_vm12, 4294967295, %v14608_v45  ;;  %vm11876_vm11 = vmand %vm14617_vm6, %vm3149_vm1  ;;  %8290 = vmatpush3.bf16.msk.msra.mxu1 %vm8289_vm14, %v14135_v39  ;;  %vm14620_vm1 = vcmp.lt.s32.totalorder %v2633_v56, %v9352_v43  ;;  %vm14624_vm14 = vcmp.ge.s32.totalorder %v2650_v35, %v9341_v52 }
0x1349   :  { %14595 = vst [vmem:[#allocation43_spill] sm:$0xff] %v11727_v30  ;;  %vm11892_vm5 = vmand %vm14621_vm4, %vm14620_vm1  ;;  %v14629_v35 = vmov 0  ;;  %v14631_v30 = vld [vmem:[#allocation16_spill] sm:$0xff]  ;;  %vm14633_vm4 = vcmp.ge.s32.totalorder %v2634_v33, %v9341_v52  ;;  %v14643_v33 = vmov 0  ;;  %vm14659_vm9 = vcmp.lt.s32.totalorder %v2636_v11, %v9352_v43 }
0x134a   :  { %vm11904_vm15 = vmand %vm14624_vm14, %vm3167_vm8  ;;  %vm14645_vm8 = vcmp.lt.s32.totalorder %v2653_v51, %v9352_v43  ;;  %vm14646_vm14 = vcmp.ge.s32.totalorder %v2653_v51, %v9341_v52  ;;  %vm14660_vm12 = vcmp.ge.s32.totalorder %v2636_v11, %v9341_v52  ;;  %v14673_v11 = vmov 0 }
0x134b   :  { %vm11918_vm7 = vmand %vm14628_vm13, %vm3168_vm2  ;;  %vm14636_vm2 = vcmp.lt.s32.totalorder %v2635_v47, %v9352_v43  ;;  %vm14637_vm13 = vcmp.ge.s32.totalorder %v2635_v47, %v9341_v52  ;;  %v14647_v47 = vmov 0  ;;  %v2658_v51 = vadd.s32 736, %v8780_v34 }
0x134c   :  { %v14630_v35 = vsel %vm11918_vm7, 4294967295, %v14629_v35  ;;  %vm11931_vm1 = vmand %vm14633_vm4, %vm14632_vm3  ;;  %vm14641_vm4 = vcmp.lt.s32.totalorder %v2652_v20, %v9352_v43  ;;  %vm14672_vm3 = vcmp.ge.s32.totalorder %v2655_v22, %v9341_v52 }
0x134d   :  { %vm11939_vm7 = vmand %vm14637_vm13, %vm14636_vm2  ;;  %vm14642_vm2 = vcmp.ge.s32.totalorder %v2652_v20, %v9341_v52  ;;  %v2639_v20 = vadd.s32 584, %v8780_v34 }
0x134e   :  { %v14639_v21 = vsel %vm11939_vm7, 4294967295, %v14638_v21  ;;  %vm11956_vm13 = vmand %vm14642_vm2, %vm14641_vm4  ;;  %vm14649_vm2 = vcmp.lt.s32.totalorder %v14631_v30, %v11677_v13  ;;  %vm14668_vm4 = vcmp.ge.s32.totalorder %v2654_v17, %v9341_v52 }
0x134f   :  { %v14644_v33 = vsel %vm11956_vm13, 4294967295, %v14643_v33  ;;  %vm11964_vm6 = vmand %vm14646_vm14, %vm14645_vm8  ;;  %vm14650_vm8 = vcmp.ge.s32.totalorder %v14631_v30, %v11674_v3  ;;  %v12069_v30 = vadd.s32 608, %v8780_v34 }
0x1350   :  { %v14648_v47 = vsel %vm11964_vm6, 4294967295, %v14647_v47  ;;  %vm11980_vm14 = vmand %vm14650_vm8, %vm14649_vm2 }
0x1351   :  { %vm12015_vm6 = vmand %vm14660_vm12, %vm14659_vm9  ;;  %vm14667_vm12 = vcmp.lt.s32.totalorder %v2654_v17, %v9352_v43  ;;  %v2659_v17 = vadd.s32 744, %v8780_v34 }
0x136f   :  { %v11793_v31 = vpop.f32.mrb[100].mxu0 }
0x1370   :  { %5634 = vrot.lane.b32.xlu0 %v11793_v31, %s8590_s18  ;;  %5637 = vrot.lane.b32.xlu1 %v11793_v31, %s8588_s29  ;;  %v7858_v48 = vpop.f32.mrb[101].mxu0  ;;  %s8591_s29 = smov 48   ;;  %s8596_s18 = smov 8  }
0x1371   :  { %v1841_v48 = vpop.f32.mrb[102].mxu0 }
0x1372   :  { %v7859_v7 = vpop.f32.mrb[103].mxu0 }
0x1373   :  { %v14625_v7 = vmov 0 }
0x1374   :  { %5640 = vrot.lane.b32.xlu0 %v11793_v31, %s8591_s29  ;;  %5643 = vrot.lane.b32.xlu1 %v11793_v31, %s8583_s17  ;;  %v14626_v7 = vsel %vm11904_vm15, 4294967295, %v14625_v7  ;;  %s8592_s17 = smov 80   ;;  %vm14687_vm15 = vcmp.ge.s32.totalorder %v2639_v20, %v9341_v52 }
0x1375   :  { %v7308_v60 = vpop.f32.mrb[122].mxu1 }
0x1376   :  { %v7309_v48 = vpop.f32.mrb[123].mxu1 }
0x1377   :  { %v11912_v56 = vadd.f32 %v7309_v48, %v7308_v60  ;;  %v14634_v60 = vmov 0  ;;  %v2638_v48 = vadd.s32 576, %v8780_v34 }
0x1378   :  { %v14635_v60 = vsel %vm11931_vm1, 4294967295, %v14634_v60  ;;  %5646 = vrot.lane.b32.xlu0 %v11793_v31, %s8592_s17  ;;  %5649 = vrot.lane.b32.xlu1 %v11793_v31, %s8589_s5  ;;  %s8593_s5 = smov 112  }
0x1379   :  { %14627 = vst [vmem:[#allocation10_spill] sm:$0xff] %v11912_v56  ;;  %v14640_v56 = vld [vmem:[#allocation17_spill] sm:$0xff] }
0x137a   :  { %vm14654_vm1 = vcmp.lt.s32.totalorder %v14640_v56, %v11677_v13  ;;  %vm14655_vm2 = vcmp.ge.s32.totalorder %v14640_v56, %v11674_v3  ;;  %v14661_v56 = vmov 0 }
0x137b   :  { %vm11999_vm8 = vmand %vm14655_vm2, %vm14654_vm1  ;;  %v14662_v56 = vsel %vm12015_vm6, 4294967295, %v14661_v56  ;;  %vm14663_vm1 = vcmp.lt.s32.totalorder %v2637_v41, %v9352_v43  ;;  %vm14664_vm2 = vcmp.ge.s32.totalorder %v2637_v41, %v9341_v52  ;;  %v14669_v41 = vmov 0 }
0x137c   :  { %vm12023_vm7 = vmand %vm14664_vm2, %vm14663_vm1  ;;  %5652 = vrot.lane.b32.xlu0 %v11793_v31, %s8593_s5  ;;  %vm14671_vm2 = vcmp.lt.s32.totalorder %v2655_v22, %v9352_v43  ;;  %vm14682_vm6 = vcmp.lt.s32.totalorder %v2638_v48, %v9352_v43 }
0x137d   :  { %v14666_v2 = vsel %vm12023_vm7, 4294967295, %v14665_v2  ;;  %vm8291_vm9 = vmpackc.low %vm11999_vm8, %vm11980_vm14  ;;  %vm14702_vm8 = vcmp.lt.s32.totalorder %v2640_v23, %v9352_v43 }
0x137e   :  { %vm12038_vm1 = vmand %vm14668_vm4, %vm14667_vm12  ;;  %8292 = vmatprep.subr.msk.bf16.mxu1 %vm8291_vm9, %v14135_v39  ;;  %vm14675_vm4 = vcmp.lt.s32.totalorder %v14653_v1, %v11677_v13  ;;  %vm14676_vm12 = vcmp.ge.s32.totalorder %v14653_v1, %v11674_v3  ;;  %vm14679_vm9 = vcmp.lt.s32.totalorder %v14658_v24, %v11677_v13  ;;  %v2643_v1 = vadd.s32 616, %v8780_v34 }
0x137f   :  { %v14670_v41 = vsel %vm12038_vm1, 4294967295, %v14669_v41  ;;  %vm12046_vm7 = vmand %vm14672_vm3, %vm14671_vm2  ;;  %vm14691_vm2 = vcmp.ge.s32.totalorder %v2656_v38, %v9341_v52 }
0x1380   :  { %v14674_v11 = vsel %vm12046_vm7, 4294967295, %v14673_v11  ;;  %vm12061_vm3 = vmand %vm14676_vm12, %vm14675_vm4  ;;  %vm14680_vm7 = vcmp.ge.s32.totalorder %v14658_v24, %v11674_v3  ;;  %vm14683_vm4 = vcmp.ge.s32.totalorder %v2638_v48, %v9341_v52  ;;  %v14684_v24 = vmov 0 }
0x1381   :  { %vm5162_vm1 = vmand %vm14680_vm7, %vm14679_vm9  ;;  %vm14686_vm9 = vcmp.lt.s32.totalorder %v2639_v20, %v9352_v43  ;;  %v14688_v48 = vmov 0  ;;  %v14692_v20 = vmov 0 }
0x1382   :  { %vm8293_vm14 = vmpackc.low %vm5162_vm1, %vm12061_vm3 }
0x1383   :  { %vm12095_vm12 = vmand %vm14683_vm4, %vm14682_vm6  ;;  %8294 = vmatpush3.bf16.msk.msra.mxu1 %vm8293_vm14, %v14135_v39  ;;  %vm14690_vm14 = vcmp.lt.s32.totalorder %v2656_v38, %v9352_v43  ;;  %v14700_v38 = vld [vmem:[#allocation20_spill] sm:$0xff]  ;;  %vm14707_vm4 = vcmp.ge.s32.totalorder %v2641_v9, %v9341_v52 }
0x1384   :  { %v14685_v24 = vsel %vm12095_vm12, 4294967295, %v14684_v24  ;;  %vm12108_vm7 = vmand %vm14687_vm15, %vm14686_vm9  ;;  %vm14706_vm9 = vcmp.lt.s32.totalorder %v2641_v9, %v9352_v43  ;;  %v14713_v9 = vmov 0  ;;  %vm14716_vm15 = vcmp.ge.s32.totalorder %v2659_v17, %v9341_v52 }
0x1385   :  { %v14689_v48 = vsel %vm12108_vm7, 4294967295, %v14688_v48  ;;  %vm12121_vm3 = vmand %vm14691_vm2, %vm14690_vm14  ;;  %vm14696_vm2 = vcmp.lt.s32.totalorder %v2657_v5, %v9352_v43  ;;  %vm14697_vm14 = vcmp.ge.s32.totalorder %v2657_v5, %v9341_v52  ;;  %v2645_v5 = vadd.s32 632, %v8780_v34 }
0x1386   :  { %v14693_v20 = vsel %vm12121_vm3, 4294967295, %v14692_v20  ;;  %vm12138_vm3 = vmand %vm14697_vm14, %vm14696_vm2  ;;  %vm14703_vm2 = vcmp.ge.s32.totalorder %v2640_v23, %v9341_v52  ;;  %v14717_v23 = vmov 0  ;;  %vm14722_vm13 = vcmp.lt.s32.totalorder %v14700_v38, %v11677_v13 }
0x1387   :  { %v2266_v61 = vpop.f32.mrb[104].mxu0  ;;  %vm12155_vm14 = vmand %vm14703_vm2, %vm14702_vm8  ;;  %vm14711_vm2 = vcmp.lt.s32.totalorder %v2658_v51, %v9352_v43  ;;  %vm14723_vm8 = vcmp.ge.s32.totalorder %v14700_v38, %v11674_v3  ;;  %v2694_v38 = vadd.s32 1024, %v8780_v34 }
0x1388   :  { %v2268_v22 = vpop.f32.mrb[105].mxu0  ;;  %v4110_v32 = vmul.f32 %v9782_v37, %v2266_v61  ;;  %v14708_v61 = vmov 0 }
0x1389   :  { %v4111_v4 = vmul.f32 %v9782_v37, %v2268_v22  ;;  %v2270_v42 = vpop.f32.mrb[106].mxu0  ;;  %v2711_v22 = vadd.s32 1160, %v8780_v34 }
0x138a   :  { %v2271_v63 = vpop.f32.mrb[107].mxu0  ;;  %v14698_v42 = vmov 0 }
0x138b   :  { %v14699_v42 = vsel %vm12138_vm3, 4294967295, %v14698_v42  ;;  %4339 = vmatprep.mubr.f32.mxu0 %v4111_v4  ;;  %v14704_v63 = vmov 0  ;;  %vm12163_vm3 = vmand %vm14707_vm4, %vm14706_vm9  ;;  %v14710_v4 = vld [vmem:[#allocation21_spill] sm:$0xff]  ;;  %vm14715_vm9 = vcmp.lt.s32.totalorder %v2659_v17, %v9352_v43  ;;  %v14741_v17 = vmov 0 }
0x138c   :  { %v14705_v63 = vsel %vm12155_vm14, 4294967295, %v14704_v63  ;;  %v14709_v61 = vsel %vm12163_vm3, 4294967295, %v14708_v61  ;;  %4340 = vmatmul.mubr.f32.vlgmr.msra.gmra.mrb[124].mxu0 %v4110_v32  ;;  %vm14712_vm14 = vcmp.ge.s32.totalorder %v2658_v51, %v9341_v52  ;;  %vm12186_vm6 = vmand %vm14716_vm15, %vm14715_vm9  ;;  %v2644_v32 = vadd.s32 624, %v8780_v34 }
0x138d   :  { %vm12178_vm4 = vmand %vm14712_vm14, %vm14711_vm2  ;;  %v14718_v23 = vsel %vm12186_vm6, 4294967295, %v14717_v23  ;;  %vm14719_vm14 = vnez %v14609_v45  ;;  %vm14720_vm2 = vnez %v14607_v40  ;;  %v14726_v45 = vld [vmem:[#allocation22_spill] sm:$0xff]  ;;  %v2710_v40 = vadd.s32 1152, %v8780_v34 }
0x138e   :  { %v14714_v9 = vsel %vm12178_vm4, 4294967295, %v14713_v9  ;;  %vm14721_vm4 = vmpackc.low %vm14719_vm14, %vm14720_vm2  ;;  %vm14730_vm3 = vcmp.lt.s32.totalorder %v14710_v4, %v11677_v13  ;;  %vm14735_vm2 = vcmp.lt.s32.totalorder %v12069_v30, %v9352_v43  ;;  %vm3228_vm12 = vcmp.lt.s32.totalorder %v2711_v22, %v9352_v43 }
0x138f   :  { %8050 = vmatpush3.bf16.msk.msra.mxu0 %vm14721_vm4, %v14135_v39  ;;  %vm12208_vm6 = vmand %vm14723_vm8, %vm14722_vm13  ;;  %vm14731_vm4 = vcmp.ge.s32.totalorder %v14710_v4, %v11674_v3  ;;  %vm14736_vm13 = vcmp.ge.s32.totalorder %v12069_v30, %v9341_v52  ;;  %v14745_v30 = vmov 0  ;;  %vm14777_vm7 = vnez %v14705_v63 }
0x1390   :  { %vm14727_vm14 = vmpackc.low %vm11832_vm0, %vm11824_vm10  ;;  %vm14743_vm10 = vcmp.lt.s32.totalorder %v2660_v18, %v9352_v43  ;;  %v2708_v63 = vadd.s32 1136, %v8780_v34 }
0x1391   :  { %8052 = vmatprep.subr.msk.bf16.mxu0 %vm14727_vm14, %v14135_v39  ;;  %vm5180_vm9 = vmand %vm14731_vm4, %vm14730_vm3  ;;  %vm14739_vm3 = vcmp.lt.s32.totalorder %v2643_v1, %v9352_v43  ;;  %vm14740_vm4 = vcmp.ge.s32.totalorder %v2643_v1, %v9341_v52  ;;  %v14749_v1 = vmov 0  ;;  %vm3211_vm14 = vcmp.lt.s32.totalorder %v2694_v38, %v9352_v43 }
0x1392   :  { %vm12247_vm1 = vmand %vm14736_vm13, %vm14735_vm2  ;;  %vm14744_vm2 = vcmp.ge.s32.totalorder %v2660_v18, %v9341_v52  ;;  %v2695_v18 = vadd.s32 1032, %v8780_v34 }
0x1393   :  { %v14738_v6 = vsel %vm12247_vm1, 4294967295, %v14737_v6  ;;  %vm12255_vm15 = vmand %vm14740_vm4, %vm14739_vm3  ;;  %vm14747_vm1 = vcmp.lt.s32.totalorder %v2661_v54, %v9352_v43  ;;  %vm14748_vm3 = vcmp.ge.s32.totalorder %v2661_v54, %v9341_v52  ;;  %v2714_v54 = vadd.s32 1184, %v8780_v34 }
0x1394   :  { %v14742_v17 = vsel %vm12255_vm15, 4294967295, %v14741_v17  ;;  %vm8295_vm8 = vmpackc.low %vm5180_vm9, %vm12208_vm6  ;;  %vm14751_vm9 = vcmp.lt.s32.totalorder %v14726_v45, %v11677_v13  ;;  %vm14756_vm15 = vcmp.lt.s32.totalorder %v14732_v53, %v11677_v13  ;;  %vm14758_vm6 = vnez %v14630_v35 }
0x1395   :  { %vm12266_vm13 = vmand %vm14744_vm2, %vm14743_vm10  ;;  %8296 = vmatprep.subr.msk.bf16.mxu1 %vm8295_vm8, %v14135_v39  ;;  %vm14752_vm10 = vcmp.ge.s32.totalorder %v14726_v45, %v11674_v3  ;;  %vm3162_vm8 = vcmp.lt.s32.totalorder %v2645_v5, %v9352_v43  ;;  %v14779_v35 = vmov 0 }
0x1396   :  { %v14746_v30 = vsel %vm12266_vm13, 4294967295, %v14745_v30  ;;  %vm12274_vm4 = vmand %vm14748_vm3, %vm14747_vm1  ;;  %vm2904_vm3 = vcmp.ge.s32.totalorder %v2645_v5, %v9341_v52  ;;  %vm3227_vm13 = vcmp.lt.s32.totalorder %v2710_v40, %v9352_v43  ;;  %v2712_v5 = vadd.s32 1168, %v8780_v34 }
0x1397   :  { %v14750_v1 = vsel %vm12274_vm4, 4294967295, %v14749_v1  ;;  %vm12288_vm2 = vmand %vm14752_vm10, %vm14751_vm9  ;;  %vm14757_vm9 = vcmp.ge.s32.totalorder %v14732_v53, %v11674_v3  ;;  %vm14759_vm4 = vnez %v14626_v7  ;;  %v14772_v7 = vmov 0 }
0x1398   :  { %vm14755_vm1 = vmpackc.low %vm11892_vm5, %vm11876_vm11  ;;  %vm2970_vm5 = vcmp.ge.s32.totalorder %v2711_v22, %v9341_v52  ;;  %v14794_v22 = vld [vmem:[#allocation26_spill] sm:$0xff]  ;;  %v2718_v53 = vadd.s32 1216, %v8780_v34 }
0x1399   :  { %8054 = vmatpush3.bf16.msk.msra.mxu0 %vm14755_vm1, %v14135_v39  ;;  %vm5164_vm10 = vmand %vm14757_vm9, %vm14756_vm15  ;;  %vm2969_vm1 = vcmp.ge.s32.totalorder %v2710_v40, %v9341_v52  ;;  %v2713_v40 = vadd.s32 1176, %v8780_v34 }
0x139a   :  { %vm14760_vm11 = vmpackc.low %vm14758_vm6, %vm14759_vm4  ;;  %vm14763_vm4 = vcmp.lt.s32.totalorder %v2644_v32, %v9352_v43  ;;  %vm14764_vm6 = vcmp.ge.s32.totalorder %v2644_v32, %v9341_v52  ;;  %v14787_v32 = vmov 0 }
0x139b   :  { %8056 = vmatprep.subr.msk.bf16.mxu0 %vm14760_vm11, %v14135_v39  ;;  %vm8297_vm0 = vmpackc.low %vm5164_vm10, %vm12288_vm2  ;;  %vm2953_vm10 = vcmp.ge.s32.totalorder %v2694_v38, %v9341_v52 }
0x139c   :  { %vm12329_vm11 = vmand %vm14764_vm6, %vm14763_vm4  ;;  %8298 = vmatpush3.bf16.msk.msra.mxu1 %vm8297_vm0, %v14135_v39  ;;  %vm14769_vm4 = vnez %v14639_v21  ;;  %vm14770_vm6 = vnez %v14635_v60  ;;  %vm2954_vm0 = vcmp.ge.s32.totalorder %v2695_v18, %v9341_v52  ;;  %v14781_v60 = vld [vmem:[#allocation24_spill] sm:$0xff] }
0x139d   :  { %v14766_v57 = vsel %vm12329_vm11, 4294967295, %v14765_v57  ;;  %vm12336_vm2 = vmand %vm2904_vm3, %vm3162_vm8  ;;  %vm3212_vm3 = vcmp.lt.s32.totalorder %v2695_v18, %v9352_v43  ;;  %vm14774_vm8 = vnez %v14648_v47  ;;  %v14786_v47 = vld [vmem:[#allocation25_spill] sm:$0xff] }
0x139e   :  { %v14768_v36 = vsel %vm12336_vm2, 4294967295, %v14767_v36  ;;  %vm14771_vm11 = vmpackc.low %vm14769_vm4, %vm14770_vm6  ;;  %vm14775_vm2 = vnez %v14644_v33  ;;  %vm14778_vm4 = vnez %v14709_v61  ;;  %vm5117_vm6 = vcmp.lt.s32.totalorder %v14781_v60, %v11677_v13  ;;  %v12372_v21 = vpop.f32.mrb[108].mxu0 }
0x139f   :  { %8058 = vmatpush3.bf16.msk.msra.mxu0 %vm14771_vm11, %v14135_v39  ;;  %vm12348_vm15 = vmand %vm2969_vm1, %vm3227_vm13  ;;  %vm5052_vm1 = vcmp.ge.s32.totalorder %v14781_v60, %v11674_v3  ;;  %v14784_v33 = vmov 0  ;;  %v2350_v4 = vpop.f32.mrb[109].mxu0  ;;  %v2700_v61 = vadd.s32 1072, %v8780_v34 }
0x13a0   :  { %v14773_v7 = vsel %vm12348_vm15, 4294967295, %v14772_v7  ;;  %vm14776_vm9 = vmpackc.low %vm14774_vm8, %vm14775_vm2  ;;  %v4115_v51 = vmul.f32 %v9782_v37, %v2350_v4  ;;  %v2352_v45 = vpop.f32.mrb[110].mxu0 }
0x13a1   :  { %8060 = vmatprep.subr.msk.bf16.mxu0 %vm14776_vm9, %v14135_v39  ;;  %vm12364_vm13 = vmand %vm2970_vm5, %vm3228_vm12  ;;  %v2353_v38 = vpop.f32.mrb[111].mxu0  ;;  %vm14795_vm5 = vnez %v14674_v11  ;;  %v2717_v45 = vadd.s32 1208, %v8780_v34 }
0x13a2   :  { %v14780_v35 = vsel %vm12364_vm13, 4294967295, %v14779_v35  ;;  %vm12378_vm15 = vmand %vm2953_vm10, %vm3211_vm14  ;;  %vm14789_vm14 = vnez %v14666_v2  ;;  %vm14790_vm10 = vnez %v14662_v56  ;;  %v2696_v2 = vadd.s32 1040, %v8780_v34  ;;  %v14802_v56 = vld [vmem:[#allocation27_spill] sm:$0xff]  ;;  %4479 = vmatprep.mubr.f32.mxu0 %v4115_v51 }
0x13a3   :  { %v14785_v33 = vsel %vm12378_vm15, 4294967295, %v14784_v33  ;;  %vm12386_vm11 = vmand %vm2954_vm0, %vm3212_vm3  ;;  %vm14800_vm0 = vcmp.lt.s32.totalorder %v14786_v47, %v11677_v13  ;;  %vm14801_vm3 = vcmp.ge.s32.totalorder %v14786_v47, %v11674_v3  ;;  %vm14805_vm15 = vcmp.lt.s32.totalorder %v14794_v22, %v11677_v13 }
0x13a4   :  { %v14788_v32 = vsel %vm12386_vm11, 4294967295, %v14787_v32  ;;  %vm14791_vm8 = vmpackc.low %vm14789_vm14, %vm14790_vm10  ;;  %vm14796_vm14 = vnez %v14670_v41  ;;  %v2697_v41 = vadd.s32 1048, %v8780_v34  ;;  %v2715_v47 = vadd.s32 1192, %v8780_v34 }
0x13a5   :  { %8062 = vmatpush3.bf16.msk.msra.mxu0 %vm14791_vm8, %v14135_v39  ;;  %vm12399_vm12 = vmand %vm5052_vm1, %vm5117_vm6  ;;  %v7378_v11 = vpop.f32.mrb[124].mxu1  ;;  %vm14806_vm6 = vcmp.ge.s32.totalorder %v14794_v22, %v11674_v3  ;;  %vm3213_vm2 = vcmp.lt.s32.totalorder %v2696_v2, %v9352_v43  ;;  %v14830_v51 = vmov 0  ;;  %v14849_v22 = vmov 0 }
0x13a6   :  { %vm14797_vm8 = vmpackc.low %vm14795_vm5, %vm14796_vm14  ;;  %v7379_v60 = vpop.f32.mrb[125].mxu1  ;;  %vm3214_vm1 = vcmp.lt.s32.totalorder %v2697_v41, %v9352_v43  ;;  %v2719_v38 = vadd.s32 1224, %v8780_v34 }
0x13a7   :  { %8064 = vmatprep.subr.msk.bf16.mxu0 %vm14797_vm8, %v14135_v39  ;;  %vm5182_vm11 = vmand %vm14801_vm3, %vm14800_vm0  ;;  %v12464_v4 = vadd.f32 %v7379_v60, %v7378_v11  ;;  %vm14832_vm8 = vnez %v14718_v23  ;;  %v2701_v23 = vadd.s32 1080, %v8780_v34  ;;  %v2720_v11 = vadd.s32 1232, %v8780_v34 }
0x13a8   :  { %vm8299_vm10 = vmpackc.low %vm5182_vm11, %vm12399_vm12  ;;  %vm14809_vm11 = vnez %v14689_v48  ;;  %vm14810_vm12 = vnez %v14685_v24  ;;  %v2698_v24 = vadd.s32 1056, %v8780_v34  ;;  %v14822_v48 = vmov 0 }
0x13a9   :  { %8300 = vmatprep.subr.msk.bf16.mxu1 %vm8299_vm10, %v14135_v39  ;;  %vm12445_vm5 = vmand %vm14806_vm6, %vm14805_vm15  ;;  %vm14812_vm15 = vcmp.lt.s32.totalorder %v14802_v56, %v11677_v13  ;;  %vm14813_vm6 = vcmp.ge.s32.totalorder %v14802_v56, %v11674_v3  ;;  %v14867_v60 = vmov 0 }
0x13aa   :  { %vm14811_vm0 = vmpackc.low %vm14809_vm11, %vm14810_vm12  ;;  %vm14814_vm11 = vnez %v14699_v42  ;;  %v14826_v42 = vmov 0  ;;  %vm2957_vm10 = vcmp.ge.s32.totalorder %v2698_v24, %v9341_v52  ;;  %vm3215_vm3 = vcmp.lt.s32.totalorder %v2698_v24, %v9352_v43 }
0x13ab   :  { %8066 = vmatpush3.bf16.msk.msra.mxu0 %vm14811_vm0, %v14135_v39  ;;  %vm5166_vm14 = vmand %vm14813_vm6, %vm14812_vm15  ;;  %vm14815_vm0 = vnez %v14693_v20  ;;  %v2699_v20 = vadd.s32 1064, %v8780_v34  ;;  %vm14837_vm6 = vcmp.ge.s32.totalorder %v2697_v41, %v9341_v52  ;;  %v14861_v41 = vmov 0 }
0x13ac   :  { %vm14816_vm12 = vmpackc.low %vm14814_vm11, %vm14815_vm0  ;;  %vm14820_vm0 = vcmp.lt.s32.totalorder %v2712_v5, %v9352_v43  ;;  %v14874_v24 = vmov 0 }
0x13ad   :  { %8068 = vmatprep.subr.msk.bf16.mxu0 %vm14816_vm12, %v14135_v39  ;;  %vm8301_vm15 = vmpackc.low %vm5166_vm14, %vm12445_vm5  ;;  %vm14821_vm12 = vcmp.ge.s32.totalorder %v2712_v5, %v9341_v52  ;;  %vm14824_vm5 = vcmp.lt.s32.totalorder %v2713_v40, %v9352_v43  ;;  %vm14825_vm14 = vcmp.ge.s32.totalorder %v2713_v40, %v9341_v52  ;;  %v2716_v5 = vadd.s32 1200, %v8780_v34 }
0x13ae   :  { %vm12489_vm9 = vmand %vm14821_vm12, %vm14820_vm0  ;;  %8302 = vmatpush3.bf16.msk.msra.mxu1 %vm8301_vm15, %v14135_v39  ;;  %vm2974_vm0 = vcmp.ge.s32.totalorder %v2715_v47, %v9341_v52  ;;  %vm3232_vm12 = vcmp.lt.s32.totalorder %v2715_v47, %v9352_v43  ;;  %v14844_v40 = vmov 0  ;;  %v2721_v47 = vadd.s32 1240, %v8780_v34 }
0x13af   :  { %v14823_v48 = vsel %vm12489_vm9, 4294967295, %v14822_v48  ;;  %vm12501_vm11 = vmand %vm14825_vm14, %vm14824_vm5  ;;  %7906 = vmatprep.subr.bf16.mxu1 %v14178_v29  ;;  %vm14829_vm5 = vcmp.ge.s32.totalorder %v2696_v2, %v9341_v52  ;;  %vm14852_vm9 = vnez %v14746_v30  ;;  %v14859_v30 = vmov 0 }
0x13b0   :  { %v14827_v42 = vsel %vm12501_vm11, 4294967295, %v14826_v42  ;;  %vm14828_vm15 = vmpackc.low %vm14778_vm4, %vm14777_vm7  ;;  %vm14833_vm7 = vnez %v14714_v9  ;;  %v14842_v9 = vmov 0  ;;  %v2703_v2 = vadd.s32 1096, %v8780_v34 }
0x13b1   :  { %8070 = vmatpush3.bf16.msk.msra.mxu0 %vm14828_vm15, %v14135_v39  ;;  %vm12519_vm14 = vmand %vm14829_vm5, %vm3213_vm2 }
0x13b2   :  { %v14831_v51 = vsel %vm12519_vm14, 4294967295, %v14830_v51  ;;  %vm14834_vm4 = vmpackc.low %vm14832_vm8, %vm14833_vm7  ;;  %vm14840_vm7 = vcmp.lt.s32.totalorder %v2714_v54, %v9352_v43  ;;  %vm14851_vm8 = vnez %v14750_v1  ;;  %v12599_v1 = vpop.f32.mrb[112].mxu0 }
0x13b3   :  { %8072 = vmatprep.subr.msk.bf16.mxu0 %vm14834_vm4, %v14135_v39  ;;  %vm12540_vm13 = vmand %vm14837_vm6, %vm3214_vm1  ;;  %vm14841_vm4 = vcmp.ge.s32.totalorder %v2714_v54, %v9341_v52  ;;  %vm2958_vm1 = vcmp.ge.s32.totalorder %v2699_v20, %v9341_v52  ;;  %vm3216_vm6 = vcmp.lt.s32.totalorder %v2699_v20, %v9352_v43  ;;  %v2432_v56 = vpop.f32.mrb[113].mxu0  ;;  %v14882_v20 = vmov 0 }
0x13b4   :  { %vm12555_vm5 = vmand %vm14841_vm4, %vm14840_vm7  ;;  %vm14846_vm7 = vnez %v14742_v17  ;;  %vm14847_vm4 = vnez %v14738_v6  ;;  %v14854_v6 = vmov 0  ;;  %v2702_v17 = vadd.s32 1088, %v8780_v34  ;;  %v2434_v18 = vpop.f32.mrb[114].mxu0 }
0x13b5   :  { %v14843_v9 = vsel %vm12555_vm5, 4294967295, %v14842_v9  ;;  %vm12562_vm15 = vmand %vm2974_vm0, %vm3232_vm12  ;;  %vm2976_vm0 = vcmp.ge.s32.totalorder %v2717_v45, %v9341_v52  ;;  %vm3234_vm12 = vcmp.lt.s32.totalorder %v2717_v45, %v9352_v43  ;;  %v4119_v54 = vmul.f32 %v9782_v37, %v2432_v56 }
0x13b6   :  { %v14845_v40 = vsel %vm12562_vm15, 4294967295, %v14844_v40  ;;  %vm14848_vm11 = vmpackc.low %vm14846_vm7, %vm14847_vm4  ;;  %vm3217_vm7 = vcmp.lt.s32.totalorder %v2700_v61, %v9352_v43  ;;  %vm14863_vm4 = vnez %v14768_v36  ;;  %v2435_v36 = vpop.f32.mrb[115].mxu0  ;;  %vm14880_vm5 = vcmp.lt.s32.totalorder %v2719_v38, %v9352_v43 }
0x13b7   :  { %8074 = vmatpush3.bf16.msk.msra.mxu0 %vm14848_vm11, %v14135_v39  ;;  %vm12575_vm2 = vmand %vm2957_vm10, %vm3215_vm3  ;;  %vm14864_vm3 = vnez %v14766_v57  ;;  %v4114_v57 = vmul.f32 %v9782_v37, %v12372_v21  ;;  %v2705_v21 = vadd.s32 1112, %v8780_v34  ;;  %v14888_v45 = vmov 0 }
0x13b8   :  { %v14850_v22 = vsel %vm12575_vm2, 4294967295, %v14849_v22  ;;  %vm14853_vm15 = vmpackc.low %vm14851_vm8, %vm14852_vm9  ;;  %vm14857_vm8 = vcmp.lt.s32.totalorder %v2716_v5, %v9352_v43  ;;  %vm3219_vm9 = vcmp.lt.s32.totalorder %v2702_v17, %v9352_v43  ;;  %vm14881_vm2 = vcmp.ge.s32.totalorder %v2719_v38, %v9341_v52 }
0x13b9   :  { %8076 = vmatprep.subr.msk.bf16.mxu0 %vm14853_vm15, %v14135_v39  ;;  %vm12592_vm10 = vmand %vm2958_vm1, %vm3216_vm6  ;;  %vm14858_vm1 = vcmp.ge.s32.totalorder %v2716_v5, %v9341_v52  ;;  %v2722_v5 = vadd.s32 1248, %v8780_v34  ;;  %v14919_v56 = vmov 0  ;;  %v2775_v18 = vadd.s32 1672, %v8780_v34 }
0x13ba   :  { %v14855_v6 = vsel %vm12592_vm10, 4294967295, %v14854_v6  ;;  %vm12609_vm6 = vmand %vm14858_vm1, %vm14857_vm8  ;;  %vm14873_vm8 = vcmp.ge.s32.totalorder %v2701_v23, %v9341_v52  ;;  %vm14891_vm10 = vnez %v14823_v48  ;;  %v14899_v48 = vmov 0 }
0x13bb   :  { %v14860_v30 = vsel %vm12609_vm6, 4294967295, %v14859_v30  ;;  %vm12620_vm15 = vmand %vm2976_vm0, %vm3234_vm12  ;;  %vm14866_vm0 = vcmp.ge.s32.totalorder %v2700_v61, %v9341_v52  ;;  %v2723_v61 = vadd.s32 1256, %v8780_v34  ;;  %v15063_v38 = vmov 0 }
0x13bc   :  { %v14862_v41 = vsel %vm12620_vm15, 4294967295, %v14861_v41  ;;  %vm14865_vm11 = vmpackc.low %vm14863_vm4, %vm14864_vm3  ;;  %vm14869_vm3 = vnez %v14780_v35  ;;  %v14878_v35 = vmov 0  ;;  %vm14887_vm15 = vcmp.ge.s32.totalorder %v2702_v17, %v9341_v52 }
0x13bd   :  { %8078 = vmatpush3.bf16.msk.msra.mxu0 %vm14865_vm11, %v14135_v39  ;;  %vm12638_vm12 = vmand %vm14866_vm0, %vm3217_vm7  ;;  %vm14870_vm11 = vnez %v14773_v7  ;;  %vm14872_vm0 = vcmp.lt.s32.totalorder %v2701_v23, %v9352_v43  ;;  %v2704_v7 = vadd.s32 1104, %v8780_v34  ;;  %v14901_v23 = vmov 0 }
0x13be   :  { %v14868_v60 = vsel %vm12638_vm12, 4294967295, %v14867_v60  ;;  %vm14871_vm4 = vmpackc.low %vm14869_vm3, %vm14870_vm11  ;;  %vm14876_vm11 = vcmp.lt.s32.totalorder %v2718_v53, %v9352_v43  ;;  %v2725_v17 = vadd.s32 1272, %v8780_v34 }
0x13bf   :  { %8112 = vmatprep.subr.msk.bf16.mxu0 %vm14871_vm4, %v14135_v39  ;;  %vm12661_vm1 = vmand %vm14873_vm8, %vm14872_vm0  ;;  %vm14877_vm4 = vcmp.ge.s32.totalorder %v2718_v53, %v9341_v52  ;;  %vm14884_vm8 = vnez %v14788_v32  ;;  %vm14885_vm0 = vnez %v14785_v33  ;;  %v14895_v33 = vmov 0 }
0x13c0   :  { %v14875_v24 = vsel %vm12661_vm1, 4294967295, %v14874_v24  ;;  %vm12676_vm7 = vmand %vm14877_vm4, %vm14876_vm11  ;;  %4480 = vmatmul.mubr.f32.vlgmr.msra.gmra.mrb[126].mxu0 %v4114_v57  ;;  %vm3238_vm11 = vcmp.lt.s32.totalorder %v2721_v47, %v9352_v43  ;;  %vm14890_vm4 = vnez %v14827_v42  ;;  %vm3221_vm14 = vcmp.lt.s32.totalorder %v2704_v7, %v9352_v43 }
0x13c1   :  { %v14879_v35 = vsel %vm12676_vm7, 4294967295, %v14878_v35  ;;  %vm12687_vm3 = vmand %vm14881_vm2, %vm14880_vm5  ;;  %4619 = vmatprep.mubr.f32.mxu0 %v4119_v54  ;;  %vm2980_vm5 = vcmp.ge.s32.totalorder %v2721_v47, %v9341_v52  ;;  %v2706_v32 = vadd.s32 1120, %v8780_v34  ;;  %v2707_v42 = vadd.s32 1128, %v8780_v34 }
0x13c2   :  { %v14883_v20 = vsel %vm12687_vm3, 4294967295, %v14882_v20  ;;  %vm14886_vm6 = vmpackc.low %vm14884_vm8, %vm14885_vm0  ;;  %v2724_v53 = vadd.s32 1264, %v8780_v34  ;;  %vm14908_vm7 = vnez %v14843_v9  ;;  %v14916_v9 = vmov 0 }
0x13c3   :  { %8114 = vmatpush3.bf16.msk.msra.mxu0 %vm14886_vm6, %v14135_v39  ;;  %vm12702_vm2 = vmand %vm14887_vm15, %vm3219_vm9  ;;  %vm14893_vm15 = vcmp.lt.s32.totalorder %v2703_v2, %v9352_v43  ;;  %vm14894_vm6 = vcmp.ge.s32.totalorder %v2703_v2, %v9341_v52  ;;  %v12765_v2 = vpop.permute.xlu1 %4976  ;;  %v14924_v54 = vmov 0  ;;  %v2759_v47 = vadd.s32 1544, %v8780_v34 }
0x13c4   :  { %v14889_v45 = vsel %vm12702_vm2, 4294967295, %v14888_v45  ;;  %vm14892_vm8 = vmpackc.low %vm14890_vm4, %vm14891_vm10  ;;  %vm2963_vm2 = vcmp.ge.s32.totalorder %v2704_v7, %v9341_v52  ;;  %vm14897_vm4 = vcmp.lt.s32.totalorder %v2720_v11, %v9352_v43  ;;  %vm14907_vm10 = vnez %v14845_v40 }
0x13c5   :  { %8116 = vmatprep.subr.msk.bf16.mxu0 %vm14892_vm8, %v14135_v39  ;;  %vm12723_vm0 = vmand %vm14894_vm6, %vm14893_vm15  ;;  %vm14898_vm8 = vcmp.ge.s32.totalorder %v2720_v11, %v9341_v52  ;;  %vm3222_vm6 = vcmp.lt.s32.totalorder %v2705_v21, %v9352_v43  ;;  %v2709_v40 = vadd.s32 1144, %v8780_v34  ;;  %v2774_v11 = vadd.s32 1664, %v8780_v34 }
0x13c6   :  { %v14896_v33 = vsel %vm12723_vm0, 4294967295, %v14895_v33  ;;  %vm12738_vm9 = vmand %vm14898_vm8, %vm14897_vm4  ;;  %vm14903_vm4 = vnez %v14831_v51  ;;  %v14936_v7 = vmov 0  ;;  %v2764_v51 = vadd.s32 1584, %v8780_v34 }
0x13c7   :  { %v14900_v48 = vsel %vm12738_vm9, 4294967295, %v14899_v48  ;;  %vm12745_vm12 = vmand %vm2980_vm5, %vm3238_vm11  ;;  %vm3240_vm5 = vcmp.lt.s32.totalorder %v2723_v61, %v9352_v43  ;;  %vm3223_vm11 = vcmp.lt.s32.totalorder %v2706_v32, %v9352_v43  ;;  %vm14927_vm9 = vnez %v14860_v30  ;;  %v4980_v57 = vpop.permute.xlu1 %4979 }
0x13c8   :  { %v14902_v23 = vsel %vm12745_vm12, 4294967295, %v14901_v23  ;;  %vm14904_vm8 = vmpackc.low %vm12540_vm13, %vm14903_vm4  ;;  %vm14918_vm13 = vcmp.ge.s32.totalorder %v2723_v61, %v9341_v52  ;;  %v14934_v30 = vmov 0  ;;  %v4118_v61 = vmul.f32 %v9782_v37, %v12599_v1 }
0x13c9   :  { %8118 = vmatpush3.bf16.msk.msra.mxu0 %vm14904_vm8, %v14135_v39  ;;  %vm12758_vm15 = vmand %vm2963_vm2, %vm3221_vm14  ;;  %vm14911_vm2 = vcmp.ge.s32.totalorder %v2705_v21, %v9341_v52  ;;  %vm2965_vm8 = vcmp.ge.s32.totalorder %v2706_v32, %v9341_v52  ;;  %v2776_v21 = vadd.s32 1680, %v8780_v34  ;;  %v2777_v32 = vadd.s32 1688, %v8780_v34 }
0x13ca   :  { %vm14909_vm3 = vmpackc.low %vm14907_vm10, %vm14908_vm7  ;;  %vm14915_vm10 = vcmp.ge.s32.totalorder %v2722_v5, %v9341_v52  ;;  %vm14926_vm7 = vnez %v14862_v41  ;;  %v12840_v41 = vpop.f32.mrb[116].mxu0  ;;  %v15037_v1 = vmov 0 }
0x13cb   :  { %8120 = vmatprep.subr.msk.bf16.mxu0 %vm14909_vm3, %v14135_v39  ;;  %vm12779_vm4 = vmand %vm14911_vm2, %vm3222_vm6  ;;  %vm14914_vm3 = vcmp.lt.s32.totalorder %v2722_v5, %v9352_v43  ;;  %vm2966_vm6 = vcmp.ge.s32.totalorder %v2707_v42, %v9341_v52  ;;  %vm3224_vm2 = vcmp.lt.s32.totalorder %v2707_v42, %v9352_v43  ;;  %v12857_v36 = vpop.f32.mrb[117].mxu0  ;;  %v2761_v42 = vadd.s32 1560, %v8780_v34 }
0x13cc   :  { %vm12794_vm14 = vmand %vm14915_vm10, %vm14914_vm3  ;;  %vm14921_vm3 = vnez %v14855_v6  ;;  %vm14922_vm10 = vnez %v14850_v22  ;;  %v14929_v22 = vmov 0  ;;  %v2758_v6 = vadd.s32 1536, %v8780_v34  ;;  %v2516_v5 = vpop.f32.mrb[118].mxu0 }
0x13cd   :  { %v14917_v9 = vsel %vm12794_vm14, 4294967295, %v14916_v9  ;;  %vm12803_vm0 = vmand %vm14918_vm13, %vm3240_vm5  ;;  %vm2984_vm5 = vcmp.ge.s32.totalorder %v2725_v17, %v9341_v52  ;;  %vm3242_vm13 = vcmp.lt.s32.totalorder %v2725_v17, %v9352_v43  ;;  %vm14955_vm14 = vcmp.lt.s32.totalorder %v2775_v18, %v9352_v43 }
0x13ce   :  { %v14920_v56 = vsel %vm12803_vm0, 4294967295, %v14919_v56  ;;  %vm14923_vm12 = vmpackc.low %vm14921_vm3, %vm14922_vm10  ;;  %vm3225_vm3 = vcmp.lt.s32.totalorder %v2708_v63, %v9352_v43  ;;  %vm14938_vm10 = vnez %v14875_v24  ;;  %v2517_v24 = vpop.f32.mrb[119].mxu0  ;;  %v14957_v17 = vmov 0 }
0x13cf   :  { %8122 = vmatpush3.bf16.msk.msra.mxu0 %vm14923_vm12, %v14135_v39  ;;  %vm12816_vm1 = vmand %vm2965_vm8, %vm3223_vm11  ;;  %vm14939_vm12 = vnez %v14868_v60  ;;  %v2766_v60 = vadd.s32 1600, %v8780_v34 }
0x13d0   :  { %v14925_v54 = vsel %vm12816_vm1, 4294967295, %v14924_v54  ;;  %vm14928_vm0 = vmpackc.low %vm14926_vm7, %vm14927_vm9  ;;  %vm14932_vm7 = vcmp.lt.s32.totalorder %v2724_v53, %v9352_v43  ;;  %vm14956_vm9 = vcmp.ge.s32.totalorder %v2775_v18, %v9341_v52  ;;  %v2779_v18 = vadd.s32 1704, %v8780_v34 }
0x13d1   :  { %8124 = vmatprep.subr.msk.bf16.mxu0 %vm14928_vm0, %v14135_v39  ;;  %vm12833_vm11 = vmand %vm2966_vm6, %vm3224_vm2  ;;  %vm14933_vm6 = vcmp.ge.s32.totalorder %v2724_v53, %v9341_v52  ;;  %v7448_v53 = vpop.f32.mrb[126].mxu1 }
0x13d2   :  { %v14930_v22 = vsel %vm12833_vm11, 4294967295, %v14929_v22  ;;  %vm12850_vm2 = vmand %vm14933_vm6, %vm14932_vm7  ;;  %vm14948_vm7 = vcmp.ge.s32.totalorder %v2709_v40, %v9341_v52  ;;  %vm14979_vm11 = vcmp.lt.s32.totalorder %v2777_v32, %v9352_v43 }
0x13d3   :  { %v14935_v30 = vsel %vm12850_vm2, 4294967295, %v14934_v30  ;;  %vm12863_vm0 = vmand %vm2984_vm5, %vm3242_vm13  ;;  %vm14941_vm5 = vcmp.ge.s32.totalorder %v2708_v63, %v9341_v52  ;;  %v2778_v63 = vadd.s32 1696, %v8780_v34  ;;  %vm14960_vm2 = vnez %v14889_v45 }
0x13d4   :  { %v14937_v7 = vsel %vm12863_vm0, 4294967295, %v14936_v7  ;;  %vm14940_vm8 = vmpackc.low %vm14938_vm10, %vm14939_vm12  ;;  %vm14944_vm12 = vnez %v14883_v20  ;;  %v14953_v20 = vmov 0 }
0x13d5   :  { %8126 = vmatpush3.bf16.msk.msra.mxu0 %vm14940_vm8, %v14135_v39  ;;  %vm12880_vm13 = vmand %vm14941_vm5, %vm3225_vm3  ;;  %vm14945_vm8 = vnez %v14879_v35  ;;  %vm14947_vm5 = vcmp.lt.s32.totalorder %v2709_v40, %v9352_v43  ;;  %v2760_v35 = vadd.s32 1552, %v8780_v34  ;;  %v7449_v40 = vpop.f32.mrb[127].mxu1 }
0x13d6   :  { %vm14946_vm10 = vmpackc.low %vm14944_vm12, %vm14945_vm8  ;;  %vm14951_vm8 = vcmp.lt.s32.totalorder %v2774_v11, %v9352_v43  ;;  %v12951_v5 = vadd.f32 %v7449_v40, %v7448_v53  ;;  %v15002_v53 = vmov 0 }
0x13d7   :  { %8128 = vmatprep.subr.msk.bf16.mxu0 %vm14946_vm10, %v14135_v39  ;;  %vm12901_vm6 = vmand %vm14948_vm7, %vm14947_vm5  ;;  %vm14952_vm10 = vcmp.ge.s32.totalorder %v2774_v11, %v9341_v52  ;;  %vm14959_vm5 = vnez %v14896_v33  ;;  %v4983_v33 = vpop.permute.xlu1 %4982  ;;  %v2769_v11 = vadd.s32 1624, %v8780_v34 }
0x13d8   :  { %vm12916_vm3 = vmand %vm14952_vm10, %vm14951_vm8  ;;  %vm14970_vm8 = vcmp.ge.s32.totalorder %v2759_v47, %v9341_v52 }
0x13d9   :  { %v14954_v20 = vsel %vm12916_vm3, 4294967295, %v14953_v20  ;;  %vm12927_vm12 = vmand %vm14956_vm9, %vm14955_vm14  ;;  %vm14962_vm14 = vcmp.lt.s32.totalorder %v2758_v6, %v9352_v43  ;;  %vm14963_vm9 = vcmp.ge.s32.totalorder %v2758_v6, %v9341_v52  ;;  %v14976_v6 = vmov 0 }
0x13da   :  { %v14958_v17 = vsel %vm12927_vm12, 4294967295, %v14957_v17  ;;  %vm14961_vm0 = vmpackc.low %vm14959_vm5, %vm14960_vm2  ;;  %vm14967_vm2 = vnez %v14900_v48  ;;  %v2762_v48 = vadd.s32 1568, %v8780_v34 }
0x13db   :  { %8130 = vmatpush3.bf16.msk.msra.mxu0 %vm14961_vm0, %v14135_v39  ;;  %vm12944_vm1 = vmand %vm14963_vm9, %vm14962_vm14  ;;  %vm14966_vm0 = vnez %v14902_v23  ;;  %vm14969_vm9 = vcmp.lt.s32.totalorder %v2759_v47, %v9352_v43  ;;  %v2763_v47 = vadd.s32 1576, %v8780_v34  ;;  %vm14983_vm14 = vcmask 785408  }
0x13dc   :  { %vm14968_vm5 = vmpackc.low %vm14966_vm0, %vm14967_vm2  ;;  %vm14973_vm0 = vcmask 261120   ;;  %vm14980_vm2 = vcmp.ge.s32.totalorder %v2777_v32, %v9341_v52  ;;  %v2781_v32 = vadd.s32 1720, %v8780_v34 }
0x13dd   :  { %8132 = vmatprep.subr.msk.bf16.mxu0 %vm14968_vm5, %v14135_v39  ;;  %vm12967_vm7 = vmand %vm14970_vm8, %vm14969_vm9  ;;  %v4985_v23 = vsel %vm14973_vm0, %v9160_v15, %v12765_v2  ;;  %vm14974_vm8 = vcmp.lt.s32.totalorder %v2776_v21, %v9352_v43  ;;  %vm14975_vm5 = vcmp.ge.s32.totalorder %v2776_v21, %v9341_v52  ;;  %vm14978_vm0 = vcmask 523264  }
0x13de   :  { %vm12985_vm9 = vmand %vm14975_vm5, %vm14974_vm8  ;;  %v4986_v15 = vsel %vm14978_vm0, %v4985_v23, %v4980_v57  ;;  %v14981_v2 = vmov 0  ;;  %v2780_v21 = vadd.s32 1712, %v8780_v34  ;;  %vm15000_vm5 = vcmp.lt.s32.totalorder %v2779_v18, %v9352_v43 }
0x13df   :  { %v14977_v6 = vsel %vm12985_vm9, 4294967295, %v14976_v6  ;;  %vm12997_vm3 = vmand %vm14980_vm2, %vm14979_vm11  ;;  %v4988_v24 = vsel %vm14983_vm14, %v4986_v15, %v4983_v33  ;;  %vm14985_vm11 = vcmp.lt.s32.totalorder %v2760_v35, %v9352_v43  ;;  %vm14986_vm2 = vcmp.ge.s32.totalorder %v2760_v35, %v9341_v52  ;;  %v4205_v15 = vpop.f32.mrb[120].mxu0 }
0x13e0   :  { %v14982_v2 = vsel %vm12997_vm3, 4294967295, %v14981_v2  ;;  %vm14984_vm0 = vmpackc.low %vm12779_vm4, %vm12758_vm15  ;;  %vm14989_vm14 = vnez %v14920_v56  ;;  %vm14990_vm15 = vnez %v14917_v9  ;;  %v14998_v9 = vmov 0 }
0x13e1   :  { %8134 = vmatpush3.bf16.msk.msra.mxu0 %vm14984_vm0, %v14135_v39  ;;  %vm13015_vm10 = vmand %vm14986_vm2, %vm14985_vm11  ;;  %vm14992_vm11 = vcmp.lt.s32.totalorder %v2761_v42, %v9352_v43  ;;  %vm14993_vm2 = vcmp.ge.s32.totalorder %v2761_v42, %v9341_v52  ;;  %v2765_v56 = vadd.s32 1592, %v8780_v34  ;;  %v13058_v35 = vrot.slane %v4988_v24, 4  ;;  %v4968_v42 = vpop.f32.mrb[128].mxu1  ;;  %v15022_v24 = vld [vmem:[#allocation28_spill] sm:$0xff] }
0x13e2   :  { %vm14991_vm4 = vmpackc.low %vm14989_vm14, %vm14990_vm15  ;;  %vm14996_vm15 = vcmp.lt.s32.totalorder %v2778_v63, %v9352_v43  ;;  %vm15001_vm14 = vcmp.ge.s32.totalorder %v2779_v18, %v9341_v52  ;;  %v4970_v40 = vpop.f32.mrb[129].mxu1  ;;  %vm15007_vm3 = vcmp.lt.s32.totalorder %v2762_v48, %v9352_v43  ;;  %v15009_v18 = vmov 0 }
0x13e3   :  { %8136 = vmatprep.subr.msk.bf16.mxu0 %vm14991_vm4, %v14135_v39  ;;  %vm13036_vm8 = vmand %vm14993_vm2, %vm14992_vm11  ;;  %vm14997_vm4 = vcmp.ge.s32.totalorder %v2778_v63, %v9341_v52  ;;  %v2782_v63 = vadd.s32 1728, %v8780_v34  ;;  %vm15004_vm11 = vnez %v14930_v22  ;;  %vm15005_vm2 = vnez %v14925_v54  ;;  %v4972_v54 = vpop.f32.mrb[130].mxu1 }
0x13e4   :  { %vm13051_vm0 = vmand %vm14997_vm4, %vm14996_vm15  ;;  %v2783_v33 = vadd.s32 1736, %v8780_v34  ;;  %v5317_v22 = vmul.f32 %v13058_v35, %v4970_v40  ;;  %vm15015_vm15 = vcmp.ge.s32.totalorder %v2763_v47, %v9341_v52  ;;  %v15016_v23 = vmov 0  ;;  %v7870_v40 = vpop.f32.mrb[121].mxu0 }
0x13e5   :  { %v14999_v9 = vsel %vm13051_vm0, 4294967295, %v14998_v9  ;;  %vm13064_vm12 = vmand %vm15001_vm14, %vm15000_vm5  ;;  %vm15008_vm5 = vcmp.ge.s32.totalorder %v2762_v48, %v9341_v52  ;;  %v8385_v48 = vld [vmem:[%s13835_s11 + $0x8] sm:$0xff]   ;;  %v13132_v54 = vpack.c.bf16 %v11793_v31, %v11793_v31  ;;  %v2786_v57 = vadd.s32 1760, %v8780_v34 }
0x13e6   :  { %v15003_v53 = vsel %vm13064_vm12, 4294967295, %v15002_v53  ;;  %vm15006_vm9 = vmpackc.low %vm15004_vm11, %vm15005_vm2  ;;  %vm15012_vm11 = vnez %v14935_v30  ;;  %v5316_v30 = vmul.f32 %v13058_v35, %v4968_v42  ;;  %v13128_v42 = vadd.f32 %v15022_v24, %v4205_v15  ;;  %5569 = vmatprep.mubr.f32.mxu1 %v5317_v22  ;;  %v4208_v22 = vpop.f32.mrb[122].mxu0 }
0x13e7   :  { %8138 = vmatpush3.bf16.msk.msra.mxu0 %vm15006_vm9, %v14135_v39  ;;  %vm13081_vm14 = vmand %vm15008_vm5, %vm15007_vm3  ;;  %vm15011_vm9 = vnez %v14937_v7  ;;  %vm15014_vm5 = vcmp.lt.s32.totalorder %v2763_v47, %v9352_v43  ;;  %v4973_v7 = vpop.f32.mrb[131].mxu1  ;;  %vm15018_vm3 = vcmp.lt.s32.totalorder %v2780_v21, %v9352_v43  ;;  %v15020_v47 = vmov 0 }
0x13e8   :  { %v15010_v18 = vsel %vm13081_vm14, 4294967295, %v15009_v18  ;;  %vm15013_vm2 = vmpackc.low %vm15011_vm9, %vm15012_vm11  ;;  %5570 = vmatmul.mubr.f32.vlgmr.msra.gmra.mrb[136].mxu1 %v5316_v30  ;;  %vm15028_vm12 = vcmp.lt.s32.totalorder %v2764_v51, %v9352_v43  ;;  %v7871_v30 = vpop.f32.mrb[123].mxu0  ;;  %vm15036_vm9 = vcmp.ge.s32.totalorder %v2765_v56, %v9341_v52  ;;  %v5755_v7 = vrot.slane %v13132_v54, 2 }
0x13e9   :  { %8140 = vmatprep.subr.msk.bf16.mxu0 %vm15013_vm2, %v14135_v39  ;;  %vm13106_vm4 = vmand %vm15015_vm15, %vm15014_vm5  ;;  %vm15019_vm15 = vcmp.ge.s32.totalorder %v2780_v21, %v9341_v52  ;;  %vm15023_vm2 = vcmp.lt.s32.totalorder %v2781_v32, %v9352_v43  ;;  %v15025_v21 = vmov 0  ;;  %7907 = vmatpush3.bf16.msra.mxu1 %v8385_v48  ;;  %v2784_v48 = vadd.s32 1744, %v8780_v34 }
0x13ea   :  { %v15017_v23 = vsel %vm13106_vm4, 4294967295, %v15016_v23  ;;  %vm13121_vm5 = vmand %vm15019_vm15, %vm15018_vm3  ;;  %vm15024_vm3 = vcmp.ge.s32.totalorder %v2781_v32, %v9341_v52  ;;  %v15030_v32 = vmov 0  ;;  %7912 = vmatprep.subr.bf16.mxu1 %v14178_v29  ;;  %v15046_v15 = vmov 0 }
0x13eb   :  { %v15021_v47 = vsel %vm13121_vm5, 4294967295, %v15020_v47  ;;  %vm13138_vm15 = vmand %vm15024_vm3, %vm15023_vm2  ;;  %vm15029_vm2 = vcmp.ge.s32.totalorder %v2764_v51, %v9341_v52  ;;  %v2767_v51 = vadd.s32 1608, %v8780_v34  ;;  %vm15049_vm4 = vcmask 130048  }
0x13ec   :  { %v15026_v21 = vsel %vm13138_vm15, 4294967295, %v15025_v21  ;;  %vm15027_vm0 = vmpackc.low %vm12901_vm6, %vm12880_vm13  ;;  %vm15032_vm6 = vnez %v14958_v17  ;;  %vm15033_vm13 = vnez %v14954_v20  ;;  %v4123_v20 = vmul.f32 %v9782_v37, %v12857_v36  ;;  %v8386_v17 = vld [vmem:[%s13835_s11] sm:$0xff]   ;;  %v13199_v36 = vpop.f32.mrb[132].mxu1 }
0x13ed   :  { %8142 = vmatpush3.bf16.msk.msra.mxu0 %vm15027_vm0, %v14135_v39  ;;  %vm13154_vm3 = vmand %vm15029_vm2, %vm15028_vm12  ;;  %vm15035_vm2 = vcmp.lt.s32.totalorder %v2765_v56, %v9352_v43  ;;  %v15042_v56 = vmov 0  ;;  %vm15045_vm0 = vcmp.ge.s32.totalorder %v2783_v33, %v9341_v52  ;;  %v7898_v24 = vpop.f32.mrb[133].mxu1  ;;  %v15065_v22 = vmov 0 }
0x13ee   :  { %v15031_v32 = vsel %vm13154_vm3, 4294967295, %v15030_v32  ;;  %vm15034_vm12 = vmpackc.low %vm15032_vm6, %vm15033_vm13  ;;  %vm15039_vm6 = vmmov 0   ;;  %vm15040_vm13 = vcmp.lt.s32.totalorder %v2782_v63, %v9352_v43  ;;  %v5432_v45 = vpop.f32.mrb[134].mxu1  ;;  %v2771_v30 = vadd.s32 1640, %v8780_v34  ;;  %v15122_v24 = vld [vmem:[#allocation42_spill] sm:$0xff] }
0x13ef   :  { %8176 = vmatprep.subr.msk.bf16.mxu0 %vm15034_vm12, %v14135_v39  ;;  %vm13177_vm11 = vmand %vm15036_vm9, %vm15035_vm2  ;;  %7908 = vmatprep.mubr.msk.bf16.mxu1 %vm15039_vm6, %v14178_v29  ;;  %vm15041_vm9 = vcmp.ge.s32.totalorder %v2782_v63, %v9341_v52  ;;  %vm15044_vm2 = vcmp.lt.s32.totalorder %v2783_v33, %v9352_v43  ;;  %v2785_v63 = vadd.s32 1752, %v8780_v34  ;;  %v2768_v33 = vadd.s32 1616, %v8780_v34  ;;  %v7899_v40 = vpop.f32.mrb[135].mxu1 }
0x13f0   :  { %v15038_v1 = vsel %vm13177_vm11, 4294967295, %v15037_v1  ;;  %vm13194_vm12 = vmand %vm15041_vm9, %vm15040_vm13  ;;  %4620 = vmatmul.mubr.f32.vlgmr.msra.gmra.mrb[128].mxu0 %v4118_v61  ;;  %7909 = vmatmul.mubr.msk.bf16.vlgmr.msra.gmra.mrb[140].mxu1 %vm15049_vm4, %v5755_v7  ;;  %vm15054_vm9 = vcmp.ge.s32.totalorder %v2766_v60, %v9341_v52  ;;  %v15072_v61 = vmov 0  ;;  %v8390_v7 = vld [vmem:[%s13832_s8 + $0x20] ss:$16 sps:$4 sm:$0xff]  }
0x13f1   :  { %v15043_v56 = vsel %vm13194_vm12, 4294967295, %v15042_v56  ;;  %vm13206_vm14 = vmand %vm15045_vm0, %vm15044_vm2  ;;  %4759 = vmatprep.mubr.f32.mxu0 %v4123_v20  ;;  %vm3026_vm0 = vcmp.ge.s32.totalorder %v2767_v51, %v9341_v52  ;;  %vm3284_vm2 = vcmp.lt.s32.totalorder %v2767_v51, %v9352_v43  ;;  %7913 = vmatpush3.bf16.msra.mxu1 %v8386_v17  ;;  %vm3044_vm11 = vcmp.ge.s32.totalorder %v2785_v63, %v9341_v52 }
0x13f2   :  { %v15047_v15 = vsel %vm13206_vm14, 4294967295, %v15046_v15  ;;  %vm15048_vm13 = vmpackc.low %vm12967_vm7, %vm12944_vm1  ;;  %vm15050_vm1 = vnez %v14982_v2  ;;  %vm15051_vm7 = vnez %v14977_v6  ;;  %7914 = vmatprep.mubr.msk.bf16.mxu1 %vm15039_vm6, %v14178_v29  ;;  %v15055_v6 = vmov 0  ;;  %7953 = vmatprep.subr.bf16.mxu1 %v14178_v29 }
0x13f3   :  { %8178 = vmatpush3.bf16.msk.msra.mxu0 %vm15048_vm13, %v14135_v39  ;;  %vm15052_vm13 = vmpackc.low %vm15050_vm1, %vm15051_vm7  ;;  %vm3043_vm1 = vcmp.ge.s32.totalorder %v2784_v48, %v9341_v52  ;;  %vm3301_vm7 = vcmp.lt.s32.totalorder %v2784_v48, %v9352_v43  ;;  %vm3302_vm6 = vcmp.lt.s32.totalorder %v2785_v63, %v9352_v43  ;;  %v15058_v2 = vmov 0  ;;  %v8392_v48 = vld [vmem:[%s13832_s8 + $0x24] ss:$16 sps:$4 sm:$0xff]   ;;  %v15121_v63 = vld [vmem:[#allocation41_spill] sm:$0xff] }
0x13f4   :  { %8180 = vmatprep.subr.msk.bf16.mxu0 %vm15052_vm13, %v14135_v39  ;;  %vm15053_vm13 = vcmp.lt.s32.totalorder %v2766_v60, %v9352_v43  ;;  %vm15057_vm4 = vmpackc.low %vm13036_vm8, %vm13015_vm10  ;;  %vm15060_vm14 = vnez %v15003_v53  ;;  %vm3028_vm10 = vcmp.ge.s32.totalorder %v2769_v11, %v9341_v52  ;;  %vm3286_vm8 = vcmp.lt.s32.totalorder %v2769_v11, %v9352_v43 }
0x13f5   :  { %vm13250_vm3 = vmand %vm15054_vm9, %vm15053_vm13  ;;  %vm3027_vm9 = vcmp.ge.s32.totalorder %v2768_v33, %v9341_v52  ;;  %vm3285_vm13 = vcmp.lt.s32.totalorder %v2768_v33, %v9352_v43  ;;  %v2787_v53 = vadd.s32 1768, %v8780_v34  ;;  %v2770_v60 = vadd.s32 1632, %v8780_v34 }
0x13f6   :  { %v15056_v6 = vsel %vm13250_vm3, 4294967295, %v15055_v6  ;;  %vm13263_vm12 = vmand %vm3026_vm0, %vm3284_vm2  ;;  %vm15061_vm3 = vnez %v14999_v9  ;;  %v15067_v9 = vmov 0  ;;  %v15092_v51 = vmov 0 }
0x13f7   :  { %8182 = vmatpush3.bf16.msk.msra.mxu0 %vm15057_vm4, %v14135_v39  ;;  %v15059_v2 = vsel %vm13263_vm12, 4294967295, %v15058_v2  ;;  %vm15062_vm5 = vmpackc.low %vm15060_vm14, %vm15061_vm3  ;;  %vm15069_vm14 = vnez %v15017_v23  ;;  %v2789_v23 = vadd.s32 1784, %v8780_v34  ;;  %v2773_v20 = vadd.s32 1656, %v8780_v34 }
0x13f8   :  { %8184 = vmatprep.subr.msk.bf16.mxu0 %vm15062_vm5, %v14135_v39  ;;  %vm13275_vm15 = vmand %vm3043_vm1, %vm3301_vm7  ;;  %vm15070_vm5 = vnez %v15010_v18  ;;  %v2788_v18 = vadd.s32 1776, %v8780_v34  ;;  %vm3288_vm7 = vcmp.lt.s32.totalorder %v2771_v30, %v9352_v43 }
0x13f9   :  { %v15064_v38 = vsel %vm13275_vm15, 4294967295, %v15063_v38  ;;  %vm13282_vm0 = vmand %vm3044_vm11, %vm3302_vm6  ;;  %vm15074_vm11 = vnez %v15026_v21  ;;  %vm15075_vm6 = vnez %v15021_v47 }
0x13fa   :  { %v15066_v22 = vsel %vm13282_vm0, 4294967295, %v15065_v22  ;;  %vm13287_vm2 = vmand %vm3027_vm9, %vm3285_vm13  ;;  %vm3045_vm13 = vcmp.ge.s32.totalorder %v2786_v57, %v9341_v52  ;;  %vm3030_vm0 = vcmp.ge.s32.totalorder %v2771_v30, %v9341_v52 }
0x13fb   :  { %v15068_v9 = vsel %vm13287_vm2, 4294967295, %v15067_v9  ;;  %vm15071_vm3 = vmpackc.low %vm15069_vm14, %vm15070_vm5  ;;  %vm3046_vm14 = vcmp.ge.s32.totalorder %v2787_v53, %v9341_v52  ;;  %vm3304_vm5 = vcmp.lt.s32.totalorder %v2787_v53, %v9352_v43  ;;  %vm15084_vm2 = vnez %v15047_v15  ;;  %v8393_v15 = vld [vmem:[%s13833_s9 + $0x10] sm:$0xff]  }
0x13fc   :  { %8186 = vmatpush3.bf16.msk.msra.mxu0 %vm15071_vm3, %v14135_v39  ;;  %vm13298_vm4 = vmand %vm3028_vm10, %vm3286_vm8  ;;  %vm3303_vm10 = vcmp.lt.s32.totalorder %v2786_v57, %v9352_v43  ;;  %vm15079_vm8 = vnez %v15031_v32  ;;  %vm15083_vm3 = vcmask 130048  }
0x13fd   :  { %v15073_v61 = vsel %vm13298_vm4, 4294967295, %v15072_v61  ;;  %vm15076_vm1 = vmpackc.low %vm15074_vm11, %vm15075_vm6  ;;  %vm3029_vm11 = vcmp.ge.s32.totalorder %v2770_v60, %v9341_v52  ;;  %vm3287_vm6 = vcmp.lt.s32.totalorder %v2770_v60, %v9352_v43  ;;  %7915 = vmatmul.mubr.msk.bf16.vlgmr.msra.gmra.mrb[140].mxu1 %vm15083_vm3, %v13132_v54  ;;  %vm15085_vm4 = vnez %v15043_v56 }
0x13fe   :  { %8188 = vmatprep.subr.msk.bf16.mxu0 %vm15076_vm1, %v14135_v39  ;;  %vm15078_vm1 = vnez %v15038_v1  ;;  %vm13335_vm15 = vmand %vm3045_vm13, %vm3303_vm10  ;;  %vm3305_vm13 = vcmp.lt.s32.totalorder %v2788_v18, %v9352_v43  ;;  %vm3048_vm3 = vcmp.ge.s32.totalorder %v2789_v23, %v9341_v52  ;;  %v2772_v1 = vadd.s32 1648, %v8780_v34 }
0x13ff   :  { %vm15080_vm9 = vmpackc.low %vm15078_vm1, %vm15079_vm8  ;;  %vm3306_vm1 = vcmp.lt.s32.totalorder %v2789_v23, %v9352_v43  ;;  %v4122_v56 = vmul.f32 %v9782_v37, %v12840_v41  ;;  %v8394_v37 = vld [vmem:[%s13833_s9 + $0x18] sm:$0xff]   ;;  %v15120_v41 = vld [vmem:[#allocation40_spill] sm:$0xff] }
0x1400   :  { %8190 = vmatpush3.bf16.msk.msra.mxu0 %vm15080_vm9, %v14135_v39  ;;  %vm15086_vm12 = vmpackc.low %vm15084_vm2, %vm15085_vm4  ;;  %vm3047_vm9 = vcmp.ge.s32.totalorder %v2788_v18, %v9341_v52  ;;  %vm15094_vm4 = vnez %v15059_v2 }
0x1401   :  { %8192 = vmatprep.subr.msk.bf16.mxu0 %vm15086_vm12, %v14135_v39  ;;  %vm13349_vm8 = vmand %vm3046_vm14, %vm3304_vm5  ;;  %vm15091_vm12 = vmmov 0   ;;  %vm15095_vm14 = vnez %v15056_v6  ;;  %v15123_v6 = vld [vmem:[#allocation43_spill] sm:$0xff] }
0x1402   :  { %vm13355_vm10 = vmand %vm3029_vm11, %vm3287_vm6  ;;  %7961 = vmatprep.mubr.msk.bf16.mxu1 %vm15091_vm12, %v14178_v29  ;;  %vm15099_vm6 = vnez %v15066_v22  ;;  %v15124_v22 = vld [vmem:[#allocation10_spill] sm:$0xff] }
0x1403   :  { %vm13364_vm2 = vmand %vm3030_vm0, %vm3288_vm7  ;;  %vm15100_vm0 = vnez %v15064_v38 }
0x1404   :  { %v15093_v51 = vsel %vm13364_vm2, 4294967295, %v15092_v51  ;;  %vm15096_vm5 = vmpackc.low %vm15094_vm4, %vm15095_vm14  ;;  %vm3031_vm4 = vcmp.ge.s32.totalorder %v2772_v1, %v9341_v52 }
0x1405   :  { %8194 = vmatpush3.bf16.msk.msra.mxu0 %vm15096_vm5, %v14135_v39  ;;  %vm13375_vm11 = vmand %vm3047_vm9, %vm3305_vm13  ;;  %vm3289_vm9 = vcmp.lt.s32.totalorder %v2772_v1, %v9352_v43  ;;  %vm15102_vm13 = vnez %v15093_v51  ;;  %vm3032_vm5 = vcmp.ge.s32.totalorder %v2773_v20, %v9341_v52  ;;  %v8389_v52 = vld [vmem:[%s13832_s8 + $0x4] ss:$16 sps:$4 sm:$0xff]  }
0x1406   :  { %vm15101_vm7 = vmpackc.low %vm15099_vm6, %vm15100_vm0  ;;  %vm3290_vm6 = vcmp.lt.s32.totalorder %v2773_v20, %v9352_v43  ;;  %v8387_v43 = vld [vmem:[%s13832_s8] ss:$16 sps:$4 sm:$0xff]  }
0x1407   :  { %8196 = vmatprep.subr.msk.bf16.mxu0 %vm15101_vm7, %v14135_v39  ;;  %vm3562_vm12 = vmand %vm3048_vm3, %vm3306_vm1  ;;  %vm15103_vm3 = vnez %v15073_v61  ;;  %vm15104_vm1 = vnez %v15068_v9 }
0x1408   :  { %vm8199_vm2 = vmpackc.low %vm13349_vm8, %vm13335_vm15 }
0x1409   :  { %vm8201_vm14 = vmpackc.low %vm15102_vm13, %vm13355_vm10  ;;  %vm5071_vm13 = vcmp.lt.s32.totalorder %v11186_v62, %v11677_v13 }
0x140a   :  { %vm15105_vm0 = vmpackc.low %vm15103_vm3, %vm15104_vm1  ;;  %vm4990_vm1 = vcmp.ge.s32.totalorder %v8780_v34, %v11674_v3 }
0x140b   :  { %8198 = vmatpush3.bf16.msk.msra.mxu0 %vm15105_vm0, %v14135_v39  ;;  %vm8203_vm15 = vmpackc.low %vm3562_vm12, %vm13375_vm11  ;;  %vm15106_vm12 = vcmask 261120   ;;  %vm4991_vm0 = vcmp.ge.s32.totalorder %v11199_v27, %v11674_v3 }
0x140c   :  { %8200 = vmatprep.subr.msk.bf16.mxu0 %vm8199_vm2, %v14135_v39  ;;  %vm3545_vm8 = vmand %vm3031_vm4, %vm3289_vm9  ;;  %vm15107_vm2 = vmmov 0   ;;  %vm5006_vm4 = vcmp.ge.s32.totalorder %v11186_v62, %v11674_v3  ;;  %vm5007_vm9 = vcmp.ge.s32.totalorder %v11193_v8, %v11674_v3  ;;  %v15109_v62 = vld [vmem:[#allocation29_spill] sm:$0xff] }
0x140d   :  { %vm3546_vm7 = vmand %vm3032_vm5, %vm3290_vm6 }
0x140e   :  { %vm8205_vm10 = vmpackc.low %vm3546_vm7, %vm3545_vm8  ;;  %vm5056_vm8 = vcmp.lt.s32.totalorder %v11199_v27, %v11677_v13 }
0x140f   :  { %8202 = vmatpush3.bf16.msk.msra.mxu0 %vm8201_vm14, %v14135_v39  ;;  %vm15108_vm11 = vmmov %vm15106_vm12  ;;  %vm5072_vm14 = vcmp.lt.s32.totalorder %v11193_v8, %v11677_v13  ;;  %v15110_v8 = vld [vmem:[#allocation30_spill] sm:$0xff] }
0x1410   :  { %8204 = vmatprep.subr.msk.bf16.mxu0 %vm8203_vm15, %v14135_v39  ;;  %vm5135_vm5 = vmand %vm5006_vm4, %vm5071_vm13  ;;  %vm5055_vm15 = vcmp.lt.s32.totalorder %v8780_v34, %v11677_v13  ;;  %vm5009_vm4 = vcmp.ge.s32.totalorder %v11223_v10, %v11674_v3  ;;  %vm5074_vm13 = vcmp.lt.s32.totalorder %v11223_v10, %v11677_v13  ;;  %v15112_v10 = vld [vmem:[#allocation32_spill] sm:$0xff] }
0x1411   :  { %vm5136_vm6 = vmand %vm5007_vm9, %vm5072_vm14  ;;  %vm5073_vm9 = vcmp.lt.s32.totalorder %v11208_v55, %v11677_v13 }
0x1412   :  { %vm8239_vm3 = vmpackc.low %vm5136_vm6, %vm5135_vm5  ;;  %vm4992_vm5 = vcmp.ge.s32.totalorder %v11286_v25, %v11674_v3  ;;  %vm5057_vm6 = vcmp.lt.s32.totalorder %v11286_v25, %v11677_v13 }
0x1413   :  { %8206 = vmatpush3.bf16.msk.msra.mxu0 %vm8205_vm10, %v14135_v39  ;;  %vm5119_vm7 = vmand %vm4990_vm1, %vm5055_vm15  ;;  %vm4993_vm1 = vcmp.ge.s32.totalorder %v11299_v50, %v11674_v3 }
0x1414   :  { %4893 = vmatprep.subr.bf16.mxu0 %v8389_v52  ;;  %vm5120_vm10 = vmand %vm4991_vm0, %vm5056_vm8  ;;  %vm5058_vm0 = vcmp.lt.s32.totalorder %v11299_v50, %v11677_v13 }
0x1415   :  { %vm5121_vm8 = vmand %vm4992_vm5, %vm5057_vm6  ;;  %vm5059_vm5 = vcmp.lt.s32.totalorder %v11332_v58, %v11677_v13 }
0x1416   :  { %4760 = vmatmul.mubr.f32.vlgmr.msra.gmra.mrb[130].mxu0 %v4122_v56 }
0x1417   :  { %4894 = vmatpush1.bf16.msra.mxu0 %v8387_v43  ;;  %4925 = vmatprep.mubr.bf16.mxu0 %v14277_v44  ;;  %v5327_v44 = vrot.slane %v11373_v49, 2  ;;  %v15125_v43 = vld [vmem:[#allocation8_spill] sm:$0xff] }
0x1418   :  { %4895 = vmatprep.subr.bf16.mxu0 %v8392_v48  ;;  %v13592_v56 = vmul.u32 16, %v15125_v43  ;;  %v15126_v48 = vld [vmem:[#allocation9_spill] sm:$0xff] }
0x1419   :  { %v8397_v43 = vld [vmem:[%s13836_s12 + $0x8] sm:$0xff]  }
0x141b   :  { %4896 = vmatpush1.bf16.msra.mxu0 %v8390_v7  ;;  %v13595_v7 = vmul.u32 16, %v15126_v48 }
0x141c   :  { %7884 = vmatprep.subr.bf16.mxu0 %v14178_v29 }
0x141e   :  { %6876 = vmatmul.mubr.msk.bf16.vlgmr.msra.gmra.mrb[132].mxu0 %vm15106_vm12, %v11373_v49  ;;  %vm8241_vm12 = vmpackc.low %vm5120_vm10, %vm5119_vm7  ;;  %vm5010_vm7 = vcmp.ge.s32.totalorder %v11309_v59, %v11674_v3  ;;  %vm5075_vm10 = vcmp.lt.s32.totalorder %v11309_v59, %v11677_v13  ;;  %v15113_v59 = vld [vmem:[#allocation33_spill] sm:$0xff]  ;;  %v15115_v49 = vld [vmem:[#allocation35_spill] sm:$0xff] }
0x141f   :  { %7885 = vmatpush3.bf16.msra.mxu0 %v8393_v15  ;;  %7888 = vmatprep.mubr.msk.bf16.mxu0 %vm15107_vm2, %v14178_v29 }
0x1420   :  { %7886 = vmatprep.subr.bf16.mxu0 %v14178_v29 }
0x1423   :  { %7887 = vmatpush3.bf16.msra.mxu0 %v8394_v37  ;;  %v13600_v37 = vld [vmem:[%s13839_s15 + $0x8] sm:$0xff] }
0x1424   :  { %8240 = vmatprep.subr.msk.bf16.mxu0 %vm8239_vm3, %v14135_v39  ;;  %vm5138_vm3 = vmand %vm5009_vm4, %vm5074_vm13  ;;  %vm5076_vm4 = vcmp.lt.s32.totalorder %v11320_v12, %v11677_v13 }
0x1425   :  { %vm5139_vm13 = vmand %vm5010_vm7, %vm5075_vm10  ;;  %vm5077_vm7 = vcmp.lt.s32.totalorder %v11431_v28, %v11677_v13 }
0x1426   :  { %7889 = vmatmul.mubr.msk.bf16.vlgmr.msra.gmra.mrb[136].mxu0 %vm15108_vm11, %v5327_v44  ;;  %vm5008_vm11 = vcmp.ge.s32.totalorder %v11208_v55, %v11674_v3  ;;  %v15111_v55 = vld [vmem:[#allocation31_spill] sm:$0xff] }
0x1427   :  { %8242 = vmatpush3.bf16.msk.msra.mxu0 %vm8241_vm12, %v14135_v39  ;;  %vm5137_vm14 = vmand %vm5008_vm11, %vm5073_vm9  ;;  %vm5011_vm11 = vcmp.ge.s32.totalorder %v11320_v12, %v11674_v3  ;;  %v15114_v12 = vld [vmem:[#allocation34_spill] sm:$0xff] }
0x1428   :  { %vm8243_vm15 = vmpackc.low %vm5138_vm3, %vm5137_vm14  ;;  %vm4994_vm14 = vcmp.ge.s32.totalorder %v11332_v58, %v11674_v3  ;;  %vm4995_vm3 = vcmp.ge.s32.totalorder %v11343_v26, %v11674_v3 }
0x1429   :  { %8244 = vmatprep.subr.msk.bf16.mxu0 %vm8243_vm15, %v14135_v39  ;;  %vm5122_vm12 = vmand %vm4993_vm1, %vm5058_vm0  ;;  %vm5060_vm1 = vcmp.lt.s32.totalorder %v11343_v26, %v11677_v13 }
0x142a   :  { %vm8245_vm9 = vmpackc.low %vm5122_vm12, %vm5121_vm8  ;;  %vm5012_vm8 = vcmp.ge.s32.totalorder %v11431_v28, %v11674_v3  ;;  %vm5013_vm12 = vcmp.ge.s32.totalorder %v11434_v46, %v11674_v3  ;;  %v15116_v28 = vld [vmem:[#allocation36_spill] sm:$0xff] }
0x142b   :  { %8246 = vmatpush3.bf16.msk.msra.mxu0 %vm8245_vm9, %v14135_v39  ;;  %vm5140_vm6 = vmand %vm5011_vm11, %vm5076_vm4  ;;  %vm5078_vm11 = vcmp.lt.s32.totalorder %v11434_v46, %v11677_v13  ;;  %v15117_v46 = vld [vmem:[#allocation37_spill] sm:$0xff] }
0x142c   :  { %vm8247_vm0 = vmpackc.low %vm5140_vm6, %vm5139_vm13  ;;  %vm4996_vm13 = vcmp.ge.s32.totalorder %v11447_v14, %v11674_v3  ;;  %vm4997_vm6 = vcmp.ge.s32.totalorder %v11450_v0, %v11674_v3 }
0x142d   :  { %8248 = vmatprep.subr.msk.bf16.mxu0 %vm8247_vm0, %v14135_v39  ;;  %vm5123_vm15 = vmand %vm4994_vm14, %vm5059_vm5  ;;  %vm5061_vm14 = vcmp.lt.s32.totalorder %v11447_v14, %v11677_v13 }
0x142e   :  { %vm5124_vm10 = vmand %vm4995_vm3, %vm5060_vm1  ;;  %vm5062_vm3 = vcmp.lt.s32.totalorder %v11450_v0, %v11677_v13 }
0x142f   :  { %vm8249_vm4 = vmpackc.low %vm5124_vm10, %vm5123_vm15  ;;  %vm5014_vm15 = vcmp.ge.s32.totalorder %v11487_v16, %v11674_v3  ;;  %vm5015_vm10 = vcmp.ge.s32.totalorder %v11490_v19, %v11674_v3 }
0x1430   :  { %8250 = vmatpush3.bf16.msk.msra.mxu0 %vm8249_vm4, %v14135_v39  ;;  %vm5141_vm9 = vmand %vm5012_vm8, %vm5077_vm7  ;;  %vm5079_vm8 = vcmp.lt.s32.totalorder %v11487_v16, %v11677_v13  ;;  %v15118_v16 = vld [vmem:[#allocation38_spill] sm:$0xff] }
0x1431   :  { %vm5142_vm5 = vmand %vm5013_vm12, %vm5078_vm11  ;;  %vm5080_vm12 = vcmp.lt.s32.totalorder %v11490_v19, %v11677_v13  ;;  %v15119_v19 = vld [vmem:[#allocation39_spill] sm:$0xff] }
0x1432   :  { %vm8251_vm1 = vmpackc.low %vm5142_vm5, %vm5141_vm9  ;;  %vm4998_vm9 = vcmp.ge.s32.totalorder %v15109_v62, %v11674_v3  ;;  %vm4999_vm5 = vcmp.ge.s32.totalorder %v15110_v8, %v11674_v3 }
0x1433   :  { %8252 = vmatprep.subr.msk.bf16.mxu0 %vm8251_vm1, %v14135_v39  ;;  %vm5125_vm0 = vmand %vm4996_vm13, %vm5061_vm14  ;;  %vm5063_vm13 = vcmp.lt.s32.totalorder %v15109_v62, %v11677_v13 }
0x1434   :  { %vm5126_vm7 = vmand %vm4997_vm6, %vm5062_vm3  ;;  %vm5064_vm6 = vcmp.lt.s32.totalorder %v15110_v8, %v11677_v13 }
0x1435   :  { %vm8253_vm11 = vmpackc.low %vm5126_vm7, %vm5125_vm0  ;;  %vm5016_vm0 = vcmp.ge.s32.totalorder %v15111_v55, %v11674_v3  ;;  %vm5017_vm7 = vcmp.ge.s32.totalorder %v15112_v10, %v11674_v3 }
0x1436   :  { %8254 = vmatpush3.bf16.msk.msra.mxu0 %vm8253_vm11, %v14135_v39  ;;  %vm5143_vm4 = vmand %vm5014_vm15, %vm5079_vm8  ;;  %vm5081_vm15 = vcmp.lt.s32.totalorder %v15111_v55, %v11677_v13 }
0x1437   :  { %vm5144_vm14 = vmand %vm5015_vm10, %vm5080_vm12  ;;  %vm5082_vm10 = vcmp.lt.s32.totalorder %v15112_v10, %v11677_v13 }
0x1438   :  { %vm8255_vm3 = vmpackc.low %vm5144_vm14, %vm5143_vm4  ;;  %vm5000_vm4 = vcmp.ge.s32.totalorder %v15113_v59, %v11674_v3  ;;  %vm5001_vm14 = vcmp.ge.s32.totalorder %v15114_v12, %v11674_v3 }
0x1439   :  { %8256 = vmatprep.subr.msk.bf16.mxu0 %vm8255_vm3, %v14135_v39  ;;  %vm5127_vm1 = vmand %vm4998_vm9, %vm5063_vm13  ;;  %vm5065_vm9 = vcmp.lt.s32.totalorder %v15113_v59, %v11677_v13 }
0x143a   :  { %vm5128_vm8 = vmand %vm4999_vm5, %vm5064_vm6  ;;  %vm5066_vm5 = vcmp.lt.s32.totalorder %v15114_v12, %v11677_v13 }
0x143b   :  { %vm8257_vm12 = vmpackc.low %vm5128_vm8, %vm5127_vm1  ;;  %vm5018_vm1 = vcmp.ge.s32.totalorder %v15115_v49, %v11674_v3  ;;  %vm5019_vm8 = vcmp.ge.s32.totalorder %v15116_v28, %v11674_v3 }
0x143c   :  { %8258 = vmatpush3.bf16.msk.msra.mxu0 %vm8257_vm12, %v14135_v39  ;;  %vm5145_vm11 = vmand %vm5016_vm0, %vm5081_vm15  ;;  %vm5083_vm0 = vcmp.lt.s32.totalorder %v15115_v49, %v11677_v13 }
0x143d   :  { %vm5146_vm13 = vmand %vm5017_vm7, %vm5082_vm10  ;;  %vm5084_vm7 = vcmp.lt.s32.totalorder %v15116_v28, %v11677_v13 }
0x143e   :  { %vm8259_vm6 = vmpackc.low %vm5146_vm13, %vm5145_vm11  ;;  %vm5002_vm11 = vcmp.ge.s32.totalorder %v15117_v46, %v11674_v3  ;;  %vm5003_vm13 = vcmp.ge.s32.totalorder %v15118_v16, %v11674_v3 }
0x143f   :  { %8260 = vmatprep.subr.msk.bf16.mxu0 %vm8259_vm6, %v14135_v39  ;;  %vm5129_vm3 = vmand %vm5000_vm4, %vm5065_vm9  ;;  %vm5067_vm4 = vcmp.lt.s32.totalorder %v15117_v46, %v11677_v13 }
0x1440   :  { %vm5130_vm15 = vmand %vm5001_vm14, %vm5066_vm5  ;;  %vm5068_vm14 = vcmp.lt.s32.totalorder %v15118_v16, %v11677_v13 }
0x1441   :  { %vm8261_vm10 = vmpackc.low %vm5130_vm15, %vm5129_vm3  ;;  %vm5020_vm3 = vcmp.ge.s32.totalorder %v15119_v19, %v11674_v3  ;;  %vm5021_vm15 = vcmp.ge.s32.totalorder %v15120_v41, %v11674_v3 }
0x1442   :  { %8262 = vmatpush3.bf16.msk.msra.mxu0 %vm8261_vm10, %v14135_v39  ;;  %vm5147_vm12 = vmand %vm5018_vm1, %vm5083_vm0  ;;  %vm5085_vm1 = vcmp.lt.s32.totalorder %v15119_v19, %v11677_v13 }
0x1443   :  { %vm5148_vm9 = vmand %vm5019_vm8, %vm5084_vm7  ;;  %vm5086_vm8 = vcmp.lt.s32.totalorder %v15120_v41, %v11677_v13 }
0x1444   :  { %vm8263_vm5 = vmpackc.low %vm5148_vm9, %vm5147_vm12  ;;  %vm5004_vm12 = vcmp.ge.s32.totalorder %v15121_v63, %v11674_v3  ;;  %vm5005_vm9 = vcmp.ge.s32.totalorder %v15122_v24, %v11674_v3 }
0x1445   :  { %8264 = vmatprep.subr.msk.bf16.mxu0 %vm8263_vm5, %v14135_v39  ;;  %vm5131_vm6 = vmand %vm5002_vm11, %vm5067_vm4  ;;  %vm5069_vm11 = vcmp.lt.s32.totalorder %v15121_v63, %v11677_v13 }
0x1446   :  { %vm5132_vm0 = vmand %vm5003_vm13, %vm5068_vm14  ;;  %vm5070_vm13 = vcmp.lt.s32.totalorder %v15122_v24, %v11677_v13 }
0x1447   :  { %vm8265_vm7 = vmpackc.low %vm5132_vm0, %vm5131_vm6 }
0x1448   :  { %8266 = vmatpush3.bf16.msk.msra.mxu0 %vm8265_vm7, %v14135_v39  ;;  %vm5149_vm10 = vmand %vm5020_vm3, %vm5085_vm1  ;;  %vm5665_vm3 = vcmp.ge.s32.totalorder %v8780_v34, %v13592_v56  ;;  %vm5682_vm1 = vcmp.lt.s32.totalorder %v8780_v34, %v13595_v7 }
0x1449   :  { %vm5150_vm4 = vmand %vm5021_vm15, %vm5086_vm8  ;;  %vm5666_vm15 = vcmp.ge.s32.totalorder %v11199_v27, %v13592_v56  ;;  %vm5683_vm8 = vcmp.lt.s32.totalorder %v11199_v27, %v13595_v7 }
0x144a   :  { %vm8267_vm14 = vmpackc.low %vm5150_vm4, %vm5149_vm10  ;;  %vm5668_vm4 = vcmp.ge.s32.totalorder %v11299_v50, %v13592_v56 }
0x144b   :  { %8268 = vmatprep.subr.msk.bf16.mxu0 %vm8267_vm14, %v14135_v39  ;;  %vm5133_vm5 = vmand %vm5004_vm12, %vm5069_vm11  ;;  %vm5667_vm12 = vcmp.ge.s32.totalorder %v11286_v25, %v13592_v56  ;;  %vm5684_vm11 = vcmp.lt.s32.totalorder %v11286_v25, %v13595_v7 }
0x144c   :  { %vm5134_vm6 = vmand %vm5005_vm9, %vm5070_vm13  ;;  %vm5685_vm9 = vcmp.lt.s32.totalorder %v11299_v50, %v13595_v7 }
0x144d   :  { %vm8269_vm0 = vmpackc.low %vm5134_vm6, %vm5133_vm5  ;;  %vm5669_vm6 = vcmp.ge.s32.totalorder %v11332_v58, %v13592_v56 }
0x144e   :  { %8270 = vmatpush3.bf16.msk.msra.mxu0 %vm8269_vm0, %v14135_v39  ;;  %vm13614_vm7 = vmand %vm5665_vm3, %vm5682_vm1  ;;  %vm5686_vm0 = vcmp.lt.s32.totalorder %v11332_v58, %v13595_v7  ;;  %vm15136_vm3 = vcmask 130048   ;;  %vm5670_vm1 = vcmp.ge.s32.totalorder %v11343_v26, %v13592_v56  ;;  %v5635_v58 = vpop.permute.xlu0 %5634 }
0x144f   :  { %7900 = vmatprep.subr.bf16.mxu0 %v14178_v29  ;;  %vm13622_vm10 = vmand %vm5666_vm15, %vm5683_vm8  ;;  %vm5687_vm15 = vcmp.lt.s32.totalorder %v11343_v26, %v13595_v7 }
0x1450   :  { %vm8304_vm13 = vmpackc.low %vm13622_vm10, %vm13614_vm7  ;;  %vm5672_vm10 = vcmp.ge.s32.totalorder %v11450_v0, %v13592_v56 }
0x1451   :  { %vm13641_vm14 = vmand %vm5667_vm12, %vm5684_vm11  ;;  %vm5671_vm12 = vcmp.ge.s32.totalorder %v11447_v14, %v13592_v56  ;;  %vm5688_vm11 = vcmp.lt.s32.totalorder %v11447_v14, %v13595_v7  ;;  %v8404_v14 = vld [vmem:[%s13838_s14 + $0x18] ss:$0 sps:$4 sm:$0xff]  }
0x1452   :  { %vm13646_vm5 = vmand %vm5668_vm4, %vm5685_vm9  ;;  %vm5689_vm4 = vcmp.lt.s32.totalorder %v11450_v0, %v13595_v7  ;;  %v5638_v0 = vpop.permute.xlu1 %5637 }
0x1453   :  { %vm8307_vm8 = vmpackc.low %vm13646_vm5, %vm13641_vm14 }
0x1454   :  { %vm5702_vm7 = vmand %vm5669_vm6, %vm5686_vm0  ;;  %vm5673_vm6 = vcmp.ge.s32.totalorder %v15109_v62, %v13592_v56  ;;  %vm5690_vm0 = vcmp.lt.s32.totalorder %v15109_v62, %v13595_v7 }
0x1455   :  { %vm5703_vm9 = vmand %vm5670_vm1, %vm5687_vm15  ;;  %vm5691_vm1 = vcmp.lt.s32.totalorder %v15110_v8, %v13595_v7 }
0x1456   :  { %vm13692_vm14 = vmand %vm5672_vm10, %vm5689_vm4  ;;  %vm5676_vm10 = vcmp.ge.s32.totalorder %v15114_v12, %v13592_v56  ;;  %vm5693_vm4 = vcmp.lt.s32.totalorder %v15114_v12, %v13595_v7 }
0x1457   :  { %vm8310_vm5 = vmpackc.low %vm5703_vm9, %vm5702_vm7  ;;  %vm5692_vm7 = vcmp.lt.s32.totalorder %v15113_v59, %v13595_v7 }
0x145f   :  { %v7203_v33 = vpop.f32.mrb[124].mxu0 }
0x1460   :  { %v7204_v45 = vpop.f32.mrb[125].mxu0 }
0x1461   :  { %v7205_v11 = vadd.f32 %v7204_v45, %v7203_v33  ;;  %v8395_v45 = vld [vmem:[%s13834_s10] sm:$0xff]  }
0x1463   :  { %v4342_v40 = vadd.f32 %v7205_v11, %v13128_v42  ;;  %v15150_v11 = vsub.s32 4, %v8780_v34 }
0x1465   :  { %v4412_v3 = vadd.f32 %v15123_v6, %v4342_v40 }
0x1493   :  { %v7273_v2 = vpop.f32.mrb[126].mxu0 }
0x1494   :  { %v7274_v38 = vpop.f32.mrb[127].mxu0 }
0x1495   :  { %v7275_v13 = vadd.f32 %v7274_v38, %v7273_v2 }
0x1497   :  { %v4482_v57 = vadd.f32 %v7275_v13, %v4412_v3  ;;  %v8396_v13 = vld [vmem:[%s13836_s12] sm:$0xff]  }
0x1498   :  { %7954 = vmatpush3.bf16.msra.mxu1 %v8396_v13 }
0x1499   :  { %v4552_v53 = vadd.f32 %v15124_v22, %v4482_v57  ;;  %7955 = vmatprep.subr.bf16.mxu1 %v14178_v29 }
0x149c   :  { %7956 = vmatpush3.bf16.msra.mxu1 %v8397_v43 }
0x149d   :  { %7957 = vmatprep.subr.bf16.mxu1 %v14178_v29 }
0x14bb   :  { %v7524_v9 = vpop.f32.mrb[136].mxu1 }
0x14bc   :  { %v7525_v60 = vpop.f32.mrb[137].mxu1 }
0x14bd   :  { %v13586_v61 = vadd.f32 %v7525_v60, %v7524_v9 }
0x14c3   :  { %v7343_v30 = vpop.f32.mrb[128].mxu0 }
0x14c4   :  { %v7344_v18 = vpop.f32.mrb[129].mxu0 }
0x14c5   :  { %v7345_v23 = vadd.f32 %v7344_v18, %v7343_v30 }
0x14c7   :  { %v4622_v47 = vadd.f32 %v7345_v23, %v4552_v53  ;;  %v15146_v23 = vsub.s32 2, %v8780_v34 }
0x14c9   :  { %v4692_v21 = vadd.f32 %v12464_v4, %v4622_v47  ;;  %v15127_v4 = vsub.s32 1, %v8780_v34  ;;  %v5578_v47 = vrot.slane %v13600_v37, %v15146_v23 }
0x14cb   :  { %v4838_v44 = vrot.slane %v13600_v37, %v15127_v4 }
0x14d0   :  { %v13589_v32 = vpop.f32.mrb[140].mxu1 }
0x14d1   :  { %v7916_v42 = vpop.f32.mrb[141].mxu1 }
0x14d2   :  { %v5848_v1 = vpop.f32.mrb[142].mxu1 }
0x14d3   :  { %v7917_v51 = vpop.f32.mrb[143].mxu1 }
0x14e9   :  { %v7413_v20 = vpop.f32.mrb[130].mxu0 }
0x14ea   :  { %v7414_v17 = vpop.f32.mrb[131].mxu0 }
0x14eb   :  { %v7415_v52 = vadd.f32 %v7414_v17, %v7413_v20 }
0x14ed   :  { %v4762_v15 = vadd.f32 %v7415_v52, %v4692_v21 }
0x14ef   :  { %v4832_v55 = vadd.f32 %v12951_v5, %v4762_v15 }
0x14f1   :  { %v4927_v10 = vpop.f32.mrb[132].mxu0  ;;  %v4839_v49 = vadd.f32 %v4838_v44, %v4832_v55 }
0x14f2   :  { %v4929_v28 = vpop.f32.mrb[133].mxu0  ;;  %v5314_v27 = vmul.f32 %v13058_v35, %v4927_v10 }
0x14f3   :  { %v5315_v5 = vmul.f32 %v13058_v35, %v4929_v28  ;;  %v4931_v41 = vpop.f32.mrb[134].mxu0  ;;  %v4840_v33 = vmax.f32 %v4839_v49, 0.0  ;;  %v8595_v35 = vmov 0.0|0.0  }
0x14f4   :  { %v4932_v40 = vpop.f32.mrb[135].mxu0 }
0x14f5   :  { %5499 = vmatprep.mubr.f32.mxu0 %v5315_v5  ;;  %5932 = vrot.lane.b32.xlu0 %v4840_v33, %s8594_s7 }
0x14f6   :  { %5500 = vmatmul.mubr.f32.vlgmr.msra.gmra.mrb[140].mxu0 %v5314_v27  ;;  %v5949_v27 = vrot.slane %v13600_v37, %v15150_v11 }
0x14f7   :  { %7901 = vmatpush3.bf16.msra.mxu0 %v8395_v45  ;;  %7902 = vmatprep.mubr.msk.bf16.mxu0 %vm15107_vm2, %v14178_v29 }
0x14f8   :  { %8303 = vmatprep.subr.bf16.mxu0 %v8595_v35 }
0x14f9   :  { %v5377_v50 = vpop.f32.mrb[136].mxu0 }
0x14fa   :  { %v13655_v3 = vadd.f32 %v13199_v36, %v5377_v50  ;;  %v7890_v2 = vpop.f32.mrb[137].mxu0  ;;  %7903 = vmatmul.mubr.msk.bf16.vlgmr.msra.gmra.mrb[144].mxu0 %vm15136_vm3, %v13132_v54  ;;  %vm5674_vm3 = vcmp.ge.s32.totalorder %v15110_v8, %v13592_v56  ;;  %v5641_v36 = vpop.permute.xlu0 %5640  ;;  %v8403_v54 = vld [vmem:[%s13838_s14 + $0x10] sm:$0xff]  }
0x14fb   :  { %v5380_v38 = vpop.f32.mrb[138].mxu0  ;;  %8305 = vmatpush3.bf16.msk.msra.mxu0 %vm8304_vm13, %v14135_v39  ;;  %7950 = vmatprep.mubr.msk.f32.mxu0 %vm15107_vm2, %v14178_v29  ;;  %vm13687_vm13 = vmand %vm5671_vm12, %vm5688_vm11  ;;  %vm5675_vm11 = vcmp.ge.s32.totalorder %v15113_v59, %v13592_v56  ;;  %v5644_v8 = vpop.permute.xlu1 %5643 }
0x14fc   :  { %v7891_v26 = vpop.f32.mrb[139].mxu0  ;;  %8306 = vmatprep.subr.bf16.mxu0 %v8595_v35  ;;  %vm8313_vm15 = vmpackc.low %vm13692_vm14, %vm13687_vm13  ;;  %v8401_v38 = vld [vmem:[%s13838_s14] sm:$0xff]  }
0x14fd   :  { %vm5707_vm12 = vmand %vm5674_vm3, %vm5691_vm1  ;;  %vm5694_vm3 = vcmp.lt.s32.totalorder %v15117_v46, %v13595_v7  ;;  %vm5695_vm1 = vcmp.lt.s32.totalorder %v15118_v16, %v13595_v7  ;;  %v8402_v26 = vld [vmem:[%s13838_s14 + $0x8] sm:$0xff]   ;;  %s8597_s14 = smov [#allocation5]  }
0x14fe   :  { %vm5708_vm13 = vmand %vm5675_vm11, %vm5692_vm7  ;;  %vm5679_vm11 = vcmp.ge.s32.totalorder %v15121_v63, %v13592_v56  ;;  %vm5680_vm7 = vcmp.ge.s32.totalorder %v15122_v24, %v13592_v56  ;;  %v5647_v12 = vpop.permute.xlu0 %5646  ;;  %s6175_s26 = sshll.u32 %s8597_s14, 4  ;;  %s6176_s26 = int_to_ptr.vmem [resolvable:$true] %s6175_s26 }
0x14ff   :  { %8308 = vmatpush3.bf16.msk.msra.mxu0 %vm8307_vm8, %v14135_v39  ;;  %vm5706_vm8 = vmand %vm5673_vm6, %vm5690_vm0  ;;  %vm5677_vm6 = vcmp.ge.s32.totalorder %v15117_v46, %v13592_v56  ;;  %vm5678_vm0 = vcmp.ge.s32.totalorder %v15118_v16, %v13592_v56  ;;  %v8399_v56 = vld [vmem:[%s13836_s12 + $0x18] ss:$0 sps:$4 sm:$0xff]   ;;  %s8555_s27 = scalar_lea.vmem %s6176_s26, 64  ;;  %p8560_p9 = scmp.lt.s32.totalorder %s6176_s26, %s6176_s26 }
0x1500   :  { %8309 = vmatprep.subr.bf16.mxu0 %v8595_v35  ;;  %vm8316_vm9 = vmpackc.low %vm5707_vm12, %vm5706_vm8  ;;  %p8556_p8 = scmp.ne.s32.totalorder %s6176_s26, %s8555_s27  ;;  %p8561_p10 = scmp.lt.s32.totalorder %s8555_s27, %s8555_s27 }
0x1501   :  { %vm5709_vm14 = vmand %vm5676_vm10, %vm5693_vm4  ;;  %vm5696_vm10 = vcmp.lt.s32.totalorder %v15121_v63, %v13595_v7  ;;  %vm5697_vm4 = vcmp.lt.s32.totalorder %v15122_v24, %v13595_v7  ;;  %v5650_v24 = vpop.permute.xlu1 %5649  ;;  %v15148_v7 = vsub.s32 3, %v8780_v34 }
0x1502   :  { %vm5711_vm8 = vmand %vm5678_vm0, %vm5695_vm1  ;;  %vm15143_vm0 = vcmask 392192   ;;  %vm15144_vm1 = vcmask 523264   ;;  %p8562_p11 = por %p8561_p10, %p8560_p9 }
0x1503   :  { %8311 = vmatpush3.bf16.msk.msra.mxu0 %vm8310_vm5, %v14135_v39  ;;  %vm8319_vm5 = vmpackc.low %vm5709_vm14, %vm5708_vm13  ;;  %v5924_v15 = vrot.slane %v13600_v37, %v15148_v7 }
0x1504   :  { %8312 = vmatprep.subr.bf16.mxu0 %v8595_v35  ;;  %vm5713_vm13 = vmand %vm5680_vm7, %vm5697_vm4  ;;  %vm15149_vm7 = vcmask 64512   ;;  %vm6035_vm4 = vcmask 1046528   ;;  %p8563_p12 = pnand %p8562_p11, %p8556_p8 }
0x1507   :  { %8314 = vmatpush3.bf16.msk.msra.mxu0 %vm8313_vm15, %v14135_v39  ;;  %vm5710_vm15 = vmand %vm5677_vm6, %vm5694_vm3  ;;  %vm15142_vm6 = vcmask 261120   ;;  %vm5659_vm3 = vcmask 654336  }
0x1508   :  { %8315 = vmatprep.subr.bf16.mxu0 %v8595_v35  ;;  %vm8322_vm12 = vmpackc.low %vm5711_vm8, %vm5710_vm15  ;;  %vm5662_vm15 = vcmask 916480   ;;  %vm15145_vm8 = vcmask 785408  }
0x150b   :  { %8317 = vmatpush3.bf16.msk.msra.mxu0 %vm8316_vm9, %v14135_v39  ;;  %vm5712_vm9 = vmand %vm5679_vm11, %vm5696_vm10  ;;  %vm5936_vm11 = vcmask 195584   ;;  %vm5971_vm10 = vcmask 457728  }
0x150c   :  { %8318 = vmatprep.subr.bf16.mxu0 %v8595_v35  ;;  %vm8325_vm14 = vmpackc.low %vm5713_vm13, %vm5712_vm9  ;;  %vm6031_vm9 = vcmask 113664   ;;  %vm6167_vm13 = vcmask 125952  }
0x150f   :  { %8320 = vmatpush3.bf16.msk.msra.mxu0 %vm8319_vm5, %v14135_v39  ;;  %vm15141_vm5 = vcmask 130048  }
0x1510   :  { %8321 = vmatprep.subr.bf16.mxu0 %v8595_v35  ;;  %v5655_v62 = vsel %vm15141_vm5, %v11793_v31, %v5635_v58 }
0x1511   :  { %v5656_v59 = vsel %vm15142_vm6, %v5655_v62, %v5638_v0  ;;  %v15152_v0 = vsub.s32 5, %v8780_v34 }
0x1512   :  { %v5657_v46 = vsel %vm15143_vm0, %v5656_v59, %v5641_v36 }
0x1513   :  { %8323 = vmatpush3.bf16.msk.msra.mxu0 %vm8322_vm12, %v14135_v39  ;;  %v5658_v16 = vsel %vm15144_vm1, %v5657_v46, %v5644_v8  ;;  %vm15147_vm12 = vcmask 1043456   ;;  %v6025_v36 = vrot.slane %v13600_v37, %v15152_v0 }
0x1514   :  { %8324 = vmatprep.subr.bf16.mxu0 %v8595_v35  ;;  %v5660_v63 = vsel %vm5659_vm3, %v5658_v16, %v5647_v12  ;;  %v5976_v48 = vsel %vm15147_vm12, %v8399_v56, 0 }
0x1515   :  { %v5661_v57 = vsel %vm15145_vm8, %v5660_v63, %v5650_v24 }
0x1517   :  { %8326 = vmatpush3.bf16.msk.msra.mxu0 %vm8325_vm14, %v14135_v39  ;;  %v5653_v39 = vpop.permute.xlu0 %5652 }
0x1518   :  { %7965 = vmatprep.subr.bf16.mxu0 %v14178_v29  ;;  %v5663_v31 = vsel %vm5662_vm15, %v5661_v57, %v5653_v39 }
0x1519   :  { %v5747_v60 = vrot.slane %v5663_v31, 4  ;;  %v15153_v31 = vsub.s32 6, %v8780_v34 }
0x1567   :  { %v5933_v19 = vpop.permute.xlu0 %5932 }
0x15c9   :  { %v7489_v22 = vpop.f32.mrb[140].mxu0 }
0x15ca   :  { %v7490_v53 = vpop.f32.mrb[141].mxu0 }
0x15cb   :  { %v7491_v9 = vadd.f32 %v7490_v53, %v7489_v22  ;;  %v6098_v22 = vrot.slane %v13600_v37, %v15153_v31 }
0x15cd   :  { %v5502_v30 = vadd.f32 %v7491_v9, %v13655_v3  ;;  %v5627_v18 = vpop.f32.mrb[144].mxu0 }
0x15ce   :  { %v5749_v21 = vmul.f32 %v5747_v60, %v5627_v18  ;;  %v7904_v42 = vpop.f32.mrb[145].mxu0 }
0x15cf   :  { %v5572_v1 = vadd.f32 %v13586_v61, %v5502_v30  ;;  %v5630_v51 = vpop.f32.mrb[146].mxu0  ;;  %v8398_v61 = vld [vmem:[%s13836_s12 + $0x10] sm:$0xff]  }
0x15d0   :  { %v7905_v20 = vpop.f32.mrb[147].mxu0  ;;  %7951 = vmatmul.mubr.f32.vlgmr.msra.gmra.mrb[142].mxu0 %v5749_v21  ;;  %7958 = vmatpush3.bf16.msra.mxu1 %v8398_v61 }
0x15d1   :  { %v5579_v17 = vadd.f32 %v5578_v47, %v5572_v1  ;;  %7967 = vmatprep.mubr.msk.bf16.mxu0 %vm15107_vm2, %v14178_v29  ;;  %7959 = vmatprep.subr.bf16.mxu1 %v14178_v29 }
0x15d3   :  { %v5580_v52 = vmax.f32 %v5579_v17, 0.0 }
0x15d4   :  { %7960 = vmatpush3.bf16.msra.mxu1 %v5976_v48 }
0x15d5   :  { %5928 = vrot.lane.b32.xlu1 %v5580_v52, %s8596_s18  ;;  %7971 = vmatprep.subr.bf16.mxu1 %v14178_v29 }
0x1647   :  { %v5929_v28 = vpop.permute.xlu1 %5928 }
0x16a3   :  { %v5917_v4 = vpop.f32.mrb[142].mxu0 }
0x16a4   :  { %v5918_v44 = vadd.f32 %v5917_v4, %v13589_v32  ;;  %v7952_v55 = vpop.f32.mrb[143].mxu0  ;;  %v8400_v32 = vld [vmem:[%s13837_s13] sm:$0x7f]  }
0x16a5   :  { %v6037_v45 = vsel %vm6035_vm4, %v8400_v32, 0 }
0x16a6   :  { %v5925_v10 = vadd.f32 %v5924_v15, %v5918_v44  ;;  %7966 = vmatpush3.bf16.msra.mxu0 %v6037_v45 }
0x16a8   :  { %v5926_v49 = vmax.f32 %v5925_v10, 0.0 }
0x16aa   :  { %v5935_v5 = vsel %vm15149_vm7, %v5926_v49, %v5929_v28 }
0x16ab   :  { %v5937_v41 = vsel %vm5936_vm11, %v5935_v5, %v5933_v19 }
0x16ac   :  { %v5945_v33 = vpack.c.bf16 %v5937_v41, %v5937_v41 }
0x16ae   :  { %7962 = vmatmul.mubr.msk.bf16.vlgmr.msra.gmra.mrb[144].mxu1 %vm5971_vm10, %v5945_v33 }
0x16af   :  { %7979 = vmatprep.mubr.msk.bf16.mxu1 %vm15107_vm2, %v14178_v29  ;;  %7972 = vmatpush3.bf16.msra.mxu1 %v8401_v38  ;;  %vm15151_vm2 = vmmov %vm15147_vm12 }
0x16b0   :  { %7973 = vmatprep.subr.bf16.mxu1 %v14178_v29  ;;  %v6124_v58 = vsel %vm15151_vm2, %v8404_v14, 0 }
0x16b3   :  { %7974 = vmatpush3.bf16.msra.mxu1 %v8402_v26 }
0x16b4   :  { %7975 = vmatprep.subr.bf16.mxu1 %v14178_v29 }
0x16b7   :  { %7976 = vmatpush3.bf16.msra.mxu1 %v8403_v54 }
0x16b8   :  { %7977 = vmatprep.subr.bf16.mxu1 %v14178_v29 }
0x16bb   :  { %7978 = vmatpush3.bf16.msra.mxu1 %v6124_v58 }
0x1781   :  { %v6012_v40 = vpop.f32.mrb[144].mxu1 }
0x1782   :  { %v6013_v25 = vadd.f32 %v6012_v40, %v5949_v27  ;;  %v7963_v35 = vpop.f32.mrb[145].mxu1 }
0x1783   :  { %v6015_v6 = vpop.f32.mrb[146].mxu1 }
0x1784   :  { %v6018_v50 = vmax.f32 %v6013_v25, 0.0  ;;  %v7964_v3 = vpop.f32.mrb[147].mxu1 }
0x1786   :  { %v6021_v2 = vpack.c.bf16 %v6018_v50, %v6018_v50 }
0x1788   :  { %7968 = vmatmul.mubr.msk.bf16.vlgmr.msra.gmra.mrb[148].mxu0 %vm6031_vm9, %v6021_v2 }
0x185b   :  { %v6073_v62 = vpop.f32.mrb[148].mxu0 }
0x185c   :  { %v6074_v8 = vadd.f32 %v6073_v62, %v6025_v36  ;;  %v7969_v59 = vpop.f32.mrb[149].mxu0 }
0x185d   :  { %v6076_v12 = vpop.f32.mrb[150].mxu0 }
0x185e   :  { %v7057_v46 = vmul.f32 -1.442695, %v6074_v8  ;;  %v7970_v16 = vpop.f32.mrb[151].mxu0 }
0x1860   :  { %8519 = vpow2.f32 %v7057_v46 }
0x186a   :  { %v8520_v63 = vpop.eup %8519 }
0x186b   :  { %v6082_v24 = vadd.f32 1.0, %v8520_v63 }
0x186d   :  { %8521 = vrcp.f32 %v6082_v24 }
0x1877   :  { %v8522_v39 = vpop.eup %8521 }
0x1878   :  { %v6085_v13 = vmul.f32 %v8522_v39, %v5937_v41 }
0x187a   :  { %v6086_v29 = vadd.f32 %v6085_v13, %v5937_v41 }
0x187c   :  { %v6094_v57 = vpack.c.bf16 %v6086_v29, %v6086_v29 }
0x187e   :  { %7980 = vmatmul.mubr.msk.bf16.vlgmr.msra.gmra.mrb[148].mxu1 %vm5971_vm10, %v6094_v57 }
0x1951   :  { %v6160_v53 = vpop.f32.mrb[148].mxu1 }
0x1952   :  { %v6161_v9 = vadd.f32 %v6160_v53, %v6098_v22  ;;  %v7981_v60 = vpop.f32.mrb[149].mxu1 }
0x1953   :  { %v6163_v30 = vpop.f32.mrb[150].mxu1 }
0x1954   :  { %v6166_v18 = vmax.f32 %v6161_v9, 0.0  ;;  %v7982_v23 = vpop.f32.mrb[151].mxu1 }
0x1956   :  { %6168 = vst.msk [vmem:[#allocation5] sm:$0xf] %vm6167_vm13, %v6166_v18 }
0x1957   :  { %8566 = shalt.err (!%p8563_p12)
}
0x1958   :  { %s8567_s30 = scalar_lea.hbm %s13840_s16, 64 }
0x1959   :  { %p8568_p13 = scmp.ne.s32.totalorder %s13840_s16, %s8567_s30  ;;  %p8571_p0 = scmp.lt.u32.totalorder %s8567_s30, %s13840_s16 }
0x195b   :  { %p8573_p1 = pnand %p8571_p0, %p8568_p13 }
0x195d   :  { %8576 = shalt.err (!%p8573_p1)
}
0x195e   :  { %6178 = dma.vmem_to_hbm [thread:$0]  %s6176_s26, 64, %s13840_s16, [#allocation4]  }
0x195f   :  { %8579 = dma.done.wait [#allocation4], 64  }
0x1960   :  { %8580 = vsyncadd [#allocation4], 4294967232 }
0x1961   :  { %6182 = vsyncpa [#allocation3], 1 }
0x1962   :  { %6183 = vsyncpa [#allocation4], 1 }

</bundles_post_ra>
